<compile_context>
chip_gen: v7x
topology: tpu7x:2x2x1
jax: 0.10.0
libtpu: 0.0.40
codegen_flags: <defaults>
</compile_context>

<pallas_src>
import math
import jax
import jax.numpy as jnp
from jax.experimental import pallas as pl
from jax.experimental.pallas import tpu as pltpu

# ----------------------------- small synthetic config -----------------------------
B = 2
IN_CHANNELS = 4
SAMPLE = 16
GRID = 4                          # config.grid_size
CNN_DIM = 32                      # config.cnn_dim
NUM_HEADS = 8
HEAD_DIM = CNN_DIM // NUM_HEADS
CNN_FEATURE_NUM = 4               # 4 * GRID^2 tokens == (2*GRID)^2 (required by reshape)
FEATURE_CHANNELS = [8, 16, 24, 32]
FEATURE_SPATIAL = [16, 16, 8, 8]
TEXT_DIM = 64                     # config.text_encoder_dim
XATTN_DIM = 32                    # config.cross_attention_dim
SEQ = 8
VOCAB = 128
LN_EPS = 1e-5
NTOK = CNN_FEATURE_NUM * GRID * GRID   # 64 tokens
GG = GRID * GRID                       # 16 tokens / extractor


def _gelu(x):
    # TODO(synk): PyTorch nn.GELU default is exact (erf) GELU; tanh approximation is
    # used here since erf has no guaranteed Mosaic lowering (numeric diff ~1e-3).
    return jax.nn.gelu(x, approximate=True)


# --------------------- in-kernel helpers (traced inside the fused kernel) ---------------------
def _extract_tokens(feat, w1, b1, w3s, pool):
    """conv1x1(+bias) -> GELU -> conv3x3(pad=1, no bias) -> AdaptiveAvgPool2d(GRID).

    feat: (HW, Cin) channels-last feature map (one batch element).
    w3s:  (9, CNN_DIM, CNN_DIM) 3x3 weight stacked by tap (dy, dx) row-major.
    pool: (9*GG, HW) pre-shifted/masked pooling matrices (one per tap),
          so pool @ gelu(conv1x1(feat)) gives the pooled shifted activations
          for all 9 taps at once; the conv then reduces to 9 tiny matmuls.
    Returns (GG, CNN_DIM) tokens in torch's row-major (i, j) cell order.
    """
    y = _gelu(jnp.dot(feat, w1, preferred_element_type=jnp.float32) + b1)   # (HW, Cd)
    t = jnp.dot(pool, y, preferred_element_type=jnp.float32)                # (9*GG, Cd)
    out = jnp.zeros((GG, CNN_DIM), jnp.float32)
    for kk in range(9):                                                     # sublane-aligned slices
        out = out + jnp.dot(t[kk * GG:(kk + 1) * GG, :], w3s[kk],
                            preferred_element_type=jnp.float32)
    return out                                                              # (GG, Cd)


def _token_mixer(x, lnw, lnb, wq, bq, wk, bk, wv, bv, hmask, wproj, bproj, gamma):
    """x + gamma * Attention(LayerNorm(x)); heads handled with channel masks."""
    # LayerNorm (eps=1e-5, biased variance -- matches torch)
    mu = jnp.mean(x, axis=-1, keepdims=True)
    var = jnp.mean((x - mu) ** 2, axis=-1, keepdims=True)
    xn = (x - mu) * jax.lax.rsqrt(var + LN_EPS)
    xn = xn * lnw + lnb

    # q/k/v projections (qkv_bias=True); sdpa scale already folded into wq/bq.
    q = jnp.dot(xn, wq, preferred_element_type=jnp.float32) + bq            # (N, C)
    k = jnp.dot(xn, wk, preferred_element_type=jnp.float32) + bk
    v = jnp.dot(xn, wv, preferred_element_type=jnp.float32) + bv

    # Per-head masked K/V: heads occupy disjoint channel groups, so masking K
    # makes the full-C contraction equal the per-head head_dim contraction.
    qb = jnp.broadcast_to(q[None], (NUM_HEADS, NTOK, CNN_DIM))              # (H, N, C)
    kh = k[None] * hmask                                                    # (H, N, C)
    vh = v[None] * hmask                                                    # (H, N, C)

    s = jnp.einsum('hnd,hmd->hnm', qb, kh, preferred_element_type=jnp.float32)   # (H, N, N)
    s = s - jnp.max(s, axis=-1, keepdims=True)
    p = jnp.exp(s)
    p = p * pl.reciprocal(jnp.sum(p, axis=-1, keepdims=True), approx=True)
    pv = jnp.einsum('hnm,hmd->hnd', p, vh, preferred_element_type=jnp.float32)   # (H, N, C)

    # Each head's output is nonzero only in its own channels -> summing over
    # heads reconstructs torch's transpose(1,2).reshape(B,N,C) concat exactly.
    ctx = jnp.sum(pv, axis=0)                                               # (N, C)
    proj = jnp.dot(ctx, wproj, preferred_element_type=jnp.float32) + bproj  # (N, C)

    # TODO(synk): DropPath(0.2) is stochastic depth in training mode; identity at inference.
    return x + gamma * proj


# ----------------------------- single fused kernel -----------------------------
def _fused_kernel(*refs):
    (text_ref, f0_ref, f1_ref, f2_ref, f3_ref,
     mw1, mb1, mw2, mb2,
     e0w1, e0b1, e0w3,
     e1w1, e1b1, e1w3,
     e2w1, e2b1, e2w3,
     e3w1, e3b1, e3w3,
     pool16, pool8,
     lnw, lnb, wq, bq, wk, bk, wv, bv, hmask, wproj, bproj, gamma,
     h_out, hw_out) = refs

    # ---- down_proj Mlp(text_dim -> xattn -> xattn) on the (stubbed) text states ----
    t = text_ref[0]                                                         # (SEQ, TEXT_DIM)
    hmid = _gelu(jnp.dot(t, mw1[...], preferred_element_type=jnp.float32) + mb1[...])
    h = jnp.dot(hmid, mw2[...], preferred_element_type=jnp.float32) + mb2[...]
    h_out[...] = h.reshape(1, SEQ, XATTN_DIM).astype(h_out.dtype)

    # ---- 4 cnn_extractors -> (64, 32) tokens, kept VMEM-resident ----
    feat_refs = (f0_ref, f1_ref, f2_ref, f3_ref)
    ext = ((e0w1, e0b1, e0w3), (e1w1, e1b1, e1w3),
           (e2w1, e2b1, e2w3), (e3w1, e3b1, e3w3))
    pool_for = (pool16, pool16, pool8, pool8)
    toks = []
    for i in range(CNN_FEATURE_NUM):
        w1r, b1r, w3r = ext[i]
        toks.append(_extract_tokens(feat_refs[i][0], w1r[...], b1r[...],
                                    w3r[...], pool_for[i][...]))
    x = jnp.concatenate(toks, axis=0)                                       # (NTOK, CNN_DIM)

    # ---- token mixer: x + gamma * MHA(LayerNorm(x)) ----
    out = _token_mixer(x, lnw[...], lnb[...], wq[...], bq[...], wk[...], bk[...],
                       wv[...], bv[...], hmask[...], wproj[...], bproj[...], gamma[...])
    hw_out[...] = out.reshape(1, NTOK, CNN_DIM).astype(hw_out.dtype)


# ----------------------------- wrapper around the one pallas_call -----------------------------
def _shifted_pool_matrix(Hs, Ws, G):
    """(9*G*G, Hs*Ws) matrix: pooled value of the (dy,dx)-shifted, zero-padded map
    for every 3x3 tap and every output cell.  Exact AdaptiveAvgPool2d(G) here
    since Hs, Ws are multiples of G; cell order matches torch's permute/reshape."""
    ph, pw = Hs // G, Ws // G
    idx = jnp.arange(Hs * Ws)
    hh, ww = idx // Ws, idx % Ws
    cell = (hh // ph) * G + (ww // pw)
    cell_onehot = (cell[None, :] == jnp.arange(G * G)[:, None]).astype(jnp.float32) / float(ph * pw)
    mats = []
    for dy in (-1, 0, 1):
        for dx in (-1, 0, 1):
            sh, sw = hh + dy, ww + dx
            valid = ((sh >= 0) & (sh < Hs) & (sw >= 0) & (sw < Ws)).astype(jnp.float32)
            src = jnp.clip(sh, 0, Hs - 1) * Ws + jnp.clip(sw, 0, Ws - 1)
            scatter = (src[:, None] == idx[None, :]).astype(jnp.float32)    # (HW, HW)
            mats.append(jnp.dot(cell_onehot * valid[None, :], scatter))     # (GG, HW)
    return jnp.concatenate(mats, axis=0)                                    # (9*GG, HW)


def fused_forward(params, feats_nchw, h_text):
    Bb = h_text.shape[0]
    C = CNN_DIM
    scale = 1.0 / math.sqrt(HEAD_DIM)                                       # sdpa default scale

    # --- wrapper-side weight prep (layout plumbing only) ---
    wq = params['w_qkv'][:, 0 * C:1 * C] * scale
    wk = params['w_qkv'][:, 1 * C:2 * C]
    wv = params['w_qkv'][:, 2 * C:3 * C]
    bq = params['b_qkv'][:, 0 * C:1 * C] * scale
    bk = params['b_qkv'][:, 1 * C:2 * C]
    bv = params['b_qkv'][:, 2 * C:3 * C]
    head_mask = (jnp.arange(C)[None, :] // HEAD_DIM ==
                 jnp.arange(NUM_HEADS)[:, None]).astype(jnp.float32)[:, None, :]   # (H,1,C)
    pool16 = _shifted_pool_matrix(16, 16, GRID)
    pool8 = _shifted_pool_matrix(8, 8, GRID)

    in_arrays, in_specs = [], []

    def add(arr, spec):
        in_arrays.append(arr)
        in_specs.append(spec)

    def add_weight(arr):
        add(arr, pl.BlockSpec(arr.shape, lambda b, nd=arr.ndim: (0,) * nd))

    # per-batch inputs
    add(h_text, pl.BlockSpec((1, SEQ, TEXT_DIM), lambda b: (b, 0, 0)))
    for i in range(CNN_FEATURE_NUM):
        Hs, Cin = FEATURE_SPATIAL[i], FEATURE_CHANNELS[i]
        f = jnp.transpose(feats_nchw[i], (0, 2, 3, 1)).reshape(Bb, Hs * Hs, Cin)   # NCHW -> (B, HW, C)
        add(f, pl.BlockSpec((1, Hs * Hs, Cin), lambda b: (b, 0, 0)))

    # weights (constant index maps)
    for nm in ('mlp_w1', 'mlp_b1', 'mlp_w2', 'mlp_b2'):
        add_weight(params[nm])
    for i in range(CNN_FEATURE_NUM):
        ep = params['extractors'][i]
        add_weight(ep['w1'])
        add_weight(ep['b1'])
        add_weight(ep['w3'].reshape(9, CNN_DIM, CNN_DIM))                   # per-tap 3x3 weight
    add_weight(pool16)
    add_weight(pool8)
    for arr in (params['ln_w'], params['ln_b'], wq, bq, wk, bk, wv, bv,
                head_mask, params['w_proj'], params['b_proj'], params['gamma']):
        add_weight(arr)

    h, cnn_tokens = pl.pallas_call(
        _fused_kernel,
        out_shape=(jax.ShapeDtypeStruct((Bb, SEQ, XATTN_DIM), jnp.float32),
                   jax.ShapeDtypeStruct((Bb, NTOK, CNN_DIM), jnp.float32)),
        grid=(Bb,),
        in_specs=in_specs,
        out_specs=(pl.BlockSpec((1, SEQ, XATTN_DIM), lambda b: (b, 0, 0)),
                   pl.BlockSpec((1, NTOK, CNN_DIM), lambda b: (b, 0, 0))),
        compiler_params=pltpu.CompilerParams(
            dimension_semantics=("parallel",)),   # 1 batch element / TensorCore
    )(*in_arrays)
    return h, cnn_tokens


# ----------------------------- parameters (deterministic) -----------------------------
def init_params(key):
    ks = jax.random.split(key, 16)
    p = {}
    # TODO(synk): T5EncoderModel text encoder is an external pretrained model; replaced
    # by a deterministic embedding-table lookup stub.
    p['text_embed_table'] = jax.random.normal(ks[0], (VOCAB, TEXT_DIM), jnp.float32) * 0.1
    # down_proj = Mlp(text_encoder_dim -> cross_attention_dim -> cross_attention_dim)
    p['mlp_w1'] = jax.random.normal(ks[1], (TEXT_DIM, XATTN_DIM), jnp.float32) * 0.05
    p['mlp_b1'] = jax.random.normal(ks[2], (1, XATTN_DIM), jnp.float32) * 0.01
    p['mlp_w2'] = jax.random.normal(ks[3], (XATTN_DIM, XATTN_DIM), jnp.float32) * 0.05
    p['mlp_b2'] = jax.random.normal(ks[4], (1, XATTN_DIM), jnp.float32) * 0.01
    # cnn_extractors[i]: Conv2d(Cin->cnn_dim,1x1,bias) / GELU / Conv2d(cnn_dim,3x3,no bias) / pool
    p['extractors'] = []
    for i in range(CNN_FEATURE_NUM):
        kk = jax.random.split(ks[5 + i], 3)
        p['extractors'].append({
            'w1': jax.random.normal(kk[0], (FEATURE_CHANNELS[i], CNN_DIM), jnp.float32) * 0.1,
            'b1': jax.random.normal(kk[1], (1, CNN_DIM), jnp.float32) * 0.01,
            'w3': jax.random.normal(kk[2], (3, 3, CNN_DIM, CNN_DIM), jnp.float32) * 0.05,
        })
    # layer_norm / gamma (module-default init) and Attention weights
    p['ln_w'] = jnp.ones((1, CNN_DIM), jnp.float32)
    p['ln_b'] = jnp.zeros((1, CNN_DIM), jnp.float32)
    p['gamma'] = jnp.ones((1, CNN_DIM), jnp.float32)          # nn.Parameter(torch.ones(cnn_dim))
    p['w_qkv'] = jax.random.normal(ks[9], (CNN_DIM, 3 * CNN_DIM), jnp.float32) * 0.05
    p['b_qkv'] = jax.random.normal(ks[10], (1, 3 * CNN_DIM), jnp.float32) * 0.01
    p['w_proj'] = jax.random.normal(ks[11], (CNN_DIM, CNN_DIM), jnp.float32) * 0.05
    p['b_proj'] = jax.random.normal(ks[12], (1, CNN_DIM), jnp.float32) * 0.01
    # TODO(synk): timm cnn_feature_model backbone is an external pretrained model; its
    # multi-scale NCHW feature maps are stubbed with deterministic random arrays.
    p['backbone_features'] = [
        jax.random.normal(ks[13 + (i % 3)], (B, FEATURE_CHANNELS[i],
                                             FEATURE_SPATIAL[i], FEATURE_SPATIAL[i]),
                          jnp.float32) * (0.5 + 0.1 * i)
        for i in range(CNN_FEATURE_NUM)
    ]
    return p


# ----------------------------- forward (mirrors the reference) -----------------------------
def unetfeats_forward(params, images, tokens):
    bsz = images.shape[0]
    # TODO(synk): h = self.text_encoder(tokens).last_hidden_state — external T5; stub lookup.
    h_text = params['text_embed_table'][tokens]                             # (B, SEQ, TEXT_DIM)
    # TODO(synk): feature_list = self.cnn_feature_model(images) — external backbone stubbed.
    feature_list = params['backbone_features']

    h, cnn_tokens = fused_forward(params, feature_list, h_text)             # one pallas_call
    cnn_tokens = cnn_tokens.reshape(bsz, GRID * 2, GRID * 2, CNN_DIM)
    highway_embeds = jnp.transpose(cnn_tokens, (0, 3, 1, 2))                # back to NCHW
    # TODO(synk): self.vision_highway = Adapter() is an undefined external class; identity here.
    # TODO(synk): UNet2DConditionModel denoiser (and the trailing F.sigmoid on its sample)
    # is an external pretrained model with no Pallas equivalent; returning its conditioning
    # inputs (cross-attn states + highway residuals) instead.
    return h, highway_embeds


if __name__ == "__main__":
    key = jax.random.PRNGKey(0)
    kp, ki, kt = jax.random.split(key, 3)
    params = init_params(kp)
    images = jax.random.normal(ki, (B, IN_CHANNELS, SAMPLE, SAMPLE), jnp.float32)
    tokens = jax.random.randint(kt, (B, SEQ), 0, VOCAB, dtype=jnp.int32)

    fwd = jax.jit(unetfeats_forward)
    h, highway = fwd(params, images, tokens)
    jax.block_until_ready((h, highway))
    assert h.shape == (B, SEQ, XATTN_DIM) and h.dtype == jnp.float32
    assert highway.shape == (B, CNN_DIM, GRID * 2, GRID * 2) and highway.dtype == jnp.float32
    assert bool(jnp.all(jnp.isfinite(h))) and bool(jnp.all(jnp.isfinite(highway)))
    print("KERNEL_OK")
</pallas_src>

<mosaic_0001>
module attributes {stable_mosaic.version = 11 : i64} {
  func.func @_fused_kernel(%arg0: i32, %arg1: memref<1x8x64xf32, #tpu.memory_space<vmem>>, %arg2: memref<1x256x8xf32, #tpu.memory_space<vmem>>, %arg3: memref<1x256x16xf32, #tpu.memory_space<vmem>>, %arg4: memref<1x64x24xf32, #tpu.memory_space<vmem>>, %arg5: memref<1x64x32xf32, #tpu.memory_space<vmem>>, %arg6: memref<64x32xf32, #tpu.memory_space<vmem>>, %arg7: memref<1x32xf32, #tpu.memory_space<vmem>>, %arg8: memref<32x32xf32, #tpu.memory_space<vmem>>, %arg9: memref<1x32xf32, #tpu.memory_space<vmem>>, %arg10: memref<8x32xf32, #tpu.memory_space<vmem>>, %arg11: memref<1x32xf32, #tpu.memory_space<vmem>>, %arg12: memref<9x32x32xf32, #tpu.memory_space<vmem>>, %arg13: memref<16x32xf32, #tpu.memory_space<vmem>>, %arg14: memref<1x32xf32, #tpu.memory_space<vmem>>, %arg15: memref<9x32x32xf32, #tpu.memory_space<vmem>>, %arg16: memref<24x32xf32, #tpu.memory_space<vmem>>, %arg17: memref<1x32xf32, #tpu.memory_space<vmem>>, %arg18: memref<9x32x32xf32, #tpu.memory_space<vmem>>, %arg19: memref<32x32xf32, #tpu.memory_space<vmem>>, %arg20: memref<1x32xf32, #tpu.memory_space<vmem>>, %arg21: memref<9x32x32xf32, #tpu.memory_space<vmem>>, %arg22: memref<144x256xf32, #tpu.memory_space<vmem>>, %arg23: memref<144x64xf32, #tpu.memory_space<vmem>>, %arg24: memref<1x32xf32, #tpu.memory_space<vmem>>, %arg25: memref<1x32xf32, #tpu.memory_space<vmem>>, %arg26: memref<32x32xf32, #tpu.memory_space<vmem>>, %arg27: memref<1x32xf32, #tpu.memory_space<vmem>>, %arg28: memref<32x32xf32, #tpu.memory_space<vmem>>, %arg29: memref<1x32xf32, #tpu.memory_space<vmem>>, %arg30: memref<32x32xf32, #tpu.memory_space<vmem>>, %arg31: memref<1x32xf32, #tpu.memory_space<vmem>>, %arg32: memref<8x1x32xf32, #tpu.memory_space<vmem>>, %arg33: memref<32x32xf32, #tpu.memory_space<vmem>>, %arg34: memref<1x32xf32, #tpu.memory_space<vmem>>, %arg35: memref<1x32xf32, #tpu.memory_space<vmem>>, %arg36: memref<1x8x32xf32, #tpu.memory_space<vmem>>, %arg37: memref<1x64x32xf32, #tpu.memory_space<vmem>>) attributes {dimension_semantics = [#tpu.dimension_semantics<parallel>], iteration_bounds = array<i64: 2>, scalar_prefetch = 0 : i64, scratch_operands = 0 : i64, tpu.core_type = #tpu.core_type<tc>, window_params = [{transform_indices = @transform_0, window_bounds = array<i64: 1, 8, 64>}, {transform_indices = @transform_1, window_bounds = array<i64: 1, 256, 8>}, {transform_indices = @transform_2, window_bounds = array<i64: 1, 256, 16>}, {transform_indices = @transform_3, window_bounds = array<i64: 1, 64, 24>}, {transform_indices = @transform_4, window_bounds = array<i64: 1, 64, 32>}, {pipeline_mode = #tpu.pipeline_mode<synchronous>, transform_indices = @transform_5, window_bounds = array<i64: 64, 32>}, {pipeline_mode = #tpu.pipeline_mode<synchronous>, transform_indices = @transform_6, window_bounds = array<i64: 1, 32>}, {pipeline_mode = #tpu.pipeline_mode<synchronous>, transform_indices = @transform_7, window_bounds = array<i64: 32, 32>}, {pipeline_mode = #tpu.pipeline_mode<synchronous>, transform_indices = @transform_8, window_bounds = array<i64: 1, 32>}, {pipeline_mode = #tpu.pipeline_mode<synchronous>, transform_indices = @transform_9, window_bounds = array<i64: 8, 32>}, {pipeline_mode = #tpu.pipeline_mode<synchronous>, transform_indices = @transform_10, window_bounds = array<i64: 1, 32>}, {pipeline_mode = #tpu.pipeline_mode<synchronous>, transform_indices = @transform_11, window_bounds = array<i64: 9, 32, 32>}, {pipeline_mode = #tpu.pipeline_mode<synchronous>, transform_indices = @transform_12, window_bounds = array<i64: 16, 32>}, {pipeline_mode = #tpu.pipeline_mode<synchronous>, transform_indices = @transform_13, window_bounds = array<i64: 1, 32>}, {pipeline_mode = #tpu.pipeline_mode<synchronous>, transform_indices = @transform_14, window_bounds = array<i64: 9, 32, 32>}, {pipeline_mode = #tpu.pipeline_mode<synchronous>, transform_indices = @transform_15, window_bounds = array<i64: 24, 32>}, {pipeline_mode = #tpu.pipeline_mode<synchronous>, transform_indices = @transform_16, window_bounds = array<i64: 1, 32>}, {pipeline_mode = #tpu.pipeline_mode<synchronous>, transform_indices = @transform_17, window_bounds = array<i64: 9, 32, 32>}, {pipeline_mode = #tpu.pipeline_mode<synchronous>, transform_indices = @transform_18, window_bounds = array<i64: 32, 32>}, {pipeline_mode = #tpu.pipeline_mode<synchronous>, transform_indices = @transform_19, window_bounds = array<i64: 1, 32>}, {pipeline_mode = #tpu.pipeline_mode<synchronous>, transform_indices = @transform_20, window_bounds = array<i64: 9, 32, 32>}, {pipeline_mode = #tpu.pipeline_mode<synchronous>, transform_indices = @transform_21, window_bounds = array<i64: 144, 256>}, {pipeline_mode = #tpu.pipeline_mode<synchronous>, transform_indices = @transform_22, window_bounds = array<i64: 144, 64>}, {pipeline_mode = #tpu.pipeline_mode<synchronous>, transform_indices = @transform_23, window_bounds = array<i64: 1, 32>}, {pipeline_mode = #tpu.pipeline_mode<synchronous>, transform_indices = @transform_24, window_bounds = array<i64: 1, 32>}, {pipeline_mode = #tpu.pipeline_mode<synchronous>, transform_indices = @transform_25, window_bounds = array<i64: 32, 32>}, {pipeline_mode = #tpu.pipeline_mode<synchronous>, transform_indices = @transform_26, window_bounds = array<i64: 1, 32>}, {pipeline_mode = #tpu.pipeline_mode<synchronous>, transform_indices = @transform_27, window_bounds = array<i64: 32, 32>}, {pipeline_mode = #tpu.pipeline_mode<synchronous>, transform_indices = @transform_28, window_bounds = array<i64: 1, 32>}, {pipeline_mode = #tpu.pipeline_mode<synchronous>, transform_indices = @transform_29, window_bounds = array<i64: 32, 32>}, {pipeline_mode = #tpu.pipeline_mode<synchronous>, transform_indices = @transform_30, window_bounds = array<i64: 1, 32>}, {pipeline_mode = #tpu.pipeline_mode<synchronous>, transform_indices = @transform_31, window_bounds = array<i64: 8, 1, 32>}, {pipeline_mode = #tpu.pipeline_mode<synchronous>, transform_indices = @transform_32, window_bounds = array<i64: 32, 32>}, {pipeline_mode = #tpu.pipeline_mode<synchronous>, transform_indices = @transform_33, window_bounds = array<i64: 1, 32>}, {pipeline_mode = #tpu.pipeline_mode<synchronous>, transform_indices = @transform_34, window_bounds = array<i64: 1, 32>}, {transform_indices = @transform_35, window_bounds = array<i64: 1, 8, 32>}, {transform_indices = @transform_36, window_bounds = array<i64: 1, 64, 32>}]} {
    %c0 = arith.constant 0 : index
    %c0_0 = arith.constant 0 : index
    %c0_1 = arith.constant 0 : index
    %0 = vector.load %arg1[%c0, %c0_0, %c0_1] : memref<1x8x64xf32, #tpu.memory_space<vmem>>, vector<1x8x64xf32>
    %1 = vector.shape_cast %0 : vector<1x8x64xf32> to vector<8x64xf32>
    %c0_2 = arith.constant 0 : index
    %c0_3 = arith.constant 0 : index
    %2 = vector.load %arg6[%c0_2, %c0_3] : memref<64x32xf32, #tpu.memory_space<vmem>>, vector<64x32xf32>
    %cst = arith.constant dense<0.000000e+00> : vector<8x32xf32>
    %3 = tpu.matmul %1, %2, %cst {dimension_numbers = #tpu.dot_dimension_numbers<[1], [0], [0], [1], [0, 0, 1, 1], [], []>} : vector<8x64xf32>, vector<64x32xf32>, vector<8x32xf32> -> vector<8x32xf32>
    %c0_4 = arith.constant 0 : index
    %c0_5 = arith.constant 0 : index
    %4 = vector.load %arg7[%c0_4, %c0_5] : memref<1x32xf32, #tpu.memory_space<vmem>>, vector<1x32xf32>
    %5 = vector.broadcast %4 : vector<1x32xf32> to vector<8x32xf32>
    %6 = arith.addf %3, %5 : vector<8x32xf32>
    %7 = arith.mulf %6, %6 : vector<8x32xf32>
    %8 = arith.mulf %6, %7 : vector<8x32xf32>
    %cst_6 = arith.constant 4.471500e-02 : f32
    %9 = vector.broadcast %cst_6 : f32 to vector<8x32xf32>
    %10 = arith.mulf %9, %8 : vector<8x32xf32>
    %11 = arith.addf %6, %10 : vector<8x32xf32>
    %cst_7 = arith.constant 0.797884583 : f32
    %12 = vector.broadcast %cst_7 : f32 to vector<8x32xf32>
    %13 = arith.mulf %12, %11 : vector<8x32xf32>
    %14 = math.tanh %13 : vector<8x32xf32>
    %cst_8 = arith.constant 1.000000e+00 : f32
    %15 = vector.broadcast %cst_8 : f32 to vector<8x32xf32>
    %16 = arith.addf %15, %14 : vector<8x32xf32>
    %cst_9 = arith.constant 5.000000e-01 : f32
    %17 = vector.broadcast %cst_9 : f32 to vector<8x32xf32>
    %18 = arith.mulf %17, %16 : vector<8x32xf32>
    %19 = arith.mulf %6, %18 : vector<8x32xf32>
    %c0_10 = arith.constant 0 : index
    %c0_11 = arith.constant 0 : index
    %20 = vector.load %arg8[%c0_10, %c0_11] : memref<32x32xf32, #tpu.memory_space<vmem>>, vector<32x32xf32>
    %cst_12 = arith.constant dense<0.000000e+00> : vector<8x32xf32>
    %21 = tpu.matmul %19, %20, %cst_12 {dimension_numbers = #tpu.dot_dimension_numbers<[1], [0], [0], [1], [0, 0, 1, 1], [], []>} : vector<8x32xf32>, vector<32x32xf32>, vector<8x32xf32> -> vector<8x32xf32>
    %c0_13 = arith.constant 0 : index
    %c0_14 = arith.constant 0 : index
    %22 = vector.load %arg9[%c0_13, %c0_14] : memref<1x32xf32, #tpu.memory_space<vmem>>, vector<1x32xf32>
    %23 = vector.broadcast %22 : vector<1x32xf32> to vector<8x32xf32>
    %24 = arith.addf %21, %23 : vector<8x32xf32>
    %25 = vector.shape_cast %24 : vector<8x32xf32> to vector<1x8x32xf32>
    %c0_15 = arith.constant 0 : index
    %c0_16 = arith.constant 0 : index
    %c0_17 = arith.constant 0 : index
    %26 = vector.load %arg36[%c0_15, %c0_16, %c0_17] : memref<1x8x32xf32, #tpu.memory_space<vmem>>, vector<1x8x32xf32>
    tpu.vector_store %arg36[%c0_15, %c0_16, %c0_17], %25 {strides = array<i32>} : memref<1x8x32xf32, #tpu.memory_space<vmem>>, vector<1x8x32xf32>,
    %c0_18 = arith.constant 0 : index
    %c0_19 = arith.constant 0 : index
    %c0_20 = arith.constant 0 : index
    %27 = vector.load %arg2[%c0_18, %c0_19, %c0_20] : memref<1x256x8xf32, #tpu.memory_space<vmem>>, vector<1x256x8xf32>
    %28 = vector.shape_cast %27 : vector<1x256x8xf32> to vector<256x8xf32>
    %c0_21 = arith.constant 0 : index
    %c0_22 = arith.constant 0 : index
    %29 = vector.load %arg10[%c0_21, %c0_22] : memref<8x32xf32, #tpu.memory_space<vmem>>, vector<8x32xf32>
    %c0_23 = arith.constant 0 : index
    %c0_24 = arith.constant 0 : index
    %30 = vector.load %arg11[%c0_23, %c0_24] : memref<1x32xf32, #tpu.memory_space<vmem>>, vector<1x32xf32>
    %c0_25 = arith.constant 0 : index
    %c0_26 = arith.constant 0 : index
    %c0_27 = arith.constant 0 : index
    %31 = vector.load %arg12[%c0_25, %c0_26, %c0_27] : memref<9x32x32xf32, #tpu.memory_space<vmem>>, vector<9x32x32xf32>
    %c0_28 = arith.constant 0 : index
    %c0_29 = arith.constant 0 : index
    %32 = vector.load %arg22[%c0_28, %c0_29] : memref<144x256xf32, #tpu.memory_space<vmem>>, vector<144x256xf32>
    %cst_30 = arith.constant dense<0.000000e+00> : vector<256x32xf32>
    %33 = tpu.matmul %28, %29, %cst_30 {dimension_numbers = #tpu.dot_dimension_numbers<[1], [0], [0], [1], [0, 0, 1, 1], [], []>} : vector<256x8xf32>, vector<8x32xf32>, vector<256x32xf32> -> vector<256x32xf32>
    %34 = vector.broadcast %30 : vector<1x32xf32> to vector<256x32xf32>
    %35 = arith.addf %33, %34 : vector<256x32xf32>
    %36 = arith.mulf %35, %35 : vector<256x32xf32>
    %37 = arith.mulf %35, %36 : vector<256x32xf32>
    %cst_31 = arith.constant 4.471500e-02 : f32
    %38 = vector.broadcast %cst_31 : f32 to vector<256x32xf32>
    %39 = arith.mulf %38, %37 : vector<256x32xf32>
    %40 = arith.addf %35, %39 : vector<256x32xf32>
    %cst_32 = arith.constant 0.797884583 : f32
    %41 = vector.broadcast %cst_32 : f32 to vector<256x32xf32>
    %42 = arith.mulf %41, %40 : vector<256x32xf32>
    %43 = math.tanh %42 : vector<256x32xf32>
    %cst_33 = arith.constant 1.000000e+00 : f32
    %44 = vector.broadcast %cst_33 : f32 to vector<256x32xf32>
    %45 = arith.addf %44, %43 : vector<256x32xf32>
    %cst_34 = arith.constant 5.000000e-01 : f32
    %46 = vector.broadcast %cst_34 : f32 to vector<256x32xf32>
    %47 = arith.mulf %46, %45 : vector<256x32xf32>
    %48 = arith.mulf %35, %47 : vector<256x32xf32>
    %cst_35 = arith.constant dense<0.000000e+00> : vector<144x32xf32>
    %49 = tpu.matmul %32, %48, %cst_35 {dimension_numbers = #tpu.dot_dimension_numbers<[1], [0], [0], [1], [0, 0, 1, 1], [], []>} : vector<144x256xf32>, vector<256x32xf32>, vector<144x32xf32> -> vector<144x32xf32>
    %cst_36 = arith.constant 0.000000e+00 : f32
    %50 = vector.broadcast %cst_36 : f32 to vector<16x32xf32>
    %51 = vector.extract_strided_slice %49 {offsets = [0, 0], sizes = [16, 32], strides = [1, 1]} : vector<144x32xf32> to vector<16x32xf32>
    %52 = vector.extract_strided_slice %31 {offsets = [0, 0, 0], sizes = [1, 32, 32], strides = [1, 1, 1]} : vector<9x32x32xf32> to vector<1x32x32xf32>
    %53 = vector.shape_cast %52 : vector<1x32x32xf32> to vector<32x32xf32>
    %cst_37 = arith.constant dense<0.000000e+00> : vector<16x32xf32>
    %54 = tpu.matmul %51, %53, %cst_37 {dimension_numbers = #tpu.dot_dimension_numbers<[1], [0], [0], [1], [0, 0, 1, 1], [], []>} : vector<16x32xf32>, vector<32x32xf32>, vector<16x32xf32> -> vector<16x32xf32>
    %55 = arith.addf %50, %54 : vector<16x32xf32>
    %56 = vector.extract_strided_slice %49 {offsets = [16, 0], sizes = [16, 32], strides = [1, 1]} : vector<144x32xf32> to vector<16x32xf32>
    %57 = vector.extract_strided_slice %31 {offsets = [1, 0, 0], sizes = [1, 32, 32], strides = [1, 1, 1]} : vector<9x32x32xf32> to vector<1x32x32xf32>
    %58 = vector.shape_cast %57 : vector<1x32x32xf32> to vector<32x32xf32>
    %cst_38 = arith.constant dense<0.000000e+00> : vector<16x32xf32>
    %59 = tpu.matmul %56, %58, %cst_38 {dimension_numbers = #tpu.dot_dimension_numbers<[1], [0], [0], [1], [0, 0, 1, 1], [], []>} : vector<16x32xf32>, vector<32x32xf32>, vector<16x32xf32> -> vector<16x32xf32>
    %60 = arith.addf %55, %59 : vector<16x32xf32>
    %61 = vector.extract_strided_slice %49 {offsets = [32, 0], sizes = [16, 32], strides = [1, 1]} : vector<144x32xf32> to vector<16x32xf32>
    %62 = vector.extract_strided_slice %31 {offsets = [2, 0, 0], sizes = [1, 32, 32], strides = [1, 1, 1]} : vector<9x32x32xf32> to vector<1x32x32xf32>
    %63 = vector.shape_cast %62 : vector<1x32x32xf32> to vector<32x32xf32>
    %cst_39 = arith.constant dense<0.000000e+00> : vector<16x32xf32>
    %64 = tpu.matmul %61, %63, %cst_39 {dimension_numbers = #tpu.dot_dimension_numbers<[1], [0], [0], [1], [0, 0, 1, 1], [], []>} : vector<16x32xf32>, vector<32x32xf32>, vector<16x32xf32> -> vector<16x32xf32>
    %65 = arith.addf %60, %64 : vector<16x32xf32>
    %66 = vector.extract_strided_slice %49 {offsets = [48, 0], sizes = [16, 32], strides = [1, 1]} : vector<144x32xf32> to vector<16x32xf32>
    %67 = vector.extract_strided_slice %31 {offsets = [3, 0, 0], sizes = [1, 32, 32], strides = [1, 1, 1]} : vector<9x32x32xf32> to vector<1x32x32xf32>
    %68 = vector.shape_cast %67 : vector<1x32x32xf32> to vector<32x32xf32>
    %cst_40 = arith.constant dense<0.000000e+00> : vector<16x32xf32>
    %69 = tpu.matmul %66, %68, %cst_40 {dimension_numbers = #tpu.dot_dimension_numbers<[1], [0], [0], [1], [0, 0, 1, 1], [], []>} : vector<16x32xf32>, vector<32x32xf32>, vector<16x32xf32> -> vector<16x32xf32>
    %70 = arith.addf %65, %69 : vector<16x32xf32>
    %71 = vector.extract_strided_slice %49 {offsets = [64, 0], sizes = [16, 32], strides = [1, 1]} : vector<144x32xf32> to vector<16x32xf32>
    %72 = vector.extract_strided_slice %31 {offsets = [4, 0, 0], sizes = [1, 32, 32], strides = [1, 1, 1]} : vector<9x32x32xf32> to vector<1x32x32xf32>
    %73 = vector.shape_cast %72 : vector<1x32x32xf32> to vector<32x32xf32>
    %cst_41 = arith.constant dense<0.000000e+00> : vector<16x32xf32>
    %74 = tpu.matmul %71, %73, %cst_41 {dimension_numbers = #tpu.dot_dimension_numbers<[1], [0], [0], [1], [0, 0, 1, 1], [], []>} : vector<16x32xf32>, vector<32x32xf32>, vector<16x32xf32> -> vector<16x32xf32>
    %75 = arith.addf %70, %74 : vector<16x32xf32>
    %76 = vector.extract_strided_slice %49 {offsets = [80, 0], sizes = [16, 32], strides = [1, 1]} : vector<144x32xf32> to vector<16x32xf32>
    %77 = vector.extract_strided_slice %31 {offsets = [5, 0, 0], sizes = [1, 32, 32], strides = [1, 1, 1]} : vector<9x32x32xf32> to vector<1x32x32xf32>
    %78 = vector.shape_cast %77 : vector<1x32x32xf32> to vector<32x32xf32>
    %cst_42 = arith.constant dense<0.000000e+00> : vector<16x32xf32>
    %79 = tpu.matmul %76, %78, %cst_42 {dimension_numbers = #tpu.dot_dimension_numbers<[1], [0], [0], [1], [0, 0, 1, 1], [], []>} : vector<16x32xf32>, vector<32x32xf32>, vector<16x32xf32> -> vector<16x32xf32>
    %80 = arith.addf %75, %79 : vector<16x32xf32>
    %81 = vector.extract_strided_slice %49 {offsets = [96, 0], sizes = [16, 32], strides = [1, 1]} : vector<144x32xf32> to vector<16x32xf32>
    %82 = vector.extract_strided_slice %31 {offsets = [6, 0, 0], sizes = [1, 32, 32], strides = [1, 1, 1]} : vector<9x32x32xf32> to vector<1x32x32xf32>
    %83 = vector.shape_cast %82 : vector<1x32x32xf32> to vector<32x32xf32>
    %cst_43 = arith.constant dense<0.000000e+00> : vector<16x32xf32>
    %84 = tpu.matmul %81, %83, %cst_43 {dimension_numbers = #tpu.dot_dimension_numbers<[1], [0], [0], [1], [0, 0, 1, 1], [], []>} : vector<16x32xf32>, vector<32x32xf32>, vector<16x32xf32> -> vector<16x32xf32>
    %85 = arith.addf %80, %84 : vector<16x32xf32>
    %86 = vector.extract_strided_slice %49 {offsets = [112, 0], sizes = [16, 32], strides = [1, 1]} : vector<144x32xf32> to vector<16x32xf32>
    %87 = vector.extract_strided_slice %31 {offsets = [7, 0, 0], sizes = [1, 32, 32], strides = [1, 1, 1]} : vector<9x32x32xf32> to vector<1x32x32xf32>
    %88 = vector.shape_cast %87 : vector<1x32x32xf32> to vector<32x32xf32>
    %cst_44 = arith.constant dense<0.000000e+00> : vector<16x32xf32>
    %89 = tpu.matmul %86, %88, %cst_44 {dimension_numbers = #tpu.dot_dimension_numbers<[1], [0], [0], [1], [0, 0, 1, 1], [], []>} : vector<16x32xf32>, vector<32x32xf32>, vector<16x32xf32> -> vector<16x32xf32>
    %90 = arith.addf %85, %89 : vector<16x32xf32>
    %91 = vector.extract_strided_slice %49 {offsets = [128, 0], sizes = [16, 32], strides = [1, 1]} : vector<144x32xf32> to vector<16x32xf32>
    %92 = vector.extract_strided_slice %31 {offsets = [8, 0, 0], sizes = [1, 32, 32], strides = [1, 1, 1]} : vector<9x32x32xf32> to vector<1x32x32xf32>
    %93 = vector.shape_cast %92 : vector<1x32x32xf32> to vector<32x32xf32>
    %cst_45 = arith.constant dense<0.000000e+00> : vector<16x32xf32>
    %94 = tpu.matmul %91, %93, %cst_45 {dimension_numbers = #tpu.dot_dimension_numbers<[1], [0], [0], [1], [0, 0, 1, 1], [], []>} : vector<16x32xf32>, vector<32x32xf32>, vector<16x32xf32> -> vector<16x32xf32>
    %95 = arith.addf %90, %94 : vector<16x32xf32>
    %c0_46 = arith.constant 0 : index
    %c0_47 = arith.constant 0 : index
    %c0_48 = arith.constant 0 : index
    %96 = vector.load %arg3[%c0_46, %c0_47, %c0_48] : memref<1x256x16xf32, #tpu.memory_space<vmem>>, vector<1x256x16xf32>
    %97 = vector.shape_cast %96 : vector<1x256x16xf32> to vector<256x16xf32>
    %c0_49 = arith.constant 0 : index
    %c0_50 = arith.constant 0 : index
    %98 = vector.load %arg13[%c0_49, %c0_50] : memref<16x32xf32, #tpu.memory_space<vmem>>, vector<16x32xf32>
    %c0_51 = arith.constant 0 : index
    %c0_52 = arith.constant 0 : index
    %99 = vector.load %arg14[%c0_51, %c0_52] : memref<1x32xf32, #tpu.memory_space<vmem>>, vector<1x32xf32>
    %c0_53 = arith.constant 0 : index
    %c0_54 = arith.constant 0 : index
    %c0_55 = arith.constant 0 : index
    %100 = vector.load %arg15[%c0_53, %c0_54, %c0_55] : memref<9x32x32xf32, #tpu.memory_space<vmem>>, vector<9x32x32xf32>
    %c0_56 = arith.constant 0 : index
    %c0_57 = arith.constant 0 : index
    %101 = vector.load %arg22[%c0_56, %c0_57] : memref<144x256xf32, #tpu.memory_space<vmem>>, vector<144x256xf32>
    %cst_58 = arith.constant dense<0.000000e+00> : vector<256x32xf32>
    %102 = tpu.matmul %97, %98, %cst_58 {dimension_numbers = #tpu.dot_dimension_numbers<[1], [0], [0], [1], [0, 0, 1, 1], [], []>} : vector<256x16xf32>, vector<16x32xf32>, vector<256x32xf32> -> vector<256x32xf32>
    %103 = vector.broadcast %99 : vector<1x32xf32> to vector<256x32xf32>
    %104 = arith.addf %102, %103 : vector<256x32xf32>
    %105 = arith.mulf %104, %104 : vector<256x32xf32>
    %106 = arith.mulf %104, %105 : vector<256x32xf32>
    %cst_59 = arith.constant 4.471500e-02 : f32
    %107 = vector.broadcast %cst_59 : f32 to vector<256x32xf32>
    %108 = arith.mulf %107, %106 : vector<256x32xf32>
    %109 = arith.addf %104, %108 : vector<256x32xf32>
    %cst_60 = arith.constant 0.797884583 : f32
    %110 = vector.broadcast %cst_60 : f32 to vector<256x32xf32>
    %111 = arith.mulf %110, %109 : vector<256x32xf32>
    %112 = math.tanh %111 : vector<256x32xf32>
    %cst_61 = arith.constant 1.000000e+00 : f32
    %113 = vector.broadcast %cst_61 : f32 to vector<256x32xf32>
    %114 = arith.addf %113, %112 : vector<256x32xf32>
    %cst_62 = arith.constant 5.000000e-01 : f32
    %115 = vector.broadcast %cst_62 : f32 to vector<256x32xf32>
    %116 = arith.mulf %115, %114 : vector<256x32xf32>
    %117 = arith.mulf %104, %116 : vector<256x32xf32>
    %cst_63 = arith.constant dense<0.000000e+00> : vector<144x32xf32>
    %118 = tpu.matmul %101, %117, %cst_63 {dimension_numbers = #tpu.dot_dimension_numbers<[1], [0], [0], [1], [0, 0, 1, 1], [], []>} : vector<144x256xf32>, vector<256x32xf32>, vector<144x32xf32> -> vector<144x32xf32>
    %cst_64 = arith.constant 0.000000e+00 : f32
    %119 = vector.broadcast %cst_64 : f32 to vector<16x32xf32>
    %120 = vector.extract_strided_slice %118 {offsets = [0, 0], sizes = [16, 32], strides = [1, 1]} : vector<144x32xf32> to vector<16x32xf32>
    %121 = vector.extract_strided_slice %100 {offsets = [0, 0, 0], sizes = [1, 32, 32], strides = [1, 1, 1]} : vector<9x32x32xf32> to vector<1x32x32xf32>
    %122 = vector.shape_cast %121 : vector<1x32x32xf32> to vector<32x32xf32>
    %cst_65 = arith.constant dense<0.000000e+00> : vector<16x32xf32>
    %123 = tpu.matmul %120, %122, %cst_65 {dimension_numbers = #tpu.dot_dimension_numbers<[1], [0], [0], [1], [0, 0, 1, 1], [], []>} : vector<16x32xf32>, vector<32x32xf32>, vector<16x32xf32> -> vector<16x32xf32>
    %124 = arith.addf %119, %123 : vector<16x32xf32>
    %125 = vector.extract_strided_slice %118 {offsets = [16, 0], sizes = [16, 32], strides = [1, 1]} : vector<144x32xf32> to vector<16x32xf32>
    %126 = vector.extract_strided_slice %100 {offsets = [1, 0, 0], sizes = [1, 32, 32], strides = [1, 1, 1]} : vector<9x32x32xf32> to vector<1x32x32xf32>
    %127 = vector.shape_cast %126 : vector<1x32x32xf32> to vector<32x32xf32>
    %cst_66 = arith.constant dense<0.000000e+00> : vector<16x32xf32>
    %128 = tpu.matmul %125, %127, %cst_66 {dimension_numbers = #tpu.dot_dimension_numbers<[1], [0], [0], [1], [0, 0, 1, 1], [], []>} : vector<16x32xf32>, vector<32x32xf32>, vector<16x32xf32> -> vector<16x32xf32>
    %129 = arith.addf %124, %128 : vector<16x32xf32>
    %130 = vector.extract_strided_slice %118 {offsets = [32, 0], sizes = [16, 32], strides = [1, 1]} : vector<144x32xf32> to vector<16x32xf32>
    %131 = vector.extract_strided_slice %100 {offsets = [2, 0, 0], sizes = [1, 32, 32], strides = [1, 1, 1]} : vector<9x32x32xf32> to vector<1x32x32xf32>
    %132 = vector.shape_cast %131 : vector<1x32x32xf32> to vector<32x32xf32>
    %cst_67 = arith.constant dense<0.000000e+00> : vector<16x32xf32>
    %133 = tpu.matmul %130, %132, %cst_67 {dimension_numbers = #tpu.dot_dimension_numbers<[1], [0], [0], [1], [0, 0, 1, 1], [], []>} : vector<16x32xf32>, vector<32x32xf32>, vector<16x32xf32> -> vector<16x32xf32>
    %134 = arith.addf %129, %133 : vector<16x32xf32>
    %135 = vector.extract_strided_slice %118 {offsets = [48, 0], sizes = [16, 32], strides = [1, 1]} : vector<144x32xf32> to vector<16x32xf32>
    %136 = vector.extract_strided_slice %100 {offsets = [3, 0, 0], sizes = [1, 32, 32], strides = [1, 1, 1]} : vector<9x32x32xf32> to vector<1x32x32xf32>
    %137 = vector.shape_cast %136 : vector<1x32x32xf32> to vector<32x32xf32>
    %cst_68 = arith.constant dense<0.000000e+00> : vector<16x32xf32>
    %138 = tpu.matmul %135, %137, %cst_68 {dimension_numbers = #tpu.dot_dimension_numbers<[1], [0], [0], [1], [0, 0, 1, 1], [], []>} : vector<16x32xf32>, vector<32x32xf32>, vector<16x32xf32> -> vector<16x32xf32>
    %139 = arith.addf %134, %138 : vector<16x32xf32>
    %140 = vector.extract_strided_slice %118 {offsets = [64, 0], sizes = [16, 32], strides = [1, 1]} : vector<144x32xf32> to vector<16x32xf32>
    %141 = vector.extract_strided_slice %100 {offsets = [4, 0, 0], sizes = [1, 32, 32], strides = [1, 1, 1]} : vector<9x32x32xf32> to vector<1x32x32xf32>
    %142 = vector.shape_cast %141 : vector<1x32x32xf32> to vector<32x32xf32>
    %cst_69 = arith.constant dense<0.000000e+00> : vector<16x32xf32>
    %143 = tpu.matmul %140, %142, %cst_69 {dimension_numbers = #tpu.dot_dimension_numbers<[1], [0], [0], [1], [0, 0, 1, 1], [], []>} : vector<16x32xf32>, vector<32x32xf32>, vector<16x32xf32> -> vector<16x32xf32>
    %144 = arith.addf %139, %143 : vector<16x32xf32>
    %145 = vector.extract_strided_slice %118 {offsets = [80, 0], sizes = [16, 32], strides = [1, 1]} : vector<144x32xf32> to vector<16x32xf32>
    %146 = vector.extract_strided_slice %100 {offsets = [5, 0, 0], sizes = [1, 32, 32], strides = [1, 1, 1]} : vector<9x32x32xf32> to vector<1x32x32xf32>
    %147 = vector.shape_cast %146 : vector<1x32x32xf32> to vector<32x32xf32>
    %cst_70 = arith.constant dense<0.000000e+00> : vector<16x32xf32>
    %148 = tpu.matmul %145, %147, %cst_70 {dimension_numbers = #tpu.dot_dimension_numbers<[1], [0], [0], [1], [0, 0, 1, 1], [], []>} : vector<16x32xf32>, vector<32x32xf32>, vector<16x32xf32> -> vector<16x32xf32>
    %149 = arith.addf %144, %148 : vector<16x32xf32>
    %150 = vector.extract_strided_slice %118 {offsets = [96, 0], sizes = [16, 32], strides = [1, 1]} : vector<144x32xf32> to vector<16x32xf32>
    %151 = vector.extract_strided_slice %100 {offsets = [6, 0, 0], sizes = [1, 32, 32], strides = [1, 1, 1]} : vector<9x32x32xf32> to vector<1x32x32xf32>
    %152 = vector.shape_cast %151 : vector<1x32x32xf32> to vector<32x32xf32>
    %cst_71 = arith.constant dense<0.000000e+00> : vector<16x32xf32>
    %153 = tpu.matmul %150, %152, %cst_71 {dimension_numbers = #tpu.dot_dimension_numbers<[1], [0], [0], [1], [0, 0, 1, 1], [], []>} : vector<16x32xf32>, vector<32x32xf32>, vector<16x32xf32> -> vector<16x32xf32>
    %154 = arith.addf %149, %153 : vector<16x32xf32>
    %155 = vector.extract_strided_slice %118 {offsets = [112, 0], sizes = [16, 32], strides = [1, 1]} : vector<144x32xf32> to vector<16x32xf32>
    %156 = vector.extract_strided_slice %100 {offsets = [7, 0, 0], sizes = [1, 32, 32], strides = [1, 1, 1]} : vector<9x32x32xf32> to vector<1x32x32xf32>
    %157 = vector.shape_cast %156 : vector<1x32x32xf32> to vector<32x32xf32>
    %cst_72 = arith.constant dense<0.000000e+00> : vector<16x32xf32>
    %158 = tpu.matmul %155, %157, %cst_72 {dimension_numbers = #tpu.dot_dimension_numbers<[1], [0], [0], [1], [0, 0, 1, 1], [], []>} : vector<16x32xf32>, vector<32x32xf32>, vector<16x32xf32> -> vector<16x32xf32>
    %159 = arith.addf %154, %158 : vector<16x32xf32>
    %160 = vector.extract_strided_slice %118 {offsets = [128, 0], sizes = [16, 32], strides = [1, 1]} : vector<144x32xf32> to vector<16x32xf32>
    %161 = vector.extract_strided_slice %100 {offsets = [8, 0, 0], sizes = [1, 32, 32], strides = [1, 1, 1]} : vector<9x32x32xf32> to vector<1x32x32xf32>
    %162 = vector.shape_cast %161 : vector<1x32x32xf32> to vector<32x32xf32>
    %cst_73 = arith.constant dense<0.000000e+00> : vector<16x32xf32>
    %163 = tpu.matmul %160, %162, %cst_73 {dimension_numbers = #tpu.dot_dimension_numbers<[1], [0], [0], [1], [0, 0, 1, 1], [], []>} : vector<16x32xf32>, vector<32x32xf32>, vector<16x32xf32> -> vector<16x32xf32>
    %164 = arith.addf %159, %163 : vector<16x32xf32>
    %c0_74 = arith.constant 0 : index
    %c0_75 = arith.constant 0 : index
    %c0_76 = arith.constant 0 : index
    %165 = vector.load %arg4[%c0_74, %c0_75, %c0_76] : memref<1x64x24xf32, #tpu.memory_space<vmem>>, vector<1x64x24xf32>
    %166 = vector.shape_cast %165 : vector<1x64x24xf32> to vector<64x24xf32>
    %c0_77 = arith.constant 0 : index
    %c0_78 = arith.constant 0 : index
    %167 = vector.load %arg16[%c0_77, %c0_78] : memref<24x32xf32, #tpu.memory_space<vmem>>, vector<24x32xf32>
    %c0_79 = arith.constant 0 : index
    %c0_80 = arith.constant 0 : index
    %168 = vector.load %arg17[%c0_79, %c0_80] : memref<1x32xf32, #tpu.memory_space<vmem>>, vector<1x32xf32>
    %c0_81 = arith.constant 0 : index
    %c0_82 = arith.constant 0 : index
    %c0_83 = arith.constant 0 : index
    %169 = vector.load %arg18[%c0_81, %c0_82, %c0_83] : memref<9x32x32xf32, #tpu.memory_space<vmem>>, vector<9x32x32xf32>
    %c0_84 = arith.constant 0 : index
    %c0_85 = arith.constant 0 : index
    %170 = vector.load %arg23[%c0_84, %c0_85] : memref<144x64xf32, #tpu.memory_space<vmem>>, vector<144x64xf32>
    %cst_86 = arith.constant dense<0.000000e+00> : vector<64x32xf32>
    %171 = tpu.matmul %166, %167, %cst_86 {dimension_numbers = #tpu.dot_dimension_numbers<[1], [0], [0], [1], [0, 0, 1, 1], [], []>} : vector<64x24xf32>, vector<24x32xf32>, vector<64x32xf32> -> vector<64x32xf32>
    %172 = vector.broadcast %168 : vector<1x32xf32> to vector<64x32xf32>
    %173 = arith.addf %171, %172 : vector<64x32xf32>
    %174 = arith.mulf %173, %173 : vector<64x32xf32>
    %175 = arith.mulf %173, %174 : vector<64x32xf32>
    %cst_87 = arith.constant 4.471500e-02 : f32
    %176 = vector.broadcast %cst_87 : f32 to vector<64x32xf32>
    %177 = arith.mulf %176, %175 : vector<64x32xf32>
    %178 = arith.addf %173, %177 : vector<64x32xf32>
    %cst_88 = arith.constant 0.797884583 : f32
    %179 = vector.broadcast %cst_88 : f32 to vector<64x32xf32>
    %180 = arith.mulf %179, %178 : vector<64x32xf32>
    %181 = math.tanh %180 : vector<64x32xf32>
    %cst_89 = arith.constant 1.000000e+00 : f32
    %182 = vector.broadcast %cst_89 : f32 to vector<64x32xf32>
    %183 = arith.addf %182, %181 : vector<64x32xf32>
    %cst_90 = arith.constant 5.000000e-01 : f32
    %184 = vector.broadcast %cst_90 : f32 to vector<64x32xf32>
    %185 = arith.mulf %184, %183 : vector<64x32xf32>
    %186 = arith.mulf %173, %185 : vector<64x32xf32>
    %cst_91 = arith.constant dense<0.000000e+00> : vector<144x32xf32>
    %187 = tpu.matmul %170, %186, %cst_91 {dimension_numbers = #tpu.dot_dimension_numbers<[1], [0], [0], [1], [0, 0, 1, 1], [], []>} : vector<144x64xf32>, vector<64x32xf32>, vector<144x32xf32> -> vector<144x32xf32>
    %cst_92 = arith.constant 0.000000e+00 : f32
    %188 = vector.broadcast %cst_92 : f32 to vector<16x32xf32>
    %189 = vector.extract_strided_slice %187 {offsets = [0, 0], sizes = [16, 32], strides = [1, 1]} : vector<144x32xf32> to vector<16x32xf32>
    %190 = vector.extract_strided_slice %169 {offsets = [0, 0, 0], sizes = [1, 32, 32], strides = [1, 1, 1]} : vector<9x32x32xf32> to vector<1x32x32xf32>
    %191 = vector.shape_cast %190 : vector<1x32x32xf32> to vector<32x32xf32>
    %cst_93 = arith.constant dense<0.000000e+00> : vector<16x32xf32>
    %192 = tpu.matmul %189, %191, %cst_93 {dimension_numbers = #tpu.dot_dimension_numbers<[1], [0], [0], [1], [0, 0, 1, 1], [], []>} : vector<16x32xf32>, vector<32x32xf32>, vector<16x32xf32> -> vector<16x32xf32>
    %193 = arith.addf %188, %192 : vector<16x32xf32>
    %194 = vector.extract_strided_slice %187 {offsets = [16, 0], sizes = [16, 32], strides = [1, 1]} : vector<144x32xf32> to vector<16x32xf32>
    %195 = vector.extract_strided_slice %169 {offsets = [1, 0, 0], sizes = [1, 32, 32], strides = [1, 1, 1]} : vector<9x32x32xf32> to vector<1x32x32xf32>
    %196 = vector.shape_cast %195 : vector<1x32x32xf32> to vector<32x32xf32>
    %cst_94 = arith.constant dense<0.000000e+00> : vector<16x32xf32>
    %197 = tpu.matmul %194, %196, %cst_94 {dimension_numbers = #tpu.dot_dimension_numbers<[1], [0], [0], [1], [0, 0, 1, 1], [], []>} : vector<16x32xf32>, vector<32x32xf32>, vector<16x32xf32> -> vector<16x32xf32>
    %198 = arith.addf %193, %197 : vector<16x32xf32>
    %199 = vector.extract_strided_slice %187 {offsets = [32, 0], sizes = [16, 32], strides = [1, 1]} : vector<144x32xf32> to vector<16x32xf32>
    %200 = vector.extract_strided_slice %169 {offsets = [2, 0, 0], sizes = [1, 32, 32], strides = [1, 1, 1]} : vector<9x32x32xf32> to vector<1x32x32xf32>
    %201 = vector.shape_cast %200 : vector<1x32x32xf32> to vector<32x32xf32>
    %cst_95 = arith.constant dense<0.000000e+00> : vector<16x32xf32>
    %202 = tpu.matmul %199, %201, %cst_95 {dimension_numbers = #tpu.dot_dimension_numbers<[1], [0], [0], [1], [0, 0, 1, 1], [], []>} : vector<16x32xf32>, vector<32x32xf32>, vector<16x32xf32> -> vector<16x32xf32>
    %203 = arith.addf %198, %202 : vector<16x32xf32>
    %204 = vector.extract_strided_slice %187 {offsets = [48, 0], sizes = [16, 32], strides = [1, 1]} : vector<144x32xf32> to vector<16x32xf32>
    %205 = vector.extract_strided_slice %169 {offsets = [3, 0, 0], sizes = [1, 32, 32], strides = [1, 1, 1]} : vector<9x32x32xf32> to vector<1x32x32xf32>
    %206 = vector.shape_cast %205 : vector<1x32x32xf32> to vector<32x32xf32>
    %cst_96 = arith.constant dense<0.000000e+00> : vector<16x32xf32>
    %207 = tpu.matmul %204, %206, %cst_96 {dimension_numbers = #tpu.dot_dimension_numbers<[1], [0], [0], [1], [0, 0, 1, 1], [], []>} : vector<16x32xf32>, vector<32x32xf32>, vector<16x32xf32> -> vector<16x32xf32>
    %208 = arith.addf %203, %207 : vector<16x32xf32>
    %209 = vector.extract_strided_slice %187 {offsets = [64, 0], sizes = [16, 32], strides = [1, 1]} : vector<144x32xf32> to vector<16x32xf32>
    %210 = vector.extract_strided_slice %169 {offsets = [4, 0, 0], sizes = [1, 32, 32], strides = [1, 1, 1]} : vector<9x32x32xf32> to vector<1x32x32xf32>
    %211 = vector.shape_cast %210 : vector<1x32x32xf32> to vector<32x32xf32>
    %cst_97 = arith.constant dense<0.000000e+00> : vector<16x32xf32>
    %212 = tpu.matmul %209, %211, %cst_97 {dimension_numbers = #tpu.dot_dimension_numbers<[1], [0], [0], [1], [0, 0, 1, 1], [], []>} : vector<16x32xf32>, vector<32x32xf32>, vector<16x32xf32> -> vector<16x32xf32>
    %213 = arith.addf %208, %212 : vector<16x32xf32>
    %214 = vector.extract_strided_slice %187 {offsets = [80, 0], sizes = [16, 32], strides = [1, 1]} : vector<144x32xf32> to vector<16x32xf32>
    %215 = vector.extract_strided_slice %169 {offsets = [5, 0, 0], sizes = [1, 32, 32], strides = [1, 1, 1]} : vector<9x32x32xf32> to vector<1x32x32xf32>
    %216 = vector.shape_cast %215 : vector<1x32x32xf32> to vector<32x32xf32>
    %cst_98 = arith.constant dense<0.000000e+00> : vector<16x32xf32>
    %217 = tpu.matmul %214, %216, %cst_98 {dimension_numbers = #tpu.dot_dimension_numbers<[1], [0], [0], [1], [0, 0, 1, 1], [], []>} : vector<16x32xf32>, vector<32x32xf32>, vector<16x32xf32> -> vector<16x32xf32>
    %218 = arith.addf %213, %217 : vector<16x32xf32>
    %219 = vector.extract_strided_slice %187 {offsets = [96, 0], sizes = [16, 32], strides = [1, 1]} : vector<144x32xf32> to vector<16x32xf32>
    %220 = vector.extract_strided_slice %169 {offsets = [6, 0, 0], sizes = [1, 32, 32], strides = [1, 1, 1]} : vector<9x32x32xf32> to vector<1x32x32xf32>
    %221 = vector.shape_cast %220 : vector<1x32x32xf32> to vector<32x32xf32>
    %cst_99 = arith.constant dense<0.000000e+00> : vector<16x32xf32>
    %222 = tpu.matmul %219, %221, %cst_99 {dimension_numbers = #tpu.dot_dimension_numbers<[1], [0], [0], [1], [0, 0, 1, 1], [], []>} : vector<16x32xf32>, vector<32x32xf32>, vector<16x32xf32> -> vector<16x32xf32>
    %223 = arith.addf %218, %222 : vector<16x32xf32>
    %224 = vector.extract_strided_slice %187 {offsets = [112, 0], sizes = [16, 32], strides = [1, 1]} : vector<144x32xf32> to vector<16x32xf32>
    %225 = vector.extract_strided_slice %169 {offsets = [7, 0, 0], sizes = [1, 32, 32], strides = [1, 1, 1]} : vector<9x32x32xf32> to vector<1x32x32xf32>
    %226 = vector.shape_cast %225 : vector<1x32x32xf32> to vector<32x32xf32>
    %cst_100 = arith.constant dense<0.000000e+00> : vector<16x32xf32>
    %227 = tpu.matmul %224, %226, %cst_100 {dimension_numbers = #tpu.dot_dimension_numbers<[1], [0], [0], [1], [0, 0, 1, 1], [], []>} : vector<16x32xf32>, vector<32x32xf32>, vector<16x32xf32> -> vector<16x32xf32>
    %228 = arith.addf %223, %227 : vector<16x32xf32>
    %229 = vector.extract_strided_slice %187 {offsets = [128, 0], sizes = [16, 32], strides = [1, 1]} : vector<144x32xf32> to vector<16x32xf32>
    %230 = vector.extract_strided_slice %169 {offsets = [8, 0, 0], sizes = [1, 32, 32], strides = [1, 1, 1]} : vector<9x32x32xf32> to vector<1x32x32xf32>
    %231 = vector.shape_cast %230 : vector<1x32x32xf32> to vector<32x32xf32>
    %cst_101 = arith.constant dense<0.000000e+00> : vector<16x32xf32>
    %232 = tpu.matmul %229, %231, %cst_101 {dimension_numbers = #tpu.dot_dimension_numbers<[1], [0], [0], [1], [0, 0, 1, 1], [], []>} : vector<16x32xf32>, vector<32x32xf32>, vector<16x32xf32> -> vector<16x32xf32>
    %233 = arith.addf %228, %232 : vector<16x32xf32>
    %c0_102 = arith.constant 0 : index
    %c0_103 = arith.constant 0 : index
    %c0_104 = arith.constant 0 : index
    %234 = vector.load %arg5[%c0_102, %c0_103, %c0_104] : memref<1x64x32xf32, #tpu.memory_space<vmem>>, vector<1x64x32xf32>
    %235 = vector.shape_cast %234 : vector<1x64x32xf32> to vector<64x32xf32>
    %c0_105 = arith.constant 0 : index
    %c0_106 = arith.constant 0 : index
    %236 = vector.load %arg19[%c0_105, %c0_106] : memref<32x32xf32, #tpu.memory_space<vmem>>, vector<32x32xf32>
    %c0_107 = arith.constant 0 : index
    %c0_108 = arith.constant 0 : index
    %237 = vector.load %arg20[%c0_107, %c0_108] : memref<1x32xf32, #tpu.memory_space<vmem>>, vector<1x32xf32>
    %c0_109 = arith.constant 0 : index
    %c0_110 = arith.constant 0 : index
    %c0_111 = arith.constant 0 : index
    %238 = vector.load %arg21[%c0_109, %c0_110, %c0_111] : memref<9x32x32xf32, #tpu.memory_space<vmem>>, vector<9x32x32xf32>
    %c0_112 = arith.constant 0 : index
    %c0_113 = arith.constant 0 : index
    %239 = vector.load %arg23[%c0_112, %c0_113] : memref<144x64xf32, #tpu.memory_space<vmem>>, vector<144x64xf32>
    %cst_114 = arith.constant dense<0.000000e+00> : vector<64x32xf32>
    %240 = tpu.matmul %235, %236, %cst_114 {dimension_numbers = #tpu.dot_dimension_numbers<[1], [0], [0], [1], [0, 0, 1, 1], [], []>} : vector<64x32xf32>, vector<32x32xf32>, vector<64x32xf32> -> vector<64x32xf32>
    %241 = vector.broadcast %237 : vector<1x32xf32> to vector<64x32xf32>
    %242 = arith.addf %240, %241 : vector<64x32xf32>
    %243 = arith.mulf %242, %242 : vector<64x32xf32>
    %244 = arith.mulf %242, %243 : vector<64x32xf32>
    %cst_115 = arith.constant 4.471500e-02 : f32
    %245 = vector.broadcast %cst_115 : f32 to vector<64x32xf32>
    %246 = arith.mulf %245, %244 : vector<64x32xf32>
    %247 = arith.addf %242, %246 : vector<64x32xf32>
    %cst_116 = arith.constant 0.797884583 : f32
    %248 = vector.broadcast %cst_116 : f32 to vector<64x32xf32>
    %249 = arith.mulf %248, %247 : vector<64x32xf32>
    %250 = math.tanh %249 : vector<64x32xf32>
    %cst_117 = arith.constant 1.000000e+00 : f32
    %251 = vector.broadcast %cst_117 : f32 to vector<64x32xf32>
    %252 = arith.addf %251, %250 : vector<64x32xf32>
    %cst_118 = arith.constant 5.000000e-01 : f32
    %253 = vector.broadcast %cst_118 : f32 to vector<64x32xf32>
    %254 = arith.mulf %253, %252 : vector<64x32xf32>
    %255 = arith.mulf %242, %254 : vector<64x32xf32>
    %cst_119 = arith.constant dense<0.000000e+00> : vector<144x32xf32>
    %256 = tpu.matmul %239, %255, %cst_119 {dimension_numbers = #tpu.dot_dimension_numbers<[1], [0], [0], [1], [0, 0, 1, 1], [], []>} : vector<144x64xf32>, vector<64x32xf32>, vector<144x32xf32> -> vector<144x32xf32>
    %cst_120 = arith.constant 0.000000e+00 : f32
    %257 = vector.broadcast %cst_120 : f32 to vector<16x32xf32>
    %258 = vector.extract_strided_slice %256 {offsets = [0, 0], sizes = [16, 32], strides = [1, 1]} : vector<144x32xf32> to vector<16x32xf32>
    %259 = vector.extract_strided_slice %238 {offsets = [0, 0, 0], sizes = [1, 32, 32], strides = [1, 1, 1]} : vector<9x32x32xf32> to vector<1x32x32xf32>
    %260 = vector.shape_cast %259 : vector<1x32x32xf32> to vector<32x32xf32>
    %cst_121 = arith.constant dense<0.000000e+00> : vector<16x32xf32>
    %261 = tpu.matmul %258, %260, %cst_121 {dimension_numbers = #tpu.dot_dimension_numbers<[1], [0], [0], [1], [0, 0, 1, 1], [], []>} : vector<16x32xf32>, vector<32x32xf32>, vector<16x32xf32> -> vector<16x32xf32>
    %262 = arith.addf %257, %261 : vector<16x32xf32>
    %263 = vector.extract_strided_slice %256 {offsets = [16, 0], sizes = [16, 32], strides = [1, 1]} : vector<144x32xf32> to vector<16x32xf32>
    %264 = vector.extract_strided_slice %238 {offsets = [1, 0, 0], sizes = [1, 32, 32], strides = [1, 1, 1]} : vector<9x32x32xf32> to vector<1x32x32xf32>
    %265 = vector.shape_cast %264 : vector<1x32x32xf32> to vector<32x32xf32>
    %cst_122 = arith.constant dense<0.000000e+00> : vector<16x32xf32>
    %266 = tpu.matmul %263, %265, %cst_122 {dimension_numbers = #tpu.dot_dimension_numbers<[1], [0], [0], [1], [0, 0, 1, 1], [], []>} : vector<16x32xf32>, vector<32x32xf32>, vector<16x32xf32> -> vector<16x32xf32>
    %267 = arith.addf %262, %266 : vector<16x32xf32>
    %268 = vector.extract_strided_slice %256 {offsets = [32, 0], sizes = [16, 32], strides = [1, 1]} : vector<144x32xf32> to vector<16x32xf32>
    %269 = vector.extract_strided_slice %238 {offsets = [2, 0, 0], sizes = [1, 32, 32], strides = [1, 1, 1]} : vector<9x32x32xf32> to vector<1x32x32xf32>
    %270 = vector.shape_cast %269 : vector<1x32x32xf32> to vector<32x32xf32>
    %cst_123 = arith.constant dense<0.000000e+00> : vector<16x32xf32>
    %271 = tpu.matmul %268, %270, %cst_123 {dimension_numbers = #tpu.dot_dimension_numbers<[1], [0], [0], [1], [0, 0, 1, 1], [], []>} : vector<16x32xf32>, vector<32x32xf32>, vector<16x32xf32> -> vector<16x32xf32>
    %272 = arith.addf %267, %271 : vector<16x32xf32>
    %273 = vector.extract_strided_slice %256 {offsets = [48, 0], sizes = [16, 32], strides = [1, 1]} : vector<144x32xf32> to vector<16x32xf32>
    %274 = vector.extract_strided_slice %238 {offsets = [3, 0, 0], sizes = [1, 32, 32], strides = [1, 1, 1]} : vector<9x32x32xf32> to vector<1x32x32xf32>
    %275 = vector.shape_cast %274 : vector<1x32x32xf32> to vector<32x32xf32>
    %cst_124 = arith.constant dense<0.000000e+00> : vector<16x32xf32>
    %276 = tpu.matmul %273, %275, %cst_124 {dimension_numbers = #tpu.dot_dimension_numbers<[1], [0], [0], [1], [0, 0, 1, 1], [], []>} : vector<16x32xf32>, vector<32x32xf32>, vector<16x32xf32> -> vector<16x32xf32>
    %277 = arith.addf %272, %276 : vector<16x32xf32>
    %278 = vector.extract_strided_slice %256 {offsets = [64, 0], sizes = [16, 32], strides = [1, 1]} : vector<144x32xf32> to vector<16x32xf32>
    %279 = vector.extract_strided_slice %238 {offsets = [4, 0, 0], sizes = [1, 32, 32], strides = [1, 1, 1]} : vector<9x32x32xf32> to vector<1x32x32xf32>
    %280 = vector.shape_cast %279 : vector<1x32x32xf32> to vector<32x32xf32>
    %cst_125 = arith.constant dense<0.000000e+00> : vector<16x32xf32>
    %281 = tpu.matmul %278, %280, %cst_125 {dimension_numbers = #tpu.dot_dimension_numbers<[1], [0], [0], [1], [0, 0, 1, 1], [], []>} : vector<16x32xf32>, vector<32x32xf32>, vector<16x32xf32> -> vector<16x32xf32>
    %282 = arith.addf %277, %281 : vector<16x32xf32>
    %283 = vector.extract_strided_slice %256 {offsets = [80, 0], sizes = [16, 32], strides = [1, 1]} : vector<144x32xf32> to vector<16x32xf32>
    %284 = vector.extract_strided_slice %238 {offsets = [5, 0, 0], sizes = [1, 32, 32], strides = [1, 1, 1]} : vector<9x32x32xf32> to vector<1x32x32xf32>
    %285 = vector.shape_cast %284 : vector<1x32x32xf32> to vector<32x32xf32>
    %cst_126 = arith.constant dense<0.000000e+00> : vector<16x32xf32>
    %286 = tpu.matmul %283, %285, %cst_126 {dimension_numbers = #tpu.dot_dimension_numbers<[1], [0], [0], [1], [0, 0, 1, 1], [], []>} : vector<16x32xf32>, vector<32x32xf32>, vector<16x32xf32> -> vector<16x32xf32>
    %287 = arith.addf %282, %286 : vector<16x32xf32>
    %288 = vector.extract_strided_slice %256 {offsets = [96, 0], sizes = [16, 32], strides = [1, 1]} : vector<144x32xf32> to vector<16x32xf32>
    %289 = vector.extract_strided_slice %238 {offsets = [6, 0, 0], sizes = [1, 32, 32], strides = [1, 1, 1]} : vector<9x32x32xf32> to vector<1x32x32xf32>
    %290 = vector.shape_cast %289 : vector<1x32x32xf32> to vector<32x32xf32>
    %cst_127 = arith.constant dense<0.000000e+00> : vector<16x32xf32>
    %291 = tpu.matmul %288, %290, %cst_127 {dimension_numbers = #tpu.dot_dimension_numbers<[1], [0], [0], [1], [0, 0, 1, 1], [], []>} : vector<16x32xf32>, vector<32x32xf32>, vector<16x32xf32> -> vector<16x32xf32>
    %292 = arith.addf %287, %291 : vector<16x32xf32>
    %293 = vector.extract_strided_slice %256 {offsets = [112, 0], sizes = [16, 32], strides = [1, 1]} : vector<144x32xf32> to vector<16x32xf32>
    %294 = vector.extract_strided_slice %238 {offsets = [7, 0, 0], sizes = [1, 32, 32], strides = [1, 1, 1]} : vector<9x32x32xf32> to vector<1x32x32xf32>
    %295 = vector.shape_cast %294 : vector<1x32x32xf32> to vector<32x32xf32>
    %cst_128 = arith.constant dense<0.000000e+00> : vector<16x32xf32>
    %296 = tpu.matmul %293, %295, %cst_128 {dimension_numbers = #tpu.dot_dimension_numbers<[1], [0], [0], [1], [0, 0, 1, 1], [], []>} : vector<16x32xf32>, vector<32x32xf32>, vector<16x32xf32> -> vector<16x32xf32>
    %297 = arith.addf %292, %296 : vector<16x32xf32>
    %298 = vector.extract_strided_slice %256 {offsets = [128, 0], sizes = [16, 32], strides = [1, 1]} : vector<144x32xf32> to vector<16x32xf32>
    %299 = vector.extract_strided_slice %238 {offsets = [8, 0, 0], sizes = [1, 32, 32], strides = [1, 1, 1]} : vector<9x32x32xf32> to vector<1x32x32xf32>
    %300 = vector.shape_cast %299 : vector<1x32x32xf32> to vector<32x32xf32>
    %cst_129 = arith.constant dense<0.000000e+00> : vector<16x32xf32>
    %301 = tpu.matmul %298, %300, %cst_129 {dimension_numbers = #tpu.dot_dimension_numbers<[1], [0], [0], [1], [0, 0, 1, 1], [], []>} : vector<16x32xf32>, vector<32x32xf32>, vector<16x32xf32> -> vector<16x32xf32>
    %302 = arith.addf %297, %301 : vector<16x32xf32>
    %303 = tpu.concatenate %95, %164, %233, %302 in 0 : vector<16x32xf32>, vector<16x32xf32>, vector<16x32xf32>, vector<16x32xf32> -> vector<64x32xf32>
    %c0_130 = arith.constant 0 : index
    %c0_131 = arith.constant 0 : index
    %304 = vector.load %arg24[%c0_130, %c0_131] : memref<1x32xf32, #tpu.memory_space<vmem>>, vector<1x32xf32>
    %c0_132 = arith.constant 0 : index
    %c0_133 = arith.constant 0 : index
    %305 = vector.load %arg25[%c0_132, %c0_133] : memref<1x32xf32, #tpu.memory_space<vmem>>, vector<1x32xf32>
    %c0_134 = arith.constant 0 : index
    %c0_135 = arith.constant 0 : index
    %306 = vector.load %arg26[%c0_134, %c0_135] : memref<32x32xf32, #tpu.memory_space<vmem>>, vector<32x32xf32>
    %c0_136 = arith.constant 0 : index
    %c0_137 = arith.constant 0 : index
    %307 = vector.load %arg27[%c0_136, %c0_137] : memref<1x32xf32, #tpu.memory_space<vmem>>, vector<1x32xf32>
    %c0_138 = arith.constant 0 : index
    %c0_139 = arith.constant 0 : index
    %308 = vector.load %arg28[%c0_138, %c0_139] : memref<32x32xf32, #tpu.memory_space<vmem>>, vector<32x32xf32>
    %c0_140 = arith.constant 0 : index
    %c0_141 = arith.constant 0 : index
    %309 = vector.load %arg29[%c0_140, %c0_141] : memref<1x32xf32, #tpu.memory_space<vmem>>, vector<1x32xf32>
    %c0_142 = arith.constant 0 : index
    %c0_143 = arith.constant 0 : index
    %310 = vector.load %arg30[%c0_142, %c0_143] : memref<32x32xf32, #tpu.memory_space<vmem>>, vector<32x32xf32>
    %c0_144 = arith.constant 0 : index
    %c0_145 = arith.constant 0 : index
    %311 = vector.load %arg31[%c0_144, %c0_145] : memref<1x32xf32, #tpu.memory_space<vmem>>, vector<1x32xf32>
    %c0_146 = arith.constant 0 : index
    %c0_147 = arith.constant 0 : index
    %c0_148 = arith.constant 0 : index
    %312 = vector.load %arg32[%c0_146, %c0_147, %c0_148] : memref<8x1x32xf32, #tpu.memory_space<vmem>>, vector<8x1x32xf32>
    %c0_149 = arith.constant 0 : index
    %c0_150 = arith.constant 0 : index
    %313 = vector.load %arg33[%c0_149, %c0_150] : memref<32x32xf32, #tpu.memory_space<vmem>>, vector<32x32xf32>
    %c0_151 = arith.constant 0 : index
    %c0_152 = arith.constant 0 : index
    %314 = vector.load %arg34[%c0_151, %c0_152] : memref<1x32xf32, #tpu.memory_space<vmem>>, vector<1x32xf32>
    %c0_153 = arith.constant 0 : index
    %c0_154 = arith.constant 0 : index
    %315 = vector.load %arg35[%c0_153, %c0_154] : memref<1x32xf32, #tpu.memory_space<vmem>>, vector<1x32xf32>
    %cst_155 = arith.constant dense<0.000000e+00> : vector<64xf32>
    %316 = vector.multi_reduction <add>, %303, %cst_155 [1] : vector<64x32xf32> to vector<64xf32>
    %317 = vector.shape_cast %316 : vector<64xf32> to vector<64x1xf32>
    %cst_156 = arith.constant 3.200000e+01 : f32
    %318 = vector.broadcast %cst_156 : f32 to vector<64x1xf32>
    %319 = arith.divf %317, %318 : vector<64x1xf32>
    %320 = vector.broadcast %319 : vector<64x1xf32> to vector<64x32xf32>
    %321 = arith.subf %303, %320 : vector<64x32xf32>
    %322 = arith.mulf %321, %321 : vector<64x32xf32>
    %cst_157 = arith.constant dense<0.000000e+00> : vector<64xf32>
    %323 = vector.multi_reduction <add>, %322, %cst_157 [1] : vector<64x32xf32> to vector<64xf32>
    %324 = vector.shape_cast %323 : vector<64xf32> to vector<64x1xf32>
    %cst_158 = arith.constant 3.200000e+01 : f32
    %325 = vector.broadcast %cst_158 : f32 to vector<64x1xf32>
    %326 = arith.divf %324, %325 : vector<64x1xf32>
    %327 = vector.broadcast %319 : vector<64x1xf32> to vector<64x32xf32>
    %328 = arith.subf %303, %327 : vector<64x32xf32>
    %cst_159 = arith.constant 9.99999974E-6 : f32
    %329 = vector.broadcast %cst_159 : f32 to vector<64x1xf32>
    %330 = arith.addf %326, %329 : vector<64x1xf32>
    %331 = math.rsqrt %330 : vector<64x1xf32>
    %332 = vector.broadcast %331 : vector<64x1xf32> to vector<64x32xf32>
    %333 = arith.mulf %328, %332 : vector<64x32xf32>
    %334 = vector.broadcast %304 : vector<1x32xf32> to vector<64x32xf32>
    %335 = arith.mulf %333, %334 : vector<64x32xf32>
    %336 = vector.broadcast %305 : vector<1x32xf32> to vector<64x32xf32>
    %337 = arith.addf %335, %336 : vector<64x32xf32>
    %cst_160 = arith.constant dense<0.000000e+00> : vector<64x32xf32>
    %338 = tpu.matmul %337, %306, %cst_160 {dimension_numbers = #tpu.dot_dimension_numbers<[1], [0], [0], [1], [0, 0, 1, 1], [], []>} : vector<64x32xf32>, vector<32x32xf32>, vector<64x32xf32> -> vector<64x32xf32>
    %339 = vector.broadcast %307 : vector<1x32xf32> to vector<64x32xf32>
    %340 = arith.addf %338, %339 : vector<64x32xf32>
    %cst_161 = arith.constant dense<0.000000e+00> : vector<64x32xf32>
    %341 = tpu.matmul %337, %308, %cst_161 {dimension_numbers = #tpu.dot_dimension_numbers<[1], [0], [0], [1], [0, 0, 1, 1], [], []>} : vector<64x32xf32>, vector<32x32xf32>, vector<64x32xf32> -> vector<64x32xf32>
    %342 = vector.broadcast %309 : vector<1x32xf32> to vector<64x32xf32>
    %343 = arith.addf %341, %342 : vector<64x32xf32>
    %cst_162 = arith.constant dense<0.000000e+00> : vector<64x32xf32>
    %344 = tpu.matmul %337, %310, %cst_162 {dimension_numbers = #tpu.dot_dimension_numbers<[1], [0], [0], [1], [0, 0, 1, 1], [], []>} : vector<64x32xf32>, vector<32x32xf32>, vector<64x32xf32> -> vector<64x32xf32>
    %345 = vector.broadcast %311 : vector<1x32xf32> to vector<64x32xf32>
    %346 = arith.addf %344, %345 : vector<64x32xf32>
    %347 = vector.shape_cast %340 : vector<64x32xf32> to vector<1x64x32xf32>
    %348 = vector.shape_cast %347 : vector<1x64x32xf32> to vector<1x64x32xf32>
    %349 = vector.broadcast %348 : vector<1x64x32xf32> to vector<8x64x32xf32>
    %350 = vector.shape_cast %343 : vector<64x32xf32> to vector<1x64x32xf32>
    %351 = vector.broadcast %350 : vector<1x64x32xf32> to vector<8x64x32xf32>
    %352 = vector.broadcast %312 : vector<8x1x32xf32> to vector<8x64x32xf32>
    %353 = arith.mulf %351, %352 : vector<8x64x32xf32>
    %354 = vector.shape_cast %346 : vector<64x32xf32> to vector<1x64x32xf32>
    %355 = vector.broadcast %354 : vector<1x64x32xf32> to vector<8x64x32xf32>
    %356 = vector.broadcast %312 : vector<8x1x32xf32> to vector<8x64x32xf32>
    %357 = arith.mulf %355, %356 : vector<8x64x32xf32>
    "tpu.trace_start"() <{level = 10 : i32, message = "hnd,hmd->hnm"}> : () -> ()
    %cst_163 = arith.constant dense<0.000000e+00> : vector<8x64x64xf32>
    %358 = tpu.matmul %349, %353, %cst_163 {dimension_numbers = #tpu.dot_dimension_numbers<[2], [2], [1], [1], [0, 0, 0, 1, 1, 1], [0], [0]>} : vector<8x64x32xf32>, vector<8x64x32xf32>, vector<8x64x64xf32> -> vector<8x64x64xf32>
    "tpu.trace_stop"() : () -> ()
    %cst_164 = arith.constant dense<0xFF800000> : vector<8x64xf32>
    %359 = vector.multi_reduction <maximumf>, %358, %cst_164 [2] : vector<8x64x64xf32> to vector<8x64xf32>
    %360 = vector.shape_cast %359 : vector<8x64xf32> to vector<8x64x1xf32>
    %361 = vector.broadcast %360 : vector<8x64x1xf32> to vector<8x64x64xf32>
    %362 = arith.subf %358, %361 : vector<8x64x64xf32>
    %363 = math.exp %362 : vector<8x64x64xf32>
    %cst_165 = arith.constant dense<0.000000e+00> : vector<8x64xf32>
    %364 = vector.multi_reduction <add>, %363, %cst_165 [2] : vector<8x64x64xf32> to vector<8x64xf32>
    %365 = vector.shape_cast %364 : vector<8x64xf32> to vector<8x64x1xf32>
    %366 = tpu.reciprocal %365 {approx = true} : vector<8x64x1xf32> -> vector<8x64x1xf32>
    %367 = vector.broadcast %366 : vector<8x64x1xf32> to vector<8x64x64xf32>
    %368 = arith.mulf %363, %367 : vector<8x64x64xf32>
    "tpu.trace_start"() <{level = 10 : i32, message = "hnm,hmd->hnd"}> : () -> ()
    %cst_166 = arith.constant dense<0.000000e+00> : vector<8x64x32xf32>
    %369 = tpu.matmul %368, %357, %cst_166 {dimension_numbers = #tpu.dot_dimension_numbers<[2], [1], [1], [2], [0, 0, 0, 1, 1, 2], [0], [0]>} : vector<8x64x64xf32>, vector<8x64x32xf32>, vector<8x64x32xf32> -> vector<8x64x32xf32>
    "tpu.trace_stop"() : () -> ()
    %cst_167 = arith.constant dense<0.000000e+00> : vector<64x32xf32>
    %370 = vector.multi_reduction <add>, %369, %cst_167 [0] : vector<8x64x32xf32> to vector<64x32xf32>
    %cst_168 = arith.constant dense<0.000000e+00> : vector<64x32xf32>
    %371 = tpu.matmul %370, %313, %cst_168 {dimension_numbers = #tpu.dot_dimension_numbers<[1], [0], [0], [1], [0, 0, 1, 1], [], []>} : vector<64x32xf32>, vector<32x32xf32>, vector<64x32xf32> -> vector<64x32xf32>
    %372 = vector.broadcast %314 : vector<1x32xf32> to vector<64x32xf32>
    %373 = arith.addf %371, %372 : vector<64x32xf32>
    %374 = vector.broadcast %315 : vector<1x32xf32> to vector<64x32xf32>
    %375 = arith.mulf %374, %373 : vector<64x32xf32>
    %376 = arith.addf %303, %375 : vector<64x32xf32>
    %377 = vector.shape_cast %376 : vector<64x32xf32> to vector<1x64x32xf32>
    %c0_169 = arith.constant 0 : index
    %c0_170 = arith.constant 0 : index
    %c0_171 = arith.constant 0 : index
    %378 = vector.load %arg37[%c0_169, %c0_170, %c0_171] : memref<1x64x32xf32, #tpu.memory_space<vmem>>, vector<1x64x32xf32>
    tpu.vector_store %arg37[%c0_169, %c0_170, %c0_171], %377 {strides = array<i32>} : memref<1x64x32xf32, #tpu.memory_space<vmem>>, vector<1x64x32xf32>,
    return
  }
  func.func @transform_0(%arg0: i32) -> (i32, i32, i32) {
    %c0_i32 = arith.constant 0 : i32
    %c0_i32_0 = arith.constant 0 : i32
    %c0_i32_1 = arith.constant 0 : i32
    return %arg0, %c0_i32, %c0_i32_0 : i32, i32, i32
  }
  func.func @transform_1(%arg0: i32) -> (i32, i32, i32) {
    %c0_i32 = arith.constant 0 : i32
    %c0_i32_0 = arith.constant 0 : i32
    %c0_i32_1 = arith.constant 0 : i32
    return %arg0, %c0_i32, %c0_i32_0 : i32, i32, i32
  }
  func.func @transform_2(%arg0: i32) -> (i32, i32, i32) {
    %c0_i32 = arith.constant 0 : i32
    %c0_i32_0 = arith.constant 0 : i32
    %c0_i32_1 = arith.constant 0 : i32
    return %arg0, %c0_i32, %c0_i32_0 : i32, i32, i32
  }
  func.func @transform_3(%arg0: i32) -> (i32, i32, i32) {
    %c0_i32 = arith.constant 0 : i32
    %c0_i32_0 = arith.constant 0 : i32
    %c0_i32_1 = arith.constant 0 : i32
    return %arg0, %c0_i32, %c0_i32_0 : i32, i32, i32
  }
  func.func @transform_4(%arg0: i32) -> (i32, i32, i32) {
    %c0_i32 = arith.constant 0 : i32
    %c0_i32_0 = arith.constant 0 : i32
    %c0_i32_1 = arith.constant 0 : i32
    return %arg0, %c0_i32, %c0_i32_0 : i32, i32, i32
  }
  func.func @transform_5(%arg0: i32) -> (i32, i32) {
    %c0_i32 = arith.constant 0 : i32
    %c0_i32_0 = arith.constant 0 : i32
    %c0_i32_1 = arith.constant 0 : i32
    return %c0_i32, %c0_i32_0 : i32, i32
  }
  func.func @transform_6(%arg0: i32) -> (i32, i32) {
    %c0_i32 = arith.constant 0 : i32
    %c0_i32_0 = arith.constant 0 : i32
    %c0_i32_1 = arith.constant 0 : i32
    return %c0_i32, %c0_i32_0 : i32, i32
  }
  func.func @transform_7(%arg0: i32) -> (i32, i32) {
    %c0_i32 = arith.constant 0 : i32
    %c0_i32_0 = arith.constant 0 : i32
    %c0_i32_1 = arith.constant 0 : i32
    return %c0_i32, %c0_i32_0 : i32, i32
  }
  func.func @transform_8(%arg0: i32) -> (i32, i32) {
    %c0_i32 = arith.constant 0 : i32
    %c0_i32_0 = arith.constant 0 : i32
    %c0_i32_1 = arith.constant 0 : i32
    return %c0_i32, %c0_i32_0 : i32, i32
  }
  func.func @transform_9(%arg0: i32) -> (i32, i32) {
    %c0_i32 = arith.constant 0 : i32
    %c0_i32_0 = arith.constant 0 : i32
    %c0_i32_1 = arith.constant 0 : i32
    return %c0_i32, %c0_i32_0 : i32, i32
  }
  func.func @transform_10(%arg0: i32) -> (i32, i32) {
    %c0_i32 = arith.constant 0 : i32
    %c0_i32_0 = arith.constant 0 : i32
    %c0_i32_1 = arith.constant 0 : i32
    return %c0_i32, %c0_i32_0 : i32, i32
  }
  func.func @transform_11(%arg0: i32) -> (i32, i32, i32) {
    %c0_i32 = arith.constant 0 : i32
    %c0_i32_0 = arith.constant 0 : i32
    %c0_i32_1 = arith.constant 0 : i32
    %c0_i32_2 = arith.constant 0 : i32
    return %c0_i32, %c0_i32_0, %c0_i32_1 : i32, i32, i32
  }
  func.func @transform_12(%arg0: i32) -> (i32, i32) {
    %c0_i32 = arith.constant 0 : i32
    %c0_i32_0 = arith.constant 0 : i32
    %c0_i32_1 = arith.constant 0 : i32
    return %c0_i32, %c0_i32_0 : i32, i32
  }
  func.func @transform_13(%arg0: i32) -> (i32, i32) {
    %c0_i32 = arith.constant 0 : i32
    %c0_i32_0 = arith.constant 0 : i32
    %c0_i32_1 = arith.constant 0 : i32
    return %c0_i32, %c0_i32_0 : i32, i32
  }
  func.func @transform_14(%arg0: i32) -> (i32, i32, i32) {
    %c0_i32 = arith.constant 0 : i32
    %c0_i32_0 = arith.constant 0 : i32
    %c0_i32_1 = arith.constant 0 : i32
    %c0_i32_2 = arith.constant 0 : i32
    return %c0_i32, %c0_i32_0, %c0_i32_1 : i32, i32, i32
  }
  func.func @transform_15(%arg0: i32) -> (i32, i32) {
    %c0_i32 = arith.constant 0 : i32
    %c0_i32_0 = arith.constant 0 : i32
    %c0_i32_1 = arith.constant 0 : i32
    return %c0_i32, %c0_i32_0 : i32, i32
  }
  func.func @transform_16(%arg0: i32) -> (i32, i32) {
    %c0_i32 = arith.constant 0 : i32
    %c0_i32_0 = arith.constant 0 : i32
    %c0_i32_1 = arith.constant 0 : i32
    return %c0_i32, %c0_i32_0 : i32, i32
  }
  func.func @transform_17(%arg0: i32) -> (i32, i32, i32) {
    %c0_i32 = arith.constant 0 : i32
    %c0_i32_0 = arith.constant 0 : i32
    %c0_i32_1 = arith.constant 0 : i32
    %c0_i32_2 = arith.constant 0 : i32
    return %c0_i32, %c0_i32_0, %c0_i32_1 : i32, i32, i32
  }
  func.func @transform_18(%arg0: i32) -> (i32, i32) {
    %c0_i32 = arith.constant 0 : i32
    %c0_i32_0 = arith.constant 0 : i32
    %c0_i32_1 = arith.constant 0 : i32
    return %c0_i32, %c0_i32_0 : i32, i32
  }
  func.func @transform_19(%arg0: i32) -> (i32, i32) {
    %c0_i32 = arith.constant 0 : i32
    %c0_i32_0 = arith.constant 0 : i32
    %c0_i32_1 = arith.constant 0 : i32
    return %c0_i32, %c0_i32_0 : i32, i32
  }
  func.func @transform_20(%arg0: i32) -> (i32, i32, i32) {
    %c0_i32 = arith.constant 0 : i32
    %c0_i32_0 = arith.constant 0 : i32
    %c0_i32_1 = arith.constant 0 : i32
    %c0_i32_2 = arith.constant 0 : i32
    return %c0_i32, %c0_i32_0, %c0_i32_1 : i32, i32, i32
  }
  func.func @transform_21(%arg0: i32) -> (i32, i32) {
    %c0_i32 = arith.constant 0 : i32
    %c0_i32_0 = arith.constant 0 : i32
    %c0_i32_1 = arith.constant 0 : i32
    return %c0_i32, %c0_i32_0 : i32, i32
  }
  func.func @transform_22(%arg0: i32) -> (i32, i32) {
    %c0_i32 = arith.constant 0 : i32
    %c0_i32_0 = arith.constant 0 : i32
    %c0_i32_1 = arith.constant 0 : i32
    return %c0_i32, %c0_i32_0 : i32, i32
  }
  func.func @transform_23(%arg0: i32) -> (i32, i32) {
    %c0_i32 = arith.constant 0 : i32
    %c0_i32_0 = arith.constant 0 : i32
    %c0_i32_1 = arith.constant 0 : i32
    return %c0_i32, %c0_i32_0 : i32, i32
  }
  func.func @transform_24(%arg0: i32) -> (i32, i32) {
    %c0_i32 = arith.constant 0 : i32
    %c0_i32_0 = arith.constant 0 : i32
    %c0_i32_1 = arith.constant 0 : i32
    return %c0_i32, %c0_i32_0 : i32, i32
  }
  func.func @transform_25(%arg0: i32) -> (i32, i32) {
    %c0_i32 = arith.constant 0 : i32
    %c0_i32_0 = arith.constant 0 : i32
    %c0_i32_1 = arith.constant 0 : i32
    return %c0_i32, %c0_i32_0 : i32, i32
  }
  func.func @transform_26(%arg0: i32) -> (i32, i32) {
    %c0_i32 = arith.constant 0 : i32
    %c0_i32_0 = arith.constant 0 : i32
    %c0_i32_1 = arith.constant 0 : i32
    return %c0_i32, %c0_i32_0 : i32, i32
  }
  func.func @transform_27(%arg0: i32) -> (i32, i32) {
    %c0_i32 = arith.constant 0 : i32
    %c0_i32_0 = arith.constant 0 : i32
    %c0_i32_1 = arith.constant 0 : i32
    return %c0_i32, %c0_i32_0 : i32, i32
  }
  func.func @transform_28(%arg0: i32) -> (i32, i32) {
    %c0_i32 = arith.constant 0 : i32
    %c0_i32_0 = arith.constant 0 : i32
    %c0_i32_1 = arith.constant 0 : i32
    return %c0_i32, %c0_i32_0 : i32, i32
  }
  func.func @transform_29(%arg0: i32) -> (i32, i32) {
    %c0_i32 = arith.constant 0 : i32
    %c0_i32_0 = arith.constant 0 : i32
    %c0_i32_1 = arith.constant 0 : i32
    return %c0_i32, %c0_i32_0 : i32, i32
  }
  func.func @transform_30(%arg0: i32) -> (i32, i32) {
    %c0_i32 = arith.constant 0 : i32
    %c0_i32_0 = arith.constant 0 : i32
    %c0_i32_1 = arith.constant 0 : i32
    return %c0_i32, %c0_i32_0 : i32, i32
  }
  func.func @transform_31(%arg0: i32) -> (i32, i32, i32) {
    %c0_i32 = arith.constant 0 : i32
    %c0_i32_0 = arith.constant 0 : i32
    %c0_i32_1 = arith.constant 0 : i32
    %c0_i32_2 = arith.constant 0 : i32
    return %c0_i32, %c0_i32_0, %c0_i32_1 : i32, i32, i32
  }
  func.func @transform_32(%arg0: i32) -> (i32, i32) {
    %c0_i32 = arith.constant 0 : i32
    %c0_i32_0 = arith.constant 0 : i32
    %c0_i32_1 = arith.constant 0 : i32
    return %c0_i32, %c0_i32_0 : i32, i32
  }
  func.func @transform_33(%arg0: i32) -> (i32, i32) {
    %c0_i32 = arith.constant 0 : i32
    %c0_i32_0 = arith.constant 0 : i32
    %c0_i32_1 = arith.constant 0 : i32
    return %c0_i32, %c0_i32_0 : i32, i32
  }
  func.func @transform_34(%arg0: i32) -> (i32, i32) {
    %c0_i32 = arith.constant 0 : i32
    %c0_i32_0 = arith.constant 0 : i32
    %c0_i32_1 = arith.constant 0 : i32
    return %c0_i32, %c0_i32_0 : i32, i32
  }
  func.func @transform_35(%arg0: i32) -> (i32, i32, i32) {
    %c0_i32 = arith.constant 0 : i32
    %c0_i32_0 = arith.constant 0 : i32
    %c0_i32_1 = arith.constant 0 : i32
    return %arg0, %c0_i32, %c0_i32_0 : i32, i32, i32
  }
  func.func @transform_36(%arg0: i32) -> (i32, i32, i32) {
    %c0_i32 = arith.constant 0 : i32
    %c0_i32_0 = arith.constant 0 : i32
    %c0_i32_1 = arith.constant 0 : i32
    return %arg0, %c0_i32, %c0_i32_0 : i32, i32, i32
  }
}

</mosaic_0001>

<bundles_post_ra>
// kernel: unetfeats_forward.1
= control target key start
LH: loop header
LB: loop body
LE: loop exit
PB: predicated region body
PF: predicated region fallthrough
CT: control target
= control target key end

     0   :  { %s14774_s6 = smov 1   ;;  %s14775_s10 = smov 2   ;;  %s18369_s0 = inlined_call_operand.smem [shape: u32[37], index: -1, kind: input, shape index: {}] }
   0x1   :  { %s14825_s5 = sld [smem:[%s18369_s0]]   ;;  %s14776_s14 = smov 3  }
   0x2   :  { %s14830_s9 = sld [smem:[%s18369_s0 + %s14774_s6]]   ;;  %s14777_s18 = smov 4  }
   0x3   :  { %s14835_s13 = sld [smem:[%s18369_s0 + %s14775_s10]]   ;;  %s14778_s22 = smov 5  }
   0x4   :  { %s14840_s17 = sld [smem:[%s18369_s0 + %s14776_s14]]   ;;  %s14779_s26 = smov 6  }
   0x5   :  { %s14845_s21 = sld [smem:[%s18369_s0 + %s14777_s18]]   ;;  %s14780_s30 = smov 7  }
   0x6   :  { %s14850_s25 = sld [smem:[%s18369_s0 + %s14778_s22]]   ;;  %s14781_s4 = smov 8  }
   0x7   :  { %18457 = sst [smem:[#allocation8_spill]] %s14825_s5  ;;  %s14782_s10 = smov 9  }
   0x8   :  { %18458 = sst [smem:[#allocation9_spill]] %s14830_s9  ;;  %s14783_s15 = smov 10  }
   0x9   :  { %18459 = sst [smem:[#allocation10_spill]] %s14835_s13  ;;  %s14784_s20 = smov 11  }
   0xa   :  { %18460 = sst [smem:[#allocation11_spill]] %s14840_s17  ;;  %s14786_s1 = smov 13  }
   0xb   :  { %18461 = sst [smem:[#allocation12_spill]] %s14845_s21  ;;  %s14787_s7 = smov 14  }
   0xc   :  { %s14855_s29 = sld [smem:[%s18369_s0 + %s14779_s26]]   ;;  %s14785_s26 = smov 12  }
   0xd   :  { %s14860_s3 = sld [smem:[%s18369_s0 + %s14780_s30]]   ;;  %s14789_s22 = smov 16  }
   0xe   :  { %s14865_s8 = sld [smem:[%s18369_s0 + %s14781_s4]]   ;;  %s14790_s28 = smov 17  }
   0xf   :  { %s14870_s14 = sld [smem:[%s18369_s0 + %s14782_s10]]  }
  0x10   :  { %s14875_s19 = sld [smem:[%s18369_s0 + %s14783_s15]]   ;;  %s14788_s15 = smov 15  }
  0x11   :  { %s14880_s24 = sld [smem:[%s18369_s0 + %s14784_s20]]  }
  0x12   :  { %s14885_s30 = sld [smem:[%s18369_s0 + %s14785_s26]]  }
  0x13   :  { %18462 = sst [smem:[#allocation13_spill]] %s14860_s3 }
  0x14   :  { %18463 = sst [smem:[#allocation14_spill]] %s14865_s8 }
  0x15   :  { %s14890_s6 = sld [smem:[%s18369_s0 + %s14786_s1]]  }
  0x16   :  { %s14895_s12 = sld [smem:[%s18369_s0 + %s14787_s7]]   ;;  %s14791_s7 = smov 18  }
  0x17   :  { %s14900_s20 = sld [smem:[%s18369_s0 + %s14788_s15]]   ;;  %s14792_s15 = smov 19  }
  0x18   :  { %s14905_s27 = sld [smem:[%s18369_s0 + %s14789_s22]]   ;;  %s14793_s22 = smov 20  }
  0x19   :  { %s14910_s4 = sld [smem:[%s18369_s0 + %s14790_s28]]   ;;  %s14794_s28 = smov 21  }
  0x1a   :  { %s14915_s21 = sld [smem:[%s18369_s0 + %s14791_s7]]   ;;  %s14795_s7 = smov 22  }
  0x1b   :  { %18464 = sst [smem:[#allocation15_spill]] %s14890_s6 }
  0x1c   :  { %18465 = sst [smem:[#allocation16_spill]] %s14895_s12 }
  0x1d   :  { %18466 = sst [smem:[#allocation17_spill]] %s14900_s20 }
  0x1e   :  { %18467 = sst [smem:[#allocation18_spill]] %s14905_s27 }
  0x1f   :  { %18468 = sst [smem:[#allocation19_spill]] %s14910_s4 }
  0x20   :  { %18469 = sst [smem:[#allocation20_spill]] %s14915_s21 }
  0x21   :  { %s14920_s17 = sld [smem:[%s18369_s0 + %s14792_s15]]   ;;  %s14796_s15 = smov 23  }
  0x22   :  { %s14925_s27 = sld [smem:[%s18369_s0 + %s14793_s22]]   ;;  %s14797_s22 = smov 24  }
  0x23   :  { %s14930_s4 = sld [smem:[%s18369_s0 + %s14794_s28]]   ;;  %s14798_s28 = smov 25  }
  0x24   :  { %s14935_s21 = sld [smem:[%s18369_s0 + %s14795_s7]]   ;;  %s14799_s7 = smov 26  }
  0x25   :  { %s14950_s20 = sld [smem:[%s18369_s0 + %s14798_s28]]   ;;  %s14802_s28 = smov 29  }
  0x27   :  { %18470 = sst [smem:[#allocation21_spill]] %s14920_s17 }
  0x28   :  { %18471 = sst [smem:[#allocation22_spill]] %s14925_s27 }
  0x29   :  { %18472 = sst [smem:[#allocation23_spill]] %s14930_s4 }
  0x2a   :  { %18473 = sst [smem:[#allocation24_spill]] %s14935_s21 }
  0x2b   :  { %s14940_s17 = sld [smem:[%s18369_s0 + %s14796_s15]]   ;;  %s14800_s15 = smov 27  }
  0x2c   :  { %s14945_s27 = sld [smem:[%s18369_s0 + %s14797_s22]]   ;;  %s14801_s22 = smov 28  }
  0x2d   :  { %18476 = sst [smem:[#allocation27_spill]] %s14950_s20 }
  0x2e   :  { %s14955_s21 = sld [smem:[%s18369_s0 + %s14799_s7]]   ;;  %s14803_s7 = smov 30  }
  0x2f   :  { %s14970_s20 = sld [smem:[%s18369_s0 + %s14802_s28]]   ;;  %s14806_s28 = smov 33  }
  0x31   :  { %18474 = sst [smem:[#allocation25_spill]] %s14940_s17 }
  0x32   :  { %18475 = sst [smem:[#allocation26_spill]] %s14945_s27 }
  0x33   :  { %s14960_s17 = sld [smem:[%s18369_s0 + %s14800_s15]]   ;;  %s14804_s15 = smov 31  }
  0x34   :  { %18477 = sst [smem:[#allocation28_spill]] %s14955_s21 }
  0x35   :  { %s14965_s27 = sld [smem:[%s18369_s0 + %s14801_s22]]   ;;  %s14805_s22 = smov 32  }
  0x36   :  { %18480 = sst [smem:[#allocation31_spill]] %s14970_s20 }
  0x37   :  { %s14975_s21 = sld [smem:[%s18369_s0 + %s14803_s7]]   ;;  %s14807_s7 = smov 34  }
  0x38   :  { %s14990_s20 = sld [smem:[%s18369_s0 + %s14806_s28]]  }
  0x39   :  { %18478 = sst [smem:[#allocation29_spill]] %s14960_s17 }
  0x3a   :  { %s14980_s17 = sld [smem:[%s18369_s0 + %s14804_s15]]   ;;  %s14808_s15 = smov 35  }
  0x3b   :  { %18479 = sst [smem:[#allocation30_spill]] %s14965_s27 }
  0x3c   :  { %s14985_s27 = sld [smem:[%s18369_s0 + %s14805_s22]]   ;;  %s14809_s22 = smov 36  }
  0x3d   :  { %18481 = sst [smem:[#allocation32_spill]] %s14975_s21 }
  0x3e   :  { %s14995_s21 = sld [smem:[%s18369_s0 + %s14807_s7]]  }
  0x40   :  { %18482 = sst [smem:[#allocation33_spill]] %s14980_s17 }
  0x41   :  { %s15000_s17 = sld [smem:[%s18369_s0 + %s14808_s15]]  }
  0x42   :  { %18483 = sst [smem:[#allocation34_spill]] %s14985_s27 }
  0x43   :  { %s15005_s27 = sld [smem:[%s18369_s0 + %s14809_s22]]  }
  0x44   :  { %79 = vsyncpa [#allocation3], 0 }
  0x45   :  { %81 = vsyncpa [#allocation3 + $0x1], 0 }
  0x46   :  { %82 = vsyncpa [#allocation5], 0 }
  0x47   :  { %84 = vsyncpa [#allocation5 + $0x1], 0  ;;  %s15007_s28 = smov 0   ;;  %s15009_s1 = smov 0  }
  0x48   :  { %s15011_s2 = smov 0   ;;  %s15013_s7 = smov 0  }
  0x49 LB: > { %s18484_s12 = sld [smem:[#allocation16_spill]]  ;;  %s18485_s4 = sld [smem:[#allocation23_spill]]  ;;  %s14768_s2 = sphi %s15011_s2, %s18647_s2   ;;  %s14764_s1 = sphi %s15009_s1, %s18646_s1   ;;  %s14760_s28 = sphi %s15007_s28, %s18645_s28   ;;  %s14772_s7 = sphi %s15013_s7, %s18648_s7  }
  0x4a   : > { %s18486_s3 = sld [smem:[#allocation13_spill]]  ;;  %s15028_s0 = sadd.s32 4294967295, %s14772_s7  }
  0x4b   : > { %s10939_s10 = sadd.s32 4294967294, %s14772_s7   ;;  %s15032_s11 = sadd.s32 1, %s14772_s7  }
  0x4c   : > { %s857_s15 = sadd.s32 1, %s14768_s2  ;;  %s854_s16 = ssub.s32 %s14772_s7, %s15032_s11 }
  0x4d   : > { %p867_p0 = scmp.ne.s32.totalorder %s14768_s2, %s14764_s1  ;;  %p855_p1 = scmp.eq.s32.totalorder %s854_s16, 0 }
  0x4e   : > { %p868_p2 = scmp.eq.s32.totalorder %s15028_s0, 1  ;;  %p873_p3 = scmp.ne.s32.totalorder %s14764_s1, %s14760_s28 }
  0x4f   : > { %p874_p4 = scmp.eq.s32.totalorder %s10939_s10, 1  ;;  %p10942_p7 = scmp.ge.s32.totalorder %s14772_s7, 1 }
  0x50   : > { %s15043_s18 = scalar_select %p855_p1, %s14768_s2, %s857_s15  }
  0x51   : > { %p15045_p5 = por %p868_p2, %p867_p0  ;;  %p15049_p6 = por %p874_p4, %p873_p3 }
  0x52   : > { %p1047_p8 = scmp.lt.s32.totalorder %s14772_s7, 3 }
  0x54   : > { %p1048_p9 = pnand %p10942_p7, %p1047_p8 }
  0x56   : > { %1051 = sbr.rel (%p1048_p9) target bundleno = 4099 (0x1003), region = 160 }
  0x5d   : > { %v1186_v0 = vld [vmem:[%s14850_s25] sm:$0xff]  ;;  %v1187_v1 = vld [vmem:[%s14850_s25 + $0x8] sm:$0xff]  ;;  %v1188_v2 = vld [vmem:[%s14850_s25 + $0x10] sm:$0xff]  ;;  %v14810_v3 = vmov 0.0|0.0   ;;  %vm14811_vm0 = vmmov 0   ;;  %v14812_v6 = vmov 0.0  }
  0x5e   : > { %13257 = vmatprep.subr.bf16.mxu0 %v14810_v3  ;;  %v13258_v4 = vpack.c.bf16 %v1187_v1, %v1186_v0  ;;  %v1189_v5 = vld [vmem:[%s14850_s25 + $0x18] sm:$0xff]  ;;  %12093 = vmatprep.mubr.msk.f32.mxu0 %vm14811_vm0, %v14812_v6  ;;  %p1161_p10 = scmp.lt.s32.totalorder %s15028_s0, 1  ;;  %s18489_s5 = sld [smem:[#allocation8_spill]]  ;;  %v1190_v8 = vld [vmem:[%s14850_s25 + $0x20] sm:$0xff]  ;;  %v1191_v9 = vld [vmem:[%s14850_s25 + $0x28] sm:$0xff]  ;;  %vm1201_vm1 = vcmask 523264  }
  0x5f   : > { %13269 = vmatprep.subr.bf16.mxu1 %v14810_v3  ;;  %12104 = vmatprep.mubr.msk.f32.mxu1 %vm14811_vm0, %v14812_v6  ;;  %v13261_v7 = vpack.c.bf16 %v1189_v5, %v1188_v2  ;;  %v13264_v10 = vpack.c.bf16 %v1191_v9, %v1190_v8  ;;  %v1192_v11 = vld [vmem:[%s14850_s25 + $0x30] sm:$0xff]  ;;  %v1193_v12 = vld [vmem:[%s14850_s25 + $0x38] sm:$0xff]  ;;  %v1284_v15 = vld [vmem:[%s18486_s3] sm:$0xff]  ;;  %s18490_s9 = sld [smem:[#allocation9_spill]]  ;;  %vm1295_vm2 = vcmask 261120   ;;  %vm1482_vm3 = vcmask 64512  }
  0x60   : > { %13259 = vmatpush3.bf16.msra.mxu0 %v13258_v4  ;;  %s15066_s26 = scalar_select %p1161_p10, %s15028_s0, 1  ;;  %v13267_v13 = vpack.c.bf16 %v1193_v12, %v1192_v11  ;;  %v1285_v16 = vld [vmem:[%s18486_s3 + $0x8] sm:$0xff]  ;;  %v1286_v17 = vld [vmem:[%s18486_s3 + $0x10] sm:$0xff]  ;;  %v1287_v19 = vld [vmem:[%s18486_s3 + $0x18] sm:$0xff]  ;;  %vm3067_vm4 = vcmask 130048   ;;  %vm4647_vm5 = vcmask 195584  }
  0x61   : > { %13260 = vmatprep.subr.bf16.mxu0 %v14810_v3  ;;  %v13270_v18 = vpack.c.bf16 %v1285_v16, %v1284_v15  ;;  %v13273_v20 = vpack.c.bf16 %v1287_v19, %v1286_v17  ;;  %v1402_v21 = vld [vmem:[%s14870_s14] sm:$0xff]  ;;  %s18491_s8 = sld [smem:[#allocation14_spill]]  ;;  %v1441_v4 = vld [vmem:[%s18485_s4 + $0x8] sm:$0xff]  ;;  %s18492_s13 = sld [smem:[#allocation10_spill]]  ;;  %vm16718_vm6 = vmpackc.low %vm1295_vm2, %vm1295_vm2 }
  0x62   : > { %s10945_s10 = sshll.u32 %s15066_s26, 3  ;;  %v10954_v22 = vld [vmem:[%s14855_s29] ss:$0 sm:$0xff]  ;;  %s18380_s16 = sshll.u32 %s15066_s26, 8 }
  0x63   : > { %13271 = vmatpush3.bf16.msra.mxu1 %v13270_v18  ;;  %v15161_v9 = vld [vmem:[%s14875_s19] ss:$0 sm:$0xff]  ;;  %s18494_s6 = sld [smem:[#allocation15_spill]] }
  0x64   : > { %13262 = vmatpush3.bf16.msra.mxu0 %v13261_v7  ;;  %s1164_s15 = scalar_lea.vmem %s18489_s5, %s10945_s10  ;;  %13272 = vmatprep.subr.bf16.mxu1 %v14810_v3  ;;  %s18382_s5 = sshll.u32 %s15066_s26, 6 }
  0x65   : > { %13263 = vmatprep.subr.bf16.mxu0 %v14810_v3  ;;  %v1185_v14 = vld [vmem:[%s1164_s15] sm:$0xff]  ;;  %s15086_s10 = scalar_lea.vmem %s18490_s9, %s18380_s16  ;;  %s15156_s15 = sand.u32 1, %s14764_s1  }
  0x66   : > { %v1370_v35 = vld [vmem:[%s15086_s10] sm:$0xff]  ;;  %v1371_v36 = vld [vmem:[%s15086_s10 + $0x8] sm:$0xff]  ;;  %v1372_v37 = vld [vmem:[%s15086_s10 + $0x10] sm:$0xff]  ;;  %s10943_s16 = sshll.u32 %s15156_s15, 3 }
  0x67   : > { %13274 = vmatpush3.bf16.msra.mxu1 %v13273_v20  ;;  %v1373_v38 = vld [vmem:[%s15086_s10 + $0x18] sm:$0xff]  ;;  %v1374_v39 = vld [vmem:[%s15086_s10 + $0x20] sm:$0xff]  ;;  %v1375_v40 = vld [vmem:[%s15086_s10 + $0x28] sm:$0xff]  ;;  %s15163_s3 = scalar_lea.vmem [#allocation2], %s10943_s16  ;;  %s18493_s16 = sshll.u32 %s15066_s26, 8 }
  0x68   : > { %13265 = vmatpush3.bf16.msra.mxu0 %v13264_v10  ;;  %12107 = vmatprep.subr.mxu1 %v1402_v21  ;;  %v1376_v41 = vld [vmem:[%s15086_s10 + $0x30] sm:$0xff]  ;;  %v1377_v42 = vld [vmem:[%s15086_s10 + $0x38] sm:$0xff]  ;;  %v1378_v43 = vld [vmem:[%s15086_s10 + $0x40] sm:$0xff] }
  0x69   : > { %13266 = vmatprep.subr.bf16.mxu0 %v14810_v3  ;;  %v1379_v44 = vld [vmem:[%s15086_s10 + $0x48] sm:$0xff]  ;;  %v1380_v45 = vld [vmem:[%s15086_s10 + $0x50] sm:$0xff]  ;;  %v1381_v46 = vld [vmem:[%s15086_s10 + $0x58] sm:$0xff] }
  0x6a   : > { %v1382_v47 = vld [vmem:[%s15086_s10 + $0x60] sm:$0xff]  ;;  %v1383_v48 = vld [vmem:[%s15086_s10 + $0x68] sm:$0xff]  ;;  %v1384_v49 = vld [vmem:[%s15086_s10 + $0x70] sm:$0xff] }
  0x6b   : > { %v1385_v50 = vld [vmem:[%s15086_s10 + $0x78] sm:$0xff]  ;;  %v1386_v51 = vld [vmem:[%s15086_s10 + $0x80] sm:$0xff]  ;;  %v1387_v52 = vld [vmem:[%s15086_s10 + $0x88] sm:$0xff] }
  0x6c   : > { %13268 = vmatpush3.bf16.msra.mxu0 %v13267_v13  ;;  %v1388_v53 = vld [vmem:[%s15086_s10 + $0x90] sm:$0xff]  ;;  %v1389_v54 = vld [vmem:[%s15086_s10 + $0x98] sm:$0xff]  ;;  %v1390_v55 = vld [vmem:[%s15086_s10 + $0xa0] sm:$0xff] }
  0x6d   : > { %v1391_v56 = vld [vmem:[%s15086_s10 + $0xa8] sm:$0xff]  ;;  %v1392_v57 = vld [vmem:[%s15086_s10 + $0xb0] sm:$0xff]  ;;  %v1393_v58 = vld [vmem:[%s15086_s10 + $0xb8] sm:$0xff] }
  0x6e   : > { %v1394_v59 = vld [vmem:[%s15086_s10 + $0xc0] sm:$0xff]  ;;  %v1395_v60 = vld [vmem:[%s15086_s10 + $0xc8] sm:$0xff]  ;;  %v1396_v61 = vld [vmem:[%s15086_s10 + $0xd0] sm:$0xff] }
  0x6f   : > { %12094 = vmatmul.mubr.msk.f32.vlgmr.msra.gmra.mrb[0].mxu0 %vm1201_vm1, %v1185_v14  ;;  %v1397_v62 = vld [vmem:[%s15086_s10 + $0xd8] sm:$0xff]  ;;  %v1398_v63 = vld [vmem:[%s15086_s10 + $0xe0] sm:$0xff]  ;;  %v1399_v0 = vld [vmem:[%s15086_s10 + $0xe8] sm:$0xff] }
  0x70   : > { %v1400_v1 = vld [vmem:[%s15086_s10 + $0xf0] sm:$0xff]  ;;  %v1401_v2 = vld [vmem:[%s15086_s10 + $0xf8] sm:$0xff]  ;;  %v10956_v5 = vld [vmem:[%s18491_s8] ss:$0 sm:$0xff]  ;;  %s15599_s10 = scalar_lea.vmem %s18492_s13, %s18493_s16  ;;  %s18497_s16 = sld [smem:[#allocation17_spill]] }
  0x71   : > { %s18504_s8 = sld [smem:[#allocation19_spill]] }
 0x142   : > { %v1271_v23 = vpop.f32.mrb[0].mxu0 }
 0x143   : > { %v1272_v24 = vadd.f32 %v10954_v22, %v1271_v23  ;;  %v12095_v25 = vpop.f32.mrb[1].mxu0 }
 0x145   : > { %v1275_v26 = vmul.f32 %v1272_v24, %v1272_v24 }
 0x147   : > { %v1276_v27 = vmul.f32 %v1275_v26, %v1272_v24 }
 0x149   : > { %v1277_v28 = vmul.f32 0.044715, %v1276_v27 }
 0x14b   : > { %v1278_v29 = vadd.f32 %v1277_v28, %v1272_v24 }
 0x14d   : > { %v1279_v30 = vmul.f32 0.7978846, %v1278_v29 }
 0x14f   : > { %14208 = vtanh.f32 %v1279_v30 }
 0x159   : > { %v14209_v31 = vpop.eup %14208 }
 0x15a   : > { %v1281_v32 = vadd.f32 1.0, %v14209_v31 }
 0x15c   : > { %v1282_v33 = vmul.f32 0.5, %v1281_v32 }
 0x15e   : > { %v1283_v34 = vmul.f32 %v1282_v33, %v1272_v24 }
 0x160   : > { %12105 = vmatmul.mubr.msk.f32.vlgmr.msra.gmra.mrb[0].mxu1 %vm1295_vm2, %v1283_v34 }
 0x161   : > { %12108 = vmatpush3.msra.mxu1 %v1402_v21  ;;  %12109 = vmatprep.mubr.msk.f32.mxu1 %vm1482_vm3, %v1370_v35 }
 0x162   : > { %13275 = vmatprep.subr.bf16.mxu1 %v14810_v3 }
 0x164   : > { %12110 = vmatmul.mubr.msk.f32.vlgmr.msra.gmra.mrb[2].mxu1 %vm1482_vm3, %v1371_v36 }
 0x165   : > { %12112 = vmatprep.mubr.msk.f32.mxu1 %vm1482_vm3, %v1372_v37 }
 0x168   : > { %12113 = vmatmul.mubr.msk.f32.gmra.mrb[4].mxu1 %vm1482_vm3, %v1373_v38 }
 0x169   : > { %12115 = vmatprep.mubr.msk.f32.mxu1 %vm1482_vm3, %v1374_v39 }
 0x16c   : > { %12116 = vmatmul.mubr.msk.f32.gmra.mrb[6].mxu1 %vm1482_vm3, %v1375_v40 }
 0x16d   : > { %12118 = vmatprep.mubr.msk.f32.mxu1 %vm1482_vm3, %v1376_v41 }
 0x170   : > { %12119 = vmatmul.mubr.msk.f32.gmra.mrb[8].mxu1 %vm1482_vm3, %v1377_v42 }
 0x171   : > { %12121 = vmatprep.mubr.msk.f32.mxu1 %vm1482_vm3, %v1378_v43 }
 0x174   : > { %12122 = vmatmul.mubr.msk.f32.gmra.mrb[10].mxu1 %vm1482_vm3, %v1379_v44 }
 0x175   : > { %12124 = vmatprep.mubr.msk.f32.mxu1 %vm1482_vm3, %v1380_v45 }
 0x178   : > { %12125 = vmatmul.mubr.msk.f32.gmra.mrb[12].mxu1 %vm1482_vm3, %v1381_v46 }
 0x179   : > { %12127 = vmatprep.mubr.msk.f32.mxu1 %vm1482_vm3, %v1382_v47 }
 0x17c   : > { %12128 = vmatmul.mubr.msk.f32.gmra.mrb[14].mxu1 %vm1482_vm3, %v1383_v48 }
 0x17d   : > { %12130 = vmatprep.mubr.msk.f32.mxu1 %vm1482_vm3, %v1384_v49 }
 0x180   : > { %12131 = vmatmul.mubr.msk.f32.gmra.mrb[16].mxu1 %vm1482_vm3, %v1385_v50 }
 0x181   : > { %12133 = vmatprep.mubr.msk.f32.mxu1 %vm1482_vm3, %v1386_v51 }
 0x184   : > { %12134 = vmatmul.mubr.msk.f32.gmra.mrb[18].mxu1 %vm1482_vm3, %v1387_v52 }
 0x185   : > { %12136 = vmatprep.mubr.msk.f32.mxu1 %vm1482_vm3, %v1388_v53 }
 0x188   : > { %12137 = vmatmul.mubr.msk.f32.gmra.mrb[20].mxu1 %vm1482_vm3, %v1389_v54 }
 0x189   : > { %12139 = vmatprep.mubr.msk.f32.mxu1 %vm1482_vm3, %v1390_v55 }
 0x18c   : > { %12140 = vmatmul.mubr.msk.f32.gmra.mrb[22].mxu1 %vm1482_vm3, %v1391_v56 }
 0x18d   : > { %12142 = vmatprep.mubr.msk.f32.mxu1 %vm1482_vm3, %v1392_v57 }
 0x190   : > { %12143 = vmatmul.mubr.msk.f32.gmra.mrb[24].mxu1 %vm1482_vm3, %v1393_v58 }
 0x191   : > { %12145 = vmatprep.mubr.msk.f32.mxu1 %vm1482_vm3, %v1394_v59 }
 0x194   : > { %12146 = vmatmul.mubr.msk.f32.gmra.mrb[26].mxu1 %vm1482_vm3, %v1395_v60 }
 0x195   : > { %12148 = vmatprep.mubr.msk.f32.mxu1 %vm1482_vm3, %v1396_v61 }
 0x198   : > { %12149 = vmatmul.mubr.msk.f32.gmra.mrb[28].mxu1 %vm1482_vm3, %v1397_v62 }
 0x199   : > { %12151 = vmatprep.mubr.msk.f32.mxu1 %vm1482_vm3, %v1398_v63 }
 0x19c   : > { %12152 = vmatmul.mubr.msk.f32.gmra.mrb[30].mxu1 %vm1482_vm3, %v1399_v0 }
 0x19d   : > { %12154 = vmatprep.mubr.msk.f32.mxu1 %vm1482_vm3, %v1400_v1 }
 0x1a0   : > { %12155 = vmatmul.mubr.msk.f32.gmra.mrb[32].mxu1 %vm1482_vm3, %v1401_v2 }
 0x1a1   : > { %2156 = vmatprep.mubr.f32.mxu1 %v1441_v4 }
 0x233   : > { %v1365_v6 = vpop.f32.mrb[0].mxu1 }
 0x234   : > { %v1366_v7 = vadd.f32 %v10956_v5, %v1365_v6  ;;  %v12106_v8 = vpop.f32.mrb[1].mxu1 }
 0x236   : > { %1369 = vst.msk [vmem:[%s15163_s3] sm:$0xff] %vm1295_vm2, %v1366_v7 }
 0x237   : > { %v12111_v10 = vpop.f32.mrb[2].mxu1 }
 0x238   : > { %v15168_v11 = vadd.f32 %v12111_v10, %v15161_v9  ;;  %v1645_v12 = vpop.f32.mrb[3].mxu1 }
 0x239   : > { %v15171_v13 = vadd.f32 %v15161_v9, %v1645_v12 }
 0x23a   : > { %v1805_v14 = vmul.f32 %v15168_v11, %v15168_v11 }
 0x23b   : > { %v1804_v15 = vmul.f32 %v15171_v13, %v15171_v13  ;;  %v12114_v16 = vpop.f32.mrb[4].mxu1 }
 0x23c   : > { %v1837_v17 = vmul.f32 %v1805_v14, %v15168_v11  ;;  %v15179_v18 = vadd.f32 %v12114_v16, %v15161_v9  ;;  %v1655_v19 = vpop.f32.mrb[5].mxu1 }
 0x23d   : > { %v1836_v20 = vmul.f32 %v1804_v15, %v15171_v13  ;;  %v15183_v21 = vadd.f32 %v15161_v9, %v1655_v19 }
 0x23e   : > { %v1869_v22 = vmul.f32 0.044715, %v1837_v17  ;;  %v1807_v23 = vmul.f32 %v15179_v18, %v15179_v18 }
 0x23f   : > { %v1868_v24 = vmul.f32 0.044715, %v1836_v20  ;;  %v1806_v25 = vmul.f32 %v15183_v21, %v15183_v21  ;;  %v12117_v26 = vpop.f32.mrb[6].mxu1 }
 0x240   : > { %v1901_v27 = vadd.f32 %v1869_v22, %v15168_v11  ;;  %v1839_v28 = vmul.f32 %v1807_v23, %v15179_v18  ;;  %v15192_v29 = vadd.f32 %v12117_v26, %v15161_v9  ;;  %v1665_v30 = vpop.f32.mrb[7].mxu1 }
 0x241   : > { %v1900_v31 = vadd.f32 %v1868_v24, %v15171_v13  ;;  %v1838_v32 = vmul.f32 %v1806_v25, %v15183_v21  ;;  %v15197_v33 = vadd.f32 %v15161_v9, %v1665_v30 }
 0x242   : > { %v1933_v34 = vmul.f32 0.7978846, %v1901_v27  ;;  %v1871_v35 = vmul.f32 0.044715, %v1839_v28  ;;  %v1809_v36 = vmul.f32 %v15192_v29, %v15192_v29 }
 0x243   : > { %v1932_v37 = vmul.f32 0.7978846, %v1900_v31  ;;  %v1870_v38 = vmul.f32 0.044715, %v1838_v32  ;;  %v1808_v39 = vmul.f32 %v15197_v33, %v15197_v33  ;;  %v12120_v40 = vpop.f32.mrb[8].mxu1 }
 0x244   : > { %14210 = vtanh.f32 %v1933_v34  ;;  %v1903_v41 = vadd.f32 %v1871_v35, %v15179_v18  ;;  %v1841_v42 = vmul.f32 %v1809_v36, %v15192_v29  ;;  %v15206_v43 = vadd.f32 %v12120_v40, %v15161_v9  ;;  %v1675_v44 = vpop.f32.mrb[9].mxu1 }
 0x245   : > { %14212 = vtanh.f32 %v1932_v37  ;;  %v1902_v45 = vadd.f32 %v1870_v38, %v15183_v21  ;;  %v1840_v46 = vmul.f32 %v1808_v39, %v15197_v33  ;;  %v15211_v47 = vadd.f32 %v15161_v9, %v1675_v44 }
 0x246   : > { %v1935_v48 = vmul.f32 0.7978846, %v1903_v41  ;;  %v1873_v49 = vmul.f32 0.044715, %v1841_v42  ;;  %v1811_v50 = vmul.f32 %v15206_v43, %v15206_v43 }
 0x247   : > { %v1934_v51 = vmul.f32 0.7978846, %v1902_v45  ;;  %v1872_v52 = vmul.f32 0.044715, %v1840_v46  ;;  %v1810_v53 = vmul.f32 %v15211_v47, %v15211_v47  ;;  %v12123_v54 = vpop.f32.mrb[10].mxu1 }
 0x248   : > { %14214 = vtanh.f32 %v1935_v48  ;;  %v1905_v55 = vadd.f32 %v1873_v49, %v15192_v29  ;;  %v1843_v56 = vmul.f32 %v1811_v50, %v15206_v43  ;;  %v15220_v57 = vadd.f32 %v12123_v54, %v15161_v9  ;;  %v1685_v58 = vpop.f32.mrb[11].mxu1 }
 0x249   : > { %14216 = vtanh.f32 %v1934_v51  ;;  %v1904_v59 = vadd.f32 %v1872_v52, %v15197_v33  ;;  %v1842_v60 = vmul.f32 %v1810_v53, %v15211_v47  ;;  %v15225_v61 = vadd.f32 %v15161_v9, %v1685_v58 }
 0x24a   : > { %v1937_v62 = vmul.f32 0.7978846, %v1905_v55  ;;  %v1875_v63 = vmul.f32 0.044715, %v1843_v56  ;;  %v1813_v0 = vmul.f32 %v15220_v57, %v15220_v57 }
 0x24b   : > { %v1936_v1 = vmul.f32 0.7978846, %v1904_v59  ;;  %v1874_v2 = vmul.f32 0.044715, %v1842_v60  ;;  %v1812_v4 = vmul.f32 %v15225_v61, %v15225_v61  ;;  %v12126_v5 = vpop.f32.mrb[12].mxu1 }
 0x24c   : > { %14218 = vtanh.f32 %v1937_v62  ;;  %v1907_v6 = vadd.f32 %v1875_v63, %v15206_v43  ;;  %v1845_v7 = vmul.f32 %v1813_v0, %v15220_v57  ;;  %v15234_v8 = vadd.f32 %v12126_v5, %v15161_v9  ;;  %v1695_v10 = vpop.f32.mrb[13].mxu1 }
 0x24d   : > { %14220 = vtanh.f32 %v1936_v1  ;;  %v1906_v12 = vadd.f32 %v1874_v2, %v15211_v47  ;;  %v1844_v14 = vmul.f32 %v1812_v4, %v15225_v61  ;;  %v15239_v15 = vadd.f32 %v15161_v9, %v1695_v10 }
 0x24e   : > { %v14211_v16 = vpop.eup %14210  ;;  %v1939_v17 = vmul.f32 0.7978846, %v1907_v6  ;;  %v1877_v19 = vmul.f32 0.044715, %v1845_v7  ;;  %v1815_v20 = vmul.f32 %v15234_v8, %v15234_v8 }
 0x24f   : > { %v14213_v22 = vpop.eup %14212  ;;  %v1997_v23 = vadd.f32 1.0, %v14211_v16  ;;  %v1938_v24 = vmul.f32 0.7978846, %v1906_v12  ;;  %v1876_v25 = vmul.f32 0.044715, %v1844_v14  ;;  %v1814_v26 = vmul.f32 %v15239_v15, %v15239_v15  ;;  %v12129_v27 = vpop.f32.mrb[14].mxu1 }
 0x250   : > { %v1996_v28 = vadd.f32 1.0, %v14213_v22  ;;  %14222 = vtanh.f32 %v1939_v17  ;;  %v1909_v30 = vadd.f32 %v1877_v19, %v15220_v57  ;;  %v1847_v31 = vmul.f32 %v1815_v20, %v15234_v8  ;;  %v1705_v32 = vpop.f32.mrb[15].mxu1 }
 0x251   : > { %v2029_v34 = vmul.f32 0.5, %v1997_v23  ;;  %14224 = vtanh.f32 %v1938_v24  ;;  %v1908_v35 = vadd.f32 %v1876_v25, %v15225_v61  ;;  %v1846_v36 = vmul.f32 %v1814_v26, %v15239_v15 }
 0x252   : > { %v14215_v37 = vpop.eup %14214  ;;  %v2028_v38 = vmul.f32 0.5, %v1996_v28  ;;  %v1941_v39 = vmul.f32 0.7978846, %v1909_v30  ;;  %v1879_v40 = vmul.f32 0.044715, %v1847_v31  ;;  %v15250_v41 = vadd.f32 %v12129_v27, %v15161_v9 }
 0x253   : > { %v14217_v42 = vpop.eup %14216  ;;  %v15253_v44 = vmul.f32 %v2029_v34, %v15168_v11  ;;  %v1999_v45 = vadd.f32 1.0, %v14215_v37  ;;  %v1940_v46 = vmul.f32 0.7978846, %v1908_v35  ;;  %v1878_v48 = vmul.f32 0.044715, %v1846_v36  ;;  %v12132_v49 = vpop.f32.mrb[16].mxu1 }
 0x254   : > { %v15256_v50 = vmul.f32 %v2028_v38, %v15171_v13  ;;  %v1998_v51 = vadd.f32 1.0, %v14217_v42  ;;  %14226 = vtanh.f32 %v1941_v39  ;;  %v1911_v52 = vadd.f32 %v1879_v40, %v15234_v8  ;;  %v1715_v53 = vpop.f32.mrb[17].mxu1 }
 0x255   : > { %v2031_v54 = vmul.f32 0.5, %v1999_v45  ;;  %14228 = vtanh.f32 %v1940_v46  ;;  %v1910_v55 = vadd.f32 %v1878_v48, %v15239_v15  ;;  %v1817_v11 = vmul.f32 %v15250_v41, %v15250_v41 }
 0x256   : > { %v14219_v56 = vpop.eup %14218  ;;  %v2030_v58 = vmul.f32 0.5, %v1998_v51  ;;  %v1943_v59 = vmul.f32 0.7978846, %v1911_v52  ;;  %v15263_v60 = vadd.f32 %v15161_v9, %v1705_v32  ;;  %v15266_v13 = vadd.f32 %v12132_v49, %v15161_v9 }
 0x257   : > { %v14221_v62 = vpop.eup %14220  ;;  %v15269_v63 = vmul.f32 %v2031_v54, %v15179_v18  ;;  %v2001_v0 = vadd.f32 1.0, %v14219_v56  ;;  %v1942_v1 = vmul.f32 0.7978846, %v1910_v55  ;;  %v1849_v2 = vmul.f32 %v1817_v11, %v15250_v41  ;;  %v12135_v4 = vpop.f32.mrb[18].mxu1 }
 0x258   : > { %v15273_v5 = vmul.f32 %v2030_v58, %v15183_v21  ;;  %v2000_v6 = vadd.f32 1.0, %v14221_v62  ;;  %14230 = vtanh.f32 %v1943_v59  ;;  %v1816_v7 = vmul.f32 %v15263_v60, %v15263_v60  ;;  %v1725_v10 = vpop.f32.mrb[19].mxu1 }
 0x259   : > { %v2033_v12 = vmul.f32 0.5, %v2001_v0  ;;  %14232 = vtanh.f32 %v1942_v1  ;;  %v1881_v14 = vmul.f32 0.044715, %v1849_v2  ;;  %v1819_v18 = vmul.f32 %v15266_v13, %v15266_v13 }
 0x25a   : > { %v14223_v16 = vpop.eup %14222  ;;  %v2032_v17 = vmul.f32 0.5, %v2000_v6  ;;  %v1848_v19 = vmul.f32 %v1816_v7, %v15263_v60  ;;  %v15281_v20 = vadd.f32 %v15161_v9, %v1715_v53  ;;  %v15284_v21 = vadd.f32 %v12135_v4, %v15161_v9 }
 0x25b   : > { %v14225_v22 = vpop.eup %14224  ;;  %v15287_v23 = vmul.f32 %v2033_v12, %v15192_v29  ;;  %v2003_v24 = vadd.f32 1.0, %v14223_v16  ;;  %v1913_v25 = vadd.f32 %v1881_v14, %v15250_v41  ;;  %v1851_v26 = vmul.f32 %v1819_v18, %v15266_v13  ;;  %v12138_v27 = vpop.f32.mrb[20].mxu1 }
 0x25c   : > { %v15292_v28 = vmul.f32 %v2032_v17, %v15197_v33  ;;  %v2002_v30 = vadd.f32 1.0, %v14225_v22  ;;  %v1880_v31 = vmul.f32 0.044715, %v1848_v19  ;;  %v1818_v32 = vmul.f32 %v15281_v20, %v15281_v20  ;;  %v1735_v34 = vpop.f32.mrb[21].mxu1 }
 0x25d   : > { %v2035_v35 = vmul.f32 0.5, %v2003_v24  ;;  %v1945_v36 = vmul.f32 0.7978846, %v1913_v25  ;;  %v1883_v37 = vmul.f32 0.044715, %v1851_v26  ;;  %v1821_v29 = vmul.f32 %v15284_v21, %v15284_v21 }
 0x25e   : > { %v14227_v38 = vpop.eup %14226  ;;  %v2034_v39 = vmul.f32 0.5, %v2002_v30  ;;  %v1912_v40 = vadd.f32 %v1880_v31, %v15263_v60  ;;  %v1850_v42 = vmul.f32 %v1818_v32, %v15281_v20  ;;  %v15301_v33 = vadd.f32 %v15161_v9, %v1725_v10 }
 0x25f   : > { %v14229_v45 = vpop.eup %14228  ;;  %v15304_v46 = vmul.f32 %v2035_v35, %v15206_v43  ;;  %v2005_v48 = vadd.f32 1.0, %v14227_v38  ;;  %14234 = vtanh.f32 %v1945_v36  ;;  %v1915_v49 = vadd.f32 %v1883_v37, %v15266_v13  ;;  %v12141_v51 = vpop.f32.mrb[22].mxu1 }
 0x260   : > { %v15308_v52 = vmul.f32 %v2034_v39, %v15211_v47  ;;  %v2004_v53 = vadd.f32 1.0, %v14229_v45  ;;  %v1944_v54 = vmul.f32 0.7978846, %v1912_v40  ;;  %v1882_v55 = vmul.f32 0.044715, %v1850_v42  ;;  %v1745_v11 = vpop.f32.mrb[23].mxu1 }
 0x261   : > { %v2037_v56 = vmul.f32 0.5, %v2005_v48  ;;  %v1947_v58 = vmul.f32 0.7978846, %v1915_v49  ;;  %v1853_v59 = vmul.f32 %v1821_v29, %v15284_v21  ;;  %v1820_v43 = vmul.f32 %v15301_v33, %v15301_v33 }
 0x262   : > { %v14231_v62 = vpop.eup %14230  ;;  %v2036_v0 = vmul.f32 0.5, %v2004_v53  ;;  %14236 = vtanh.f32 %v1944_v54  ;;  %v1914_v1 = vadd.f32 %v1882_v55, %v15281_v20  ;;  %v13276_v47 = vpack.c.bf16 %v15253_v44, %v15256_v50 }
 0x263   : > { %v14233_v2 = vpop.eup %14232  ;;  %v15317_v4 = vmul.f32 %v2037_v56, %v15220_v57  ;;  %v2007_v6 = vadd.f32 1.0, %v14231_v62  ;;  %14238 = vtanh.f32 %v1947_v58  ;;  %v1885_v7 = vmul.f32 0.044715, %v1853_v59  ;;  %v12144_v10 = vpop.f32.mrb[24].mxu1 }
 0x264   : > { %v15320_v12 = vmul.f32 %v2036_v0, %v15225_v61  ;;  %v2006_v14 = vadd.f32 1.0, %v14233_v2  ;;  %v1946_v18 = vmul.f32 0.7978846, %v1914_v1  ;;  %v1852_v16 = vmul.f32 %v1820_v43, %v15301_v33  ;;  %13277 = vmatpush1.bf16.msra.mxu1 %v13276_v47  ;;  %v1755_v17 = vpop.f32.mrb[25].mxu1 }
 0x265   : > { %v2039_v19 = vmul.f32 0.5, %v2007_v6  ;;  %v1917_v44 = vadd.f32 %v1885_v7, %v15284_v21  ;;  %v15325_v50 = vadd.f32 %v12138_v27, %v15161_v9  ;;  %13278 = vmatprep.subr.bf16.mxu1 %v14810_v3  ;;  %v15329_v57 = vadd.f32 %v15161_v9, %v1735_v34 }
 0x266   : > { %v2038_v22 = vmul.f32 0.5, %v2006_v14  ;;  %14240 = vtanh.f32 %v1946_v18  ;;  %v1884_v61 = vmul.f32 0.044715, %v1852_v16  ;;  %v13279_v24 = vpack.c.bf16 %v15269_v63, %v15273_v5 }
 0x267   : > { %v15334_v25 = vmul.f32 %v2039_v19, %v15234_v8  ;;  %v1949_v26 = vmul.f32 0.7978846, %v1917_v44  ;;  %v1823_v30 = vmul.f32 %v15325_v50, %v15325_v50  ;;  %v1822_v27 = vmul.f32 %v15329_v57, %v15329_v57  ;;  %v15340_v31 = vpop.f32.mrb[26].mxu1 }
 0x268   : > { %v15343_v32 = vmul.f32 %v2038_v22, %v15239_v15  ;;  %v1916_v34 = vadd.f32 %v1884_v61, %v15301_v33  ;;  %13280 = vmatpush1.bf16.msra.mxu1 %v13279_v24  ;;  %v15347_v63 = vadd.f32 %v12141_v51, %v15161_v9  ;;  %v15350_v8 = vadd.f32 %v15161_v9, %v1745_v11  ;;  %v1765_v5 = vpop.f32.mrb[27].mxu1 }
 0x269   : > { %v14235_v35 = vpop.eup %14234  ;;  %14242 = vtanh.f32 %v1949_v26  ;;  %v1855_v36 = vmul.f32 %v1823_v30, %v15325_v50  ;;  %v1854_v37 = vmul.f32 %v1822_v27, %v15329_v57  ;;  %13281 = vmatprep.subr.bf16.mxu1 %v14810_v3  ;;  %v13282_v15 = vpack.c.bf16 %v15287_v23, %v15292_v28 }
 0x26a   : > { %v2009_v29 = vadd.f32 1.0, %v14235_v35  ;;  %v1948_v38 = vmul.f32 0.7978846, %v1916_v34  ;;  %v1825_v39 = vmul.f32 %v15347_v63, %v15347_v63  ;;  %v1824_v40 = vmul.f32 %v15350_v8, %v15350_v8 }
 0x26b   : > { %v1887_v42 = vmul.f32 0.044715, %v1855_v36  ;;  %v1886_v45 = vmul.f32 0.044715, %v1854_v37  ;;  %v15362_v48 = vadd.f32 %v12144_v10, %v15161_v9  ;;  %v15365_v49 = vadd.f32 %v15161_v9, %v1755_v17  ;;  %v12150_v51 = vpop.f32.mrb[28].mxu1 }
 0x26c   : > { %v14237_v53 = vpop.eup %14236  ;;  %v2041_v54 = vmul.f32 0.5, %v2009_v29  ;;  %14244 = vtanh.f32 %v1948_v38  ;;  %v1857_v23 = vmul.f32 %v1825_v39, %v15347_v63  ;;  %v1856_v28 = vmul.f32 %v1824_v40, %v15350_v8  ;;  %13283 = vmatpush1.bf16.msra.mxu1 %v13282_v15  ;;  %v1775_v55 = vpop.f32.mrb[29].mxu1 }
 0x26d   : > { %v14239_v11 = vpop.eup %14238  ;;  %v2008_v56 = vadd.f32 1.0, %v14237_v53  ;;  %v1919_v58 = vadd.f32 %v1887_v42, %v15325_v50  ;;  %v1918_v59 = vadd.f32 %v1886_v45, %v15329_v57  ;;  %v1827_v43 = vmul.f32 %v15362_v48, %v15362_v48  ;;  %13284 = vmatprep.subr.bf16.mxu1 %v14810_v3 }
 0x26e   : > { %v15375_v62 = vmul.f32 %v2041_v54, %v15250_v41  ;;  %v2011_v0 = vadd.f32 1.0, %v14239_v11  ;;  %v1889_v1 = vmul.f32 0.044715, %v1857_v23  ;;  %v1888_v47 = vmul.f32 0.044715, %v1856_v28 }
 0x26f   : > { %v2040_v2 = vmul.f32 0.5, %v2008_v56  ;;  %v1951_v6 = vmul.f32 0.7978846, %v1919_v58  ;;  %v1950_v7 = vmul.f32 0.7978846, %v1918_v59  ;;  %v1859_v10 = vmul.f32 %v1827_v43, %v15362_v48  ;;  %v12153_v14 = vpop.f32.mrb[30].mxu1 }
 0x270   : > { %v14241_v18 = vpop.eup %14240  ;;  %v2043_v16 = vmul.f32 0.5, %v2011_v0  ;;  %v1921_v17 = vadd.f32 %v1889_v1, %v15347_v63  ;;  %v1920_v19 = vadd.f32 %v1888_v47, %v15350_v8  ;;  %v1826_v44 = vmul.f32 %v15365_v49, %v15365_v49  ;;  %v1785_v41 = vpop.f32.mrb[31].mxu1 }
 0x271   : > { %v15383_v22 = vmul.f32 %v2040_v2, %v15263_v60  ;;  %v2010_v61 = vadd.f32 1.0, %v14241_v18  ;;  %14246 = vtanh.f32 %v1951_v6  ;;  %v1891_v24 = vmul.f32 0.044715, %v1859_v10 }
 0x272   : > { %v15386_v26 = vmul.f32 %v2043_v16, %v15266_v13  ;;  %14248 = vtanh.f32 %v1950_v7  ;;  %v1953_v30 = vmul.f32 0.7978846, %v1921_v17  ;;  %v1952_v27 = vmul.f32 0.7978846, %v1920_v19 }
 0x273   : > { %v14243_v34 = vpop.eup %14242  ;;  %v2042_v35 = vmul.f32 0.5, %v2010_v61  ;;  %v1923_v36 = vadd.f32 %v1891_v24, %v15362_v48  ;;  %v1858_v37 = vmul.f32 %v1826_v44, %v15365_v49  ;;  %v13285_v15 = vpack.c.bf16 %v15304_v46, %v15308_v52  ;;  %v15392_v60 = vpop.f32.mrb[32].mxu1 }
 0x274   : > { %v2013_v29 = vadd.f32 1.0, %v14243_v34  ;;  %14250 = vtanh.f32 %v1953_v30  ;;  %v15396_v13 = vadd.f32 %v15340_v31, %v15161_v9  ;;  %v15399_v38 = vadd.f32 %v15161_v9, %v1765_v5  ;;  %v15401_v39 = vpop.f32.mrb[33].mxu1 }
 0x275   : > { %v15404_v40 = vmul.f32 %v2042_v35, %v15281_v20  ;;  %14252 = vtanh.f32 %v1952_v27  ;;  %v1955_v42 = vmul.f32 0.7978846, %v1923_v36  ;;  %v1890_v45 = vmul.f32 0.044715, %v1858_v37  ;;  %13286 = vmatpush1.bf16.msra.mxu1 %v13285_v15 }
 0x276   : > { %v14245_v46 = vpop.eup %14244  ;;  %v2045_v52 = vmul.f32 0.5, %v2013_v29  ;;  %v1829_v53 = vmul.f32 %v15396_v13, %v15396_v13  ;;  %13287 = vmatprep.subr.bf16.mxu1 %v14810_v3  ;;  %v1828_v31 = vmul.f32 %v15399_v38, %v15399_v38  ;;  %v13288_v5 = vpack.c.bf16 %v15317_v4, %v15320_v12 }
 0x277   : > { %v2012_v54 = vadd.f32 1.0, %v14245_v46  ;;  %14254 = vtanh.f32 %v1955_v42  ;;  %v1922_v20 = vadd.f32 %v1890_v45, %v15365_v49  ;;  %v15415_v23 = vadd.f32 %v12150_v51, %v15161_v9 }
 0x278   : > { %v15418_v28 = vmul.f32 %v2045_v52, %v15284_v21  ;;  %v1861_v11 = vmul.f32 %v1829_v53, %v15396_v13  ;;  %v1860_v56 = vmul.f32 %v1828_v31, %v15399_v38  ;;  %v15423_v58 = vadd.f32 %v15161_v9, %v1775_v55 }
 0x279   : > { %v2044_v59 = vmul.f32 0.5, %v2012_v54  ;;  %v1954_v43 = vmul.f32 0.7978846, %v1922_v20  ;;  %13289 = vmatpush1.bf16.msra.mxu1 %v13288_v5  ;;  %v1831_v4 = vmul.f32 %v15415_v23, %v15415_v23  ;;  %v13291_v12 = vpack.c.bf16 %v15334_v25, %v15343_v32 }
 0x27a   : > { %v1893_v51 = vmul.f32 0.044715, %v1861_v11  ;;  %v1892_v0 = vmul.f32 0.044715, %v1860_v56  ;;  %13290 = vmatprep.subr.bf16.mxu1 %v14810_v3  ;;  %v1830_v21 = vmul.f32 %v15423_v58, %v15423_v58  ;;  %v15433_v1 = vadd.f32 %v12153_v14, %v15161_v9 }
 0x27b   : > { %v14247_v55 = vpop.eup %14246  ;;  %v15436_v47 = vmul.f32 %v2044_v59, %v15301_v33  ;;  %14256 = vtanh.f32 %v1954_v43  ;;  %v1863_v2 = vmul.f32 %v1831_v4, %v15415_v23  ;;  %v15440_v6 = vadd.f32 %v15161_v9, %v1785_v41 }
 0x27c   : > { %v14249_v25 = vpop.eup %14248  ;;  %v2015_v32 = vadd.f32 1.0, %v14247_v55  ;;  %v1925_v7 = vadd.f32 %v1893_v51, %v15396_v13  ;;  %v1924_v10 = vadd.f32 %v1892_v0, %v15399_v38  ;;  %v1862_v18 = vmul.f32 %v1830_v21, %v15423_v58 }
 0x27d   : > { %v2014_v14 = vadd.f32 1.0, %v14249_v25  ;;  %v1895_v16 = vmul.f32 0.044715, %v1863_v2  ;;  %13292 = vmatpush1.bf16.msra.mxu1 %v13291_v12  ;;  %v1833_v33 = vmul.f32 %v15433_v1, %v15433_v1  ;;  %v1832_v17 = vmul.f32 %v15440_v6, %v15440_v6 }
 0x27e   : > { %v14251_v19 = vpop.eup %14250  ;;  %v2047_v44 = vmul.f32 0.5, %v2015_v32  ;;  %v1957_v41 = vmul.f32 0.7978846, %v1925_v7  ;;  %v1956_v61 = vmul.f32 0.7978846, %v1924_v10  ;;  %13293 = vmatprep.subr.bf16.mxu1 %v14810_v3  ;;  %v13294_v24 = vpack.c.bf16 %v15375_v62, %v15383_v22 }
 0x27f   : > { %v14253_v30 = vpop.eup %14252  ;;  %v2046_v27 = vmul.f32 0.5, %v2014_v14  ;;  %v2017_v34 = vadd.f32 1.0, %v14251_v19  ;;  %v1927_v35 = vadd.f32 %v1895_v16, %v15415_v23  ;;  %v1894_v36 = vmul.f32 0.044715, %v1862_v18 }
 0x280   : > { %v15454_v37 = vmul.f32 %v2047_v44, %v15325_v50  ;;  %v2016_v15 = vadd.f32 1.0, %v14253_v30  ;;  %14258 = vtanh.f32 %v1957_v41  ;;  %v1865_v29 = vmul.f32 %v1833_v33, %v15433_v1 }
 0x281   : > { %v14255_v42 = vpop.eup %14254  ;;  %v2078_v45 = vmul.f32 %v2046_v27, %v15329_v57  ;;  %v2049_v46 = vmul.f32 0.5, %v2017_v34  ;;  %14260 = vtanh.f32 %v1956_v61  ;;  %v1959_v52 = vmul.f32 0.7978846, %v1927_v35  ;;  %13295 = vmatpush1.bf16.msra.mxu1 %v13294_v24 }
 0x282   : > { %v2048_v62 = vmul.f32 0.5, %v2016_v15  ;;  %v2019_v22 = vadd.f32 1.0, %v14255_v42  ;;  %v1926_v53 = vadd.f32 %v1894_v36, %v15423_v58  ;;  %v1897_v31 = vmul.f32 0.044715, %v1865_v29  ;;  %13296 = vmatprep.subr.bf16.mxu1 %v14810_v3 }
 0x283   : > { %v2081_v50 = vmul.f32 %v2049_v46, %v15347_v63  ;;  %14262 = vtanh.f32 %v1959_v52  ;;  %v1864_v5 = vmul.f32 %v1832_v17, %v15440_v6  ;;  %v15464_v54 = vadd.f32 %v15392_v60, %v15161_v9 }
 0x284   : > { %v2080_v57 = vmul.f32 %v2048_v62, %v15350_v8  ;;  %v2051_v20 = vmul.f32 0.5, %v2019_v22  ;;  %v1958_v11 = vmul.f32 0.7978846, %v1926_v53  ;;  %v1929_v56 = vadd.f32 %v1897_v31, %v15433_v1 }
 0x285   : > { %v14257_v59 = vpop.eup %14256  ;;  %v1896_v43 = vmul.f32 0.044715, %v1864_v5  ;;  %v1835_v4 = vmul.f32 %v15464_v54, %v15464_v54  ;;  %v15472_v63 = vadd.f32 %v15161_v9, %v15401_v39  ;;  %v13297_v12 = vpack.c.bf16 %v15386_v26, %v15404_v40 }
 0x286   : > { %v2083_v60 = vmul.f32 %v2051_v20, %v15362_v48  ;;  %v2018_v51 = vadd.f32 1.0, %v14257_v59  ;;  %14264 = vtanh.f32 %v1958_v11  ;;  %v1961_v8 = vmul.f32 0.7978846, %v1929_v56  ;;  %v1440_v56 = vld [vmem:[%s18485_s4] sm:$0xff]  ;;  %v1443_v59 = vld [vmem:[%s18485_s4 + $0x18] sm:$0xff] }
 0x287   : > { %v1928_v0 = vadd.f32 %v1896_v43, %v15440_v6  ;;  %v1867_v21 = vmul.f32 %v1835_v4, %v15464_v54  ;;  %v1834_v55 = vmul.f32 %v15472_v63, %v15472_v63  ;;  %13298 = vmatpush1.bf16.msra.mxu1 %v13297_v12  ;;  %v13300_v9 = vpack.c.bf16 %v15418_v28, %v15436_v47  ;;  %v1445_v43 = vld [vmem:[%s18485_s4 + $0x28] sm:$0xff]  ;;  %v1444_v4 = vld [vmem:[%s18485_s4 + $0x20] sm:$0xff]  ;;  %v1446_v12 = vld [vmem:[%s18485_s4 + $0x30] sm:$0xff] }
 0x288   : > { %v2050_v39 = vmul.f32 0.5, %v2018_v51  ;;  %14266 = vtanh.f32 %v1961_v8  ;;  %13299 = vmatprep.subr.bf16.mxu1 %v14810_v3  ;;  %v13303_v48 = vpack.c.bf16 %v15454_v37, %v2078_v45  ;;  %v13306_v26 = vpack.c.bf16 %v2081_v50, %v2080_v57  ;;  %v1448_v51 = vld [vmem:[%s18485_s4 + $0x40] sm:$0xff]  ;;  %v1451_v8 = vld [vmem:[%s18485_s4 + $0x58] sm:$0xff] }
 0x289   : > { %v1960_v40 = vmul.f32 0.7978846, %v1928_v0  ;;  %v1899_v2 = vmul.f32 0.044715, %v1867_v21  ;;  %v1866_v25 = vmul.f32 %v1834_v55, %v15472_v63  ;;  %v1450_v0 = vld [vmem:[%s18485_s4 + $0x50] sm:$0xff]  ;;  %v1453_v21 = vld [vmem:[%s18485_s4 + $0x68] sm:$0xff] }
 0x28a   : > { %v14259_v32 = vpop.eup %14258  ;;  %v2082_v7 = vmul.f32 %v2050_v39, %v15365_v49  ;;  %v1452_v55 = vld [vmem:[%s18485_s4 + $0x60] sm:$0xff]  ;;  %v1454_v39 = vld [vmem:[%s18485_s4 + $0x70] sm:$0xff] }
 0x28b   : > { %v14261_v10 = vpop.eup %14260  ;;  %v2021_v18 = vadd.f32 1.0, %v14259_v32  ;;  %14268 = vtanh.f32 %v1960_v40  ;;  %v1931_v14 = vadd.f32 %v1899_v2, %v15464_v54  ;;  %v1898_v28 = vmul.f32 0.044715, %v1866_v25  ;;  %13301 = vmatpush1.bf16.msra.mxu1 %v13300_v9  ;;  %v1455_v9 = vld [vmem:[%s18485_s4 + $0x78] sm:$0xff]  ;;  %v1458_v2 = vld [vmem:[%s18485_s4 + $0x90] sm:$0xff]  ;;  %v1461_v25 = vld [vmem:[%s18485_s4 + $0xa8] sm:$0xff] }
 0x28c   : > { %v2020_v47 = vadd.f32 1.0, %v14261_v10  ;;  %13302 = vmatprep.subr.bf16.mxu1 %v14810_v3  ;;  %v13309_v16 = vpack.c.bf16 %v2083_v60, %v2082_v7  ;;  %v1449_v60 = vld [vmem:[%s18485_s4 + $0x48] sm:$0xff]  ;;  %v1459_v40 = vld [vmem:[%s18485_s4 + $0x98] sm:$0xff]  ;;  %v1460_v32 = vld [vmem:[%s18485_s4 + $0xa0] sm:$0xff] }
 0x28d   : > { %v14263_v33 = vpop.eup %14262  ;;  %v2053_v17 = vmul.f32 0.5, %v2021_v18  ;;  %v1963_v19 = vmul.f32 0.7978846, %v1931_v14  ;;  %v1930_v44 = vadd.f32 %v1898_v28, %v15472_v63  ;;  %v1463_v7 = vld [vmem:[%s18485_s4 + $0xb8] sm:$0xff]  ;;  %v1462_v10 = vld [vmem:[%s18485_s4 + $0xb0] sm:$0xff]  ;;  %v1465_v18 = vld [vmem:[%s18485_s4 + $0xc8] sm:$0xff] }
 0x28e   : > { %v2052_v41 = vmul.f32 0.5, %v2020_v47  ;;  %v2023_v61 = vadd.f32 1.0, %v14263_v33  ;;  %v1464_v14 = vld [vmem:[%s18485_s4 + $0xc0] sm:$0xff]  ;;  %v1467_v28 = vld [vmem:[%s18485_s4 + $0xd8] sm:$0xff]  ;;  %v1466_v47 = vld [vmem:[%s18485_s4 + $0xd0] sm:$0xff] }
 0x28f   : > { %v2085_v49 = vmul.f32 %v2053_v17, %v15396_v13  ;;  %14270 = vtanh.f32 %v1963_v19  ;;  %v1962_v24 = vmul.f32 0.7978846, %v1930_v44  ;;  %13304 = vmatpush1.bf16.msra.mxu1 %v13303_v48  ;;  %v1457_v48 = vld [vmem:[%s18485_s4 + $0x88] sm:$0xff]  ;;  %v1468_v33 = vld [vmem:[%s18485_s4 + $0xe0] sm:$0xff]  ;;  %v1471_v17 = vld [vmem:[%s18485_s4 + $0xf8] sm:$0xff] }
 0x290   : > { %v14265_v30 = vpop.eup %14264  ;;  %v2084_v27 = vmul.f32 %v2052_v41, %v15399_v38  ;;  %v2055_v34 = vmul.f32 0.5, %v2023_v61  ;;  %13305 = vmatprep.subr.bf16.mxu1 %v14810_v3  ;;  %v1470_v19 = vld [vmem:[%s18485_s4 + $0xf0] sm:$0xff]  ;;  %v1473_v44 = vld [vmem:[%s18485_s4 + $0x108] sm:$0xff]  ;;  %v1472_v41 = vld [vmem:[%s18485_s4 + $0x100] sm:$0xff] }
 0x291   : > { %v2022_v35 = vadd.f32 1.0, %v14265_v30  ;;  %14272 = vtanh.f32 %v1962_v24  ;;  %v1475_v61 = vld [vmem:[%s18485_s4 + $0x118] sm:$0xff]  ;;  %v14642_v24 = vld [vmem:[%s18485_s4 + $0x8] sm:$0xff]  ;;  %v1408_v30 = vld [vmem:[%s14880_s24 + $0x20] sm:$0xff] }
 0x292   : > { %v14267_v36 = vpop.eup %14266  ;;  %v13312_v37 = vpack.c.bf16 %v2085_v49, %v2084_v27  ;;  %v2087_v15 = vmul.f32 %v2055_v34, %v15415_v23  ;;  %v1474_v49 = vld [vmem:[%s18485_s4 + $0x110] sm:$0xff]  ;;  %v1409_v27 = vld [vmem:[%s14880_s24 + $0x28] sm:$0xff] }
 0x293   : > { %v2054_v29 = vmul.f32 0.5, %v2022_v35  ;;  %v2025_v42 = vadd.f32 1.0, %v14267_v36  ;;  %13307 = vmatpush1.bf16.msra.mxu1 %v13306_v26  ;;  %v1456_v26 = vld [vmem:[%s18485_s4 + $0x80] sm:$0xff]  ;;  %v13323_v34 = vpack.c.bf16 %v1409_v27, %v1408_v30  ;;  %v1410_v35 = vld [vmem:[%s14880_s24 + $0x30] sm:$0xff]  ;;  %v1411_v36 = vld [vmem:[%s14880_s24 + $0x38] sm:$0xff] }
 0x294   : > { %13308 = vmatprep.subr.bf16.mxu1 %v14810_v3  ;;  %v1430_v27 = vld [vmem:[%s14880_s24 + $0xd0] sm:$0xff] }
 0x295   : > { %v14269_v13 = vpop.eup %14268  ;;  %v2086_v45 = vmul.f32 %v2054_v29, %v15423_v58  ;;  %v2057_v46 = vmul.f32 0.5, %v2025_v42  ;;  %13324 = vmatprep.subr.bf16.mxu0 %v13323_v34  ;;  %v1405_v29 = vld [vmem:[%s14880_s24 + $0x8] sm:$0xff] }
 0x296   : > { %v2024_v52 = vadd.f32 1.0, %v14269_v13  ;;  %13326 = vmatpush3.bf16.msra.mxu0 %v13323_v34  ;;  %v1431_v34 = vld [vmem:[%s14880_s24 + $0xd8] sm:$0xff] }
 0x297   : > { %13310 = vmatpush1.bf16.msra.mxu1 %v13309_v16  ;;  %v13315_v38 = vpack.c.bf16 %v2087_v15, %v2086_v45  ;;  %v2089_v62 = vmul.f32 %v2057_v46, %v15433_v1  ;;  %v1469_v16 = vld [vmem:[%s18485_s4 + $0xe8] sm:$0xff]  ;;  %v1404_v15 = vld [vmem:[%s14880_s24] sm:$0xff] }
 0x298   : > { %v2056_v22 = vmul.f32 0.5, %v2024_v52  ;;  %13311 = vmatprep.subr.bf16.mxu1 %v14810_v3  ;;  %v13331_v42 = vpack.c.bf16 %v1405_v29, %v1404_v15  ;;  %v1432_v15 = vld [vmem:[%s14880_s24 + $0xe0] sm:$0xff]  ;;  %v1433_v29 = vld [vmem:[%s14880_s24 + $0xe8] sm:$0xff] }
 0x299   : > { %v14271_v53 = vpop.eup %14270 }
 0x29a   : > { %v2088_v23 = vmul.f32 %v2056_v22, %v15440_v6  ;;  %v2027_v31 = vadd.f32 1.0, %v14271_v53  ;;  %v1407_v22 = vld [vmem:[%s14880_s24 + $0x18] sm:$0xff] }
 0x29b   : > { %v14273_v50 = vpop.eup %14272  ;;  %13313 = vmatpush1.bf16.msra.mxu1 %v13312_v37  ;;  %v13327_v37 = vpack.c.bf16 %v1411_v36, %v1410_v35  ;;  %v13375_v36 = vpack.c.bf16 %v1431_v34, %v1430_v27  ;;  %v15673_v34 = vld [vmem:[%s18494_s6] ss:$0 sm:$0xff] }
 0x29c   : > { %v2059_v5 = vmul.f32 0.5, %v2027_v31  ;;  %v2026_v57 = vadd.f32 1.0, %v14273_v50  ;;  %13314 = vmatprep.subr.bf16.mxu1 %v14810_v3  ;;  %v13318_v58 = vpack.c.bf16 %v2089_v62, %v2088_v23  ;;  %v1406_v62 = vld [vmem:[%s14880_s24 + $0x10] sm:$0xff]  ;;  %v1412_v50 = vld [vmem:[%s14880_s24 + $0x40] sm:$0xff] }
 0x29d   : > { %13328 = vmatprep.subr.bf16.mxu0 %v13327_v37  ;;  %v13335_v23 = vpack.c.bf16 %v1407_v22, %v1406_v62 }
 0x29e   : > { %v2091_v1 = vmul.f32 %v2059_v5, %v15464_v54  ;;  %v2058_v20 = vmul.f32 0.5, %v2026_v57  ;;  %v1442_v54 = vld [vmem:[%s18485_s4 + $0x10] sm:$0xff]  ;;  %13330 = vmatpush3.bf16.msra.mxu0 %v13327_v37  ;;  %v1413_v5 = vld [vmem:[%s14880_s24 + $0x48] sm:$0xff] }
 0x29f   : > { %13316 = vmatpush1.bf16.msra.mxu1 %v13315_v38  ;;  %13332 = vmatprep.subr.bf16.mxu0 %v13331_v42 }
 0x2a0   : > { %v2090_v11 = vmul.f32 %v2058_v20, %v15472_v63  ;;  %13317 = vmatprep.subr.bf16.mxu1 %v14810_v3  ;;  %v1447_v63 = vld [vmem:[%s18485_s4 + $0x38] sm:$0xff]  ;;  %v1414_v20 = vld [vmem:[%s14880_s24 + $0x50] sm:$0xff] }
 0x2a2   : > { %v13321_v6 = vpack.c.bf16 %v2091_v1, %v2090_v11  ;;  %v1415_v11 = vld [vmem:[%s14880_s24 + $0x58] sm:$0xff] }
 0x2a3   : > { %13319 = vmatpush1.bf16.msra.mxu1 %v13318_v58  ;;  %v13339_v58 = vpack.c.bf16 %v1413_v5, %v1412_v50 }
 0x2a4   : > { %13320 = vmatprep.subr.bf16.mxu1 %v14810_v3 }
 0x2a7   : > { %13322 = vmatpush1.bf16.msra.mxu1 %v13321_v6 }
 0x2a8   : > { %13399 = vmatprep.subr.bf16.mxu1 %v14810_v3 }
 0x2aa   : > { %2157 = vmatmul.mubr.f32.vlgmr.msra.gmra.mrb[34].mxu1 %v1440_v56  ;;  %v13343_v56 = vpack.c.bf16 %v1415_v11, %v1414_v20 }
 0x2ab   : > { %2161 = vmatprep.mubr.f32.mxu1 %v1443_v59 }
 0x2ae   : > { %2162 = vmatmul.mubr.f32.gmra.mrb[36].mxu1 %v1442_v54  ;;  %v1416_v54 = vld [vmem:[%s14880_s24 + $0x60] sm:$0xff] }
 0x2af   : > { %2166 = vmatprep.mubr.f32.mxu1 %v1445_v43  ;;  %v1417_v43 = vld [vmem:[%s14880_s24 + $0x68] sm:$0xff] }
 0x2b2   : > { %2167 = vmatmul.mubr.f32.gmra.mrb[38].mxu1 %v1444_v4 }
 0x2b3   : > { %2171 = vmatprep.mubr.f32.mxu1 %v1447_v63  ;;  %v13347_v63 = vpack.c.bf16 %v1417_v43, %v1416_v54  ;;  %v2990_v43 = vld [vmem:[%s15599_s10] sm:$0xff] }
 0x2b6   : > { %2172 = vmatmul.mubr.f32.gmra.mrb[40].mxu1 %v1446_v12 }
 0x2b7   : > { %2176 = vmatprep.mubr.f32.mxu1 %v1449_v60  ;;  %v1418_v60 = vld [vmem:[%s14880_s24 + $0x70] sm:$0xff] }
 0x2ba   : > { %2177 = vmatmul.mubr.f32.gmra.mrb[42].mxu1 %v1448_v51  ;;  %v1419_v51 = vld [vmem:[%s14880_s24 + $0x78] sm:$0xff] }
 0x2bb   : > { %2181 = vmatprep.mubr.f32.mxu1 %v1451_v8 }
 0x2be   : > { %2182 = vmatmul.mubr.f32.gmra.mrb[44].mxu1 %v1450_v0  ;;  %v13351_v0 = vpack.c.bf16 %v1419_v51, %v1418_v60  ;;  %v2994_v60 = vld [vmem:[%s15599_s10 + $0x20] sm:$0xff]  ;;  %v2995_v51 = vld [vmem:[%s15599_s10 + $0x28] sm:$0xff] }
 0x2bf   : > { %2186 = vmatprep.mubr.f32.mxu1 %v1453_v21 }
 0x2c2   : > { %2187 = vmatmul.mubr.f32.gmra.mrb[46].mxu1 %v1452_v55  ;;  %v1420_v55 = vld [vmem:[%s14880_s24 + $0x80] sm:$0xff] }
 0x2c3   : > { %2191 = vmatprep.mubr.f32.mxu1 %v1455_v9  ;;  %v1421_v9 = vld [vmem:[%s14880_s24 + $0x88] sm:$0xff] }
 0x2c6   : > { %2192 = vmatmul.mubr.f32.gmra.mrb[48].mxu1 %v1454_v39 }
 0x2c7   : > { %2196 = vmatprep.mubr.f32.mxu1 %v1457_v48  ;;  %v13355_v48 = vpack.c.bf16 %v1421_v9, %v1420_v55  ;;  %v2999_v55 = vld [vmem:[%s15599_s10 + $0x48] sm:$0xff]  ;;  %v3000_v9 = vld [vmem:[%s15599_s10 + $0x50] sm:$0xff] }
 0x2ca   : > { %2197 = vmatmul.mubr.f32.gmra.mrb[50].mxu1 %v1456_v26 }
 0x2cb   : > { %2201 = vmatprep.mubr.f32.mxu1 %v1459_v40  ;;  %v1422_v40 = vld [vmem:[%s14880_s24 + $0x90] sm:$0xff] }
 0x2ce   : > { %2202 = vmatmul.mubr.f32.gmra.mrb[52].mxu1 %v1458_v2  ;;  %v1423_v2 = vld [vmem:[%s14880_s24 + $0x98] sm:$0xff] }
 0x2cf   : > { %2206 = vmatprep.mubr.f32.mxu1 %v1461_v25 }
 0x2d2   : > { %2207 = vmatmul.mubr.f32.gmra.mrb[54].mxu1 %v1460_v32  ;;  %v13359_v32 = vpack.c.bf16 %v1423_v2, %v1422_v40  ;;  %v3004_v40 = vld [vmem:[%s15599_s10 + $0x70] sm:$0xff]  ;;  %v3005_v2 = vld [vmem:[%s15599_s10 + $0x78] sm:$0xff] }
 0x2d3   : > { %2211 = vmatprep.mubr.f32.mxu1 %v1463_v7 }
 0x2d6   : > { %2212 = vmatmul.mubr.f32.gmra.mrb[56].mxu1 %v1462_v10  ;;  %v1424_v10 = vld [vmem:[%s14880_s24 + $0xa0] sm:$0xff] }
 0x2d7   : > { %2216 = vmatprep.mubr.f32.mxu1 %v1465_v18  ;;  %v1425_v18 = vld [vmem:[%s14880_s24 + $0xa8] sm:$0xff] }
 0x2da   : > { %2217 = vmatmul.mubr.f32.gmra.mrb[58].mxu1 %v1464_v14 }
 0x2db   : > { %2221 = vmatprep.mubr.f32.mxu1 %v1467_v28  ;;  %v13363_v28 = vpack.c.bf16 %v1425_v18, %v1424_v10  ;;  %v3009_v10 = vld [vmem:[%s15599_s10 + $0x98] sm:$0xff]  ;;  %v3010_v18 = vld [vmem:[%s15599_s10 + $0xa0] sm:$0xff] }
 0x2de   : > { %2222 = vmatmul.mubr.f32.gmra.mrb[60].mxu1 %v1466_v47 }
 0x2df   : > { %2226 = vmatprep.mubr.f32.mxu1 %v1469_v16  ;;  %v1426_v16 = vld [vmem:[%s14880_s24 + $0xb0] sm:$0xff] }
 0x2e2   : > { %2227 = vmatmul.mubr.f32.gmra.mrb[62].mxu1 %v1468_v33  ;;  %v1427_v33 = vld [vmem:[%s14880_s24 + $0xb8] sm:$0xff] }
 0x2e3   : > { %2231 = vmatprep.mubr.f32.mxu1 %v1471_v17 }
 0x2e6   : > { %2232 = vmatmul.mubr.f32.gmra.mrb[64].mxu1 %v1470_v19  ;;  %v13367_v19 = vpack.c.bf16 %v1427_v33, %v1426_v16  ;;  %v3014_v16 = vld [vmem:[%s15599_s10 + $0xc0] sm:$0xff]  ;;  %v3015_v33 = vld [vmem:[%s15599_s10 + $0xc8] sm:$0xff] }
 0x2e7   : > { %2236 = vmatprep.mubr.f32.mxu1 %v1473_v44 }
 0x2ea   : > { %2237 = vmatmul.mubr.f32.gmra.mrb[66].mxu1 %v1472_v41  ;;  %v1428_v41 = vld [vmem:[%s14880_s24 + $0xc0] sm:$0xff] }
 0x2eb   : > { %2241 = vmatprep.mubr.f32.mxu1 %v1475_v61  ;;  %v1429_v61 = vld [vmem:[%s14880_s24 + $0xc8] sm:$0xff] }
 0x2ee   : > { %2242 = vmatmul.mubr.f32.gmra.mrb[68].mxu1 %v1474_v49 }
 0x2ef   : > { %3741 = vmatprep.mubr.f32.mxu1 %v14642_v24  ;;  %v13371_v24 = vpack.c.bf16 %v1429_v61, %v1428_v41  ;;  %v3019_v41 = vld [vmem:[%s15599_s10 + $0xe8] sm:$0xff]  ;;  %v3020_v61 = vld [vmem:[%s15599_s10 + $0xf0] sm:$0xff] }
 0x37d   : > { %v2158_v13 = vpop.f32.mrb[34].mxu1 }
 0x37e   : > { %v2160_v45 = vpop.f32.mrb[35].mxu1 }
 0x381   : > { %v2163_v46 = vpop.f32.mrb[36].mxu1 }
 0x382   : > { %v2165_v52 = vpop.f32.mrb[37].mxu1 }
 0x383   : > { %v1435_v52 = vld [vmem:[%s14880_s24 + $0xf8] sm:$0xff] }
 0x385   : > { %v2168_v38 = vpop.f32.mrb[38].mxu1 }
 0x386   : > { %v2170_v53 = vpop.f32.mrb[39].mxu1  ;;  %12165 = vmatprep.mubr.msk.f32.mxu0 %vm1295_vm2, %v2168_v38 }
 0x387   : > { %v1436_v53 = vld [vmem:[%s14880_s24 + $0x100] sm:$0xff] }
 0x389   : > { %v2173_v31 = vpop.f32.mrb[40].mxu1 }
 0x38a   : > { %v2175_v57 = vpop.f32.mrb[41].mxu1  ;;  %12166 = vmatmul.mubr.msk.f32.vlgmr.msra.gmra.mrb[2].mxu0 %vm1295_vm2, %v2173_v31 }
 0x38b   : > { %13334 = vmatpush3.bf16.msra.mxu0 %v13331_v42  ;;  %12176 = vmatprep.mubr.msk.f32.mxu0 %vm1295_vm2, %v2158_v13  ;;  %v13379_v13 = vpack.c.bf16 %v1433_v29, %v1432_v15  ;;  %v1438_v57 = vld [vmem:[%s14880_s24 + $0x110] sm:$0xff] }
 0x38c   : > { %13336 = vmatprep.subr.bf16.mxu0 %v13335_v23 }
 0x38d   : > { %v2178_v1 = vpop.f32.mrb[42].mxu1 }
 0x38e   : > { %v2180_v6 = vpop.f32.mrb[43].mxu1 }
 0x38f   : > { %13338 = vmatpush3.bf16.msra.mxu0 %v13335_v23  ;;  %v1437_v23 = vld [vmem:[%s14880_s24 + $0x108] sm:$0xff]  ;;  %v3022_v6 = vld [vmem:[%s14885_s30] sm:$0xff] }
 0x390   : > { %13340 = vmatprep.subr.bf16.mxu0 %v13339_v58  ;;  %v13387_v50 = vpack.c.bf16 %v1437_v23, %v1436_v53 }
 0x391   : > { %v2183_v59 = vpop.f32.mrb[44].mxu1 }
 0x392   : > { %12177 = vmatmul.mubr.msk.f32.vlgmr.msra.gmra.mrb[2].mxu0 %vm1295_vm2, %v2163_v46  ;;  %v2185_v4 = vpop.f32.mrb[45].mxu1  ;;  %v1434_v46 = vld [vmem:[%s14880_s24 + $0xf0] sm:$0xff] }
 0x393   : > { %13342 = vmatpush3.bf16.msra.mxu0 %v13339_v58  ;;  %12187 = vmatprep.mubr.msk.f32.mxu0 %vm1295_vm2, %v2178_v1  ;;  %v13383_v62 = vpack.c.bf16 %v1435_v52, %v1434_v46  ;;  %v1439_v58 = vld [vmem:[%s14880_s24 + $0x118] sm:$0xff]  ;;  %v2991_v4 = vld [vmem:[%s15599_s10 + $0x8] sm:$0xff] }
 0x394   : > { %13344 = vmatprep.subr.bf16.mxu0 %v13343_v56  ;;  %v13391_v20 = vpack.c.bf16 %v1439_v58, %v1438_v57 }
 0x395   : > { %v2188_v12 = vpop.f32.mrb[46].mxu1 }
 0x396   : > { %v2190_v8 = vpop.f32.mrb[47].mxu1 }
 0x397   : > { %13346 = vmatpush3.bf16.msra.mxu0 %v13343_v56  ;;  %v3023_v56 = vld [vmem:[%s14885_s30 + $0x8] sm:$0xff]  ;;  %v2996_v8 = vld [vmem:[%s15599_s10 + $0x30] sm:$0xff] }
 0x398   : > { %13348 = vmatprep.subr.bf16.mxu0 %v13347_v63  ;;  %v13395_v54 = vpack.c.bf16 %v3023_v56, %v3022_v6 }
 0x399   : > { %v2193_v21 = vpop.f32.mrb[48].mxu1 }
 0x39a   : > { %12188 = vmatmul.mubr.msk.f32.vlgmr.msra.gmra.mrb[2].mxu0 %vm1295_vm2, %v2183_v59  ;;  %v2195_v39 = vpop.f32.mrb[49].mxu1 }
 0x39b   : > { %13350 = vmatpush3.bf16.msra.mxu0 %v13347_v63  ;;  %12198 = vmatprep.mubr.msk.f32.mxu0 %vm1295_vm2, %v2188_v12  ;;  %v2992_v63 = vld [vmem:[%s15599_s10 + $0x10] sm:$0xff]  ;;  %v2993_v12 = vld [vmem:[%s15599_s10 + $0x18] sm:$0xff] }
 0x39c   : > { %13352 = vmatprep.subr.bf16.mxu0 %v13351_v0  ;;  %v3001_v39 = vld [vmem:[%s15599_s10 + $0x58] sm:$0xff] }
 0x39d   : > { %v2198_v26 = vpop.f32.mrb[50].mxu1 }
 0x39e   : > { %v2200_v25 = vpop.f32.mrb[51].mxu1 }
 0x39f   : > { %13354 = vmatpush3.bf16.msra.mxu0 %v13351_v0  ;;  %v2997_v0 = vld [vmem:[%s15599_s10 + $0x38] sm:$0xff]  ;;  %v3006_v25 = vld [vmem:[%s15599_s10 + $0x80] sm:$0xff] }
 0x3a0   : > { %13356 = vmatprep.subr.bf16.mxu0 %v13355_v48 }
 0x3a1   : > { %v2203_v7 = vpop.f32.mrb[52].mxu1 }
 0x3a2   : > { %12199 = vmatmul.mubr.msk.f32.vlgmr.msra.gmra.mrb[2].mxu0 %vm1295_vm2, %v2193_v21  ;;  %v2205_v14 = vpop.f32.mrb[53].mxu1  ;;  %v2998_v21 = vld [vmem:[%s15599_s10 + $0x40] sm:$0xff] }
 0x3a3   : > { %13358 = vmatpush3.bf16.msra.mxu0 %v13355_v48  ;;  %12209 = vmatprep.mubr.msk.f32.mxu0 %vm1295_vm2, %v2198_v26  ;;  %v3002_v48 = vld [vmem:[%s15599_s10 + $0x60] sm:$0xff]  ;;  %v3003_v26 = vld [vmem:[%s15599_s10 + $0x68] sm:$0xff] }
 0x3a4   : > { %13360 = vmatprep.subr.bf16.mxu0 %v13359_v32  ;;  %v3011_v14 = vld [vmem:[%s15599_s10 + $0xa8] sm:$0xff] }
 0x3a5   : > { %v2208_v47 = vpop.f32.mrb[54].mxu1 }
 0x3a6   : > { %v2210_v17 = vpop.f32.mrb[55].mxu1 }
 0x3a7   : > { %13362 = vmatpush3.bf16.msra.mxu0 %v13359_v32  ;;  %v3007_v32 = vld [vmem:[%s15599_s10 + $0x88] sm:$0xff]  ;;  %v3016_v17 = vld [vmem:[%s15599_s10 + $0xd0] sm:$0xff] }
 0x3a8   : > { %13364 = vmatprep.subr.bf16.mxu0 %v13363_v28 }
 0x3a9   : > { %v2213_v44 = vpop.f32.mrb[56].mxu1 }
 0x3aa   : > { %12210 = vmatmul.mubr.msk.f32.vlgmr.msra.gmra.mrb[2].mxu0 %vm1295_vm2, %v2203_v7  ;;  %v2215_v49 = vpop.f32.mrb[57].mxu1  ;;  %v3008_v7 = vld [vmem:[%s15599_s10 + $0x90] sm:$0xff] }
 0x3ab   : > { %13366 = vmatpush3.bf16.msra.mxu0 %v13363_v28  ;;  %12220 = vmatprep.mubr.msk.f32.mxu0 %vm1295_vm2, %v2208_v47  ;;  %v3012_v28 = vld [vmem:[%s15599_s10 + $0xb0] sm:$0xff]  ;;  %v3013_v47 = vld [vmem:[%s15599_s10 + $0xb8] sm:$0xff] }
 0x3ac   : > { %13368 = vmatprep.subr.bf16.mxu0 %v13367_v19  ;;  %v3021_v49 = vld [vmem:[%s15599_s10 + $0xf8] sm:$0xff] }
 0x3ad   : > { %v2218_v30 = vpop.f32.mrb[58].mxu1 }
 0x3ae   : > { %v2220_v35 = vpop.f32.mrb[59].mxu1 }
 0x3af   : > { %13370 = vmatpush3.bf16.msra.mxu0 %v13367_v19  ;;  %v3017_v19 = vld [vmem:[%s15599_s10 + $0xd8] sm:$0xff] }
 0x3b0   : > { %13372 = vmatprep.subr.bf16.mxu0 %v13371_v24 }
 0x3b1   : > { %v2223_v37 = vpop.f32.mrb[60].mxu1 }
 0x3b2   : > { %12221 = vmatmul.mubr.msk.f32.vlgmr.msra.gmra.mrb[2].mxu0 %vm1295_vm2, %v2213_v44  ;;  %v2225_v42 = vpop.f32.mrb[61].mxu1  ;;  %v3018_v44 = vld [vmem:[%s15599_s10 + $0xe0] sm:$0xff]  ;;  %s18498_s10 = sld [smem:[#allocation11_spill]] }
 0x3b3   : > { %13374 = vmatpush3.bf16.msra.mxu0 %v13371_v24  ;;  %12231 = vmatprep.mubr.msk.f32.mxu0 %vm1295_vm2, %v2218_v30 }
 0x3b4   : > { %13376 = vmatprep.subr.bf16.mxu0 %v13375_v36 }
 0x3b5   : > { %v2228_v45 = vpop.f32.mrb[62].mxu1 }
 0x3b6   : > { %v2230_v38 = vpop.f32.mrb[63].mxu1 }
 0x3b7   : > { %13378 = vmatpush3.bf16.msra.mxu0 %v13375_v36 }
 0x3b8   : > { %13380 = vmatprep.subr.bf16.mxu0 %v13379_v13  ;;  %s1179_s6 = scalar_lea.vmem %s18498_s10, %s18382_s5  ;;  %s18500_s10 = sld [smem:[#allocation24_spill]] }
 0x3b9   : > { %v2233_v22 = vpop.f32.mrb[64].mxu1  ;;  %s18502_s5 = sld [smem:[#allocation12_spill]] }
 0x3ba   : > { %12232 = vmatmul.mubr.msk.f32.vlgmr.msra.gmra.mrb[2].mxu0 %vm1295_vm2, %v2223_v37  ;;  %v2235_v31 = vpop.f32.mrb[65].mxu1 }
 0x3bb   : > { %13382 = vmatpush3.bf16.msra.mxu0 %v13379_v13  ;;  %12242 = vmatprep.mubr.msk.f32.mxu0 %vm1295_vm2, %v2228_v45 }
 0x3bc   : > { %13384 = vmatprep.subr.bf16.mxu0 %v13383_v62 }
 0x3bd   : > { %v2238_v5 = vpop.f32.mrb[66].mxu1 }
 0x3be   : > { %v2240_v1 = vpop.f32.mrb[67].mxu1 }
 0x3bf   : > { %13386 = vmatpush3.bf16.msra.mxu0 %v13383_v62 }
 0x3c0   : > { %13388 = vmatprep.subr.bf16.mxu0 %v13387_v50 }
 0x3c1   : > { %v2243_v11 = vpop.f32.mrb[68].mxu1 }
 0x3c2   : > { %12243 = vmatmul.mubr.msk.f32.vlgmr.msra.gmra.mrb[2].mxu0 %vm1295_vm2, %v2233_v22  ;;  %v2245_v59 = vpop.f32.mrb[69].mxu1 }
 0x3c3   : > { %13390 = vmatpush3.bf16.msra.mxu0 %v13387_v50  ;;  %12253 = vmatprep.mubr.msk.f32.mxu0 %vm1295_vm2, %v2238_v5 }
 0x3c4   : > { %13392 = vmatprep.subr.bf16.mxu0 %v13391_v20 }
 0x3c7   : > { %13394 = vmatpush3.bf16.msra.mxu0 %v13391_v20 }
 0x3c8   : > { %13396 = vmatprep.subr.bf16.mxu0 %v13395_v54 }
 0x3ca   : > { %12254 = vmatmul.mubr.msk.f32.vlgmr.msra.gmra.mrb[2].mxu0 %vm1295_vm2, %v2243_v11 }
 0x3cb   : > { %13398 = vmatpush3.bf16.msra.mxu0 %v13395_v54  ;;  %12260 = vmatprep.mubr.msk.f32.mxu0 %vm3067_vm4, %v2990_v43 }
 0x3ce   : > { %12261 = vmatmul.mubr.msk.f32.vlgmr.msra.gmra.mrb[4].mxu0 %vm3067_vm4, %v2991_v4 }
 0x3cf   : > { %12263 = vmatprep.mubr.msk.f32.mxu0 %vm3067_vm4, %v2992_v63 }
 0x3d2   : > { %12264 = vmatmul.mubr.msk.f32.gmra.mrb[6].mxu0 %vm3067_vm4, %v2993_v12 }
 0x3d3   : > { %12266 = vmatprep.mubr.msk.f32.mxu0 %vm3067_vm4, %v2994_v60 }
 0x3d6   : > { %12267 = vmatmul.mubr.msk.f32.gmra.mrb[8].mxu0 %vm3067_vm4, %v2995_v51 }
 0x3d7   : > { %12269 = vmatprep.mubr.msk.f32.mxu0 %vm3067_vm4, %v2996_v8 }
 0x3da   : > { %12270 = vmatmul.mubr.msk.f32.gmra.mrb[10].mxu0 %vm3067_vm4, %v2997_v0 }
 0x3db   : > { %12272 = vmatprep.mubr.msk.f32.mxu0 %vm3067_vm4, %v2998_v21 }
 0x3de   : > { %12273 = vmatmul.mubr.msk.f32.gmra.mrb[12].mxu0 %vm3067_vm4, %v2999_v55 }
 0x3df   : > { %12275 = vmatprep.mubr.msk.f32.mxu0 %vm3067_vm4, %v3000_v9 }
 0x3e2   : > { %12276 = vmatmul.mubr.msk.f32.gmra.mrb[14].mxu0 %vm3067_vm4, %v3001_v39 }
 0x3e3   : > { %12278 = vmatprep.mubr.msk.f32.mxu0 %vm3067_vm4, %v3002_v48 }
 0x3e6   : > { %12279 = vmatmul.mubr.msk.f32.gmra.mrb[16].mxu0 %vm3067_vm4, %v3003_v26 }
 0x3e7   : > { %12281 = vmatprep.mubr.msk.f32.mxu0 %vm3067_vm4, %v3004_v40 }
 0x3ea   : > { %12282 = vmatmul.mubr.msk.f32.gmra.mrb[18].mxu0 %vm3067_vm4, %v3005_v2 }
 0x3eb   : > { %12284 = vmatprep.mubr.msk.f32.mxu0 %vm3067_vm4, %v3006_v25 }
 0x3ee   : > { %12285 = vmatmul.mubr.msk.f32.gmra.mrb[20].mxu0 %vm3067_vm4, %v3007_v32 }
 0x3ef   : > { %12287 = vmatprep.mubr.msk.f32.mxu0 %vm3067_vm4, %v3008_v7 }
 0x3f2   : > { %12288 = vmatmul.mubr.msk.f32.gmra.mrb[22].mxu0 %vm3067_vm4, %v3009_v10 }
 0x3f3   : > { %12290 = vmatprep.mubr.msk.f32.mxu0 %vm3067_vm4, %v3010_v18 }
 0x3f6   : > { %12291 = vmatmul.mubr.msk.f32.gmra.mrb[24].mxu0 %vm3067_vm4, %v3011_v14 }
 0x3f7   : > { %12293 = vmatprep.mubr.msk.f32.mxu0 %vm3067_vm4, %v3012_v28 }
 0x3fa   : > { %12294 = vmatmul.mubr.msk.f32.gmra.mrb[26].mxu0 %vm3067_vm4, %v3013_v47 }
 0x3fb   : > { %12296 = vmatprep.mubr.msk.f32.mxu0 %vm3067_vm4, %v3014_v16 }
 0x3fe   : > { %12297 = vmatmul.mubr.msk.f32.gmra.mrb[28].mxu0 %vm3067_vm4, %v3015_v33 }
 0x3ff   : > { %12299 = vmatprep.mubr.msk.f32.mxu0 %vm3067_vm4, %v3016_v17 }
 0x402   : > { %12300 = vmatmul.mubr.msk.f32.gmra.mrb[30].mxu0 %vm3067_vm4, %v3017_v19 }
 0x403   : > { %12302 = vmatprep.mubr.msk.f32.mxu0 %vm3067_vm4, %v3018_v44 }
 0x406   : > { %12303 = vmatmul.mubr.msk.f32.gmra.mrb[32].mxu0 %vm3067_vm4, %v3019_v41 }
 0x407   : > { %12305 = vmatprep.mubr.msk.f32.mxu0 %vm3067_vm4, %v3020_v61 }
 0x40a   : > { %12306 = vmatmul.mubr.msk.f32.gmra.mrb[34].mxu0 %vm3067_vm4, %v3021_v49 }
 0x49d   : > { %v15666_v24 = vpop.f32.mrb[2].mxu0 }
 0x49e   : > { %18495 = vst [vmem:[#allocation35_spill] sm:$0xff] %v15666_v24  ;;  %v15668_v30 = vpop.f32.mrb[3].mxu0  ;;  %v6989_v29 = vsel %vm1295_vm2, %v15666_v24, 0.0 }
 0x49f   : > { %18496 = vst [vmem:[#allocation36_spill] sm:$0xff] %v15668_v30  ;;  %v6986_v27 = vsel %vm1295_vm2, %v15668_v30, 0.0 }
 0x4a0   : > { %6987 = vadd.xlane.f32.xlu0 %v6986_v27 }
 0x4a1   : > { %v12262_v35 = vpop.f32.mrb[4].mxu0 }
 0x4a2   : > { %v15676_v36 = vadd.f32 %v12262_v35, %v15673_v34  ;;  %v3230_v37 = vpop.f32.mrb[5].mxu0 }
 0x4a3   : > { %v15679_v15 = vadd.f32 %v15673_v34, %v3230_v37 }
 0x4a4   : > { %v3390_v42 = vmul.f32 %v15676_v36, %v15676_v36  ;;  %6990 = vadd.xlane.f32.xlu0 %v6989_v29 }
 0x4a5   : > { %v3389_v13 = vmul.f32 %v15679_v15, %v15679_v15  ;;  %v12265_v45 = vpop.f32.mrb[6].mxu0 }
 0x4a6   : > { %v3422_v46 = vmul.f32 %v3390_v42, %v15676_v36  ;;  %v15689_v52 = vadd.f32 %v12265_v45, %v15673_v34  ;;  %v3240_v38 = vpop.f32.mrb[7].mxu0 }
 0x4a7   : > { %v3421_v62 = vmul.f32 %v3389_v13, %v15679_v15  ;;  %v15693_v22 = vadd.f32 %v15673_v34, %v3240_v38 }
 0x4a8   : > { %v3454_v53 = vmul.f32 0.044715, %v3422_v46  ;;  %v3392_v23 = vmul.f32 %v15689_v52, %v15689_v52 }
 0x4a9   : > { %v3453_v31 = vmul.f32 0.044715, %v3421_v62  ;;  %v3391_v50 = vmul.f32 %v15693_v22, %v15693_v22  ;;  %v12268_v5 = vpop.f32.mrb[8].mxu0 }
 0x4aa   : > { %v3486_v57 = vadd.f32 %v3454_v53, %v15676_v36  ;;  %v3424_v58 = vmul.f32 %v3392_v23, %v15689_v52  ;;  %v15702_v1 = vadd.f32 %v12268_v5, %v15673_v34  ;;  %v3250_v20 = vpop.f32.mrb[9].mxu0 }
 0x4ab   : > { %v3485_v11 = vadd.f32 %v3453_v31, %v15679_v15  ;;  %v3423_v6 = vmul.f32 %v3391_v50, %v15693_v22  ;;  %v15707_v56 = vadd.f32 %v15673_v34, %v3250_v20 }
 0x4ac   : > { %v3518_v59 = vmul.f32 0.7978846, %v3486_v57  ;;  %v3456_v54 = vmul.f32 0.044715, %v3424_v58  ;;  %v3394_v43 = vmul.f32 %v15702_v1, %v15702_v1 }
 0x4ad   : > { %v3517_v4 = vmul.f32 0.7978846, %v3485_v11  ;;  %v3455_v63 = vmul.f32 0.044715, %v3423_v6  ;;  %v3393_v12 = vmul.f32 %v15707_v56, %v15707_v56  ;;  %v12271_v60 = vpop.f32.mrb[10].mxu0 }
 0x4ae   : > { %14274 = vtanh.f32 %v3518_v59  ;;  %v3488_v51 = vadd.f32 %v3456_v54, %v15689_v52  ;;  %v3426_v8 = vmul.f32 %v3394_v43, %v15702_v1  ;;  %v15716_v0 = vadd.f32 %v12271_v60, %v15673_v34  ;;  %v3260_v21 = vpop.f32.mrb[11].mxu0 }
 0x4af   : > { %14276 = vtanh.f32 %v3517_v4  ;;  %v3487_v55 = vadd.f32 %v3455_v63, %v15693_v22  ;;  %v3425_v9 = vmul.f32 %v3393_v12, %v15707_v56  ;;  %v15721_v39 = vadd.f32 %v15673_v34, %v3260_v21 }
 0x4b0   : > { %v3520_v48 = vmul.f32 0.7978846, %v3488_v51  ;;  %v3458_v26 = vmul.f32 0.044715, %v3426_v8  ;;  %v3396_v40 = vmul.f32 %v15716_v0, %v15716_v0 }
 0x4b1   : > { %v3519_v2 = vmul.f32 0.7978846, %v3487_v55  ;;  %v3457_v25 = vmul.f32 0.044715, %v3425_v9  ;;  %v3395_v32 = vmul.f32 %v15721_v39, %v15721_v39  ;;  %v12274_v7 = vpop.f32.mrb[12].mxu0 }
 0x4b2   : > { %14278 = vtanh.f32 %v3520_v48  ;;  %v3490_v10 = vadd.f32 %v3458_v26, %v15702_v1  ;;  %v3428_v18 = vmul.f32 %v3396_v40, %v15716_v0  ;;  %v15730_v14 = vadd.f32 %v12274_v7, %v15673_v34  ;;  %v3270_v28 = vpop.f32.mrb[13].mxu0 }
 0x4b3   : > { %14280 = vtanh.f32 %v3519_v2  ;;  %v3489_v47 = vadd.f32 %v3457_v25, %v15707_v56  ;;  %v3427_v16 = vmul.f32 %v3395_v32, %v15721_v39  ;;  %v15735_v33 = vadd.f32 %v15673_v34, %v3270_v28 }
 0x4b4   : > { %v3522_v17 = vmul.f32 0.7978846, %v3490_v10  ;;  %v3460_v19 = vmul.f32 0.044715, %v3428_v18  ;;  %v3398_v44 = vmul.f32 %v15730_v14, %v15730_v14 }
 0x4b5   : > { %v3521_v41 = vmul.f32 0.7978846, %v3489_v47  ;;  %v3459_v61 = vmul.f32 0.044715, %v3427_v16  ;;  %v3397_v49 = vmul.f32 %v15735_v33, %v15735_v33  ;;  %v12277_v27 = vpop.f32.mrb[14].mxu0 }
 0x4b6   : > { %14282 = vtanh.f32 %v3522_v17  ;;  %v3492_v35 = vadd.f32 %v3460_v19, %v15716_v0  ;;  %v3430_v37 = vmul.f32 %v3398_v44, %v15730_v14  ;;  %v15744_v29 = vadd.f32 %v12277_v27, %v15673_v34  ;;  %v3280_v42 = vpop.f32.mrb[15].mxu0 }
 0x4b7   : > { %14284 = vtanh.f32 %v3521_v41  ;;  %v3491_v13 = vadd.f32 %v3459_v61, %v15721_v39  ;;  %v3429_v45 = vmul.f32 %v3397_v49, %v15735_v33  ;;  %v15749_v46 = vadd.f32 %v15673_v34, %v3280_v42 }
 0x4b8   : > { %v14275_v38 = vpop.eup %14274  ;;  %v3524_v62 = vmul.f32 0.7978846, %v3492_v35  ;;  %v3462_v53 = vmul.f32 0.044715, %v3430_v37  ;;  %v3400_v23 = vmul.f32 %v15744_v29, %v15744_v29 }
 0x4b9   : > { %v14277_v31 = vpop.eup %14276  ;;  %v3582_v50 = vadd.f32 1.0, %v14275_v38  ;;  %v3523_v5 = vmul.f32 0.7978846, %v3491_v13  ;;  %v3461_v57 = vmul.f32 0.044715, %v3429_v45  ;;  %v3399_v58 = vmul.f32 %v15749_v46, %v15749_v46  ;;  %v12280_v20 = vpop.f32.mrb[16].mxu0 }
 0x4ba   : > { %v3581_v11 = vadd.f32 1.0, %v14277_v31  ;;  %14286 = vtanh.f32 %v3524_v62  ;;  %v3494_v6 = vadd.f32 %v3462_v53, %v15730_v14  ;;  %v3432_v59 = vmul.f32 %v3400_v23, %v15744_v29  ;;  %v3290_v54 = vpop.f32.mrb[17].mxu0 }
 0x4bb   : > { %v3614_v43 = vmul.f32 0.5, %v3582_v50  ;;  %14288 = vtanh.f32 %v3523_v5  ;;  %v3493_v4 = vadd.f32 %v3461_v57, %v15735_v33  ;;  %v3431_v63 = vmul.f32 %v3399_v58, %v15749_v46 }
 0x4bc   : > { %v14279_v12 = vpop.eup %14278  ;;  %v3613_v60 = vmul.f32 0.5, %v3581_v11  ;;  %v3526_v51 = vmul.f32 0.7978846, %v3494_v6  ;;  %v3464_v8 = vmul.f32 0.044715, %v3432_v59  ;;  %v15760_v21 = vadd.f32 %v12280_v20, %v15673_v34 }
 0x4bd   : > { %v14281_v55 = vpop.eup %14280  ;;  %v15763_v9 = vmul.f32 %v3614_v43, %v15676_v36  ;;  %v3584_v48 = vadd.f32 1.0, %v14279_v12  ;;  %v3525_v26 = vmul.f32 0.7978846, %v3493_v4  ;;  %v3463_v40 = vmul.f32 0.044715, %v3431_v63  ;;  %v12283_v2 = vpop.f32.mrb[18].mxu0 }
 0x4be   : > { %v15766_v25 = vmul.f32 %v3613_v60, %v15679_v15  ;;  %v3583_v32 = vadd.f32 1.0, %v14281_v55  ;;  %14290 = vtanh.f32 %v3526_v51  ;;  %v3496_v7 = vadd.f32 %v3464_v8, %v15744_v29  ;;  %v3300_v10 = vpop.f32.mrb[19].mxu0 }
 0x4bf   : > { %v3616_v18 = vmul.f32 0.5, %v3584_v48  ;;  %14292 = vtanh.f32 %v3525_v26  ;;  %v3495_v28 = vadd.f32 %v3463_v40, %v15749_v46  ;;  %v3402_v36 = vmul.f32 %v15760_v21, %v15760_v21 }
 0x4c0   : > { %v14283_v47 = vpop.eup %14282  ;;  %v3615_v16 = vmul.f32 0.5, %v3583_v32  ;;  %v3528_v17 = vmul.f32 0.7978846, %v3496_v7  ;;  %v15773_v19 = vadd.f32 %v15673_v34, %v3290_v54  ;;  %v15776_v15 = vadd.f32 %v12283_v2, %v15673_v34 }
 0x4c1   : > { %v14285_v44 = vpop.eup %14284  ;;  %v15779_v41 = vmul.f32 %v3616_v18, %v15689_v52  ;;  %v3586_v61 = vadd.f32 1.0, %v14283_v47  ;;  %v3527_v49 = vmul.f32 0.7978846, %v3495_v28  ;;  %v3434_v27 = vmul.f32 %v3402_v36, %v15760_v21  ;;  %v12286_v35 = vpop.f32.mrb[20].mxu0 }
 0x4c2   : > { %v15783_v37 = vmul.f32 %v3615_v16, %v15693_v22  ;;  %v3585_v42 = vadd.f32 1.0, %v14285_v44  ;;  %14294 = vtanh.f32 %v3528_v17  ;;  %v3401_v13 = vmul.f32 %v15773_v19, %v15773_v19  ;;  %v3310_v45 = vpop.f32.mrb[21].mxu0 }
 0x4c3   : > { %v3618_v38 = vmul.f32 0.5, %v3586_v61  ;;  %14296 = vtanh.f32 %v3527_v49  ;;  %v3466_v62 = vmul.f32 0.044715, %v3434_v27  ;;  %v3404_v52 = vmul.f32 %v15776_v15, %v15776_v15 }
 0x4c4   : > { %v14287_v53 = vpop.eup %14286  ;;  %v3617_v23 = vmul.f32 0.5, %v3585_v42  ;;  %v3433_v31 = vmul.f32 %v3401_v13, %v15773_v19  ;;  %v15791_v50 = vadd.f32 %v15673_v34, %v3300_v10  ;;  %v15794_v22 = vadd.f32 %v12286_v35, %v15673_v34 }
 0x4c5   : > { %v14289_v5 = vpop.eup %14288  ;;  %v15797_v57 = vmul.f32 %v3618_v38, %v15702_v1  ;;  %v3588_v58 = vadd.f32 1.0, %v14287_v53  ;;  %v3498_v20 = vadd.f32 %v3466_v62, %v15760_v21  ;;  %v3436_v11 = vmul.f32 %v3404_v52, %v15776_v15  ;;  %v12289_v6 = vpop.f32.mrb[22].mxu0 }
 0x4c6   : > { %v15802_v59 = vmul.f32 %v3617_v23, %v15707_v56  ;;  %v3587_v54 = vadd.f32 1.0, %v14289_v5  ;;  %v3465_v43 = vmul.f32 0.044715, %v3433_v31  ;;  %v3403_v4 = vmul.f32 %v15791_v50, %v15791_v50  ;;  %v3320_v63 = vpop.f32.mrb[23].mxu0 }
 0x4c7   : > { %v3620_v12 = vmul.f32 0.5, %v3588_v58  ;;  %v3530_v60 = vmul.f32 0.7978846, %v3498_v20  ;;  %v3468_v51 = vmul.f32 0.044715, %v3436_v11  ;;  %v3406_v1 = vmul.f32 %v15794_v22, %v15794_v22 }
 0x4c8   : > { %v14291_v8 = vpop.eup %14290  ;;  %v3619_v55 = vmul.f32 0.5, %v3587_v54  ;;  %v3497_v48 = vadd.f32 %v3465_v43, %v15773_v19  ;;  %v3435_v26 = vmul.f32 %v3403_v4, %v15791_v50  ;;  %v15811_v56 = vadd.f32 %v15673_v34, %v3310_v45 }
 0x4c9   : > { %v14293_v40 = vpop.eup %14292  ;;  %v15814_v2 = vmul.f32 %v3620_v12, %v15716_v0  ;;  %v3590_v32 = vadd.f32 1.0, %v14291_v8  ;;  %14298 = vtanh.f32 %v3530_v60  ;;  %v3500_v7 = vadd.f32 %v3468_v51, %v15776_v15  ;;  %v12292_v10 = vpop.f32.mrb[24].mxu0 }
 0x4ca   : > { %v15818_v18 = vmul.f32 %v3619_v55, %v15721_v39  ;;  %v3589_v28 = vadd.f32 1.0, %v14293_v40  ;;  %v3529_v36 = vmul.f32 0.7978846, %v3497_v48  ;;  %v3467_v47 = vmul.f32 0.044715, %v3435_v26  ;;  %v3330_v16 = vpop.f32.mrb[25].mxu0 }
 0x4cb   : > { %v3622_v17 = vmul.f32 0.5, %v3590_v32  ;;  %v3532_v44 = vmul.f32 0.7978846, %v3500_v7  ;;  %v3438_v61 = vmul.f32 %v3406_v1, %v15794_v22  ;;  %v3405_v0 = vmul.f32 %v15811_v56, %v15811_v56 }
 0x4cc   : > { %v14295_v49 = vpop.eup %14294  ;;  %v3621_v27 = vmul.f32 0.5, %v3589_v28  ;;  %14300 = vtanh.f32 %v3529_v36  ;;  %v3499_v35 = vadd.f32 %v3467_v47, %v15791_v50  ;;  %v13400_v39 = vpack.c.bf16 %v15763_v9, %v15766_v25 }
 0x4cd   : > { %v14297_v42 = vpop.eup %14296  ;;  %v15827_v13 = vmul.f32 %v3622_v17, %v15730_v14  ;;  %v3592_v45 = vadd.f32 1.0, %v14295_v49  ;;  %14302 = vtanh.f32 %v3532_v44  ;;  %v3470_v38 = vmul.f32 0.044715, %v3438_v61  ;;  %v12295_v62 = vpop.f32.mrb[26].mxu0 }
 0x4ce   : > { %v15830_v52 = vmul.f32 %v3621_v27, %v15735_v33  ;;  %v3591_v53 = vadd.f32 1.0, %v14297_v42  ;;  %v3531_v23 = vmul.f32 0.7978846, %v3499_v35  ;;  %v3437_v31 = vmul.f32 %v3405_v0, %v15811_v56  ;;  %13401 = vmatpush1.bf16.msra.mxu1 %v13400_v39  ;;  %v3340_v5 = vpop.f32.mrb[27].mxu0 }
 0x4cf   : > { %v3624_v58 = vmul.f32 0.5, %v3592_v45  ;;  %v3502_v9 = vadd.f32 %v3470_v38, %v15794_v22  ;;  %v15835_v25 = vadd.f32 %v12289_v6, %v15673_v34  ;;  %13402 = vmatprep.subr.bf16.mxu1 %v14810_v3  ;;  %v15839_v14 = vadd.f32 %v15673_v34, %v3320_v63 }
 0x4d0   : > { %v3623_v20 = vmul.f32 0.5, %v3591_v53  ;;  %14304 = vtanh.f32 %v3531_v23  ;;  %v3469_v33 = vmul.f32 0.044715, %v3437_v31  ;;  %v13403_v11 = vpack.c.bf16 %v15779_v41, %v15783_v37 }
 0x4d1   : > { %v15844_v54 = vmul.f32 %v3624_v58, %v15744_v29  ;;  %v3534_v43 = vmul.f32 0.7978846, %v3502_v9  ;;  %v3408_v4 = vmul.f32 %v15835_v25, %v15835_v25  ;;  %v3407_v6 = vmul.f32 %v15839_v14, %v15839_v14  ;;  %v15850_v12 = vpop.f32.mrb[28].mxu0 }
 0x4d2   : > { %v15853_v63 = vmul.f32 %v3623_v20, %v15749_v46  ;;  %v3501_v60 = vadd.f32 %v3469_v33, %v15811_v56  ;;  %13404 = vmatpush1.bf16.msra.mxu1 %v13403_v11  ;;  %v15857_v41 = vadd.f32 %v12292_v10, %v15673_v34  ;;  %v15860_v29 = vadd.f32 %v15673_v34, %v3330_v16  ;;  %v3350_v37 = vpop.f32.mrb[29].mxu0 }
 0x4d3   : > { %v14299_v51 = vpop.eup %14298  ;;  %14306 = vtanh.f32 %v3534_v43  ;;  %v3440_v1 = vmul.f32 %v3408_v4, %v15835_v25  ;;  %v3439_v8 = vmul.f32 %v3407_v6, %v15839_v14  ;;  %13405 = vmatprep.subr.bf16.mxu1 %v14810_v3  ;;  %v13406_v46 = vpack.c.bf16 %v15797_v57, %v15802_v59 }
 0x4d4   : > { %v3594_v55 = vadd.f32 1.0, %v14299_v51  ;;  %v3533_v48 = vmul.f32 0.7978846, %v3501_v60  ;;  %v3410_v26 = vmul.f32 %v15857_v41, %v15857_v41  ;;  %v3409_v40 = vmul.f32 %v15860_v29, %v15860_v29 }
 0x4d5   : > { %v3472_v32 = vmul.f32 0.044715, %v3440_v1  ;;  %v3471_v7 = vmul.f32 0.044715, %v3439_v8  ;;  %v15872_v10 = vadd.f32 %v12295_v62, %v15673_v34  ;;  %v15875_v28 = vadd.f32 %v15673_v34, %v3340_v5  ;;  %v12301_v36 = vpop.f32.mrb[30].mxu0 }
 0x4d6   : > { %v14301_v47 = vpop.eup %14300  ;;  %v3626_v16 = vmul.f32 0.5, %v3594_v55  ;;  %14308 = vtanh.f32 %v3533_v48  ;;  %v3442_v57 = vmul.f32 %v3410_v26, %v15857_v41  ;;  %v3441_v59 = vmul.f32 %v3409_v40, %v15860_v29  ;;  %13407 = vmatpush1.bf16.msra.mxu1 %v13406_v46  ;;  %v3360_v17 = vpop.f32.mrb[31].mxu0 }
 0x4d7   : > { %v14303_v44 = vpop.eup %14302  ;;  %v3593_v61 = vadd.f32 1.0, %v14301_v47  ;;  %v3504_v0 = vadd.f32 %v3472_v32, %v15835_v25  ;;  %v3503_v49 = vadd.f32 %v3471_v7, %v15839_v14  ;;  %v3412_v27 = vmul.f32 %v15872_v10, %v15872_v10  ;;  %13408 = vmatprep.subr.bf16.mxu1 %v14810_v3 }
 0x4d8   : > { %v15885_v35 = vmul.f32 %v3626_v16, %v15760_v21  ;;  %v3596_v39 = vadd.f32 1.0, %v14303_v44  ;;  %v3474_v42 = vmul.f32 0.044715, %v3442_v57  ;;  %v3473_v45 = vmul.f32 0.044715, %v3441_v59 }
 0x4d9   : > { %v3625_v38 = vmul.f32 0.5, %v3593_v61  ;;  %v3536_v62 = vmul.f32 0.7978846, %v3504_v0  ;;  %v3535_v53 = vmul.f32 0.7978846, %v3503_v49  ;;  %v3444_v23 = vmul.f32 %v3412_v27, %v15872_v10  ;;  %v12304_v31 = vpop.f32.mrb[32].mxu0 }
 0x4da   : > { %v14305_v5 = vpop.eup %14304  ;;  %v3628_v58 = vmul.f32 0.5, %v3596_v39  ;;  %v3506_v9 = vadd.f32 %v3474_v42, %v15857_v41  ;;  %v3505_v20 = vadd.f32 %v3473_v45, %v15860_v29  ;;  %v3411_v33 = vmul.f32 %v15875_v28, %v15875_v28  ;;  %v3370_v21 = vpop.f32.mrb[33].mxu0 }
 0x4db   : > { %v15893_v11 = vmul.f32 %v3625_v38, %v15773_v19  ;;  %v3595_v43 = vadd.f32 1.0, %v14305_v5  ;;  %14310 = vtanh.f32 %v3536_v62  ;;  %v3476_v4 = vmul.f32 0.044715, %v3444_v23 }
 0x4dc   : > { %v15896_v6 = vmul.f32 %v3628_v58, %v15776_v15  ;;  %14312 = vtanh.f32 %v3535_v53  ;;  %v3538_v60 = vmul.f32 0.7978846, %v3506_v9  ;;  %v3537_v51 = vmul.f32 0.7978846, %v3505_v20 }
 0x4dd   : > { %v14307_v1 = vpop.eup %14306  ;;  %v3627_v8 = vmul.f32 0.5, %v3595_v43  ;;  %v3508_v46 = vadd.f32 %v3476_v4, %v15872_v10  ;;  %v3443_v55 = vmul.f32 %v3411_v33, %v15875_v28  ;;  %v13409_v48 = vpack.c.bf16 %v15814_v2, %v15818_v18  ;;  %v15902_v19 = vpop.f32.mrb[34].mxu0 }
 0x4de   : > { %v3598_v26 = vadd.f32 1.0, %v14307_v1  ;;  %14314 = vtanh.f32 %v3538_v60  ;;  %v15906_v15 = vadd.f32 %v15850_v12, %v15673_v34  ;;  %v15909_v40 = vadd.f32 %v15673_v34, %v3350_v37  ;;  %v15911_v32 = vpop.f32.mrb[35].mxu0 }
 0x4df   : > { %v15914_v7 = vmul.f32 %v3627_v8, %v15791_v50  ;;  %14316 = vtanh.f32 %v3537_v51  ;;  %v3540_v47 = vmul.f32 0.7978846, %v3508_v46  ;;  %v3475_v16 = vmul.f32 0.044715, %v3443_v55  ;;  %13410 = vmatpush1.bf16.msra.mxu1 %v13409_v48 }
 0x4e0   : > { %v14309_v2 = vpop.eup %14308  ;;  %v3630_v18 = vmul.f32 0.5, %v3598_v26  ;;  %v3414_v57 = vmul.f32 %v15906_v15, %v15906_v15  ;;  %13411 = vmatprep.subr.bf16.mxu1 %v14810_v3  ;;  %v3413_v12 = vmul.f32 %v15909_v40, %v15909_v40  ;;  %v13412_v37 = vpack.c.bf16 %v15827_v13, %v15830_v52 }
 0x4e1   : > { %v3597_v59 = vadd.f32 1.0, %v14309_v2  ;;  %14318 = vtanh.f32 %v3540_v47  ;;  %v3507_v50 = vadd.f32 %v3475_v16, %v15875_v28  ;;  %v15925_v44 = vadd.f32 %v12301_v36, %v15673_v34 }
 0x4e2   : > { %v15928_v61 = vmul.f32 %v3630_v18, %v15794_v22  ;;  %v3446_v0 = vmul.f32 %v3414_v57, %v15906_v15  ;;  %v3445_v49 = vmul.f32 %v3413_v12, %v15909_v40  ;;  %v15933_v27 = vadd.f32 %v15673_v34, %v3360_v17 }
 0x4e3   : > { %v3629_v39 = vmul.f32 0.5, %v3597_v59  ;;  %v3539_v42 = vmul.f32 0.7978846, %v3507_v50  ;;  %13413 = vmatpush1.bf16.msra.mxu1 %v13412_v37  ;;  %v3416_v13 = vmul.f32 %v15925_v44, %v15925_v44  ;;  %v13415_v52 = vpack.c.bf16 %v15844_v54, %v15853_v63 }
 0x4e4   : > { %v3478_v36 = vmul.f32 0.044715, %v3446_v0  ;;  %v3477_v45 = vmul.f32 0.044715, %v3445_v49  ;;  %13414 = vmatprep.subr.bf16.mxu1 %v14810_v3  ;;  %v3415_v22 = vmul.f32 %v15933_v27, %v15933_v27  ;;  %v15943_v38 = vadd.f32 %v12304_v31, %v15673_v34 }
 0x4e5   : > { %v14311_v17 = vpop.eup %14310  ;;  %v15946_v62 = vmul.f32 %v3629_v39, %v15811_v56  ;;  %14320 = vtanh.f32 %v3539_v42  ;;  %v3448_v53 = vmul.f32 %v3416_v13, %v15925_v44  ;;  %v15950_v23 = vadd.f32 %v15673_v34, %v3370_v21 }
 0x4e6   : > { %v14313_v54 = vpop.eup %14312  ;;  %v3600_v63 = vadd.f32 1.0, %v14311_v17  ;;  %v3510_v5 = vadd.f32 %v3478_v36, %v15906_v15  ;;  %v3509_v58 = vadd.f32 %v3477_v45, %v15909_v40  ;;  %v3447_v9 = vmul.f32 %v3415_v22, %v15933_v27 }
 0x4e7   : > { %v3599_v31 = vadd.f32 1.0, %v14313_v54  ;;  %v3480_v20 = vmul.f32 0.044715, %v3448_v53  ;;  %13416 = vmatpush1.bf16.msra.mxu1 %v13415_v52  ;;  %v3418_v56 = vmul.f32 %v15943_v38, %v15943_v38  ;;  %v3417_v33 = vmul.f32 %v15950_v23, %v15950_v23 }
 0x4e8   : > { %v14315_v43 = vpop.eup %14314  ;;  %v3632_v21 = vmul.f32 0.5, %v3600_v63  ;;  %v3542_v4 = vmul.f32 0.7978846, %v3510_v5  ;;  %v3541_v60 = vmul.f32 0.7978846, %v3509_v58  ;;  %13417 = vmatprep.subr.bf16.mxu1 %v14810_v3  ;;  %v13418_v51 = vpack.c.bf16 %v15885_v35, %v15893_v11  ;;  %v3030_v63 = vld [vmem:[%s18484_s12 + $0x28] sm:$0xff] }
 0x4e9   : > { %v14317_v1 = vpop.eup %14316  ;;  %v3631_v8 = vmul.f32 0.5, %v3599_v31  ;;  %v3602_v46 = vadd.f32 1.0, %v14315_v43  ;;  %v3512_v55 = vadd.f32 %v3480_v20, %v15925_v44  ;;  %v3479_v48 = vmul.f32 0.044715, %v3447_v9 }
 0x4ea   : > { %v15964_v26 = vmul.f32 %v3632_v21, %v15835_v25  ;;  %v3601_v47 = vadd.f32 1.0, %v14317_v1  ;;  %14322 = vtanh.f32 %v3542_v4  ;;  %v3450_v16 = vmul.f32 %v3418_v56, %v15943_v38 }
 0x4eb   : > { %v14319_v2 = vpop.eup %14318  ;;  %v15968_v18 = vmul.f32 %v3631_v8, %v15839_v14  ;;  %v3634_v57 = vmul.f32 0.5, %v3602_v46  ;;  %14324 = vtanh.f32 %v3541_v60  ;;  %v3544_v35 = vmul.f32 0.7978846, %v3512_v55  ;;  %13419 = vmatpush1.bf16.msra.mxu1 %v13418_v51 }
 0x4ec   : > { %v3633_v11 = vmul.f32 0.5, %v3601_v47  ;;  %v3604_v12 = vadd.f32 1.0, %v14319_v2  ;;  %v3511_v37 = vadd.f32 %v3479_v48, %v15933_v27  ;;  %v3482_v59 = vmul.f32 0.044715, %v3450_v16  ;;  %13420 = vmatprep.subr.bf16.mxu1 %v14810_v3 }
 0x4ed   : > { %v15973_v25 = vmul.f32 %v3634_v57, %v15857_v41  ;;  %14326 = vtanh.f32 %v3544_v35  ;;  %v3449_v50 = vmul.f32 %v3417_v33, %v15950_v23  ;;  %v15978_v14 = vadd.f32 %v15902_v19, %v15673_v34 }
 0x4ee   : > { %v15981_v0 = vmul.f32 %v3633_v11, %v15860_v29  ;;  %v3636_v49 = vmul.f32 0.5, %v3604_v12  ;;  %v3543_v39 = vmul.f32 0.7978846, %v3511_v37  ;;  %v3514_v42 = vadd.f32 %v3482_v59, %v15943_v38 }
 0x4ef   : > { %v14321_v13 = vpop.eup %14320  ;;  %v3481_v52 = vmul.f32 0.044715, %v3449_v50  ;;  %v3420_v41 = vmul.f32 %v15978_v14, %v15978_v14  ;;  %v15988_v36 = vadd.f32 %v15673_v34, %v15911_v32  ;;  %v13421_v19 = vpack.c.bf16 %v15896_v6, %v15914_v7  ;;  %v3029_v32 = vld [vmem:[%s18484_s12 + $0x20] sm:$0xff] }
 0x4f0   : > { %v3668_v29 = vmul.f32 %v3636_v49, %v15872_v10  ;;  %v3603_v45 = vadd.f32 1.0, %v14321_v13  ;;  %14328 = vtanh.f32 %v3543_v39  ;;  %v3546_v22 = vmul.f32 0.7978846, %v3514_v42 }
 0x4f1   : > { %v3513_v17 = vadd.f32 %v3481_v52, %v15950_v23  ;;  %v3452_v53 = vmul.f32 %v3420_v41, %v15978_v14  ;;  %v3419_v54 = vmul.f32 %v15988_v36, %v15988_v36  ;;  %13422 = vmatpush1.bf16.msra.mxu1 %v13421_v19  ;;  %v13424_v34 = vpack.c.bf16 %v15928_v61, %v15946_v62 }
 0x4f2   : > { %v3635_v5 = vmul.f32 0.5, %v3603_v45  ;;  %14330 = vtanh.f32 %v3546_v22  ;;  %13423 = vmatprep.subr.bf16.mxu1 %v14810_v3  ;;  %v13427_v10 = vpack.c.bf16 %v15964_v26, %v15968_v18  ;;  %v13430_v6 = vpack.c.bf16 %v15973_v25, %v15981_v0 }
 0x4f3   : > { %v3545_v7 = vmul.f32 0.7978846, %v3513_v17  ;;  %v3484_v58 = vmul.f32 0.044715, %v3452_v53  ;;  %v3451_v9 = vmul.f32 %v3419_v54, %v15988_v36  ;;  %v13447_v61 = vpack.c.bf16 %v3030_v63, %v3029_v32  ;;  %v14643_v17 = vld [vmem:[%s18485_s4] sm:$0xff]  ;;  %v14645_v53 = vld [vmem:[%s18485_s4 + $0x10] sm:$0xff] }
 0x4f4   : > { %v14323_v31 = vpop.eup %14322  ;;  %v3667_v20 = vmul.f32 %v3635_v5, %v15875_v28  ;;  %v14647_v54 = vld [vmem:[%s18485_s4 + $0x20] sm:$0xff]  ;;  %v14649_v32 = vld [vmem:[%s18485_s4 + $0x30] sm:$0xff]  ;;  %v14650_v63 = vld [vmem:[%s18485_s4 + $0x48] sm:$0xff] }
 0x4f5   : > { %v14325_v62 = vpop.eup %14324  ;;  %v3606_v56 = vadd.f32 1.0, %v14323_v31  ;;  %14332 = vtanh.f32 %v3545_v7  ;;  %v3516_v33 = vadd.f32 %v3484_v58, %v15978_v14  ;;  %v3483_v43 = vmul.f32 0.044715, %v3451_v9  ;;  %13425 = vmatpush1.bf16.msra.mxu1 %v13424_v34  ;;  %13448 = vmatprep.subr.bf16.mxu0 %v13447_v61  ;;  %v14648_v34 = vld [vmem:[%s18485_s4 + $0x38] sm:$0xff]  ;;  %v14651_v5 = vld [vmem:[%s18485_s4 + $0x40] sm:$0xff]  ;;  %v14654_v7 = vld [vmem:[%s18485_s4 + $0x68] sm:$0xff] }
 0x4f6   : > { %v3605_v21 = vadd.f32 1.0, %v14325_v62  ;;  %13426 = vmatprep.subr.bf16.mxu1 %v14810_v3  ;;  %v13433_v4 = vpack.c.bf16 %v3668_v29, %v3667_v20  ;;  %13450 = vmatpush3.bf16.msra.mxu0 %v13447_v61  ;;  %v4584_v29 = vld [vmem:[%s18497_s16 + $0x8] sm:$0xff]  ;;  %v14655_v58 = vld [vmem:[%s18485_s4 + $0x60] sm:$0xff]  ;;  %v14656_v9 = vld [vmem:[%s18485_s4 + $0x78] sm:$0xff] }
 0x4f7   : > { %v14327_v60 = vpop.eup %14326  ;;  %v3638_v51 = vmul.f32 0.5, %v3606_v56  ;;  %v3548_v1 = vmul.f32 0.7978846, %v3516_v33  ;;  %v3515_v8 = vadd.f32 %v3483_v43, %v15988_v36  ;;  %v14657_v31 = vld [vmem:[%s18485_s4 + $0x70] sm:$0xff]  ;;  %v14658_v20 = vld [vmem:[%s18485_s4 + $0x88] sm:$0xff]  ;;  %v14659_v61 = vld [vmem:[%s18485_s4 + $0x80] sm:$0xff] }
 0x4f8   : > { %v3637_v28 = vmul.f32 0.5, %v3605_v21  ;;  %v3608_v46 = vadd.f32 1.0, %v14327_v60  ;;  %v14660_v62 = vld [vmem:[%s18485_s4 + $0x98] sm:$0xff]  ;;  %v14661_v56 = vld [vmem:[%s18485_s4 + $0x90] sm:$0xff]  ;;  %v14662_v33 = vld [vmem:[%s18485_s4 + $0xa8] sm:$0xff] }
 0x4f9   : > { %v3670_v55 = vmul.f32 %v3638_v51, %v15906_v15  ;;  %14334 = vtanh.f32 %v3548_v1  ;;  %v3547_v48 = vmul.f32 0.7978846, %v3515_v8  ;;  %13428 = vmatpush1.bf16.msra.mxu1 %v13427_v10  ;;  %v14652_v10 = vld [vmem:[%s18485_s4 + $0x58] sm:$0xff]  ;;  %v14663_v43 = vld [vmem:[%s18485_s4 + $0xa0] sm:$0xff]  ;;  %v14666_v60 = vld [vmem:[%s18485_s4 + $0xc8] sm:$0xff] }
 0x4fa   : > { %v14329_v26 = vpop.eup %14328  ;;  %v3669_v47 = vmul.f32 %v3637_v28, %v15909_v40  ;;  %v3640_v16 = vmul.f32 0.5, %v3608_v46  ;;  %13429 = vmatprep.subr.bf16.mxu1 %v14810_v3  ;;  %v14664_v21 = vld [vmem:[%s18485_s4 + $0xb8] sm:$0xff]  ;;  %v14667_v51 = vld [vmem:[%s18485_s4 + $0xc0] sm:$0xff]  ;;  %v14669_v8 = vld [vmem:[%s18485_s4 + $0xd0] sm:$0xff] }
 0x4fb   : > { %v3607_v2 = vadd.f32 1.0, %v14329_v26  ;;  %14336 = vtanh.f32 %v3547_v48  ;;  %v14668_v1 = vld [vmem:[%s18485_s4 + $0xd8] sm:$0xff]  ;;  %v14670_v28 = vld [vmem:[%s18485_s4 + $0xe8] sm:$0xff]  ;;  %v14671_v46 = vld [vmem:[%s18485_s4 + $0xe0] sm:$0xff] }
 0x4fc   : > { %v14331_v18 = vpop.eup %14330  ;;  %v13436_v57 = vpack.c.bf16 %v3670_v55, %v3669_v47  ;;  %v3672_v35 = vmul.f32 %v3640_v16, %v15925_v44  ;;  %v14672_v55 = vld [vmem:[%s18485_s4 + $0xf8] sm:$0xff]  ;;  %v14673_v48 = vld [vmem:[%s18485_s4 + $0xf0] sm:$0xff]  ;;  %v14674_v26 = vld [vmem:[%s18485_s4 + $0x108] sm:$0xff] }
 0x4fd   : > { %v3639_v11 = vmul.f32 0.5, %v3607_v2  ;;  %v3610_v12 = vadd.f32 1.0, %v14331_v18  ;;  %13431 = vmatpush1.bf16.msra.mxu1 %v13430_v6  ;;  %v14653_v6 = vld [vmem:[%s18485_s4 + $0x50] sm:$0xff]  ;;  %v14675_v47 = vld [vmem:[%s18485_s4 + $0x100] sm:$0xff]  ;;  %v14676_v16 = vld [vmem:[%s18485_s4 + $0x118] sm:$0xff] }
 0x4fe   : > { %13432 = vmatprep.subr.bf16.mxu1 %v14810_v3  ;;  %v4575_v2 = vld [vmem:[%s1179_s6] sm:$0xff]  ;;  %v14677_v18 = vld [vmem:[%s18485_s4 + $0x110] sm:$0xff] }
 0x4ff   : > { %v14333_v15 = vpop.eup %14332  ;;  %v3671_v37 = vmul.f32 %v3639_v11, %v15933_v27  ;;  %v3642_v59 = vmul.f32 0.5, %v3610_v12  ;;  %v4578_v11 = vld [vmem:[%s1179_s6 + $0x18] sm:$0xff]  ;;  %v4579_v12 = vld [vmem:[%s1179_s6 + $0x20] sm:$0xff] }
 0x500   : > { %v3609_v25 = vadd.f32 1.0, %v14333_v15  ;;  %v4580_v15 = vld [vmem:[%s1179_s6 + $0x28] sm:$0xff] }
 0x501   : > { %13434 = vmatpush1.bf16.msra.mxu1 %v13433_v4  ;;  %v13439_v40 = vpack.c.bf16 %v3672_v35, %v3671_v37  ;;  %v3674_v50 = vmul.f32 %v3642_v59, %v15943_v38  ;;  %v14665_v4 = vld [vmem:[%s18485_s4 + $0xb0] sm:$0xff]  ;;  %v4582_v59 = vld [vmem:[%s1179_s6 + $0x38] sm:$0xff] }
 0x502   : > { %v3641_v0 = vmul.f32 0.5, %v3609_v25  ;;  %13435 = vmatprep.subr.bf16.mxu1 %v14810_v3  ;;  %v4577_v35 = vld [vmem:[%s1179_s6 + $0x10] sm:$0xff] }
 0x503   : > { %v14335_v44 = vpop.eup %14334  ;;  %v4581_v37 = vld [vmem:[%s1179_s6 + $0x30] sm:$0xff] }
 0x504   : > { %v3673_v49 = vmul.f32 %v3641_v0, %v15950_v23  ;;  %v3612_v39 = vadd.f32 1.0, %v14335_v44  ;;  %v4583_v23 = vld [vmem:[%s18497_s16] sm:$0xff]  ;;  %v3031_v25 = vld [vmem:[%s18484_s12 + $0x30] sm:$0xff]  ;;  %v3026_v44 = vld [vmem:[%s18484_s12 + $0x8] sm:$0xff] }
 0x505   : > { %v14337_v42 = vpop.eup %14336  ;;  %13437 = vmatpush1.bf16.msra.mxu1 %v13436_v57  ;;  %v13519_v22 = vpack.c.bf16 %v4584_v29, %v4583_v23  ;;  %v4576_v57 = vld [vmem:[%s1179_s6 + $0x8] sm:$0xff]  ;;  %v3025_v0 = vld [vmem:[%s18484_s12] sm:$0xff]  ;;  %s18499_s6 = sld [smem:[#allocation18_spill]] }
 0x506   : > { %v3644_v13 = vmul.f32 0.5, %v3612_v39  ;;  %v3611_v52 = vadd.f32 1.0, %v14337_v42  ;;  %13438 = vmatprep.subr.bf16.mxu1 %v14810_v3  ;;  %v13442_v27 = vpack.c.bf16 %v3674_v50, %v3673_v49  ;;  %v13455_v49 = vpack.c.bf16 %v3026_v44, %v3025_v0  ;;  %v3053_v44 = vld [vmem:[%s18484_s12 + $0xe0] sm:$0xff] }
 0x508   : > { %v3676_v38 = vmul.f32 %v3644_v13, %v15978_v14  ;;  %v3643_v41 = vmul.f32 0.5, %v3611_v52  ;;  %v4585_v14 = vld [vmem:[%s18497_s16 + $0x10] sm:$0xff] }
 0x509   : > { %13440 = vmatpush1.bf16.msra.mxu1 %v13439_v40  ;;  %v3032_v40 = vld [vmem:[%s18484_s12 + $0x38] sm:$0xff] }
 0x50a   : > { %v3675_v19 = vmul.f32 %v3643_v41, %v15988_v36  ;;  %13441 = vmatprep.subr.bf16.mxu1 %v14810_v3  ;;  %v14644_v36 = vld [vmem:[%s18485_s4 + $0x18] sm:$0xff]  ;;  %v13451_v50 = vpack.c.bf16 %v3032_v40, %v3031_v25 }
 0x50b   : > { %v3028_v41 = vld [vmem:[%s18484_s12 + $0x18] sm:$0xff] }
 0x50c   : > { %v13445_v45 = vpack.c.bf16 %v3676_v38, %v3675_v19  ;;  %13452 = vmatprep.subr.bf16.mxu0 %v13451_v50  ;;  %v3027_v38 = vld [vmem:[%s18484_s12 + $0x10] sm:$0xff]  ;;  %v3052_v25 = vld [vmem:[%s18484_s12 + $0xd8] sm:$0xff] }
 0x50d   : > { %13443 = vmatpush1.bf16.msra.mxu1 %v13442_v27  ;;  %13454 = vmatpush3.bf16.msra.mxu0 %v13451_v50  ;;  %v13459_v23 = vpack.c.bf16 %v3028_v41, %v3027_v38 }
 0x50e   : > { %13444 = vmatprep.subr.bf16.mxu1 %v14810_v3  ;;  %v14646_v3 = vld [vmem:[%s18485_s4 + $0x28] sm:$0xff]  ;;  %13456 = vmatprep.subr.bf16.mxu0 %v13455_v49  ;;  %s18503_s4 = sshll.u32 %s15066_s26, 6  ;;  %s18513_s26 = sld [smem:[#allocation27_spill]] }
 0x511   : > { %13446 = vmatpush1.bf16.msra.mxu1 %v13445_v45  ;;  %v3033_v45 = vld [vmem:[%s18484_s12 + $0x40] sm:$0xff] }
 0x512   : > { %13520 = vmatprep.subr.bf16.mxu1 %v13519_v22 }
 0x514   : > { %3742 = vmatmul.mubr.f32.vlgmr.msra.gmra.mrb[70].mxu1 %v14643_v17 }
 0x515   : > { %3746 = vmatprep.mubr.f32.mxu1 %v14644_v36  ;;  %13522 = vmatpush3.bf16.msra.mxu1 %v13519_v22  ;;  %v3034_v22 = vld [vmem:[%s18484_s12 + $0x48] sm:$0xff] }
 0x516   : > { %12411 = vmatprep.subr.mxu1 %v4585_v14  ;;  %v13463_v17 = vpack.c.bf16 %v3034_v22, %v3033_v45 }
 0x518   : > { %3747 = vmatmul.mubr.f32.gmra.mrb[72].mxu1 %v14645_v53  ;;  %v3035_v53 = vld [vmem:[%s18484_s12 + $0x50] sm:$0xff] }
 0x519   : > { %3751 = vmatprep.mubr.f32.mxu1 %v14646_v3  ;;  %12412 = vmatpush3.msra.mxu1 %v4585_v14  ;;  %v3036_v3 = vld [vmem:[%s18484_s12 + $0x58] sm:$0xff] }
 0x51c   : > { %3752 = vmatmul.mubr.f32.gmra.mrb[74].mxu1 %v14647_v54 }
 0x51d   : > { %3756 = vmatprep.mubr.f32.mxu1 %v14648_v34  ;;  %v13467_v34 = vpack.c.bf16 %v3036_v3, %v3035_v53 }
 0x520   : > { %3757 = vmatmul.mubr.f32.gmra.mrb[76].mxu1 %v14649_v32 }
 0x521   : > { %3761 = vmatprep.mubr.f32.mxu1 %v14650_v63  ;;  %v3037_v63 = vld [vmem:[%s18484_s12 + $0x60] sm:$0xff] }
 0x524   : > { %3762 = vmatmul.mubr.f32.gmra.mrb[78].mxu1 %v14651_v5  ;;  %v3038_v5 = vld [vmem:[%s18484_s12 + $0x68] sm:$0xff] }
 0x525   : > { %3766 = vmatprep.mubr.f32.mxu1 %v14652_v10 }
 0x528   : > { %3767 = vmatmul.mubr.f32.gmra.mrb[80].mxu1 %v14653_v6  ;;  %v13471_v6 = vpack.c.bf16 %v3038_v5, %v3037_v63 }
 0x529   : > { %3771 = vmatprep.mubr.f32.mxu1 %v14654_v7 }
 0x52c   : > { %3772 = vmatmul.mubr.f32.gmra.mrb[82].mxu1 %v14655_v58  ;;  %v3039_v58 = vld [vmem:[%s18484_s12 + $0x70] sm:$0xff] }
 0x52d   : > { %3776 = vmatprep.mubr.f32.mxu1 %v14656_v9  ;;  %v3040_v9 = vld [vmem:[%s18484_s12 + $0x78] sm:$0xff] }
 0x530   : > { %3777 = vmatmul.mubr.f32.gmra.mrb[84].mxu1 %v14657_v31 }
 0x531   : > { %3781 = vmatprep.mubr.f32.mxu1 %v14658_v20  ;;  %v13475_v20 = vpack.c.bf16 %v3040_v9, %v3039_v58  ;;  %v16134_v58 = vld [vmem:[%s18500_s10] sm:$0xff] }
 0x534   : > { %3782 = vmatmul.mubr.f32.gmra.mrb[86].mxu1 %v14659_v61 }
 0x535   : > { %3786 = vmatprep.mubr.f32.mxu1 %v14660_v62  ;;  %v3041_v62 = vld [vmem:[%s18484_s12 + $0x80] sm:$0xff] }
 0x538   : > { %3787 = vmatmul.mubr.f32.gmra.mrb[88].mxu1 %v14661_v56  ;;  %v3042_v56 = vld [vmem:[%s18484_s12 + $0x88] sm:$0xff] }
 0x539   : > { %3791 = vmatprep.mubr.f32.mxu1 %v14662_v33 }
 0x53c   : > { %3792 = vmatmul.mubr.f32.gmra.mrb[90].mxu1 %v14663_v43  ;;  %v13479_v43 = vpack.c.bf16 %v3042_v56, %v3041_v62 }
 0x53d   : > { %3796 = vmatprep.mubr.f32.mxu1 %v14664_v21 }
 0x540   : > { %3797 = vmatmul.mubr.f32.gmra.mrb[92].mxu1 %v14665_v4  ;;  %v3043_v4 = vld [vmem:[%s18484_s12 + $0x90] sm:$0xff] }
 0x541   : > { %3801 = vmatprep.mubr.f32.mxu1 %v14666_v60  ;;  %v3044_v60 = vld [vmem:[%s18484_s12 + $0x98] sm:$0xff] }
 0x544   : > { %3802 = vmatmul.mubr.f32.gmra.mrb[94].mxu1 %v14667_v51 }
 0x545   : > { %3806 = vmatprep.mubr.f32.mxu1 %v14668_v1  ;;  %v13483_v1 = vpack.c.bf16 %v3044_v60, %v3043_v4 }
 0x548   : > { %3807 = vmatmul.mubr.f32.gmra.mrb[96].mxu1 %v14669_v8 }
 0x549   : > { %3811 = vmatprep.mubr.f32.mxu1 %v14670_v28  ;;  %v3045_v28 = vld [vmem:[%s18484_s12 + $0xa0] sm:$0xff] }
 0x54c   : > { %3812 = vmatmul.mubr.f32.gmra.mrb[98].mxu1 %v14671_v46  ;;  %v3046_v46 = vld [vmem:[%s18484_s12 + $0xa8] sm:$0xff] }
 0x54d   : > { %3816 = vmatprep.mubr.f32.mxu1 %v14672_v55 }
 0x550   : > { %3817 = vmatmul.mubr.f32.gmra.mrb[100].mxu1 %v14673_v48  ;;  %v13487_v48 = vpack.c.bf16 %v3046_v46, %v3045_v28 }
 0x551   : > { %3821 = vmatprep.mubr.f32.mxu1 %v14674_v26 }
 0x554   : > { %3822 = vmatmul.mubr.f32.gmra.mrb[102].mxu1 %v14675_v47  ;;  %v3047_v47 = vld [vmem:[%s18484_s12 + $0xb0] sm:$0xff] }
 0x555   : > { %3826 = vmatprep.mubr.f32.mxu1 %v14676_v16  ;;  %v3048_v16 = vld [vmem:[%s18484_s12 + $0xb8] sm:$0xff] }
 0x558   : > { %3827 = vmatmul.mubr.f32.gmra.mrb[104].mxu1 %v14677_v18  ;;  %v13491_v18 = vpack.c.bf16 %v3048_v16, %v3047_v47 }
 0x559   : > { %12413 = vmatprep.mubr.msk.f32.mxu1 %vm4647_vm5, %v4575_v2 }
 0x55c   : > { %12414 = vmatmul.mubr.msk.f32.vlgmr.msra.gmra.mrb[106].mxu1 %vm4647_vm5, %v4576_v57 }
 0x55d   : > { %12416 = vmatprep.mubr.msk.f32.mxu1 %vm4647_vm5, %v4577_v35  ;;  %v3049_v35 = vld [vmem:[%s18484_s12 + $0xc0] sm:$0xff] }
 0x560   : > { %12417 = vmatmul.mubr.msk.f32.gmra.mrb[108].mxu1 %vm4647_vm5, %v4578_v11  ;;  %v3050_v11 = vld [vmem:[%s18484_s12 + $0xc8] sm:$0xff] }
 0x561   : > { %12419 = vmatprep.mubr.msk.f32.mxu1 %vm4647_vm5, %v4579_v12 }
 0x564   : > { %12420 = vmatmul.mubr.msk.f32.gmra.mrb[110].mxu1 %vm4647_vm5, %v4580_v15  ;;  %v13495_v15 = vpack.c.bf16 %v3050_v11, %v3049_v35 }
 0x565   : > { %12422 = vmatprep.mubr.msk.f32.mxu1 %vm4647_vm5, %v4581_v37 }
 0x568   : > { %12423 = vmatmul.mubr.msk.f32.gmra.mrb[112].mxu1 %vm4647_vm5, %v4582_v59  ;;  %v3051_v59 = vld [vmem:[%s18484_s12 + $0xd0] sm:$0xff] }
 0x569   : > { %v13499_v50 = vpack.c.bf16 %v3052_v25, %v3051_v59 }
 0x5e7   : > { %v3743_v39 = vpop.f32.mrb[70].mxu1 }
 0x5e8   : > { %v3745_v42 = vpop.f32.mrb[71].mxu1 }
 0x5eb   : > { %v3748_v13 = vpop.f32.mrb[72].mxu1 }
 0x5ec   : > { %v3750_v52 = vpop.f32.mrb[73].mxu1 }
 0x5ed   : > { %v3055_v52 = vld [vmem:[%s18484_s12 + $0xf0] sm:$0xff] }
 0x5ef   : > { %v3753_v27 = vpop.f32.mrb[74].mxu1 }
 0x5f0   : > { %v3755_v19 = vpop.f32.mrb[75].mxu1  ;;  %12316 = vmatprep.mubr.msk.f32.mxu0 %vm1295_vm2, %v3753_v27  ;;  %v3056_v27 = vld [vmem:[%s18484_s12 + $0xf8] sm:$0xff] }
 0x5f1   : > { %v13507_v41 = vpack.c.bf16 %v3056_v27, %v3055_v52 }
 0x5f3   : > { %v3758_v29 = vpop.f32.mrb[76].mxu1 }
 0x5f4   : > { %12317 = vmatmul.mubr.msk.f32.vlgmr.msra.gmra.mrb[36].mxu0 %vm1295_vm2, %v3758_v29  ;;  %v3760_v14 = vpop.f32.mrb[77].mxu1  ;;  %v3058_v29 = vld [vmem:[%s18484_s12 + $0x108] sm:$0xff] }
 0x5f5   : > { %13458 = vmatpush3.bf16.msra.mxu0 %v13455_v49  ;;  %12327 = vmatprep.mubr.msk.f32.mxu0 %vm1295_vm2, %v3743_v39  ;;  %v3054_v49 = vld [vmem:[%s18484_s12 + $0xe8] sm:$0xff] }
 0x5f6   : > { %13460 = vmatprep.subr.bf16.mxu0 %v13459_v23  ;;  %v13503_v42 = vpack.c.bf16 %v3054_v49, %v3053_v44 }
 0x5f7   : > { %v3763_v36 = vpop.f32.mrb[78].mxu1 }
 0x5f8   : > { %v3765_v54 = vpop.f32.mrb[79].mxu1 }
 0x5f9   : > { %13462 = vmatpush3.bf16.msra.mxu0 %v13459_v23  ;;  %v3057_v23 = vld [vmem:[%s18484_s12 + $0x100] sm:$0xff] }
 0x5fa   : > { %13464 = vmatprep.subr.bf16.mxu0 %v13463_v17  ;;  %v13511_v22 = vpack.c.bf16 %v3058_v29, %v3057_v23 }
 0x5fb   : > { %v3768_v32 = vpop.f32.mrb[80].mxu1 }
 0x5fc   : > { %12328 = vmatmul.mubr.msk.f32.vlgmr.msra.gmra.mrb[36].mxu0 %vm1295_vm2, %v3748_v13  ;;  %v3770_v10 = vpop.f32.mrb[81].mxu1 }
 0x5fd   : > { %13466 = vmatpush3.bf16.msra.mxu0 %v13463_v17  ;;  %12338 = vmatprep.mubr.msk.f32.mxu0 %vm1295_vm2, %v3763_v36  ;;  %v3059_v17 = vld [vmem:[%s18484_s12 + $0x110] sm:$0xff]  ;;  %v3060_v36 = vld [vmem:[%s18484_s12 + $0x118] sm:$0xff] }
 0x5fe   : > { %13468 = vmatprep.subr.bf16.mxu0 %v13467_v34  ;;  %v13515_v3 = vpack.c.bf16 %v3060_v36, %v3059_v17 }
 0x5ff   : > { %v3773_v7 = vpop.f32.mrb[82].mxu1 }
 0x600   : > { %v3775_v31 = vpop.f32.mrb[83].mxu1 }
 0x601   : > { %13470 = vmatpush3.bf16.msra.mxu0 %v13467_v34 }
 0x602   : > { %13472 = vmatprep.subr.bf16.mxu0 %v13471_v6 }
 0x603   : > { %v3778_v61 = vpop.f32.mrb[84].mxu1 }
 0x604   : > { %12339 = vmatmul.mubr.msk.f32.vlgmr.msra.gmra.mrb[36].mxu0 %vm1295_vm2, %v3768_v32  ;;  %v3780_v33 = vpop.f32.mrb[85].mxu1  ;;  %v11060_v32 = vld [vmem:[%s18499_s6] ss:$0 sm:$0xff]  ;;  %s18501_s6 = sld [smem:[#allocation20_spill]] }
 0x605   : > { %13474 = vmatpush3.bf16.msra.mxu0 %v13471_v6  ;;  %12349 = vmatprep.mubr.msk.f32.mxu0 %vm1295_vm2, %v3773_v7 }
 0x606   : > { %13476 = vmatprep.subr.bf16.mxu0 %v13475_v20 }
 0x607   : > { %v3783_v21 = vpop.f32.mrb[86].mxu1 }
 0x608   : > { %v3785_v51 = vpop.f32.mrb[87].mxu1 }
 0x609   : > { %13478 = vmatpush3.bf16.msra.mxu0 %v13475_v20 }
 0x60a   : > { %13480 = vmatprep.subr.bf16.mxu0 %v13479_v43 }
 0x60b   : > { %v3788_v8 = vpop.f32.mrb[88].mxu1 }
 0x60c   : > { %12350 = vmatmul.mubr.msk.f32.vlgmr.msra.gmra.mrb[36].mxu0 %vm1295_vm2, %v3778_v61  ;;  %v3790_v55 = vpop.f32.mrb[89].mxu1 }
 0x60d   : > { %13482 = vmatpush3.bf16.msra.mxu0 %v13479_v43  ;;  %12360 = vmatprep.mubr.msk.f32.mxu0 %vm1295_vm2, %v3783_v21 }
 0x60e   : > { %13484 = vmatprep.subr.bf16.mxu0 %v13483_v1 }
 0x60f   : > { %v3793_v26 = vpop.f32.mrb[90].mxu1 }
 0x610   : > { %v3795_v2 = vpop.f32.mrb[91].mxu1 }
 0x611   : > { %13486 = vmatpush3.bf16.msra.mxu0 %v13483_v1 }
 0x612   : > { %13488 = vmatprep.subr.bf16.mxu0 %v13487_v48 }
 0x613   : > { %v3798_v57 = vpop.f32.mrb[92].mxu1 }
 0x614   : > { %12361 = vmatmul.mubr.msk.f32.vlgmr.msra.gmra.mrb[36].mxu0 %vm1295_vm2, %v3788_v8  ;;  %v3800_v12 = vpop.f32.mrb[93].mxu1 }
 0x615   : > { %13490 = vmatpush3.bf16.msra.mxu0 %v13487_v48  ;;  %12371 = vmatprep.mubr.msk.f32.mxu0 %vm1295_vm2, %v3793_v26 }
 0x616   : > { %13492 = vmatprep.subr.bf16.mxu0 %v13491_v18 }
 0x617   : > { %v3803_v37 = vpop.f32.mrb[94].mxu1 }
 0x618   : > { %v3805_v40 = vpop.f32.mrb[95].mxu1 }
 0x619   : > { %13494 = vmatpush3.bf16.msra.mxu0 %v13491_v18 }
 0x61a   : > { %13496 = vmatprep.subr.bf16.mxu0 %v13495_v15 }
 0x61b   : > { %v3808_v0 = vpop.f32.mrb[96].mxu1 }
 0x61c   : > { %12372 = vmatmul.mubr.msk.f32.vlgmr.msra.gmra.mrb[36].mxu0 %vm1295_vm2, %v3798_v57  ;;  %v3810_v39 = vpop.f32.mrb[97].mxu1 }
 0x61d   : > { %13498 = vmatpush3.bf16.msra.mxu0 %v13495_v15  ;;  %12382 = vmatprep.mubr.msk.f32.mxu0 %vm1295_vm2, %v3803_v37 }
 0x61e   : > { %13500 = vmatprep.subr.bf16.mxu0 %v13499_v50 }
 0x61f   : > { %v3813_v13 = vpop.f32.mrb[98].mxu1 }
 0x620   : > { %v3815_v38 = vpop.f32.mrb[99].mxu1 }
 0x621   : > { %13502 = vmatpush3.bf16.msra.mxu0 %v13499_v50 }
 0x622   : > { %13504 = vmatprep.subr.bf16.mxu0 %v13503_v42 }
 0x623   : > { %v3818_v19 = vpop.f32.mrb[100].mxu1 }
 0x624   : > { %12383 = vmatmul.mubr.msk.f32.vlgmr.msra.gmra.mrb[36].mxu0 %vm1295_vm2, %v3808_v0  ;;  %v3820_v45 = vpop.f32.mrb[101].mxu1 }
 0x625   : > { %13506 = vmatpush3.bf16.msra.mxu0 %v13503_v42  ;;  %12393 = vmatprep.mubr.msk.f32.mxu0 %vm1295_vm2, %v3813_v13 }
 0x626   : > { %13508 = vmatprep.subr.bf16.mxu0 %v13507_v41 }
 0x627   : > { %v3823_v14 = vpop.f32.mrb[102].mxu1 }
 0x628   : > { %v3825_v53 = vpop.f32.mrb[103].mxu1 }
 0x629   : > { %13510 = vmatpush3.bf16.msra.mxu0 %v13507_v41 }
 0x62a   : > { %13512 = vmatprep.subr.bf16.mxu0 %v13511_v22 }
 0x62b   : > { %v3828_v54 = vpop.f32.mrb[104].mxu1 }
 0x62c   : > { %12394 = vmatmul.mubr.msk.f32.vlgmr.msra.gmra.mrb[36].mxu0 %vm1295_vm2, %v3818_v19  ;;  %v3830_v34 = vpop.f32.mrb[105].mxu1 }
 0x62d   : > { %13514 = vmatpush3.bf16.msra.mxu0 %v13511_v22  ;;  %12404 = vmatprep.mubr.msk.f32.mxu0 %vm1295_vm2, %v3823_v14 }
 0x62e   : > { %13516 = vmatprep.subr.bf16.mxu0 %v13515_v3 }
 0x62f   : > { %v12415_v63 = vpop.f32.mrb[106].mxu1 }
 0x630   : > { %v16127_v5 = vadd.f32 %v12415_v63, %v11060_v32  ;;  %v4738_v10 = vpop.f32.mrb[107].mxu1 }
 0x631   : > { %v16129_v6 = vadd.f32 %v11060_v32, %v4738_v10  ;;  %13518 = vmatpush3.bf16.msra.mxu0 %v13515_v3 }
 0x632   : > { %v4778_v7 = vmul.f32 %v16127_v5, %v16127_v5 }
 0x633   : > { %v4777_v9 = vmul.f32 %v16129_v6, %v16129_v6  ;;  %v12418_v31 = vpop.f32.mrb[108].mxu1 }
 0x634   : > { %v4786_v20 = vmul.f32 %v4778_v7, %v16127_v5  ;;  %v16139_v61 = vadd.f32 %v12418_v31, %v11060_v32  ;;  %12405 = vmatmul.mubr.msk.f32.vlgmr.msra.gmra.mrb[36].mxu0 %vm1295_vm2, %v3828_v54  ;;  %v4748_v62 = vpop.f32.mrb[109].mxu1 }
 0x635   : > { %v4785_v56 = vmul.f32 %v4777_v9, %v16129_v6  ;;  %v16143_v33 = vadd.f32 %v11060_v32, %v4748_v62  ;;  %12441 = vmatprep.mubr.msk.f32.mxu0 %vm1201_vm1, %v16134_v58 }
 0x636   : > { %v4794_v43 = vmul.f32 0.044715, %v4786_v20  ;;  %v4780_v21 = vmul.f32 %v16139_v61, %v16139_v61 }
 0x637   : > { %v4793_v4 = vmul.f32 0.044715, %v4785_v56  ;;  %v4779_v60 = vmul.f32 %v16143_v33, %v16143_v33  ;;  %v12421_v51 = vpop.f32.mrb[110].mxu1 }
 0x638   : > { %v4802_v1 = vadd.f32 %v4794_v43, %v16127_v5  ;;  %v4788_v8 = vmul.f32 %v4780_v21, %v16139_v61  ;;  %v16153_v28 = vadd.f32 %v12421_v51, %v11060_v32  ;;  %v4758_v46 = vpop.f32.mrb[111].mxu1 }
 0x639   : > { %v4801_v55 = vadd.f32 %v4793_v4, %v16129_v6  ;;  %v4787_v48 = vmul.f32 %v4779_v60, %v16143_v33  ;;  %v16157_v26 = vadd.f32 %v11060_v32, %v4758_v46 }
 0x63a   : > { %v4810_v47 = vmul.f32 0.7978846, %v4802_v1  ;;  %v4796_v16 = vmul.f32 0.044715, %v4788_v8  ;;  %v4782_v2 = vmul.f32 %v16153_v28, %v16153_v28 }
 0x63b   : > { %v4809_v18 = vmul.f32 0.7978846, %v4801_v55  ;;  %v4795_v57 = vmul.f32 0.044715, %v4787_v48  ;;  %v4781_v35 = vmul.f32 %v16157_v26, %v16157_v26  ;;  %v12424_v11 = vpop.f32.mrb[112].mxu1 }
 0x63c   : > { %14338 = vtanh.f32 %v4810_v47  ;;  %v4804_v12 = vadd.f32 %v4796_v16, %v16139_v61  ;;  %v4790_v15 = vmul.f32 %v4782_v2, %v16153_v28  ;;  %v16165_v37 = vadd.f32 %v12424_v11, %v11060_v32  ;;  %v4768_v59 = vpop.f32.mrb[113].mxu1 }
 0x63d   : > { %14340 = vtanh.f32 %v4809_v18  ;;  %v4803_v25 = vadd.f32 %v4795_v57, %v16143_v33  ;;  %v4789_v40 = vmul.f32 %v4781_v35, %v16157_v26  ;;  %v16169_v50 = vadd.f32 %v11060_v32, %v4768_v59 }
 0x63e   : > { %v4812_v0 = vmul.f32 0.7978846, %v4804_v12  ;;  %v4798_v44 = vmul.f32 0.044715, %v4790_v15  ;;  %v4784_v49 = vmul.f32 %v16165_v37, %v16165_v37  ;;  %v5809_v12 = vld [vmem:[%s18501_s6] sm:$0xff]  ;;  %v5810_v15 = vld [vmem:[%s18501_s6 + $0x8] sm:$0xff] }
 0x63f   : > { %v4811_v39 = vmul.f32 0.7978846, %v4803_v25  ;;  %v4797_v42 = vmul.f32 0.044715, %v4789_v40  ;;  %v4783_v13 = vmul.f32 %v16169_v50, %v16169_v50  ;;  %v13611_v25 = vpack.c.bf16 %v5810_v15, %v5809_v12  ;;  %v5812_v40 = vld [vmem:[%s18501_s6 + $0x18] sm:$0xff]  ;;  %v4599_v15 = vld [vmem:[%s18504_s8 + $0x60] sm:$0xff] }
 0x640   : > { %14342 = vtanh.f32 %v4812_v0  ;;  %v4806_v52 = vadd.f32 %v4798_v44, %v16153_v28  ;;  %v4792_v27 = vmul.f32 %v4784_v49, %v16165_v37  ;;  %v16194_v0 = vld [vmem:[%s18500_s10 + $0x8] sm:$0xff]  ;;  %v16197_v44 = vld [vmem:[%s18500_s10 + $0x10] sm:$0xff]  ;;  %v16207_v49 = vld [vmem:[%s18500_s10 + $0x20] sm:$0xff] }
 0x641   : > { %14344 = vtanh.f32 %v4811_v39  ;;  %v4805_v38 = vadd.f32 %v4797_v42, %v16157_v26  ;;  %v4791_v41 = vmul.f32 %v4783_v13, %v16169_v50  ;;  %v16214_v39 = vld [vmem:[%s18500_s10 + $0x28] sm:$0xff]  ;;  %v16217_v42 = vld [vmem:[%s18500_s10 + $0x30] sm:$0xff]  ;;  %v16224_v13 = vld [vmem:[%s18500_s10 + $0x38] sm:$0xff] }
 0x642   : > { %v4814_v19 = vmul.f32 0.7978846, %v4806_v52  ;;  %v4800_v23 = vmul.f32 0.044715, %v4792_v27  ;;  %v16227_v52 = vld [vmem:[%s18500_s10 + $0x40] sm:$0xff]  ;;  %v16234_v27 = vld [vmem:[%s18500_s10 + $0x48] sm:$0xff] }
 0x643   : > { %v4813_v29 = vmul.f32 0.7978846, %v4805_v38  ;;  %v4799_v45 = vmul.f32 0.044715, %v4791_v41  ;;  %v16237_v38 = vld [vmem:[%s18500_s10 + $0x50] sm:$0xff]  ;;  %v16244_v41 = vld [vmem:[%s18500_s10 + $0x58] sm:$0xff] }
 0x644   : > { %14346 = vtanh.f32 %v4814_v19  ;;  %v4808_v22 = vadd.f32 %v4800_v23, %v16165_v37  ;;  %v16247_v19 = vld [vmem:[%s18500_s10 + $0x60] sm:$0xff]  ;;  %v16254_v23 = vld [vmem:[%s18500_s10 + $0x68] sm:$0xff] }
 0x645   : > { %14348 = vtanh.f32 %v4813_v29  ;;  %v4807_v14 = vadd.f32 %v4799_v45, %v16169_v50  ;;  %v16257_v29 = vld [vmem:[%s18500_s10 + $0x70] sm:$0xff]  ;;  %v16264_v45 = vld [vmem:[%s18500_s10 + $0x78] sm:$0xff] }
 0x646   : > { %v14339_v17 = vpop.eup %14338  ;;  %v4816_v36 = vmul.f32 0.7978846, %v4808_v22  ;;  %v16267_v22 = vld [vmem:[%s18500_s10 + $0x80] sm:$0xff] }
 0x647   : > { %v14341_v53 = vpop.eup %14340  ;;  %v4815_v3 = vmul.f32 0.7978846, %v4807_v14  ;;  %v4826_v54 = vadd.f32 1.0, %v14339_v17  ;;  %v16277_v14 = vld [vmem:[%s18500_s10 + $0x88] sm:$0xff] }
 0x648   : > { %14350 = vtanh.f32 %v4816_v36  ;;  %v4825_v34 = vadd.f32 1.0, %v14341_v53 }
 0x649   : > { %14352 = vtanh.f32 %v4815_v3  ;;  %v4834_v32 = vmul.f32 0.5, %v4826_v54 }
 0x64a   : > { %v14343_v63 = vpop.eup %14342  ;;  %v4833_v10 = vmul.f32 0.5, %v4825_v34 }
 0x64b   : > { %v14345_v7 = vpop.eup %14344  ;;  %v4842_v9 = vmul.f32 %v4834_v32, %v16127_v5  ;;  %v4828_v31 = vadd.f32 1.0, %v14343_v63 }
 0x64c   : > { %v4841_v20 = vmul.f32 %v4833_v10, %v16129_v6  ;;  %v4827_v62 = vadd.f32 1.0, %v14345_v7  ;;  %v4591_v10 = vld [vmem:[%s18504_s8 + $0x20] sm:$0xff]  ;;  %v4592_v7 = vld [vmem:[%s18504_s8 + $0x28] sm:$0xff] }
 0x64d   : > { %v4836_v56 = vmul.f32 0.5, %v4828_v31  ;;  %v4593_v31 = vld [vmem:[%s18504_s8 + $0x30] sm:$0xff] }
 0x64e   : > { %v14347_v43 = vpop.eup %14346  ;;  %v13523_v21 = vpack.c.bf16 %v4842_v9, %v4841_v20  ;;  %v4835_v4 = vmul.f32 0.5, %v4827_v62  ;;  %v13539_v9 = vpack.c.bf16 %v4592_v7, %v4591_v10  ;;  %v4594_v20 = vld [vmem:[%s18504_s8 + $0x38] sm:$0xff]  ;;  %v4605_v10 = vld [vmem:[%s18504_s8 + $0x90] sm:$0xff] }
 0x64f   : > { %v14349_v60 = vpop.eup %14348  ;;  %v4844_v51 = vmul.f32 %v4836_v56, %v16139_v61  ;;  %v4830_v1 = vadd.f32 1.0, %v14347_v43  ;;  %v13543_v62 = vpack.c.bf16 %v4594_v20, %v4593_v31  ;;  %v4587_v56 = vld [vmem:[%s18504_s8] sm:$0xff]  ;;  %v4588_v43 = vld [vmem:[%s18504_s8 + $0x8] sm:$0xff]  ;;  %v4606_v7 = vld [vmem:[%s18504_s8 + $0x98] sm:$0xff] }
 0x650   : > { %13524 = vmatprep.subr.bf16.mxu0 %v13523_v21  ;;  %v4843_v8 = vmul.f32 %v4835_v4, %v16143_v33  ;;  %v4829_v46 = vadd.f32 1.0, %v14349_v60  ;;  %13540 = vmatprep.subr.bf16.mxu1 %v13539_v9  ;;  %v13575_v20 = vpack.c.bf16 %v4606_v7, %v4605_v10  ;;  %v4615_v7 = vld [vmem:[%s18504_s8 + $0xe0] sm:$0xff] }
 0x651   : > { %13526 = vmatpush3.bf16.msra.mxu0 %v13523_v21  ;;  %v4838_v55 = vmul.f32 0.5, %v4830_v1  ;;  %13542 = vmatpush3.bf16.msra.mxu1 %v13539_v9  ;;  %v13547_v21 = vpack.c.bf16 %v4588_v43, %v4587_v56  ;;  %v4608_v56 = vld [vmem:[%s18504_s8 + $0xa8] sm:$0xff] }
 0x652   : > { %v14351_v5 = vpop.eup %14350  ;;  %v13527_v48 = vpack.c.bf16 %v4844_v51, %v4843_v8  ;;  %v4837_v6 = vmul.f32 0.5, %v4829_v46  ;;  %13544 = vmatprep.subr.bf16.mxu1 %v13543_v62  ;;  %v4589_v46 = vld [vmem:[%s18504_s8 + $0x10] sm:$0xff] }
 0x653   : > { %v14353_v47 = vpop.eup %14352  ;;  %v4846_v16 = vmul.f32 %v4838_v55, %v16153_v28  ;;  %v4832_v2 = vadd.f32 1.0, %v14351_v5  ;;  %v4590_v55 = vld [vmem:[%s18504_s8 + $0x18] sm:$0xff] }
 0x654   : > { %13528 = vmatprep.subr.bf16.mxu0 %v13527_v48  ;;  %v4845_v61 = vmul.f32 %v4837_v6, %v16157_v26  ;;  %v4831_v18 = vadd.f32 1.0, %v14353_v47  ;;  %v5811_v26 = vld [vmem:[%s18501_s6 + $0x10] sm:$0xff]  ;;  %s1184_s6 = scalar_lea.vmem %s18502_s5, %s18503_s4  ;;  %v13551_v6 = vpack.c.bf16 %v4590_v55, %v4589_v46  ;;  %v4595_v47 = vld [vmem:[%s18504_s8 + $0x40] sm:$0xff]  ;;  %s18507_s5 = sld [smem:[#allocation21_spill]] }
 0x655   : > { %13530 = vmatpush3.bf16.msra.mxu0 %v13527_v48  ;;  %v4840_v33 = vmul.f32 0.5, %v4832_v2  ;;  %v5801_v17 = vld [vmem:[%s1184_s6] sm:$0xff]  ;;  %v5802_v36 = vld [vmem:[%s1184_s6 + $0x8] sm:$0xff]  ;;  %v5803_v53 = vld [vmem:[%s1184_s6 + $0x10] sm:$0xff]  ;;  %13546 = vmatpush3.bf16.msra.mxu1 %v13543_v62  ;;  %s18508_s4 = sld [smem:[#allocation22_spill]] }
 0x656   : > { %v13531_v57 = vpack.c.bf16 %v4846_v16, %v4845_v61  ;;  %v4839_v35 = vmul.f32 0.5, %v4831_v18  ;;  %v5804_v3 = vld [vmem:[%s1184_s6 + $0x18] sm:$0xff]  ;;  %v5805_v54 = vld [vmem:[%s1184_s6 + $0x20] sm:$0xff]  ;;  %v5806_v34 = vld [vmem:[%s1184_s6 + $0x28] sm:$0xff]  ;;  %13548 = vmatprep.subr.bf16.mxu1 %v13547_v21 }
 0x657   : > { %v4848_v11 = vmul.f32 %v4840_v33, %v16165_v37  ;;  %v13615_v37 = vpack.c.bf16 %v5812_v40, %v5811_v26  ;;  %v5807_v32 = vld [vmem:[%s1184_s6 + $0x30] sm:$0xff]  ;;  %v5808_v63 = vld [vmem:[%s1184_s6 + $0x38] sm:$0xff]  ;;  %v4596_v16 = vld [vmem:[%s18504_s8 + $0x48] sm:$0xff]  ;;  %s18514_s6 = sld [smem:[#allocation25_spill]] }
 0x658   : > { %13532 = vmatprep.subr.bf16.mxu0 %v13531_v57  ;;  %v4847_v28 = vmul.f32 %v4839_v35, %v16169_v50  ;;  %v16204_v50 = vld [vmem:[%s18500_s10 + $0x18] sm:$0xff]  ;;  %v13555_v61 = vpack.c.bf16 %v4596_v16, %v4595_v47  ;;  %v4597_v33 = vld [vmem:[%s18504_s8 + $0x50] sm:$0xff]  ;;  %v4607_v62 = vld [vmem:[%s18504_s8 + $0xa0] sm:$0xff]  ;;  %s14813_s10 = smov [#allocation2]  }
 0x659   : > { %13534 = vmatpush3.bf16.msra.mxu0 %v13531_v57  ;;  %v4598_v57 = vld [vmem:[%s18504_s8 + $0x58] sm:$0xff]  ;;  %v4601_v40 = vld [vmem:[%s18504_s8 + $0x70] sm:$0xff]  ;;  %v4611_v47 = vld [vmem:[%s18504_s8 + $0xc0] sm:$0xff]  ;;  %s14682_s12 = sshll.u32 %s14813_s10, 4  ;;  %s14683_s12 = int_to_ptr.vmem [resolvable:$false] %s14682_s12 }
 0x65a   : > { %v13535_v59 = vpack.c.bf16 %v4848_v11, %v4847_v28  ;;  %v13559_v11 = vpack.c.bf16 %v4598_v57, %v4597_v33  ;;  %v4600_v28 = vld [vmem:[%s18504_s8 + $0x68] sm:$0xff]  ;;  %s14684_s13 = scalar_lea.vmem %s14683_s12, 256 }
 0x65b   : > { %v4612_v16 = vld [vmem:[%s18504_s8 + $0xc8] sm:$0xff] }
 0x65c   : > { %13536 = vmatprep.subr.bf16.mxu0 %v13535_v59 }
 0x65d   : > { %13538 = vmatpush3.bf16.msra.mxu0 %v13535_v59 }
 0x65e   : > { %13612 = vmatprep.subr.bf16.mxu0 %v13611_v25 }
 0x660   : > { %12442 = vmatmul.mubr.msk.f32.vlgmr.msra.gmra.mrb[38].mxu0 %vm1201_vm1, %v16194_v0 }
 0x661   : > { %12444 = vmatprep.mubr.msk.f32.mxu0 %vm1201_vm1, %v16197_v44  ;;  %13614 = vmatpush3.bf16.msra.mxu0 %v13611_v25  ;;  %v13563_v25 = vpack.c.bf16 %v4600_v28, %v4599_v15  ;;  %v4613_v28 = vld [vmem:[%s18504_s8 + $0xd0] sm:$0xff] }
 0x662   : > { %13616 = vmatprep.subr.bf16.mxu0 %v13615_v37 }
 0x664   : > { %12445 = vmatmul.mubr.msk.f32.gmra.mrb[40].mxu0 %vm1201_vm1, %v16204_v50 }
 0x665   : > { %12447 = vmatprep.mubr.msk.f32.mxu0 %vm1201_vm1, %v16207_v49  ;;  %13618 = vmatpush3.bf16.msra.mxu0 %v13615_v37  ;;  %v4602_v37 = vld [vmem:[%s18504_s8 + $0x78] sm:$0xff] }
 0x668   : > { %12448 = vmatmul.mubr.msk.f32.gmra.mrb[42].mxu0 %vm1201_vm1, %v16214_v39 }
 0x669   : > { %12450 = vmatprep.mubr.msk.f32.mxu0 %vm1201_vm1, %v16217_v42 }
 0x66c   : > { %12451 = vmatmul.mubr.msk.f32.gmra.mrb[44].mxu0 %vm1201_vm1, %v16224_v13 }
 0x66d   : > { %12453 = vmatprep.mubr.msk.f32.mxu0 %vm1201_vm1, %v16227_v52 }
 0x670   : > { %12454 = vmatmul.mubr.msk.f32.gmra.mrb[46].mxu0 %vm1201_vm1, %v16234_v27 }
 0x671   : > { %12456 = vmatprep.mubr.msk.f32.mxu0 %vm1201_vm1, %v16237_v38 }
 0x674   : > { %12457 = vmatmul.mubr.msk.f32.gmra.mrb[48].mxu0 %vm1201_vm1, %v16244_v41 }
 0x675   : > { %12459 = vmatprep.mubr.msk.f32.mxu0 %vm1201_vm1, %v16247_v19 }
 0x678   : > { %12460 = vmatmul.mubr.msk.f32.gmra.mrb[50].mxu0 %vm1201_vm1, %v16254_v23 }
 0x679   : > { %12462 = vmatprep.mubr.msk.f32.mxu0 %vm1201_vm1, %v16257_v29 }
 0x67c   : > { %12463 = vmatmul.mubr.msk.f32.gmra.mrb[52].mxu0 %vm1201_vm1, %v16264_v45 }
 0x67d   : > { %12465 = vmatprep.mubr.msk.f32.mxu0 %vm1201_vm1, %v16267_v22 }
 0x680   : > { %12466 = vmatmul.mubr.msk.f32.gmra.mrb[54].mxu0 %vm1201_vm1, %v16277_v14 }
 0x681   : > { %12575 = vmatprep.mubr.msk.f32.mxu0 %vm1295_vm2, %v5801_v17 }
 0x684   : > { %12576 = vmatmul.mubr.msk.f32.vlgmr.msra.gmra.mrb[56].mxu0 %vm1295_vm2, %v5802_v36  ;;  %v13567_v36 = vpack.c.bf16 %v4602_v37, %v4601_v40 }
 0x685   : > { %12578 = vmatprep.mubr.msk.f32.mxu0 %vm1295_vm2, %v5803_v53 }
 0x688   : > { %12579 = vmatmul.mubr.msk.f32.gmra.mrb[58].mxu0 %vm1295_vm2, %v5804_v3  ;;  %v4603_v3 = vld [vmem:[%s18504_s8 + $0x80] sm:$0xff] }
 0x689   : > { %12581 = vmatprep.mubr.msk.f32.mxu0 %vm1295_vm2, %v5805_v54  ;;  %v4604_v54 = vld [vmem:[%s18504_s8 + $0x88] sm:$0xff] }
 0x68c   : > { %12582 = vmatmul.mubr.msk.f32.gmra.mrb[60].mxu0 %vm1295_vm2, %v5806_v34 }
 0x68d   : > { %12584 = vmatprep.mubr.msk.f32.mxu0 %vm1295_vm2, %v5807_v32 }
 0x690   : > { %12585 = vmatmul.mubr.msk.f32.gmra.mrb[62].mxu0 %vm1295_vm2, %v5808_v63  ;;  %v13571_v63 = vpack.c.bf16 %v4604_v54, %v4603_v3 }
 0x691   : > { %12603 = vmatprep.mubr.msk.f32.mxu0 %vm1201_vm1, %v16134_v58 }
 0x707   : > { %v16297_v4 = vpop.f32.mrb[36].mxu0 }
 0x708   : > { %18505 = vst [vmem:[#allocation37_spill] sm:$0xff] %v16297_v4  ;;  %v16299_v60 = vpop.f32.mrb[37].mxu0  ;;  %v6995_v51 = vsel %vm1295_vm2, %v16297_v4, 0.0 }
 0x709   : > { %18506 = vst [vmem:[#allocation38_spill] sm:$0xff] %v16299_v60  ;;  %v6992_v58 = vsel %vm1295_vm2, %v16299_v60, 0.0 }
 0x70a   : > { %6993 = vadd.xlane.f32.xlu1 %v6992_v58  ;;  %v13579_v58 = vpack.c.bf16 %v4608_v56, %v4607_v62 }
 0x70e   : > { %6996 = vadd.xlane.f32.xlu1 %v6995_v51  ;;  %v16345_v51 = vld [vmem:[%s18507_s5] ss:$0 sm:$0xff]  ;;  %s18515_s5 = sld [smem:[#allocation26_spill]] }
 0x733   : > { %v12443_v1 = vpop.f32.mrb[38].mxu0 }
 0x734   : > { %v4969_v8 = vpop.f32.mrb[39].mxu0 }
 0x737   : > { %v12446_v5 = vpop.f32.mrb[40].mxu0 }
 0x738   : > { %v4979_v48 = vpop.f32.mrb[41].mxu0 }
 0x739   : > { %12476 = vmatprep.mubr.msk.f32.mxu1 %vm1295_vm2, %v4979_v48 }
 0x73a   : > { %12477 = vmatmul.mubr.msk.f32.vlgmr.msra.gmra.mrb[114].mxu1 %vm1295_vm2, %v12446_v5 }
 0x73b   : > { %13550 = vmatpush3.bf16.msra.mxu1 %v13547_v21  ;;  %12487 = vmatprep.mubr.msk.f32.mxu1 %vm1295_vm2, %v4969_v8  ;;  %v12449_v2 = vpop.f32.mrb[42].mxu0  ;;  %v4610_v8 = vld [vmem:[%s18504_s8 + $0xb8] sm:$0xff] }
 0x73c   : > { %13552 = vmatprep.subr.bf16.mxu1 %v13551_v6  ;;  %v4989_v18 = vpop.f32.mrb[43].mxu0 }
 0x73f   : > { %13554 = vmatpush3.bf16.msra.mxu1 %v13551_v6  ;;  %v12452_v35 = vpop.f32.mrb[44].mxu0 }
 0x740   : > { %13556 = vmatprep.subr.bf16.mxu1 %v13555_v61  ;;  %v4999_v12 = vpop.f32.mrb[45].mxu0 }
 0x742   : > { %12488 = vmatmul.mubr.msk.f32.vlgmr.msra.gmra.mrb[114].mxu1 %vm1295_vm2, %v12443_v1  ;;  %v4609_v1 = vld [vmem:[%s18504_s8 + $0xb0] sm:$0xff] }
 0x743   : > { %13558 = vmatpush3.bf16.msra.mxu1 %v13555_v61  ;;  %12498 = vmatprep.mubr.msk.f32.mxu1 %vm1295_vm2, %v4989_v18  ;;  %v12455_v59 = vpop.f32.mrb[46].mxu0  ;;  %v13583_v48 = vpack.c.bf16 %v4610_v8, %v4609_v1 }
 0x744   : > { %13560 = vmatprep.subr.bf16.mxu1 %v13559_v11  ;;  %v5009_v26 = vpop.f32.mrb[47].mxu0 }
 0x747   : > { %13562 = vmatpush3.bf16.msra.mxu1 %v13559_v11  ;;  %v16320_v17 = vpop.f32.mrb[48].mxu0  ;;  %v13587_v11 = vpack.c.bf16 %v4612_v16, %v4611_v47 }
 0x748   : > { %13564 = vmatprep.subr.bf16.mxu1 %v13563_v25  ;;  %v5019_v53 = vpop.f32.mrb[49].mxu0 }
 0x74a   : > { %12499 = vmatmul.mubr.msk.f32.vlgmr.msra.gmra.mrb[114].mxu1 %vm1295_vm2, %v12449_v2 }
 0x74b   : > { %13566 = vmatpush3.bf16.msra.mxu1 %v13563_v25  ;;  %12509 = vmatprep.mubr.msk.f32.mxu1 %vm1295_vm2, %v4999_v12  ;;  %v16326_v34 = vpop.f32.mrb[50].mxu0 }
 0x74c   : > { %13568 = vmatprep.subr.bf16.mxu1 %v13567_v36  ;;  %v16328_v32 = vpop.f32.mrb[51].mxu0 }
 0x74f   : > { %13570 = vmatpush3.bf16.msra.mxu1 %v13567_v36  ;;  %v16332_v9 = vpop.f32.mrb[52].mxu0 }
 0x750   : > { %13572 = vmatprep.subr.bf16.mxu1 %v13571_v63  ;;  %v16334_v31 = vpop.f32.mrb[53].mxu0 }
 0x752   : > { %12510 = vmatmul.mubr.msk.f32.vlgmr.msra.gmra.mrb[114].mxu1 %vm1295_vm2, %v12452_v35 }
 0x753   : > { %13574 = vmatpush3.bf16.msra.mxu1 %v13571_v63  ;;  %12520 = vmatprep.mubr.msk.f32.mxu1 %vm1295_vm2, %v5009_v26  ;;  %v16340_v43 = vpop.f32.mrb[54].mxu0 }
 0x754   : > { %v16342_v21 = vpop.f32.mrb[55].mxu0  ;;  %13576 = vmatprep.subr.bf16.mxu1 %v13575_v20 }
 0x757   : > { %13578 = vmatpush3.bf16.msra.mxu1 %v13575_v20  ;;  %v12577_v46 = vpop.f32.mrb[56].mxu0  ;;  %v4616_v20 = vld [vmem:[%s18504_s8 + $0xe8] sm:$0xff] }
 0x758   : > { %v16350_v55 = vadd.f32 %v12577_v46, %v16345_v51  ;;  %v5946_v5 = vpop.f32.mrb[57].mxu0  ;;  %13580 = vmatprep.subr.bf16.mxu1 %v13579_v58 }
 0x759   : > { %v16353_v6 = vadd.f32 %v16345_v51, %v5946_v5 }
 0x75a   : > { %v5986_v2 = vmul.f32 %v16350_v55, %v16350_v55  ;;  %12521 = vmatmul.mubr.msk.f32.vlgmr.msra.gmra.mrb[114].mxu1 %vm1295_vm2, %v12455_v59  ;;  %v4614_v59 = vld [vmem:[%s18504_s8 + $0xd8] sm:$0xff] }
 0x75b   : > { %v5985_v61 = vmul.f32 %v16353_v6, %v16353_v6  ;;  %13582 = vmatpush3.bf16.msra.mxu1 %v13579_v58  ;;  %12531 = vmatprep.mubr.msk.f32.mxu1 %vm1295_vm2, %v5019_v53  ;;  %v12580_v18 = vpop.f32.mrb[58].mxu0  ;;  %v13591_v10 = vpack.c.bf16 %v4614_v59, %v4613_v28  ;;  %v4618_v28 = vld [vmem:[%s18504_s8 + $0xf8] sm:$0xff] }
 0x75c   : > { %v5994_v33 = vmul.f32 %v5986_v2, %v16350_v55  ;;  %v16365_v57 = vadd.f32 %v12580_v18, %v16345_v51  ;;  %v5956_v35 = vpop.f32.mrb[59].mxu0  ;;  %13584 = vmatprep.subr.bf16.mxu1 %v13583_v48  ;;  %v13595_v2 = vpack.c.bf16 %v4616_v20, %v4615_v7  ;;  %v4619_v20 = vld [vmem:[%s18504_s8 + $0x100] sm:$0xff] }
 0x75d   : > { %v5993_v12 = vmul.f32 %v5985_v61, %v16353_v6  ;;  %v16369_v15 = vadd.f32 %v16345_v51, %v5956_v35 }
 0x75e   : > { %v6002_v25 = vmul.f32 0.044715, %v5994_v33  ;;  %v5988_v26 = vmul.f32 %v16365_v57, %v16365_v57 }
 0x75f   : > { %v6001_v40 = vmul.f32 0.044715, %v5993_v12  ;;  %v5987_v37 = vmul.f32 %v16369_v15, %v16369_v15  ;;  %13586 = vmatpush3.bf16.msra.mxu1 %v13583_v48  ;;  %v12583_v36 = vpop.f32.mrb[60].mxu0 }
 0x760   : > { %v6010_v53 = vadd.f32 %v6002_v25, %v16350_v55  ;;  %v5996_v3 = vmul.f32 %v5988_v26, %v16365_v57  ;;  %v16380_v54 = vadd.f32 %v12583_v36, %v16345_v51  ;;  %v5966_v63 = vpop.f32.mrb[61].mxu0  ;;  %13588 = vmatprep.subr.bf16.mxu1 %v13587_v11 }
 0x761   : > { %v6009_v62 = vadd.f32 %v6001_v40, %v16353_v6  ;;  %v5995_v56 = vmul.f32 %v5987_v37, %v16369_v15  ;;  %v16387_v58 = vadd.f32 %v16345_v51, %v5966_v63 }
 0x762   : > { %v6018_v1 = vmul.f32 0.7978846, %v6010_v53  ;;  %v6004_v8 = vmul.f32 0.044715, %v5996_v3  ;;  %v5990_v46 = vmul.f32 %v16380_v54, %v16380_v54  ;;  %12532 = vmatmul.mubr.msk.f32.vlgmr.msra.gmra.mrb[114].mxu1 %vm1295_vm2, %v16320_v17 }
 0x763   : > { %v6017_v5 = vmul.f32 0.7978846, %v6009_v62  ;;  %v6003_v48 = vmul.f32 0.044715, %v5995_v56  ;;  %v5989_v47 = vmul.f32 %v16387_v58, %v16387_v58  ;;  %13590 = vmatpush3.bf16.msra.mxu1 %v13587_v11  ;;  %12542 = vmatprep.mubr.msk.f32.mxu1 %vm1295_vm2, %v16328_v32  ;;  %v12586_v16 = vpop.f32.mrb[62].mxu0  ;;  %v4617_v32 = vld [vmem:[%s18504_s8 + $0xf0] sm:$0xff] }
 0x764   : > { %14354 = vtanh.f32 %v6018_v1  ;;  %v6012_v61 = vadd.f32 %v6004_v8, %v16365_v57  ;;  %v5998_v18 = vmul.f32 %v5990_v46, %v16380_v54  ;;  %v16400_v17 = vadd.f32 %v12586_v16, %v16345_v51  ;;  %v5976_v33 = vpop.f32.mrb[63].mxu0  ;;  %13592 = vmatprep.subr.bf16.mxu1 %v13591_v10  ;;  %v4620_v62 = vld [vmem:[%s18504_s8 + $0x108] sm:$0xff]  ;;  %v4622_v16 = vld [vmem:[%s18504_s8 + $0x118] sm:$0xff] }
 0x765   : > { %14356 = vtanh.f32 %v6017_v5  ;;  %v6011_v35 = vadd.f32 %v6003_v48, %v16369_v15  ;;  %v5997_v11 = vmul.f32 %v5989_v47, %v16387_v58  ;;  %v16405_v12 = vadd.f32 %v16345_v51, %v5976_v33  ;;  %v4621_v47 = vld [vmem:[%s18504_s8 + $0x110] sm:$0xff]  ;;  %s10730_s8 = scalar_lea.sflag [#allocation3], %s15156_s15 }
 0x766   : > { %v6020_v59 = vmul.f32 0.7978846, %v6012_v61  ;;  %v6006_v25 = vmul.f32 0.044715, %v5998_v18  ;;  %v5992_v26 = vmul.f32 %v16400_v17, %v16400_v17  ;;  %v13599_v3 = vpack.c.bf16 %v4618_v28, %v4617_v32 }
 0x767   : > { %v6019_v40 = vmul.f32 0.7978846, %v6011_v35  ;;  %v6005_v37 = vmul.f32 0.044715, %v5997_v11  ;;  %v5991_v36 = vmul.f32 %v16405_v12, %v16405_v12  ;;  %13594 = vmatpush3.bf16.msra.mxu1 %v13591_v10  ;;  %v13603_v5 = vpack.c.bf16 %v4620_v62, %v4619_v20 }
 0x768   : > { %14358 = vtanh.f32 %v6020_v59  ;;  %v6014_v53 = vadd.f32 %v6006_v25, %v16380_v54  ;;  %v6000_v51 = vmul.f32 %v5992_v26, %v16400_v17  ;;  %13596 = vmatprep.subr.bf16.mxu1 %v13595_v2 }
 0x769   : > { %14360 = vtanh.f32 %v6019_v40  ;;  %v6013_v63 = vadd.f32 %v6005_v37, %v16387_v58  ;;  %v5999_v7 = vmul.f32 %v5991_v36, %v16405_v12 }
 0x76a   : > { %v6022_v56 = vmul.f32 0.7978846, %v6014_v53  ;;  %v6008_v1 = vmul.f32 0.044715, %v6000_v51  ;;  %12543 = vmatmul.mubr.msk.f32.vlgmr.msra.gmra.mrb[114].mxu1 %vm1295_vm2, %v16326_v34 }
 0x76b   : > { %v6021_v10 = vmul.f32 0.7978846, %v6013_v63  ;;  %v6007_v8 = vmul.f32 0.044715, %v5999_v7  ;;  %13598 = vmatpush3.bf16.msra.mxu1 %v13595_v2  ;;  %12553 = vmatprep.mubr.msk.f32.mxu1 %vm1295_vm2, %v16334_v31  ;;  %v13607_v2 = vpack.c.bf16 %v4622_v16, %v4621_v47 }
 0x76c   : > { %14362 = vtanh.f32 %v6022_v56  ;;  %v6016_v46 = vadd.f32 %v6008_v1, %v16400_v17  ;;  %13600 = vmatprep.subr.bf16.mxu1 %v13599_v3 }
 0x76d   : > { %14364 = vtanh.f32 %v6021_v10  ;;  %v6015_v48 = vadd.f32 %v6007_v8, %v16405_v12 }
 0x76e   : > { %v14355_v61 = vpop.eup %14354  ;;  %v6024_v18 = vmul.f32 0.7978846, %v6016_v46 }
 0x76f   : > { %v14357_v33 = vpop.eup %14356  ;;  %v6023_v34 = vmul.f32 0.7978846, %v6015_v48  ;;  %13602 = vmatpush3.bf16.msra.mxu1 %v13599_v3  ;;  %v6034_v35 = vadd.f32 1.0, %v14355_v61  ;;  %v5823_v61 = vld [vmem:[%s18508_s4 + $0x48] sm:$0xff] }
 0x770   : > { %14366 = vtanh.f32 %v6024_v18  ;;  %13604 = vmatprep.subr.bf16.mxu1 %v13603_v5  ;;  %v6033_v31 = vadd.f32 1.0, %v14357_v33 }
 0x771   : > { %14368 = vtanh.f32 %v6023_v34  ;;  %v6042_v11 = vmul.f32 0.5, %v6034_v35  ;;  %v5824_v35 = vld [vmem:[%s18508_s4 + $0x50] sm:$0xff] }
 0x772   : > { %v14359_v32 = vpop.eup %14358  ;;  %12554 = vmatmul.mubr.msk.f32.vlgmr.msra.gmra.mrb[114].mxu1 %vm1295_vm2, %v16332_v9  ;;  %v6041_v28 = vmul.f32 0.5, %v6033_v31 }
 0x773   : > { %v14361_v59 = vpop.eup %14360  ;;  %13606 = vmatpush3.bf16.msra.mxu1 %v13603_v5  ;;  %12564 = vmatprep.mubr.msk.f32.mxu1 %vm1295_vm2, %v16342_v21  ;;  %v6050_v25 = vmul.f32 %v6042_v11, %v16350_v55  ;;  %v6036_v26 = vadd.f32 1.0, %v14359_v32 }
 0x774   : > { %13608 = vmatprep.subr.bf16.mxu1 %v13607_v2  ;;  %v6049_v40 = vmul.f32 %v6041_v28, %v16353_v6  ;;  %v6035_v37 = vadd.f32 1.0, %v14361_v59  ;;  %v5826_v28 = vld [vmem:[%s18508_s4 + $0x60] sm:$0xff]  ;;  %v5827_v59 = vld [vmem:[%s18508_s4 + $0x68] sm:$0xff] }
 0x775   : > { %v6044_v36 = vmul.f32 0.5, %v6036_v26  ;;  %v13659_v26 = vpack.c.bf16 %v5827_v59, %v5826_v28 }
 0x776   : > { %v14363_v53 = vpop.eup %14362  ;;  %v13619_v51 = vpack.c.bf16 %v6050_v25, %v6049_v40  ;;  %v6043_v3 = vmul.f32 0.5, %v6035_v37  ;;  %v5828_v37 = vld [vmem:[%s18508_s4 + $0x70] sm:$0xff] }
 0x777   : > { %v14365_v63 = vpop.eup %14364  ;;  %13610 = vmatpush3.bf16.msra.mxu1 %v13607_v2  ;;  %v6052_v9 = vmul.f32 %v6044_v36, %v16365_v57  ;;  %v6038_v7 = vadd.f32 1.0, %v14363_v53  ;;  %v5825_v2 = vld [vmem:[%s18508_s4 + $0x58] sm:$0xff] }
 0x778   : > { %13620 = vmatprep.subr.bf16.mxu0 %v13619_v51  ;;  %v6051_v20 = vmul.f32 %v6043_v3, %v16369_v15  ;;  %v6037_v21 = vadd.f32 1.0, %v14365_v63  ;;  %v13655_v11 = vpack.c.bf16 %v5825_v2, %v5824_v35  ;;  %v5829_v36 = vld [vmem:[%s18508_s4 + $0x78] sm:$0xff]  ;;  %v5830_v63 = vld [vmem:[%s18508_s4 + $0x80] sm:$0xff] }
 0x779   : > { %13622 = vmatpush3.bf16.msra.mxu0 %v13619_v51  ;;  %v6046_v55 = vmul.f32 0.5, %v6038_v7  ;;  %v13663_v51 = vpack.c.bf16 %v5829_v36, %v5828_v37 }
 0x77a   : > { %v14367_v62 = vpop.eup %14366  ;;  %12565 = vmatmul.mubr.msk.f32.vlgmr.msra.gmra.mrb[114].mxu1 %vm1295_vm2, %v16340_v43  ;;  %v13623_v6 = vpack.c.bf16 %v6052_v9, %v6051_v20  ;;  %v6045_v56 = vmul.f32 0.5, %v6037_v21  ;;  %v5831_v9 = vld [vmem:[%s18508_s4 + $0x88] sm:$0xff] }
 0x77b   : > { %v14369_v1 = vpop.eup %14368  ;;  %v6054_v10 = vmul.f32 %v6046_v55, %v16380_v54  ;;  %v6040_v8 = vadd.f32 1.0, %v14367_v62  ;;  %v13667_v20 = vpack.c.bf16 %v5831_v9, %v5830_v63  ;;  %v5832_v55 = vld [vmem:[%s18508_s4 + $0x90] sm:$0xff]  ;;  %v5833_v62 = vld [vmem:[%s18508_s4 + $0x98] sm:$0xff] }
 0x77c   : > { %13624 = vmatprep.subr.bf16.mxu0 %v13623_v6  ;;  %v6053_v57 = vmul.f32 %v6045_v56, %v16387_v58  ;;  %v6039_v46 = vadd.f32 1.0, %v14369_v1  ;;  %v13671_v56 = vpack.c.bf16 %v5833_v62, %v5832_v55 }
 0x77d   : > { %13626 = vmatpush3.bf16.msra.mxu0 %v13623_v6  ;;  %v6048_v5 = vmul.f32 0.5, %v6040_v8  ;;  %v5835_v8 = vld [vmem:[%s18508_s4 + $0xa8] sm:$0xff] }
 0x77e   : > { %v13627_v15 = vpack.c.bf16 %v6054_v10, %v6053_v57  ;;  %v6047_v48 = vmul.f32 0.5, %v6039_v46  ;;  %v5834_v10 = vld [vmem:[%s18508_s4 + $0xa0] sm:$0xff] }
 0x77f   : > { %v6056_v47 = vmul.f32 %v6048_v5, %v16400_v17  ;;  %v13675_v46 = vpack.c.bf16 %v5835_v8, %v5834_v10 }
 0x780   : > { %13628 = vmatprep.subr.bf16.mxu0 %v13627_v15  ;;  %v6055_v16 = vmul.f32 %v6047_v48, %v16405_v12  ;;  %v5822_v12 = vld [vmem:[%s18508_s4 + $0x40] sm:$0xff]  ;;  %v5837_v48 = vld [vmem:[%s18508_s4 + $0xb8] sm:$0xff] }
 0x781   : > { %13630 = vmatpush3.bf16.msra.mxu0 %v13627_v15  ;;  %v13651_v33 = vpack.c.bf16 %v5823_v61, %v5822_v12  ;;  %v5836_v15 = vld [vmem:[%s18508_s4 + $0xb0] sm:$0xff] }
 0x782   : > { %v13631_v43 = vpack.c.bf16 %v6056_v47, %v6055_v16  ;;  %v13679_v47 = vpack.c.bf16 %v5837_v48, %v5836_v15  ;;  %v5838_v16 = vld [vmem:[%s18508_s4 + $0xc0] sm:$0xff]  ;;  %v6959_v15 = vld [vmem:[%s18513_s26 + $0x10] sm:$0xff]  ;;  %v6960_v48 = vld [vmem:[%s18513_s26 + $0x18] sm:$0xff] }
 0x784   : > { %13632 = vmatprep.subr.bf16.mxu0 %v13631_v43 }
 0x785   : > { %13634 = vmatpush3.bf16.msra.mxu0 %v13631_v43  ;;  %v5839_v43 = vld [vmem:[%s18508_s4 + $0xc8] sm:$0xff] }
 0x788   : > { %12604 = vmatmul.mubr.msk.f32.vlgmr.msra.gmra.mrb[64].mxu0 %vm1201_vm1, %v16194_v0  ;;  %v5818_v0 = vld [vmem:[%s18508_s4 + $0x20] sm:$0xff] }
 0x789   : > { %12606 = vmatprep.mubr.msk.f32.mxu0 %vm1201_vm1, %v16197_v44  ;;  %v5819_v44 = vld [vmem:[%s18508_s4 + $0x28] sm:$0xff] }
 0x78c   : > { %12607 = vmatmul.mubr.msk.f32.gmra.mrb[66].mxu0 %vm1201_vm1, %v16204_v50  ;;  %v13635_v50 = vpack.c.bf16 %v5819_v44, %v5818_v0  ;;  %v13683_v0 = vpack.c.bf16 %v5839_v43, %v5838_v16  ;;  %v5840_v44 = vld [vmem:[%s18508_s4 + $0xd0] sm:$0xff] }
 0x78d   : > { %12609 = vmatprep.mubr.msk.f32.mxu0 %vm1201_vm1, %v16207_v49  ;;  %v5820_v49 = vld [vmem:[%s18508_s4 + $0x30] sm:$0xff] }
 0x78e   : > { %13636 = vmatprep.subr.bf16.mxu1 %v13635_v50 }
 0x78f   : > { %13638 = vmatpush3.bf16.msra.mxu1 %v13635_v50  ;;  %v5841_v50 = vld [vmem:[%s18508_s4 + $0xd8] sm:$0xff] }
 0x790   : > { %12610 = vmatmul.mubr.msk.f32.gmra.mrb[68].mxu0 %vm1201_vm1, %v16214_v39  ;;  %v5821_v39 = vld [vmem:[%s18508_s4 + $0x38] sm:$0xff] }
 0x791   : > { %12612 = vmatprep.mubr.msk.f32.mxu0 %vm1201_vm1, %v16217_v42  ;;  %v13639_v42 = vpack.c.bf16 %v5821_v39, %v5820_v49  ;;  %v13687_v49 = vpack.c.bf16 %v5841_v50, %v5840_v44  ;;  %v5842_v39 = vld [vmem:[%s18508_s4 + $0xe0] sm:$0xff] }
 0x793   : > { %13640 = vmatprep.subr.bf16.mxu1 %v13639_v42 }
 0x794   : > { %12613 = vmatmul.mubr.msk.f32.gmra.mrb[70].mxu0 %vm1201_vm1, %v16224_v13  ;;  %13642 = vmatpush3.bf16.msra.mxu1 %v13639_v42  ;;  %v5814_v13 = vld [vmem:[%s18508_s4] sm:$0xff]  ;;  %v5843_v42 = vld [vmem:[%s18508_s4 + $0xe8] sm:$0xff] }
 0x795   : > { %12615 = vmatprep.mubr.msk.f32.mxu0 %vm1201_vm1, %v16227_v52  ;;  %v5815_v52 = vld [vmem:[%s18508_s4 + $0x8] sm:$0xff] }
 0x798   : > { %12616 = vmatmul.mubr.msk.f32.gmra.mrb[72].mxu0 %vm1201_vm1, %v16234_v27  ;;  %v13643_v27 = vpack.c.bf16 %v5815_v52, %v5814_v13  ;;  %v13691_v13 = vpack.c.bf16 %v5843_v42, %v5842_v39  ;;  %v5844_v52 = vld [vmem:[%s18508_s4 + $0xf0] sm:$0xff] }
 0x799   : > { %12618 = vmatprep.mubr.msk.f32.mxu0 %vm1201_vm1, %v16237_v38 }
 0x79a   : > { %13644 = vmatprep.subr.bf16.mxu1 %v13643_v27 }
 0x79c   : > { %12619 = vmatmul.mubr.msk.f32.gmra.mrb[74].mxu0 %vm1201_vm1, %v16244_v41 }
 0x79d   : > { %12621 = vmatprep.mubr.msk.f32.mxu0 %vm1201_vm1, %v16247_v19 }
 0x7a0   : > { %12622 = vmatmul.mubr.msk.f32.gmra.mrb[76].mxu0 %vm1201_vm1, %v16254_v23 }
 0x7a1   : > { %12624 = vmatprep.mubr.msk.f32.mxu0 %vm1201_vm1, %v16257_v29 }
 0x7a4   : > { %12625 = vmatmul.mubr.msk.f32.gmra.mrb[78].mxu0 %vm1201_vm1, %v16264_v45 }
 0x7a5   : > { %12627 = vmatprep.mubr.msk.f32.mxu0 %vm1201_vm1, %v16267_v22  ;;  %v5816_v22 = vld [vmem:[%s18508_s4 + $0x10] sm:$0xff] }
 0x7a8   : > { %12628 = vmatmul.mubr.msk.f32.gmra.mrb[80].mxu0 %vm1201_vm1, %v16277_v14  ;;  %v5817_v14 = vld [vmem:[%s18508_s4 + $0x18] sm:$0xff] }
 0x7a9   : > { %v13647_v17 = vpack.c.bf16 %v5817_v14, %v5816_v22  ;;  %v5848_v22 = vld [vmem:[%s18508_s4 + $0x110] sm:$0xff]  ;;  %v5849_v14 = vld [vmem:[%s18508_s4 + $0x118] sm:$0xff] }
 0x84d   : > { %v16481_v38 = vpop.f32.mrb[114].mxu1 }
 0x84e   : > { %18509 = vst [vmem:[#allocation39_spill] sm:$0xff] %v16481_v38  ;;  %v16483_v41 = vpop.f32.mrb[115].mxu1  ;;  %v7001_v19 = vsel %vm1295_vm2, %v16481_v38, 0.0 }
 0x84f   : > { %18510 = vst [vmem:[#allocation40_spill] sm:$0xff] %v16483_v41  ;;  %7002 = vadd.xlane.f32.xlu1 %v7001_v19  ;;  %v6998_v23 = vsel %vm1295_vm2, %v16483_v41, 0.0 }
 0x850   : > { %6999 = vadd.xlane.f32.xlu0 %v6998_v23  ;;  %v5846_v23 = vld [vmem:[%s18508_s4 + $0x100] sm:$0xff] }
 0x85b   : > { %v12605_v29 = vpop.f32.mrb[64].mxu0 }
 0x85c   : > { %v6123_v45 = vpop.f32.mrb[65].mxu0 }
 0x85f   : > { %v12608_v54 = vpop.f32.mrb[66].mxu0 }
 0x860   : > { %v6133_v58 = vpop.f32.mrb[67].mxu0 }
 0x861   : > { %12638 = vmatprep.mubr.msk.f32.mxu1 %vm1295_vm2, %v6133_v58  ;;  %v6988_v58 = vpop.xlane.xlu0 %6987 }
 0x862   : > { %12639 = vmatmul.mubr.msk.f32.vlgmr.msra.gmra.mrb[116].mxu1 %vm1295_vm2, %v12608_v54  ;;  %v13703_v54 = vpack.c.bf16 %v5849_v14, %v5848_v22 }
 0x863   : > { %13646 = vmatpush3.bf16.msra.mxu1 %v13643_v27  ;;  %12649 = vmatprep.mubr.msk.f32.mxu1 %vm1295_vm2, %v6123_v45  ;;  %v12611_v18 = vpop.f32.mrb[68].mxu0  ;;  %v5845_v27 = vld [vmem:[%s18508_s4 + $0xf8] sm:$0xff] }
 0x864   : > { %13648 = vmatprep.subr.bf16.mxu1 %v13647_v17  ;;  %v6143_v34 = vpop.f32.mrb[69].mxu0  ;;  %v13695_v19 = vpack.c.bf16 %v5845_v27, %v5844_v52 }
 0x865   : > { %v6991_v12 = vpop.xlane.xlu0 %6990 }
 0x866   : > { %v7012_v61 = vmul.f32 0.03125, %v6991_v12 }
 0x867   : > { %13650 = vmatpush3.bf16.msra.mxu1 %v13647_v17  ;;  %v12614_v31 = vpop.f32.mrb[70].mxu0  ;;  %v6994_v17 = vpop.xlane.xlu1 %6993 }
 0x868   : > { %13652 = vmatprep.subr.bf16.mxu1 %v13651_v33  ;;  %v6153_v32 = vpop.f32.mrb[71].mxu0 }
 0x86a   : > { %12650 = vmatmul.mubr.msk.f32.vlgmr.msra.gmra.mrb[116].mxu1 %vm1295_vm2, %v12605_v29  ;;  %v5847_v29 = vld [vmem:[%s18508_s4 + $0x108] sm:$0xff]  ;;  %s18516_s4 = sld [smem:[#allocation29_spill]] }
 0x86b   : > { %13654 = vmatpush3.bf16.msra.mxu1 %v13651_v33  ;;  %12660 = vmatprep.mubr.msk.f32.mxu1 %vm1295_vm2, %v6143_v34  ;;  %v12617_v25 = vpop.f32.mrb[72].mxu0  ;;  %v13699_v45 = vpack.c.bf16 %v5847_v29, %v5846_v23  ;;  %v6997_v33 = vpop.xlane.xlu1 %6996  ;;  %v16538_v34 = vsub.f32 %v15666_v24, %v7012_v61 }
 0x86c   : > { %13656 = vmatprep.subr.bf16.mxu1 %v13655_v11  ;;  %v6163_v40 = vpop.f32.mrb[73].mxu0  ;;  %v7014_v35 = vmul.f32 0.03125, %v6997_v33 }
 0x86d   : > { %v7028_v37 = vmul.f32 %v16538_v34, %v16538_v34 }
 0x86e   : > { %v16546_v59 = vsub.f32 %v16297_v4, %v7014_v35 }
 0x86f   : > { %13658 = vmatpush3.bf16.msra.mxu1 %v13655_v11  ;;  %v12620_v53 = vpop.f32.mrb[74].mxu0  ;;  %v7038_v9 = vsel %vm1295_vm2, %v7028_v37, 0.0 }
 0x870   : > { %13660 = vmatprep.subr.bf16.mxu1 %v13659_v26  ;;  %v6173_v3 = vpop.f32.mrb[75].mxu0 }
 0x872   : > { %12661 = vmatmul.mubr.msk.f32.vlgmr.msra.gmra.mrb[116].mxu1 %vm1295_vm2, %v12611_v18  ;;  %v7011_v18 = vmul.f32 0.03125, %v6988_v58 }
 0x873   : > { %13662 = vmatpush3.bf16.msra.mxu1 %v13659_v26  ;;  %12671 = vmatprep.mubr.msk.f32.mxu1 %vm1295_vm2, %v6153_v32  ;;  %v12623_v7 = vpop.f32.mrb[76].mxu0 }
 0x874   : > { %13664 = vmatprep.subr.bf16.mxu1 %v13663_v51  ;;  %v6183_v21 = vpop.f32.mrb[77].mxu0  ;;  %v16541_v2 = vsub.f32 %v15668_v30, %v7011_v18 }
 0x877   : > { %13666 = vmatpush3.bf16.msra.mxu1 %v13663_v51  ;;  %v12626_v6 = vpop.f32.mrb[78].mxu0 }
 0x878   : > { %13668 = vmatprep.subr.bf16.mxu1 %v13667_v20  ;;  %v6193_v1 = vpop.f32.mrb[79].mxu0 }
 0x87a   : > { %12672 = vmatmul.mubr.msk.f32.vlgmr.msra.gmra.mrb[116].mxu1 %vm1295_vm2, %v12614_v31  ;;  %v7013_v31 = vmul.f32 0.03125, %v6994_v17 }
 0x87b   : > { %13670 = vmatpush3.bf16.msra.mxu1 %v13667_v20  ;;  %12682 = vmatprep.mubr.msk.f32.mxu1 %vm1295_vm2, %v6163_v40  ;;  %v12629_v57 = vpop.f32.mrb[80].mxu0 }
 0x87c   : > { %13672 = vmatprep.subr.bf16.mxu1 %v13671_v56  ;;  %v6203_v5 = vpop.f32.mrb[81].mxu0  ;;  %v16555_v36 = vsub.f32 %v16299_v60, %v7013_v31 }
 0x87e   : > { %v7029_v55 = vmul.f32 %v16555_v36, %v16555_v36 }
 0x87f   : > { %13674 = vmatpush3.bf16.msra.mxu1 %v13671_v56 }
 0x880   : > { %13676 = vmatprep.subr.bf16.mxu1 %v13675_v46  ;;  %v7041_v56 = vsel %vm1295_vm2, %v7029_v55, 0.0 }
 0x882   : > { %12683 = vmatmul.mubr.msk.f32.vlgmr.msra.gmra.mrb[116].mxu1 %vm1295_vm2, %v12617_v25 }
 0x883   : > { %13678 = vmatpush3.bf16.msra.mxu1 %v13675_v46  ;;  %12693 = vmatprep.mubr.msk.f32.mxu1 %vm1295_vm2, %v6173_v3  ;;  %v7027_v3 = vmul.f32 %v16541_v2, %v16541_v2  ;;  %v6958_v46 = vld [vmem:[%s18513_s26 + $0x8] sm:$0xff] }
 0x884   : > { %13680 = vmatprep.subr.bf16.mxu1 %v13679_v47 }
 0x887   : > { %13682 = vmatpush3.bf16.msra.mxu1 %v13679_v47  ;;  %v13711_v47 = vpack.c.bf16 %v6960_v48, %v6959_v15 }
 0x888   : > { %13684 = vmatprep.subr.bf16.mxu1 %v13683_v0 }
 0x88a   : > { %12694 = vmatmul.mubr.msk.f32.vlgmr.msra.gmra.mrb[116].mxu1 %vm1295_vm2, %v12620_v53 }
 0x88b   : > { %13686 = vmatpush3.bf16.msra.mxu1 %v13683_v0  ;;  %12704 = vmatprep.mubr.msk.f32.mxu1 %vm1295_vm2, %v6183_v21  ;;  %v7035_v21 = vsel %vm1295_vm2, %v7027_v3, 0.0 }
 0x88c   : > { %13688 = vmatprep.subr.bf16.mxu1 %v13687_v49 }
 0x88f   : > { %13690 = vmatpush3.bf16.msra.mxu1 %v13687_v49 }
 0x890   : > { %13692 = vmatprep.subr.bf16.mxu1 %v13691_v13 }
 0x892   : > { %12705 = vmatmul.mubr.msk.f32.vlgmr.msra.gmra.mrb[116].mxu1 %vm1295_vm2, %v12623_v7  ;;  %v7030_v7 = vmul.f32 %v16546_v59, %v16546_v59 }
 0x893   : > { %13694 = vmatpush3.bf16.msra.mxu1 %v13691_v13  ;;  %12715 = vmatprep.mubr.msk.f32.mxu1 %vm1295_vm2, %v6193_v1 }
 0x894   : > { %13696 = vmatprep.subr.bf16.mxu1 %v13695_v19  ;;  %v7044_v62 = vsel %vm1295_vm2, %v7030_v7, 0.0 }
 0x897   : > { %13698 = vmatpush3.bf16.msra.mxu1 %v13695_v19 }
 0x898   : > { %13700 = vmatprep.subr.bf16.mxu1 %v13699_v45 }
 0x89a   : > { %12716 = vmatmul.mubr.msk.f32.vlgmr.msra.gmra.mrb[116].mxu1 %vm1295_vm2, %v12626_v6 }
 0x89b   : > { %13702 = vmatpush3.bf16.msra.mxu1 %v13699_v45  ;;  %12726 = vmatprep.mubr.msk.f32.mxu1 %vm1295_vm2, %v6203_v5 }
 0x89c   : > { %13704 = vmatprep.subr.bf16.mxu1 %v13703_v54 }
 0x89f   : > { %13706 = vmatpush3.bf16.msra.mxu1 %v13703_v54 }
 0x8a2   : > { %12727 = vmatmul.mubr.msk.f32.vlgmr.msra.gmra.mrb[116].mxu1 %vm1295_vm2, %v12629_v57  ;;  %v6957_v57 = vld [vmem:[%s18513_s26] sm:$0xff] }
 0x8a3   : > { %v13707_v5 = vpack.c.bf16 %v6958_v46, %v6957_v57  ;;  %v6963_v57 = vld [vmem:[%s18516_s4 + $0x8] sm:$0xff] }
 0x8a5   : > { %13708 = vmatprep.subr.bf16.mxu0 %v13707_v5 }
 0x8a6   : > { %13710 = vmatpush3.bf16.msra.mxu0 %v13707_v5 }
 0x8a7   : > { %13712 = vmatprep.subr.bf16.mxu0 %v13711_v47 }
 0x8aa   : > { %13714 = vmatpush3.bf16.msra.mxu0 %v13711_v47 }
 0x8dc   : > { %v7003_v11 = vpop.xlane.xlu1 %7002 }
 0x8dd   : > { %v7000_v32 = vpop.xlane.xlu0 %6999  ;;  %v7016_v25 = vmul.f32 0.03125, %v7003_v11 }
 0x8de   : > { %v7015_v53 = vmul.f32 0.03125, %v7000_v32 }
 0x8df   : > { %v16562_v63 = vsub.f32 %v16481_v38, %v7016_v25 }
 0x8e0   : > { %v16568_v20 = vsub.f32 %v16483_v41, %v7015_v53 }
 0x8e1   : > { %v7032_v6 = vmul.f32 %v16562_v63, %v16562_v63 }
 0x8e2   : > { %v7031_v1 = vmul.f32 %v16568_v20, %v16568_v20 }
 0x8e3   : > { %v7050_v10 = vsel %vm1295_vm2, %v7032_v6, 0.0 }
 0x8e4   : > { %v7047_v8 = vsel %vm1295_vm2, %v7031_v1, 0.0 }
 0x975   : > { %v16543_v28 = vpop.f32.mrb[116].mxu1 }
 0x976   : > { %18511 = vst [vmem:[#allocation41_spill] sm:$0xff] %v16543_v28  ;;  %v16548_v26 = vpop.f32.mrb[117].mxu1  ;;  %v7007_v40 = vsel %vm1295_vm2, %v16543_v28, 0.0 }
 0x977   : > { %18512 = vst [vmem:[#allocation42_spill] sm:$0xff] %v16548_v26  ;;  %7008 = vadd.xlane.f32.xlu1 %v7007_v40  ;;  %v7004_v51 = vsel %vm1295_vm2, %v16548_v26, 0.0  ;;  %v11150_v40 = vld [vmem:[%s18514_s6] ss:$0 sm:$0xff]  ;;  %s18517_s6 = sld [smem:[#allocation31_spill]] }
 0x978   : > { %7005 = vadd.xlane.f32.xlu0 %v7004_v51 }
 0x97b   : > { %7039 = vadd.xlane.f32.xlu1 %v7038_v9  ;;  %v11151_v9 = vld [vmem:[%s18515_s5] ss:$0 sm:$0xff]  ;;  %s18518_s5 = sld [smem:[#allocation28_spill]] }
 0x97c   : > { %7036 = vadd.xlane.f32.xlu0 %v7035_v21 }
 0x97f   : > { %7045 = vadd.xlane.f32.xlu1 %v7044_v62 }
 0x980   : > { %7042 = vadd.xlane.f32.xlu0 %v7041_v56 }
 0x983   : > { %7051 = vadd.xlane.f32.xlu1 %v7050_v10 }
 0x984   : > { %7048 = vadd.xlane.f32.xlu0 %v7047_v8 }
 0xa04   : > { %v7009_v16 = vpop.xlane.xlu1 %7008 }
 0xa05   : > { %v7018_v43 = vmul.f32 0.03125, %v7009_v16  ;;  %v7006_v0 = vpop.xlane.xlu0 %7005 }
 0xa06   : > { %v7017_v44 = vmul.f32 0.03125, %v7006_v0 }
 0xa07   : > { %v16586_v50 = vsub.f32 %v16543_v28, %v7018_v43 }
 0xa08   : > { %v16589_v49 = vsub.f32 %v16548_v26, %v7017_v44  ;;  %v7040_v39 = vpop.xlane.xlu1 %7039  ;;  %v6965_v44 = vld [vmem:[%s18516_s4 + $0x18] sm:$0xff] }
 0xa09   : > { %v7060_v42 = vmul.f32 0.03125, %v7040_v39  ;;  %v7037_v13 = vpop.xlane.xlu0 %7036  ;;  %v7034_v52 = vmul.f32 %v16586_v50, %v16586_v50  ;;  %v6967_v39 = vld [vmem:[%s18517_s6] sm:$0xff] }
 0xa0a   : > { %v7059_v27 = vmul.f32 0.03125, %v7037_v13  ;;  %v7033_v19 = vmul.f32 %v16589_v49, %v16589_v49 }
 0xa0b   : > { %v7068_v23 = vadd.f32 1e-05, %v7060_v42  ;;  %v7056_v29 = vsel %vm1295_vm2, %v7034_v52, 0.0  ;;  %v6968_v42 = vld [vmem:[%s18517_s6 + $0x8] sm:$0xff] }
 0xa0c   : > { %v7067_v45 = vadd.f32 1e-05, %v7059_v27  ;;  %7057 = vadd.xlane.f32.xlu1 %v7056_v29  ;;  %v7046_v22 = vpop.xlane.xlu1 %7045  ;;  %v7053_v14 = vsel %vm1295_vm2, %v7033_v19, 0.0  ;;  %v13723_v13 = vpack.c.bf16 %v6968_v42, %v6967_v39 }
 0xa0d   : > { %14370 = vrsqrt.f32 %v7068_v23  ;;  %v7062_v54 = vmul.f32 0.03125, %v7046_v22  ;;  %7054 = vadd.xlane.f32.xlu0 %v7053_v14  ;;  %v7043_v58 = vpop.xlane.xlu0 %7042 }
 0xa0e   : > { %14372 = vrsqrt.f32 %v7067_v45  ;;  %v7061_v17 = vmul.f32 0.03125, %v7043_v58 }
 0xa0f   : > { %v7070_v12 = vadd.f32 1e-05, %v7062_v54 }
 0xa10   : > { %v7069_v61 = vadd.f32 1e-05, %v7061_v17  ;;  %v7052_v18 = vpop.xlane.xlu1 %7051 }
 0xa11   : > { %14374 = vrsqrt.f32 %v7070_v12  ;;  %v7064_v33 = vmul.f32 0.03125, %v7052_v18  ;;  %v7049_v35 = vpop.xlane.xlu0 %7048 }
 0xa12   : > { %14376 = vrsqrt.f32 %v7069_v61  ;;  %v7063_v31 = vmul.f32 0.03125, %v7049_v35  ;;  %v6970_v35 = vld [vmem:[%s18517_s6 + $0x18] sm:$0xff] }
 0xa13   : > { %v7072_v11 = vadd.f32 1e-05, %v7064_v33  ;;  %v6969_v33 = vld [vmem:[%s18517_s6 + $0x10] sm:$0xff]  ;;  %s18520_s6 = sld [smem:[#allocation33_spill]] }
 0xa14   : > { %v7071_v32 = vadd.f32 1e-05, %v7063_v31  ;;  %v13727_v31 = vpack.c.bf16 %v6970_v35, %v6969_v33 }
 0xa15   : > { %14378 = vrsqrt.f32 %v7072_v11 }
 0xa16   : > { %14380 = vrsqrt.f32 %v7071_v32 }
 0xa17   : > { %v14371_v25 = vpop.eup %14370 }
 0xa18   : > { %v14373_v37 = vpop.eup %14372  ;;  %v7084_v53 = vmul.f32 %v14371_v25, %v16538_v34 }
 0xa19   : > { %v7083_v51 = vmul.f32 %v14373_v37, %v16541_v2  ;;  %v6962_v2 = vld [vmem:[%s18516_s4] sm:$0xff] }
 0xa1a   : > { %v7098_v3 = vmul.f32 %v11150_v40, %v7084_v53  ;;  %v13715_v5 = vpack.c.bf16 %v6963_v57, %v6962_v2 }
 0xa1b   : > { %v14375_v7 = vpop.eup %14374  ;;  %v7097_v21 = vmul.f32 %v11150_v40, %v7083_v51 }
 0xa1c   : > { %v14377_v55 = vpop.eup %14376  ;;  %v7086_v62 = vmul.f32 %v14375_v7, %v16546_v59  ;;  %v16605_v1 = vadd.f32 %v11151_v9, %v7098_v3  ;;  %13716 = vmatprep.subr.bf16.mxu0 %v13715_v5  ;;  %v16660_v7 = vld [vmem:[%s18520_s6] ss:$0 sm:$0xff] }
 0xa1d   : > { %v16602_v6 = vadd.f32 %v11151_v9, %v7097_v21  ;;  %v7085_v56 = vmul.f32 %v14377_v55, %v16555_v36  ;;  %v16663_v21 = vld [vmem:[%s18520_s6 + $0x1] ss:$0 sm:$0xff] }
 0xa1e   : > { %v7100_v10 = vmul.f32 %v11150_v40, %v7086_v62 }
 0xa1f   : > { %v14379_v8 = vpop.eup %14378  ;;  %12737 = vmatprep.mubr.msk.f32.mxu0 %vm1295_vm2, %v16602_v6  ;;  %v7099_v34 = vmul.f32 %v11150_v40, %v7085_v56  ;;  %v16671_v56 = vld [vmem:[%s18520_s6 + $0x3] ss:$0 sm:$0xff] }
 0xa20   : > { %v14381_v46 = vpop.eup %14380  ;;  %12738 = vmatmul.mubr.msk.f32.vlgmr.msra.gmra.mrb[82].mxu0 %vm1295_vm2, %v16605_v1  ;;  %v7088_v59 = vmul.f32 %v14379_v8, %v16562_v63  ;;  %v7114_v48 = vadd.f32 %v11151_v9, %v7100_v10  ;;  %v6964_v63 = vld [vmem:[%s18516_s4 + $0x10] sm:$0xff]  ;;  %s18519_s4 = sld [smem:[#allocation30_spill]] }
 0xa21   : > { %v7113_v36 = vadd.f32 %v11151_v9, %v7099_v34  ;;  %v7087_v15 = vmul.f32 %v14381_v46, %v16568_v20  ;;  %13718 = vmatpush3.bf16.msra.mxu0 %v13715_v5  ;;  %v13719_v20 = vpack.c.bf16 %v6965_v44, %v6964_v63 }
 0xa22   : > { %v7102_v47 = vmul.f32 %v11150_v40, %v7088_v59 }
 0xa23   : > { %12740 = vmatprep.mubr.msk.f32.mxu0 %vm1295_vm2, %v7113_v36  ;;  %v7101_v16 = vmul.f32 %v11150_v40, %v7087_v15  ;;  %13720 = vmatprep.subr.bf16.mxu0 %v13719_v20  ;;  %v16695_v15 = vld [vmem:[%s18520_s6 + $0x5] ss:$0 sm:$0xff] }
 0xa24   : > { %12741 = vmatmul.mubr.msk.f32.gmra.mrb[84].mxu0 %vm1295_vm2, %v7114_v48  ;;  %v7116_v0 = vadd.f32 %v11151_v9, %v7102_v47 }
 0xa25   : > { %v7115_v43 = vadd.f32 %v11151_v9, %v7101_v16  ;;  %13722 = vmatpush3.bf16.msra.mxu0 %v13719_v20 }
 0xa26   : > { %13724 = vmatprep.subr.bf16.mxu0 %v13723_v13 }
 0xa27   : > { %12743 = vmatprep.mubr.msk.f32.mxu0 %vm1295_vm2, %v7115_v43 }
 0xa28   : > { %12744 = vmatmul.mubr.msk.f32.gmra.mrb[86].mxu0 %vm1295_vm2, %v7116_v0 }
 0xa99   : > { %v7058_v52 = vpop.xlane.xlu1 %7057 }
 0xa9a   : > { %v7066_v27 = vmul.f32 0.03125, %v7058_v52  ;;  %v7055_v19 = vpop.xlane.xlu0 %7054 }
 0xa9b   : > { %v7065_v23 = vmul.f32 0.03125, %v7055_v19 }
 0xa9c   : > { %v7074_v29 = vadd.f32 1e-05, %v7066_v27 }
 0xa9d   : > { %v7073_v45 = vadd.f32 1e-05, %v7065_v23 }
 0xa9e   : > { %14382 = vrsqrt.f32 %v7074_v29 }
 0xa9f   : > { %14384 = vrsqrt.f32 %v7073_v45 }
 0xaa8   : > { %v14383_v22 = vpop.eup %14382 }
 0xaa9   : > { %v14385_v14 = vpop.eup %14384  ;;  %v7090_v54 = vmul.f32 %v14383_v22, %v16586_v50  ;;  %v11152_v50 = vld [vmem:[%s18518_s5] ss:$0 sm:$0xff]  ;;  %s18632_s5 = sld [smem:[#allocation34_spill]] }
 0xaaa   : > { %v7089_v58 = vmul.f32 %v14385_v14, %v16589_v49 }
 0xaab   : > { %v7104_v17 = vmul.f32 %v11150_v40, %v7090_v54 }
 0xaac   : > { %v7103_v12 = vmul.f32 %v11150_v40, %v7089_v58 }
 0xaad   : > { %v7118_v18 = vadd.f32 %v11151_v9, %v7104_v17 }
 0xaae   : > { %v7117_v61 = vadd.f32 %v11151_v9, %v7103_v12  ;;  %v16657_v9 = vld [vmem:[%s18519_s4] ss:$0 sm:$0xff]  ;;  %s18523_s4 = sld [smem:[#allocation32_spill]] }
 0xab0   : > { %12746 = vmatprep.mubr.msk.f32.mxu0 %vm1295_vm2, %v7117_v61 }
 0xab1   : > { %12747 = vmatmul.mubr.msk.f32.gmra.mrb[88].mxu0 %vm1295_vm2, %v7118_v18 }
 0xab2   : > { %12757 = vmatprep.mubr.msk.f32.mxu0 %vm1295_vm2, %v16602_v6 }
 0xab5   : > { %12758 = vmatmul.mubr.msk.f32.vlgmr.msra.gmra.mrb[90].mxu0 %vm1295_vm2, %v16605_v1 }
 0xab6   : > { %12760 = vmatprep.mubr.msk.f32.mxu0 %vm1295_vm2, %v7113_v36  ;;  %13726 = vmatpush3.bf16.msra.mxu0 %v13723_v13 }
 0xab7   : > { %13728 = vmatprep.subr.bf16.mxu0 %v13727_v31 }
 0xab9   : > { %12761 = vmatmul.mubr.msk.f32.gmra.mrb[92].mxu0 %vm1295_vm2, %v7114_v48 }
 0xaba   : > { %12763 = vmatprep.mubr.msk.f32.mxu0 %vm1295_vm2, %v7115_v43  ;;  %13730 = vmatpush3.bf16.msra.mxu0 %v13727_v31 }
 0xabd   : > { %12764 = vmatmul.mubr.msk.f32.gmra.mrb[94].mxu0 %vm1295_vm2, %v7116_v0 }
 0xabe   : > { %12766 = vmatprep.mubr.msk.f32.mxu0 %vm1295_vm2, %v7117_v61 }
 0xac1   : > { %12767 = vmatmul.mubr.msk.f32.gmra.mrb[96].mxu0 %vm1295_vm2, %v7118_v18 }
 0xac2   : > { %12777 = vmatprep.mubr.msk.f32.mxu0 %vm1295_vm2, %v16602_v6  ;;  %v16668_v6 = vld [vmem:[%s18520_s6 + $0x2] ss:$0 sm:$0xff] }
 0xac5   : > { %12778 = vmatmul.mubr.msk.f32.vlgmr.msra.gmra.mrb[98].mxu0 %vm1295_vm2, %v16605_v1 }
 0xac6   : > { %12780 = vmatprep.mubr.msk.f32.mxu0 %vm1295_vm2, %v7113_v36  ;;  %v16692_v36 = vld [vmem:[%s18520_s6 + $0x4] ss:$0 sm:$0xff] }
 0xac9   : > { %12781 = vmatmul.mubr.msk.f32.gmra.mrb[100].mxu0 %vm1295_vm2, %v7114_v48 }
 0xaca   : > { %12783 = vmatprep.mubr.msk.f32.mxu0 %vm1295_vm2, %v7115_v43 }
 0xacd   : > { %12784 = vmatmul.mubr.msk.f32.gmra.mrb[102].mxu0 %vm1295_vm2, %v7116_v0 }
 0xace   : > { %12786 = vmatprep.mubr.msk.f32.mxu0 %vm1295_vm2, %v7117_v61 }
 0xad1   : > { %12787 = vmatmul.mubr.msk.f32.gmra.mrb[104].mxu0 %vm1295_vm2, %v7118_v18 }
 0xaf3   : > { %v12739_v49 = vpop.f32.mrb[82].mxu0 }
 0xaf4   : > { %v7215_v11 = vpop.f32.mrb[83].mxu0  ;;  %v16665_v55 = vadd.f32 %v12739_v49, %v11152_v50 }
 0xaf5   : > { %v16650_v32 = vadd.f32 %v11152_v50, %v7215_v11 }
 0xaf7   : > { %v12742_v25 = vpop.f32.mrb[84].mxu0  ;;  %12805 = vmatprep.mubr.msk.f32.mxu0 %vm1295_vm2, %v16650_v32  ;;  %12833 = vmatprep.mubr.msk.f32.mxu1 %vm1295_vm2, %v16650_v32 }
 0xaf8   : > { %v7225_v40 = vpop.f32.mrb[85].mxu0  ;;  %v16673_v1 = vadd.f32 %v12742_v25, %v11152_v50 }
 0xaf9   : > { %v16675_v10 = vadd.f32 %v11152_v50, %v7225_v40 }
 0xafb   : > { %v12745_v37 = vpop.f32.mrb[86].mxu0 }
 0xafc   : > { %v7235_v53 = vpop.f32.mrb[87].mxu0  ;;  %v16677_v8 = vadd.f32 %v12745_v37, %v11152_v50 }
 0xafd   : > { %v16682_v57 = vadd.f32 %v11152_v50, %v7235_v53 }
 0xb84   : > { %v12748_v51 = vpop.f32.mrb[88].mxu0 }
 0xb85   : > { %v7245_v3 = vpop.f32.mrb[89].mxu0  ;;  %v16684_v46 = vadd.f32 %v12748_v51, %v11152_v50 }
 0xb86   : > { %v16686_v59 = vadd.f32 %v11152_v50, %v7245_v3 }
 0xb88   : > { %v12759_v62 = vpop.f32.mrb[90].mxu0 }
 0xb89   : > { %v16680_v34 = vadd.f32 %v12759_v62, %v16657_v9  ;;  %v7326_v2 = vpop.f32.mrb[91].mxu0 }
 0xb8a   : > { %v16689_v5 = vadd.f32 %v16657_v9, %v7326_v2 }
 0xb8b   : > { %v7525_v48 = vmul.f32 %v16660_v7, %v16680_v34  ;;  %v7533_v47 = vmul.f32 %v16663_v21, %v16680_v34  ;;  %v7541_v16 = vmul.f32 %v16668_v6, %v16680_v34  ;;  %v7549_v43 = vmul.f32 %v16671_v56, %v16680_v34 }
 0xb8c   : > { %v12762_v0 = vpop.f32.mrb[92].mxu0  ;;  %v7524_v63 = vmul.f32 %v16660_v7, %v16689_v5  ;;  %v7532_v44 = vmul.f32 %v16663_v21, %v16689_v5  ;;  %v7540_v20 = vmul.f32 %v16668_v6, %v16689_v5  ;;  %v7548_v39 = vmul.f32 %v16671_v56, %v16689_v5 }
 0xb8d   : > { %v16714_v42 = vadd.f32 %v12762_v0, %v16657_v9  ;;  %v7336_v13 = vpop.f32.mrb[93].mxu0  ;;  %v7556_v27 = vmul.f32 %v16692_v36, %v16689_v5  ;;  %v7557_v19 = vmul.f32 %v16692_v36, %v16680_v34  ;;  %v16728_v23 = vmul.f32 %v16695_v15, %v16689_v5 }
 0xb8e   : > { %v16731_v29 = vadd.f32 %v16657_v9, %v7336_v13  ;;  %v13731_v45 = vpack.c.bf16 %v7525_v48, %v7524_v63  ;;  %v13755_v22 = vpack.c.bf16 %v7533_v47, %v7532_v44  ;;  %v16733_v14 = vpack.c.bf16 %v7541_v16, %v7540_v20 }
 0xb8f   : > { %v7527_v54 = vmul.f32 %v16660_v7, %v16714_v42  ;;  %v7535_v58 = vmul.f32 %v16663_v21, %v16714_v42  ;;  %v16739_v17 = vpack.c.bf16 %v7549_v43, %v7548_v39  ;;  %v7543_v12 = vmul.f32 %v16668_v6, %v16714_v42 }
 0xb90   : > { %v12765_v61 = vpop.f32.mrb[94].mxu0  ;;  %13733 = vmatprep.subr.msk.bf16.mxu0 %vm16718_vm6, %v13731_v45  ;;  %13757 = vmatprep.subr.msk.bf16.mxu1 %vm16718_vm6, %v13755_v22  ;;  %v7526_v18 = vmul.f32 %v16660_v7, %v16731_v29  ;;  %v7534_v33 = vmul.f32 %v16663_v21, %v16731_v29  ;;  %v7542_v35 = vmul.f32 %v16668_v6, %v16731_v29 }
 0xb91   : > { %v16754_v31 = vadd.f32 %v12765_v61, %v16657_v9  ;;  %v7346_v50 = vpop.f32.mrb[95].mxu0  ;;  %13736 = vmatpush3.bf16.xpose.msk.msra.mxu0 %vm16718_vm6, %v13731_v45  ;;  %13760 = vmatpush3.bf16.xpose.msk.msra.mxu1 %vm16718_vm6, %v13755_v22  ;;  %v7550_v49 = vmul.f32 %v16671_v56, %v16731_v29  ;;  %v7551_v11 = vmul.f32 %v16671_v56, %v16714_v42  ;;  %v16800_v45 = vld [vmem:[%s18523_s4] ss:$0 sm:$0xff]  ;;  %s11391_s4 = sshll.u32 %s15028_s0, 7 }
 0xb92   : > { %v16765_v25 = vadd.f32 %v16657_v9, %v7346_v50  ;;  %v13737_v40 = vpack.c.bf16 %v7527_v54, %v7526_v18  ;;  %v13761_v37 = vpack.c.bf16 %v7535_v58, %v7534_v33  ;;  %v16767_v53 = vpack.c.bf16 %v7543_v12, %v7542_v35 }
 0xb93   : > { %v7529_v51 = vmul.f32 %v16660_v7, %v16754_v31  ;;  %v7537_v3 = vmul.f32 %v16663_v21, %v16754_v31  ;;  %v16773_v62 = vpack.c.bf16 %v7551_v11, %v7550_v49  ;;  %v7545_v2 = vmul.f32 %v16668_v6, %v16754_v31 }
 0xb94   : > { %v12768_v48 = vpop.f32.mrb[96].mxu0  ;;  %13739 = vmatprep.subr.msk.bf16.mxu0 %vm16718_vm6, %v13737_v40  ;;  %13763 = vmatprep.subr.msk.bf16.mxu1 %vm16718_vm6, %v13761_v37  ;;  %v7528_v47 = vmul.f32 %v16660_v7, %v16765_v25  ;;  %v7536_v16 = vmul.f32 %v16663_v21, %v16765_v25  ;;  %v7544_v43 = vmul.f32 %v16668_v6, %v16765_v25 }
 0xb95   : > { %v16788_v0 = vadd.f32 %v12768_v48, %v16657_v9  ;;  %v7356_v63 = vpop.f32.mrb[97].mxu0  ;;  %v7552_v44 = vmul.f32 %v16671_v56, %v16765_v25  ;;  %v7553_v20 = vmul.f32 %v16671_v56, %v16754_v31  ;;  %v16794_v39 = vpack.c.bf16 %v7557_v19, %v7556_v27 }
 0xb96   : > { %v16797_v13 = vadd.f32 %v16657_v9, %v7356_v63  ;;  %v13743_v22 = vpack.c.bf16 %v7529_v51, %v7528_v47  ;;  %v13767_v54 = vpack.c.bf16 %v7537_v3, %v7536_v16  ;;  %v16802_v58 = vpack.c.bf16 %v7545_v2, %v7544_v43 }
 0xb97   : > { %v7531_v12 = vmul.f32 %v16660_v7, %v16788_v0  ;;  %v7539_v61 = vmul.f32 %v16663_v21, %v16788_v0  ;;  %v16808_v18 = vpack.c.bf16 %v7553_v20, %v7552_v44  ;;  %v7547_v27 = vmul.f32 %v16668_v6, %v16788_v0 }
 0xb98   : > { %v12779_v19 = vpop.f32.mrb[98].mxu0  ;;  %v7530_v9 = vmul.f32 %v16660_v7, %v16797_v13  ;;  %v7538_v33 = vmul.f32 %v16663_v21, %v16797_v13  ;;  %v7546_v35 = vmul.f32 %v16668_v6, %v16797_v13  ;;  %v7554_v50 = vmul.f32 %v16671_v56, %v16797_v13 }
 0xb99   : > { %v16821_v49 = vadd.f32 %v12779_v19, %v16800_v45  ;;  %v7437_v11 = vpop.f32.mrb[99].mxu0  ;;  %13742 = vmatpush3.bf16.xpose.msk.msra.mxu0 %vm16718_vm6, %v13737_v40  ;;  %13766 = vmatpush3.bf16.xpose.msk.msra.mxu1 %vm16718_vm6, %v13761_v37  ;;  %v7555_v51 = vmul.f32 %v16671_v56, %v16788_v0  ;;  %v7565_v3 = vmul.f32 %v16695_v15, %v16680_v34 }
 0xb9a   : > { %v16832_v2 = vadd.f32 %v16800_v45, %v7437_v11  ;;  %13745 = vmatprep.subr.msk.bf16.mxu0 %vm16718_vm6, %v13743_v22  ;;  %13769 = vmatprep.subr.msk.bf16.mxu1 %vm16718_vm6, %v13767_v54  ;;  %v16838_v48 = vpack.c.bf16 %v7531_v12, %v7530_v9  ;;  %v16840_v40 = vpack.c.bf16 %v7539_v61, %v7538_v33 }
 0xb9b   : > { %v16842_v37 = vpack.c.bf16 %v7547_v27, %v7546_v35  ;;  %v16844_v47 = vpack.c.bf16 %v7555_v51, %v7554_v50  ;;  %v16847_v16 = vpack.c.bf16 %v7565_v3, %v16728_v23  ;;  %v7558_v43 = vmul.f32 %v16692_v36, %v16731_v29  ;;  %v16869_v35 = vld [vmem:[%s18520_s6 + $0x6] ss:$0 sm:$0xff]  ;;  %v16872_v50 = vld [vmem:[%s18520_s6 + $0x7] ss:$0 sm:$0xff]  ;;  %s18280_s6 = scalar_lea.hbm %s15000_s17, %s11391_s4 }
 0xb9c   : > { %v12782_v63 = vpop.f32.mrb[100].mxu0  ;;  %v7559_v44 = vmul.f32 %v16692_v36, %v16714_v42  ;;  %v7566_v20 = vmul.f32 %v16695_v15, %v16731_v29  ;;  %v7567_v12 = vmul.f32 %v16695_v15, %v16714_v42  ;;  %v7560_v61 = vmul.f32 %v16692_v36, %v16765_v25 }
 0xb9d   : > { %v16860_v27 = vadd.f32 %v12782_v63, %v16800_v45  ;;  %v7447_v23 = vpop.f32.mrb[101].mxu0  ;;  %v7561_v19 = vmul.f32 %v16692_v36, %v16754_v31  ;;  %v7568_v9 = vmul.f32 %v16695_v15, %v16765_v25  ;;  %v7569_v33 = vmul.f32 %v16695_v15, %v16754_v31 }
 0xb9e   : > { %v16875_v11 = vadd.f32 %v16800_v45, %v7447_v23  ;;  %v16877_v51 = vpack.c.bf16 %v7559_v44, %v7558_v43  ;;  %v16879_v3 = vpack.c.bf16 %v7567_v12, %v7566_v20  ;;  %v7562_v63 = vmul.f32 %v16692_v36, %v16797_v13 }
 0xb9f   : > { %v16883_v26 = vpack.c.bf16 %v7561_v19, %v7560_v61  ;;  %v16885_v28 = vpack.c.bf16 %v7569_v33, %v7568_v9  ;;  %v7563_v41 = vmul.f32 %v16692_v36, %v16788_v0  ;;  %v7570_v38 = vmul.f32 %v16695_v15, %v16797_v13 }
 0xba0   : > { %v12785_v60 = vpop.f32.mrb[102].mxu0  ;;  %v7571_v43 = vmul.f32 %v16695_v15, %v16788_v0  ;;  %v7572_v44 = vmul.f32 %v16869_v35, %v16689_v5  ;;  %v7573_v20 = vmul.f32 %v16869_v35, %v16680_v34  ;;  %v7580_v12 = vmul.f32 %v16872_v50, %v16689_v5 }
 0xba1   : > { %v16900_v61 = vadd.f32 %v12785_v60, %v16800_v45  ;;  %v7457_v23 = vpop.f32.mrb[103].mxu0  ;;  %13748 = vmatpush3.bf16.xpose.msk.msra.mxu0 %vm16718_vm6, %v13743_v22  ;;  %13772 = vmatpush3.bf16.xpose.msk.msra.mxu1 %vm16718_vm6, %v13767_v54  ;;  %v16906_v19 = vpack.c.bf16 %v7563_v41, %v7562_v63  ;;  %v7581_v9 = vmul.f32 %v16872_v50, %v16680_v34 }
 0xba2   : > { %v16911_v33 = vadd.f32 %v16800_v45, %v7457_v23  ;;  %13751 = vmatprep.subr.msk.bf16.mxu0 %vm16718_vm6, %v16838_v48  ;;  %13775 = vmatprep.subr.msk.bf16.mxu1 %vm16718_vm6, %v16840_v40  ;;  %v16919_v60 = vpack.c.bf16 %v7571_v43, %v7570_v38  ;;  %v16921_v5 = vpack.c.bf16 %v7573_v20, %v7572_v44 }
 0xba3   : > { %v16923_v41 = vpack.c.bf16 %v7581_v9, %v7580_v12  ;;  %v7574_v34 = vmul.f32 %v16869_v35, %v16731_v29  ;;  %v7575_v22 = vmul.f32 %v16869_v35, %v16714_v42  ;;  %v7582_v54 = vmul.f32 %v16872_v50, %v16731_v29 }
 0xba4   : > { %v12788_v63 = vpop.f32.mrb[104].mxu0  ;;  %v7583_v23 = vmul.f32 %v16872_v50, %v16714_v42  ;;  %v7576_v38 = vmul.f32 %v16869_v35, %v16765_v25  ;;  %v7577_v43 = vmul.f32 %v16869_v35, %v16754_v31  ;;  %v7584_v44 = vmul.f32 %v16872_v50, %v16765_v25 }
 0xba5   : > { %v16940_v20 = vadd.f32 %v12788_v63, %v16800_v45  ;;  %v7467_v12 = vpop.f32.mrb[105].mxu0  ;;  %v16942_v9 = vpack.c.bf16 %v7575_v22, %v7574_v34  ;;  %v7585_v29 = vmul.f32 %v16872_v50, %v16754_v31  ;;  %v7578_v42 = vmul.f32 %v16869_v35, %v16797_v13 }
 0xba6   : > { %v16949_v4 = vadd.f32 %v16800_v45, %v7467_v12  ;;  %v16951_v30 = vpack.c.bf16 %v7583_v23, %v7582_v54  ;;  %v16953_v24 = vpack.c.bf16 %v7577_v43, %v7576_v38  ;;  %v7579_v25 = vmul.f32 %v16869_v35, %v16788_v0 }
 0xba7   : > { %v16957_v63 = vpack.c.bf16 %v7585_v29, %v7584_v44  ;;  %v7586_v34 = vmul.f32 %v16872_v50, %v16797_v13  ;;  %v7587_v31 = vmul.f32 %v16872_v50, %v16788_v0  ;;  %v7588_v22 = vmul.f32 %v16660_v7, %v16832_v2 }
 0xba8   : > { %v16965_v45 = vpack.c.bf16 %v7579_v25, %v7578_v42  ;;  %v7589_v54 = vmul.f32 %v16660_v7, %v16821_v49  ;;  %v7604_v23 = vmul.f32 %v16668_v6, %v16832_v2  ;;  %v7605_v38 = vmul.f32 %v16668_v6, %v16821_v49 }
 0xba9   : > { %13754 = vmatpush3.bf16.xpose.msk.msra.mxu0 %vm16718_vm6, %v16838_v48  ;;  %13778 = vmatpush3.bf16.xpose.msk.msra.mxu1 %vm16718_vm6, %v16840_v40  ;;  %v16979_v0 = vpack.c.bf16 %v7587_v31, %v7586_v34  ;;  %v7590_v13 = vmul.f32 %v16660_v7, %v16875_v11  ;;  %v7591_v43 = vmul.f32 %v16660_v7, %v16860_v27 }
 0xbaa   : > { %13781 = vmatprep.subr.msk.bf16.mxu0 %vm16718_vm6, %v16733_v14  ;;  %13805 = vmatprep.subr.msk.bf16.mxu1 %vm16718_vm6, %v16739_v17  ;;  %v16991_v48 = vpack.c.bf16 %v7589_v54, %v7588_v22  ;;  %v16993_v44 = vpack.c.bf16 %v7605_v38, %v7604_v23  ;;  %v7606_v40 = vmul.f32 %v16668_v6, %v16875_v11 }
 0xbab   : > { %v16997_v12 = vpack.c.bf16 %v7591_v43, %v7590_v13  ;;  %v7607_v29 = vmul.f32 %v16668_v6, %v16860_v27  ;;  %v7592_v42 = vmul.f32 %v16660_v7, %v16911_v33  ;;  %v7593_v25 = vmul.f32 %v16660_v7, %v16900_v61 }
 0xbac   : > { %18524 = vst [vmem:[#allocation43_spill] sm:$0xff] %v16991_v48  ;;  %18525 = vst [vmem:[#allocation44_spill] sm:$0xff] %v16993_v44  ;;  %v7608_v34 = vmul.f32 %v16668_v6, %v16911_v33  ;;  %v7609_v31 = vmul.f32 %v16668_v6, %v16900_v61  ;;  %v7594_v22 = vmul.f32 %v16660_v7, %v16949_v4 }
 0xbad   : > { %18526 = vst [vmem:[#allocation45_spill] sm:$0xff] %v16997_v12  ;;  %v7595_v54 = vmul.f32 %v16660_v7, %v16940_v20  ;;  %v17013_v23 = vpack.c.bf16 %v7607_v29, %v7606_v40  ;;  %v17015_v38 = vpack.c.bf16 %v7593_v25, %v7592_v42  ;;  %v7610_v13 = vmul.f32 %v16668_v6, %v16949_v4 }
 0xbae   : > { %v7611_v43 = vmul.f32 %v16668_v6, %v16940_v20  ;;  %v17021_v12 = vpack.c.bf16 %v7609_v31, %v7608_v34  ;;  %v7596_v48 = vmul.f32 %v16663_v21, %v16832_v2  ;;  %v7597_v7 = vmul.f32 %v16663_v21, %v16821_v49 }
 0xbaf   : > { %v17023_v44 = vpack.c.bf16 %v7595_v54, %v7594_v22  ;;  %v7620_v29 = vmul.f32 %v16692_v36, %v16832_v2  ;;  %v7621_v42 = vmul.f32 %v16692_v36, %v16821_v49  ;;  %v7598_v6 = vmul.f32 %v16663_v21, %v16875_v11 }
 0xbb0   : > { %v17029_v40 = vpack.c.bf16 %v7611_v43, %v7610_v13  ;;  %12806 = vmatmul.mubr.msk.f32.vlgmr.msra.gmra.mrb[106].mxu0 %vm1295_vm2, %v16665_v55  ;;  %12834 = vmatmul.mubr.msk.f32.vlgmr.msra.gmra.mrb[118].mxu1 %vm1295_vm2, %v16665_v55  ;;  %v17041_v25 = vpack.c.bf16 %v7597_v7, %v7596_v48  ;;  %v7599_v34 = vmul.f32 %v16663_v21, %v16860_v27 }
 0xbb1   : > { %v7600_v31 = vmul.f32 %v16663_v21, %v16911_v33  ;;  %12808 = vmatprep.mubr.msk.f32.mxu0 %vm1295_vm2, %v16675_v10  ;;  %12836 = vmatprep.mubr.msk.f32.mxu1 %vm1295_vm2, %v16675_v10  ;;  %v17051_v22 = vpack.c.bf16 %v7621_v42, %v7620_v29  ;;  %v7601_v54 = vmul.f32 %v16663_v21, %v16900_v61 }
 0xbb2   : > { %18527 = vst [vmem:[#allocation46_spill] sm:$0xff] %v17041_v25  ;;  %v7602_v48 = vmul.f32 %v16663_v21, %v16949_v4  ;;  %13784 = vmatpush3.bf16.xpose.msk.msra.mxu0 %vm16718_vm6, %v16733_v14  ;;  %13808 = vmatpush3.bf16.xpose.msk.msra.mxu1 %vm16718_vm6, %v16739_v17  ;;  %v17063_v13 = vpack.c.bf16 %v7599_v34, %v7598_v6 }
 0xbb3   : > { %18528 = vst [vmem:[#allocation47_spill] sm:$0xff] %v17051_v22  ;;  %v7603_v43 = vmul.f32 %v16663_v21, %v16940_v20  ;;  %v7612_v7 = vmul.f32 %v16671_v56, %v16832_v2  ;;  %13787 = vmatprep.subr.msk.bf16.mxu0 %vm16718_vm6, %v16767_v53  ;;  %13811 = vmatprep.subr.msk.bf16.mxu1 %vm16718_vm6, %v16773_v62 }
 0xbb4   : > { %18529 = vst [vmem:[#allocation48_spill] sm:$0xff] %v17063_v13  ;;  %v17075_v14 = vpack.c.bf16 %v7601_v54, %v7600_v31  ;;  %v7613_v17 = vmul.f32 %v16671_v56, %v16821_v49  ;;  %v7614_v29 = vmul.f32 %v16671_v56, %v16875_v11  ;;  %12809 = vmatmul.mubr.msk.f32.gmra.mrb[108].mxu0 %vm1295_vm2, %v16673_v1 }
 0xbb5   : > { %12837 = vmatmul.mubr.msk.f32.gmra.mrb[120].mxu1 %vm1295_vm2, %v16673_v1  ;;  %v17085_v21 = vpack.c.bf16 %v7603_v43, %v7602_v48  ;;  %v7615_v42 = vmul.f32 %v16671_v56, %v16860_v27  ;;  %v7616_v6 = vmul.f32 %v16671_v56, %v16911_v33  ;;  %12811 = vmatprep.mubr.msk.f32.mxu0 %vm1295_vm2, %v16682_v57 }
 0xbb6   : > { %18530 = vst [vmem:[#allocation49_spill] sm:$0xff] %v17075_v14  ;;  %12839 = vmatprep.mubr.msk.f32.mxu1 %vm1295_vm2, %v16682_v57  ;;  %v17095_v34 = vpack.c.bf16 %v7613_v17, %v7612_v7  ;;  %v7617_v31 = vmul.f32 %v16671_v56, %v16900_v61  ;;  %v7622_v54 = vmul.f32 %v16692_v36, %v16875_v11 }
 0xbb7   : > { %18531 = vst [vmem:[#allocation50_spill] sm:$0xff] %v17085_v21  ;;  %v17101_v48 = vpack.c.bf16 %v7615_v42, %v7614_v29  ;;  %v7623_v43 = vmul.f32 %v16692_v36, %v16860_v27  ;;  %v7618_v21 = vmul.f32 %v16671_v56, %v16949_v4  ;;  %v7619_v14 = vmul.f32 %v16671_v56, %v16940_v20 }
 0xbb8   : > { %18532 = vst [vmem:[#allocation51_spill] sm:$0xff] %v17095_v34  ;;  %v17109_v13 = vpack.c.bf16 %v7617_v31, %v7616_v6  ;;  %v7624_v7 = vmul.f32 %v16692_v36, %v16911_v33  ;;  %v7625_v17 = vmul.f32 %v16692_v36, %v16900_v61  ;;  %v7626_v29 = vmul.f32 %v16692_v36, %v16949_v4 }
 0xbb9   : > { %18533 = vst [vmem:[#allocation52_spill] sm:$0xff] %v17101_v48  ;;  %12812 = vmatmul.mubr.msk.f32.gmra.mrb[110].mxu0 %vm1295_vm2, %v16677_v8  ;;  %12840 = vmatmul.mubr.msk.f32.gmra.mrb[122].mxu1 %vm1295_vm2, %v16677_v8  ;;  %v17121_v42 = vpack.c.bf16 %v7623_v43, %v7622_v54  ;;  %v17123_v56 = vpack.c.bf16 %v7619_v14, %v7618_v21 }
 0xbba   : > { %18534 = vst [vmem:[#allocation53_spill] sm:$0xff] %v17109_v13  ;;  %v7627_v6 = vmul.f32 %v16692_v36, %v16940_v20  ;;  %12814 = vmatprep.mubr.msk.f32.mxu0 %vm1295_vm2, %v16686_v59  ;;  %12842 = vmatprep.mubr.msk.f32.mxu1 %vm1295_vm2, %v16686_v59  ;;  %v17131_v31 = vpack.c.bf16 %v7625_v17, %v7624_v7 }
 0xbbb   : > { %18535 = vst [vmem:[#allocation54_spill] sm:$0xff] %v17121_v42  ;;  %18536 = vst [vmem:[#allocation55_spill] sm:$0xff] %v17123_v56  ;;  %v7628_v13 = vmul.f32 %v16695_v15, %v16832_v2  ;;  %v7629_v54 = vmul.f32 %v16695_v15, %v16821_v49  ;;  %13790 = vmatpush3.bf16.xpose.msk.msra.mxu0 %vm16718_vm6, %v16767_v53  ;;  %13814 = vmatpush3.bf16.xpose.msk.msra.mxu1 %vm16718_vm6, %v16773_v62 }
 0xbbc   : > { %18537 = vst [vmem:[#allocation56_spill] sm:$0xff] %v17131_v31  ;;  %v17143_v36 = vpack.c.bf16 %v7627_v6, %v7626_v29  ;;  %v7630_v14 = vmul.f32 %v16695_v15, %v16875_v11  ;;  %v7631_v21 = vmul.f32 %v16695_v15, %v16860_v27  ;;  %13793 = vmatprep.subr.msk.bf16.mxu0 %vm16718_vm6, %v16802_v58 }
 0xbbd   : > { %13817 = vmatprep.subr.msk.bf16.mxu1 %vm16718_vm6, %v16808_v18  ;;  %v17155_v53 = vpack.c.bf16 %v7629_v54, %v7628_v13  ;;  %v7636_v62 = vmul.f32 %v16869_v35, %v16832_v2  ;;  %v7637_v43 = vmul.f32 %v16869_v35, %v16821_v49  ;;  %12815 = vmatmul.mubr.msk.f32.gmra.mrb[112].mxu0 %vm1295_vm2, %v16684_v46 }
 0xbbe   : > { %18538 = vst [vmem:[#allocation57_spill] sm:$0xff] %v17143_v36  ;;  %12843 = vmatmul.mubr.msk.f32.gmra.mrb[124].mxu1 %vm1295_vm2, %v16684_v46  ;;  %v17165_v7 = vpack.c.bf16 %v7631_v21, %v7630_v14  ;;  %v7632_v17 = vmul.f32 %v16695_v15, %v16911_v33  ;;  %v7633_v13 = vmul.f32 %v16695_v15, %v16900_v61 }
 0xbbf   : > { %18539 = vst [vmem:[#allocation58_spill] sm:$0xff] %v17155_v53  ;;  %12861 = vmatprep.mubr.msk.f32.mxu0 %vm1295_vm2, %v16650_v32  ;;  %12889 = vmatprep.mubr.msk.f32.mxu1 %vm1295_vm2, %v16650_v32  ;;  %v17175_v29 = vpack.c.bf16 %v7637_v43, %v7636_v62  ;;  %v7634_v6 = vmul.f32 %v16695_v15, %v16949_v4 }
 0xbc0   : > { %18540 = vst [vmem:[#allocation59_spill] sm:$0xff] %v17165_v7  ;;  %v7635_v54 = vmul.f32 %v16695_v15, %v16940_v20  ;;  %v17181_v14 = vpack.c.bf16 %v7633_v13, %v7632_v17  ;;  %v7644_v21 = vmul.f32 %v16872_v50, %v16832_v2  ;;  %v7645_v7 = vmul.f32 %v16872_v50, %v16821_v49 }
 0xbc1   : > { %18541 = vst [vmem:[#allocation60_spill] sm:$0xff] %v17175_v29  ;;  %v7638_v53 = vmul.f32 %v16869_v35, %v16875_v11  ;;  %v7639_v62 = vmul.f32 %v16869_v35, %v16860_v27  ;;  %v7640_v43 = vmul.f32 %v16869_v35, %v16911_v33  ;;  %v7641_v15 = vmul.f32 %v16869_v35, %v16900_v61 }
 0xbc2   : > { %18542 = vst [vmem:[#allocation61_spill] sm:$0xff] %v17181_v14  ;;  %v17189_v36 = vpack.c.bf16 %v7635_v54, %v7634_v6  ;;  %v17197_v17 = vpack.c.bf16 %v7645_v7, %v7644_v21  ;;  %v7646_v2 = vmul.f32 %v16872_v50, %v16875_v11  ;;  %v7647_v49 = vmul.f32 %v16872_v50, %v16860_v27 }
 0xbc3   : > { %v7642_v13 = vmul.f32 %v16869_v35, %v16949_v4  ;;  %v17205_v6 = vpack.c.bf16 %v7639_v62, %v7638_v53  ;;  %v17207_v54 = vpack.c.bf16 %v7641_v15, %v7640_v43  ;;  %v7648_v7 = vmul.f32 %v16872_v50, %v16911_v33  ;;  %13796 = vmatpush3.bf16.xpose.msk.msra.mxu0 %vm16718_vm6, %v16802_v58 }
 0xbc4   : > { %18543 = vst [vmem:[#allocation62_spill] sm:$0xff] %v17189_v36  ;;  %18544 = vst [vmem:[#allocation63_spill] sm:$0xff] %v17197_v17  ;;  %v7643_v36 = vmul.f32 %v16869_v35, %v16940_v20  ;;  %13820 = vmatpush3.bf16.xpose.msk.msra.mxu1 %vm16718_vm6, %v16808_v18  ;;  %v17219_v27 = vpack.c.bf16 %v7647_v49, %v7646_v2  ;;  %v7649_v11 = vmul.f32 %v16872_v50, %v16900_v61 }
 0xbc5   : > { %18545 = vst [vmem:[#allocation64_spill] sm:$0xff] %v17205_v6  ;;  %18546 = vst [vmem:[#allocation65_spill] sm:$0xff] %v17207_v54  ;;  %v7650_v53 = vmul.f32 %v16872_v50, %v16949_v4  ;;  %13799 = vmatprep.subr.msk.bf16.mxu0 %vm16718_vm6, %v16842_v37  ;;  %13823 = vmatprep.subr.msk.bf16.mxu1 %vm16718_vm6, %v16844_v47  ;;  %v7651_v18 = vmul.f32 %v16872_v50, %v16940_v20  ;;  %v18553_v4 = vld [vmem:[#allocation45_spill] sm:$0xff] }
 0xbc6   : > { %18547 = vst [vmem:[#allocation66_spill] sm:$0xff] %v17219_v27  ;;  %v17231_v58 = vpack.c.bf16 %v7643_v36, %v7642_v13  ;;  %v17235_v35 = vpack.c.bf16 %v7649_v11, %v7648_v7 }
 0xbc7   : > { %v17237_v33 = vpack.c.bf16 %v7651_v18, %v7650_v53 }
 0xbc8   : > { %18548 = vst [vmem:[#allocation67_spill] sm:$0xff] %v17231_v58  ;;  %18549 = vst [vmem:[#allocation68_spill] sm:$0xff] %v17235_v35 }
 0xbc9   : > { %18550 = vst [vmem:[#allocation69_spill] sm:$0xff] %v17237_v33 }
 0xbcb   : > { %13802 = vmatpush3.bf16.xpose.msk.msra.mxu0 %vm16718_vm6, %v16842_v37 }
 0xbcc   : > { %13826 = vmatpush3.bf16.xpose.msk.msra.mxu1 %vm16718_vm6, %v16844_v47  ;;  %13829 = vmatprep.subr.msk.bf16.mxu0 %vm16718_vm6, %v16794_v39 }
 0xbcd   : > { %13853 = vmatprep.subr.msk.bf16.mxu1 %vm16718_vm6, %v16847_v16 }
 0xbd2   : > { %12862 = vmatmul.mubr.msk.f32.vlgmr.msra.gmra.mrb[114].mxu0 %vm1295_vm2, %v16665_v55 }
 0xbd3   : > { %12890 = vmatmul.mubr.msk.f32.vlgmr.msra.gmra.mrb[126].mxu1 %vm1295_vm2, %v16665_v55  ;;  %12864 = vmatprep.mubr.msk.f32.mxu0 %vm1295_vm2, %v16675_v10 }
 0xbd4   : > { %12892 = vmatprep.mubr.msk.f32.mxu1 %vm1295_vm2, %v16675_v10  ;;  %13832 = vmatpush3.bf16.xpose.msk.msra.mxu0 %vm16718_vm6, %v16794_v39 }
 0xbd5   : > { %13856 = vmatpush3.bf16.xpose.msk.msra.mxu1 %vm16718_vm6, %v16847_v16  ;;  %13835 = vmatprep.subr.msk.bf16.mxu0 %vm16718_vm6, %v16877_v51 }
 0xbd6   : > { %13859 = vmatprep.subr.msk.bf16.mxu1 %vm16718_vm6, %v16879_v3  ;;  %12865 = vmatmul.mubr.msk.f32.gmra.mrb[116].mxu0 %vm1295_vm2, %v16673_v1 }
 0xbd7   : > { %12893 = vmatmul.mubr.msk.f32.gmra.mrb[128].mxu1 %vm1295_vm2, %v16673_v1  ;;  %12867 = vmatprep.mubr.msk.f32.mxu0 %vm1295_vm2, %v16682_v57 }
 0xbd8   : > { %12895 = vmatprep.mubr.msk.f32.mxu1 %vm1295_vm2, %v16682_v57 }
 0xbda   : > { %12868 = vmatmul.mubr.msk.f32.gmra.mrb[118].mxu0 %vm1295_vm2, %v16677_v8 }
 0xbdb   : > { %12896 = vmatmul.mubr.msk.f32.gmra.mrb[130].mxu1 %vm1295_vm2, %v16677_v8  ;;  %12870 = vmatprep.mubr.msk.f32.mxu0 %vm1295_vm2, %v16686_v59 }
 0xbdc   : > { %12898 = vmatprep.mubr.msk.f32.mxu1 %vm1295_vm2, %v16686_v59  ;;  %13838 = vmatpush3.bf16.xpose.msk.msra.mxu0 %vm16718_vm6, %v16877_v51 }
 0xbdd   : > { %13862 = vmatpush3.bf16.xpose.msk.msra.mxu1 %vm16718_vm6, %v16879_v3  ;;  %13841 = vmatprep.subr.msk.bf16.mxu0 %vm16718_vm6, %v16883_v26 }
 0xbde   : > { %13865 = vmatprep.subr.msk.bf16.mxu1 %vm16718_vm6, %v16885_v28  ;;  %12871 = vmatmul.mubr.msk.f32.gmra.mrb[120].mxu0 %vm1295_vm2, %v16684_v46 }
 0xbdf   : > { %12899 = vmatmul.mubr.msk.f32.gmra.mrb[132].mxu1 %vm1295_vm2, %v16684_v46  ;;  %12917 = vmatprep.mubr.msk.f32.mxu0 %vm1295_vm2, %v16650_v32 }
 0xbe0   : > { %12945 = vmatprep.mubr.msk.f32.mxu1 %vm1295_vm2, %v16650_v32 }
 0xbe4   : > { %13844 = vmatpush3.bf16.xpose.msk.msra.mxu0 %vm16718_vm6, %v16883_v26 }
 0xbe5   : > { %13868 = vmatpush3.bf16.xpose.msk.msra.mxu1 %vm16718_vm6, %v16885_v28  ;;  %13847 = vmatprep.subr.msk.bf16.mxu0 %vm16718_vm6, %v16906_v19 }
 0xbe6   : > { %13871 = vmatprep.subr.msk.bf16.mxu1 %vm16718_vm6, %v16919_v60 }
 0xbec   : > { %13850 = vmatpush3.bf16.xpose.msk.msra.mxu0 %vm16718_vm6, %v16906_v19 }
 0xbed   : > { %13874 = vmatpush3.bf16.xpose.msk.msra.mxu1 %vm16718_vm6, %v16919_v60  ;;  %13877 = vmatprep.subr.msk.bf16.mxu0 %vm16718_vm6, %v16921_v5 }
 0xbee   : > { %13901 = vmatprep.subr.msk.bf16.mxu1 %vm16718_vm6, %v16923_v41 }
 0xbf3   : > { %12918 = vmatmul.mubr.msk.f32.vlgmr.msra.gmra.mrb[122].mxu0 %vm1295_vm2, %v16665_v55 }
 0xbf4   : > { %12946 = vmatmul.mubr.msk.f32.vlgmr.msra.gmra.mrb[134].mxu1 %vm1295_vm2, %v16665_v55  ;;  %12920 = vmatprep.mubr.msk.f32.mxu0 %vm1295_vm2, %v16675_v10 }
 0xbf5   : > { %12948 = vmatprep.mubr.msk.f32.mxu1 %vm1295_vm2, %v16675_v10  ;;  %13880 = vmatpush3.bf16.xpose.msk.msra.mxu0 %vm16718_vm6, %v16921_v5 }
 0xbf6   : > { %13904 = vmatpush3.bf16.xpose.msk.msra.mxu1 %vm16718_vm6, %v16923_v41  ;;  %13883 = vmatprep.subr.msk.bf16.mxu0 %vm16718_vm6, %v16942_v9 }
 0xbf7   : > { %13907 = vmatprep.subr.msk.bf16.mxu1 %vm16718_vm6, %v16951_v30  ;;  %12921 = vmatmul.mubr.msk.f32.gmra.mrb[124].mxu0 %vm1295_vm2, %v16673_v1 }
 0xbf8   : > { %12949 = vmatmul.mubr.msk.f32.gmra.mrb[136].mxu1 %vm1295_vm2, %v16673_v1  ;;  %12923 = vmatprep.mubr.msk.f32.mxu0 %vm1295_vm2, %v16682_v57 }
 0xbf9   : > { %12951 = vmatprep.mubr.msk.f32.mxu1 %vm1295_vm2, %v16682_v57 }
 0xbfb   : > { %12924 = vmatmul.mubr.msk.f32.gmra.mrb[126].mxu0 %vm1295_vm2, %v16677_v8 }
 0xbfc   : > { %12952 = vmatmul.mubr.msk.f32.gmra.mrb[138].mxu1 %vm1295_vm2, %v16677_v8  ;;  %12926 = vmatprep.mubr.msk.f32.mxu0 %vm1295_vm2, %v16686_v59 }
 0xbfd   : > { %12954 = vmatprep.mubr.msk.f32.mxu1 %vm1295_vm2, %v16686_v59  ;;  %13886 = vmatpush3.bf16.xpose.msk.msra.mxu0 %vm16718_vm6, %v16942_v9 }
 0xbfe   : > { %13910 = vmatpush3.bf16.xpose.msk.msra.mxu1 %vm16718_vm6, %v16951_v30  ;;  %13889 = vmatprep.subr.msk.bf16.mxu0 %vm16718_vm6, %v16953_v24  ;;  %v18552_v30 = vld [vmem:[#allocation44_spill] sm:$0xff] }
 0xbff   : > { %13913 = vmatprep.subr.msk.bf16.mxu1 %vm16718_vm6, %v16957_v63  ;;  %12927 = vmatmul.mubr.msk.f32.gmra.mrb[128].mxu0 %vm1295_vm2, %v16684_v46 }
 0xc00   : > { %12955 = vmatmul.mubr.msk.f32.gmra.mrb[140].mxu1 %vm1295_vm2, %v16684_v46  ;;  %12973 = vmatprep.mubr.msk.f32.mxu0 %vm1295_vm2, %v16650_v32 }
 0xc01   : > { %13001 = vmatprep.mubr.msk.f32.mxu1 %vm1295_vm2, %v16650_v32 }
 0xc05   : > { %13892 = vmatpush3.bf16.xpose.msk.msra.mxu0 %vm16718_vm6, %v16953_v24  ;;  %v18551_v24 = vld [vmem:[#allocation43_spill] sm:$0xff] }
 0xc06   : > { %13916 = vmatpush3.bf16.xpose.msk.msra.mxu1 %vm16718_vm6, %v16957_v63  ;;  %13895 = vmatprep.subr.msk.bf16.mxu0 %vm16718_vm6, %v16965_v45 }
 0xc07   : > { %13919 = vmatprep.subr.msk.bf16.mxu1 %vm16718_vm6, %v16979_v0 }
 0xc0d   : > { %13898 = vmatpush3.bf16.xpose.msk.msra.mxu0 %vm16718_vm6, %v16965_v45 }
 0xc0e   : > { %13922 = vmatpush3.bf16.xpose.msk.msra.mxu1 %vm16718_vm6, %v16979_v0  ;;  %13924 = vmatprep.subr.bf16.mxu0 %v18551_v24 }
 0xc0f   : > { %13956 = vmatprep.subr.bf16.mxu1 %v18552_v30 }
 0xc14   : > { %12974 = vmatmul.mubr.msk.f32.vlgmr.msra.gmra.mrb[130].mxu0 %vm1295_vm2, %v16665_v55 }
 0xc15   : > { %13002 = vmatmul.mubr.msk.f32.vlgmr.msra.gmra.mrb[142].mxu1 %vm1295_vm2, %v16665_v55  ;;  %12976 = vmatprep.mubr.msk.f32.mxu0 %vm1295_vm2, %v16675_v10 }
 0xc16   : > { %13004 = vmatprep.mubr.msk.f32.mxu1 %vm1295_vm2, %v16675_v10  ;;  %13926 = vmatpush3.bf16.msra.mxu0 %v18551_v24 }
 0xc17   : > { %13958 = vmatpush3.bf16.msra.mxu1 %v18552_v30  ;;  %13928 = vmatprep.subr.bf16.mxu0 %v18553_v4 }
 0xc18   : > { %13960 = vmatprep.subr.bf16.mxu1 %v17013_v23  ;;  %12977 = vmatmul.mubr.msk.f32.gmra.mrb[132].mxu0 %vm1295_vm2, %v16673_v1 }
 0xc19   : > { %13005 = vmatmul.mubr.msk.f32.gmra.mrb[144].mxu1 %vm1295_vm2, %v16673_v1  ;;  %12979 = vmatprep.mubr.msk.f32.mxu0 %vm1295_vm2, %v16682_v57 }
 0xc1a   : > { %13007 = vmatprep.mubr.msk.f32.mxu1 %vm1295_vm2, %v16682_v57  ;;  %13930 = vmatpush3.bf16.msra.mxu0 %v18553_v4 }
 0xc1b   : > { %13962 = vmatpush3.bf16.msra.mxu1 %v17013_v23  ;;  %13932 = vmatprep.subr.bf16.mxu0 %v17015_v38 }
 0xc1c   : > { %13964 = vmatprep.subr.bf16.mxu1 %v17021_v12  ;;  %12980 = vmatmul.mubr.msk.f32.gmra.mrb[134].mxu0 %vm1295_vm2, %v16677_v8 }
 0xc1d   : > { %13008 = vmatmul.mubr.msk.f32.gmra.mrb[146].mxu1 %vm1295_vm2, %v16677_v8  ;;  %12982 = vmatprep.mubr.msk.f32.mxu0 %vm1295_vm2, %v16686_v59 }
 0xc1e   : > { %13010 = vmatprep.mubr.msk.f32.mxu1 %vm1295_vm2, %v16686_v59  ;;  %13934 = vmatpush3.bf16.msra.mxu0 %v17015_v38 }
 0xc1f   : > { %13966 = vmatpush3.bf16.msra.mxu1 %v17021_v12  ;;  %13936 = vmatprep.subr.bf16.mxu0 %v17023_v44 }
 0xc20   : > { %13968 = vmatprep.subr.bf16.mxu1 %v17029_v40  ;;  %12983 = vmatmul.mubr.msk.f32.gmra.mrb[136].mxu0 %vm1295_vm2, %v16684_v46 }
 0xc21   : > { %13011 = vmatmul.mubr.msk.f32.gmra.mrb[148].mxu1 %vm1295_vm2, %v16684_v46 }
 0xc22   : > { %13938 = vmatpush3.bf16.msra.mxu0 %v17023_v44 }
 0xc23   : > { %13970 = vmatpush3.bf16.msra.mxu1 %v17029_v40  ;;  %13940 = vmatprep.subr.bf16.mxu0 %v17041_v25 }
 0xc24   : > { %13988 = vmatprep.subr.bf16.mxu1 %v17051_v22 }
 0xc83   : > { %v17451_v28 = vpop.f32.mrb[106].mxu0  ;;  %v17453_v26 = vpop.f32.mrb[118].mxu1 }
 0xc84   : > { %v17455_v32 = vpop.f32.mrb[107].mxu0  ;;  %v17457_v55 = vpop.f32.mrb[119].mxu1  ;;  %v8711_v1 = vsel %vm1201_vm1, %v17451_v28, -inf  ;;  %v8735_v52 = vsel %vm1201_vm1, %v17453_v26, -inf }
 0xc85   : > { %8712 = vmax.xlane.f32.xlu1 %v8711_v1  ;;  %v8708_v10 = vsel %vm1201_vm1, %v17455_v32, -inf  ;;  %v8732_v39 = vsel %vm1201_vm1, %v17457_v55, -inf }
 0xc86   : > { %8709 = vmax.xlane.f32.xlu0 %v8708_v10 }
 0xc87   : > { %v17463_v8 = vpop.f32.mrb[108].mxu0 }
 0xc88   : > { %v17465_v57 = vpop.f32.mrb[120].mxu1  ;;  %v17467_v46 = vpop.f32.mrb[109].mxu0  ;;  %v8717_v51 = vsel %vm1201_vm1, %v17463_v8, -inf }
 0xc89   : > { %v17469_v59 = vpop.f32.mrb[121].mxu1  ;;  %8736 = vmax.xlane.f32.xlu1 %v8735_v52  ;;  %v8714_v3 = vsel %vm1201_vm1, %v17467_v46, -inf  ;;  %v8741_v41 = vsel %vm1201_vm1, %v17465_v57, -inf }
 0xc8a   : > { %8733 = vmax.xlane.f32.xlu0 %v8732_v39  ;;  %v8738_v20 = vsel %vm1201_vm1, %v17469_v59, -inf }
 0xc8c   : > { %v17475_v37 = vpop.f32.mrb[110].mxu0  ;;  %v17477_v47 = vpop.f32.mrb[122].mxu1 }
 0xc8d   : > { %v17479_v16 = vpop.f32.mrb[111].mxu0  ;;  %v17481_v50 = vpop.f32.mrb[123].mxu1  ;;  %8718 = vmax.xlane.f32.xlu1 %v8717_v51  ;;  %v8723_v9 = vsel %vm1201_vm1, %v17475_v37, -inf  ;;  %v8747_v45 = vsel %vm1201_vm1, %v17477_v47, -inf }
 0xc8e   : > { %8715 = vmax.xlane.f32.xlu0 %v8714_v3  ;;  %v8720_v63 = vsel %vm1201_vm1, %v17479_v16, -inf  ;;  %v8744_v0 = vsel %vm1201_vm1, %v17481_v50, -inf }
 0xc90   : > { %v17487_v61 = vpop.f32.mrb[112].mxu0 }
 0xc91   : > { %v17489_v19 = vpop.f32.mrb[124].mxu1  ;;  %v17491_v60 = vpop.f32.mrb[113].mxu0  ;;  %8742 = vmax.xlane.f32.xlu1 %v8741_v41  ;;  %v8729_v44 = vsel %vm1201_vm1, %v17487_v61, -inf }
 0xc92   : > { %v17493_v5 = vpop.f32.mrb[125].mxu1  ;;  %8739 = vmax.xlane.f32.xlu0 %v8738_v20  ;;  %v8726_v12 = vsel %vm1201_vm1, %v17491_v60, -inf  ;;  %v8753_v23 = vsel %vm1201_vm1, %v17489_v19, -inf }
 0xc93   : > { %v8750_v38 = vsel %vm1201_vm1, %v17493_v5, -inf }
 0xc95   : > { %8724 = vmax.xlane.f32.xlu1 %v8723_v9 }
 0xc96   : > { %8721 = vmax.xlane.f32.xlu0 %v8720_v63 }
 0xc99   : > { %8748 = vmax.xlane.f32.xlu1 %v8747_v45 }
 0xc9a   : > { %8745 = vmax.xlane.f32.xlu0 %v8744_v0 }
 0xc9d   : > { %8730 = vmax.xlane.f32.xlu1 %v8729_v44 }
 0xc9e   : > { %8727 = vmax.xlane.f32.xlu0 %v8726_v12 }
 0xca1   : > { %8754 = vmax.xlane.f32.xlu1 %v8753_v23 }
 0xca2   : > { %8751 = vmax.xlane.f32.xlu0 %v8750_v38 }
 0xca5   : > { %v17515_v40 = vpop.f32.mrb[114].mxu0 }
 0xca6   : > { %v17517_v36 = vpop.f32.mrb[126].mxu1  ;;  %v17519_v21 = vpop.f32.mrb[115].mxu0  ;;  %v8759_v43 = vsel %vm1201_vm1, %v17515_v40, -inf }
 0xca7   : > { %v17521_v62 = vpop.f32.mrb[127].mxu1  ;;  %8760 = vmax.xlane.f32.xlu1 %v8759_v43  ;;  %v8756_v15 = vsel %vm1201_vm1, %v17519_v21, -inf  ;;  %v8783_v11 = vsel %vm1201_vm1, %v17517_v36, -inf }
 0xca8   : > { %8757 = vmax.xlane.f32.xlu0 %v8756_v15  ;;  %v8780_v53 = vsel %vm1201_vm1, %v17521_v62, -inf }
 0xca9   : > { %v17527_v2 = vpop.f32.mrb[116].mxu0 }
 0xcaa   : > { %v17529_v49 = vpop.f32.mrb[128].mxu1  ;;  %v17531_v13 = vpop.f32.mrb[117].mxu0  ;;  %v8765_v1 = vsel %vm1201_vm1, %v17527_v2, -inf }
 0xcab   : > { %v17533_v7 = vpop.f32.mrb[129].mxu1  ;;  %8784 = vmax.xlane.f32.xlu1 %v8783_v11  ;;  %v8762_v10 = vsel %vm1201_vm1, %v17531_v13, -inf  ;;  %v8789_v41 = vsel %vm1201_vm1, %v17529_v49, -inf }
 0xcac   : > { %8781 = vmax.xlane.f32.xlu0 %v8780_v53  ;;  %v8786_v20 = vsel %vm1201_vm1, %v17533_v7, -inf }
 0xcad   : > { %v17539_v18 = vpop.f32.mrb[118].mxu0 }
 0xcae   : > { %v17541_v24 = vpop.f32.mrb[130].mxu1  ;;  %v17543_v30 = vpop.f32.mrb[119].mxu0  ;;  %v8771_v9 = vsel %vm1201_vm1, %v17539_v18, -inf }
 0xcaf   : > { %v17545_v4 = vpop.f32.mrb[131].mxu1  ;;  %8766 = vmax.xlane.f32.xlu1 %v8765_v1  ;;  %v8768_v63 = vsel %vm1201_vm1, %v17543_v30, -inf  ;;  %v8795_v45 = vsel %vm1201_vm1, %v17541_v24, -inf }
 0xcb0   : > { %8763 = vmax.xlane.f32.xlu0 %v8762_v10  ;;  %v8792_v0 = vsel %vm1201_vm1, %v17545_v4, -inf }
 0xcb1   : > { %v17551_v52 = vpop.f32.mrb[120].mxu0 }
 0xcb2   : > { %v17553_v39 = vpop.f32.mrb[132].mxu1  ;;  %v17555_v51 = vpop.f32.mrb[121].mxu0  ;;  %v8777_v44 = vsel %vm1201_vm1, %v17551_v52, -inf }
 0xcb3   : > { %v17557_v3 = vpop.f32.mrb[133].mxu1  ;;  %8790 = vmax.xlane.f32.xlu1 %v8789_v41  ;;  %v8774_v12 = vsel %vm1201_vm1, %v17555_v51, -inf  ;;  %v8801_v23 = vsel %vm1201_vm1, %v17553_v39, -inf }
 0xcb4   : > { %8787 = vmax.xlane.f32.xlu0 %v8786_v20  ;;  %v8798_v38 = vsel %vm1201_vm1, %v17557_v3, -inf }
 0xcb7   : > { %8772 = vmax.xlane.f32.xlu1 %v8771_v9 }
 0xcb8   : > { %8769 = vmax.xlane.f32.xlu0 %v8768_v63 }
 0xcbb   : > { %8796 = vmax.xlane.f32.xlu1 %v8795_v45 }
 0xcbc   : > { %8793 = vmax.xlane.f32.xlu0 %v8792_v0 }
 0xcbf   : > { %8778 = vmax.xlane.f32.xlu1 %v8777_v44 }
 0xcc0   : > { %8775 = vmax.xlane.f32.xlu0 %v8774_v12 }
 0xcc3   : > { %8802 = vmax.xlane.f32.xlu1 %v8801_v23 }
 0xcc4   : > { %8799 = vmax.xlane.f32.xlu0 %v8798_v38 }
 0xcc6   : > { %v17579_v43 = vpop.f32.mrb[122].mxu0 }
 0xcc7   : > { %v17581_v15 = vpop.f32.mrb[134].mxu1  ;;  %v17583_v11 = vpop.f32.mrb[123].mxu0  ;;  %v8807_v1 = vsel %vm1201_vm1, %v17579_v43, -inf }
 0xcc8   : > { %v17585_v53 = vpop.f32.mrb[135].mxu1  ;;  %8808 = vmax.xlane.f32.xlu1 %v8807_v1  ;;  %v8804_v10 = vsel %vm1201_vm1, %v17583_v11, -inf  ;;  %v8831_v45 = vsel %vm1201_vm1, %v17581_v15, -inf }
 0xcc9   : > { %8805 = vmax.xlane.f32.xlu0 %v8804_v10  ;;  %v8828_v0 = vsel %vm1201_vm1, %v17585_v53, -inf }
 0xcca   : > { %v17591_v41 = vpop.f32.mrb[124].mxu0 }
 0xccb   : > { %v17593_v20 = vpop.f32.mrb[136].mxu1  ;;  %v17595_v9 = vpop.f32.mrb[125].mxu0  ;;  %v8813_v1 = vsel %vm1201_vm1, %v17591_v41, -inf }
 0xccc   : > { %v17597_v63 = vpop.f32.mrb[137].mxu1  ;;  %8832 = vmax.xlane.f32.xlu1 %v8831_v45  ;;  %v8810_v10 = vsel %vm1201_vm1, %v17595_v9, -inf  ;;  %v8837_v58 = vsel %vm1201_vm1, %v17593_v20, -inf }
 0xccd   : > { %8829 = vmax.xlane.f32.xlu0 %v8828_v0  ;;  %v8834_v27 = vsel %vm1201_vm1, %v17597_v63, -inf }
 0xcce   : > { %v17603_v44 = vpop.f32.mrb[126].mxu0 }
 0xccf   : > { %v17605_v12 = vpop.f32.mrb[138].mxu1  ;;  %v17607_v23 = vpop.f32.mrb[127].mxu0 }
 0xcd0   : > { %v17609_v38 = vpop.f32.mrb[139].mxu1  ;;  %8814 = vmax.xlane.f32.xlu1 %v8813_v1  ;;  %v8819_v1 = vsel %vm1201_vm1, %v17603_v44, -inf  ;;  %v8843_v54 = vsel %vm1201_vm1, %v17605_v12, -inf }
 0xcd1   : > { %8811 = vmax.xlane.f32.xlu0 %v8810_v10  ;;  %v8816_v10 = vsel %vm1201_vm1, %v17607_v23, -inf  ;;  %v8840_v6 = vsel %vm1201_vm1, %v17609_v38, -inf }
 0xcd2   : > { %v17615_v45 = vpop.f32.mrb[128].mxu0 }
 0xcd3   : > { %v17617_v33 = vpop.f32.mrb[140].mxu1  ;;  %v17619_v0 = vpop.f32.mrb[129].mxu0 }
 0xcd4   : > { %v17621_v35 = vpop.f32.mrb[141].mxu1  ;;  %8838 = vmax.xlane.f32.xlu1 %v8837_v58  ;;  %v8825_v58 = vsel %vm1201_vm1, %v17615_v45, -inf }
 0xcd5   : > { %8835 = vmax.xlane.f32.xlu0 %v8834_v27  ;;  %v8822_v27 = vsel %vm1201_vm1, %v17619_v0, -inf }
 0xcd8   : > { %8820 = vmax.xlane.f32.xlu1 %v8819_v1  ;;  %v8849_v1 = vsel %vm1201_vm1, %v17617_v33, -inf }
 0xcd9   : > { %8817 = vmax.xlane.f32.xlu0 %v8816_v10  ;;  %v8846_v10 = vsel %vm1201_vm1, %v17621_v35, -inf }
 0xcdc   : > { %8844 = vmax.xlane.f32.xlu1 %v8843_v54 }
 0xcdd   : > { %8841 = vmax.xlane.f32.xlu0 %v8840_v6 }
 0xce0   : > { %8826 = vmax.xlane.f32.xlu1 %v8825_v58 }
 0xce1   : > { %8823 = vmax.xlane.f32.xlu0 %v8822_v27 }
 0xce4   : > { %8850 = vmax.xlane.f32.xlu1 %v8849_v1 }
 0xce5   : > { %8847 = vmax.xlane.f32.xlu0 %v8846_v10 }
 0xce7   : > { %v17643_v54 = vpop.f32.mrb[130].mxu0 }
 0xce8   : > { %v17645_v17 = vpop.f32.mrb[142].mxu1  ;;  %v17647_v6 = vpop.f32.mrb[131].mxu0  ;;  %v8855_v58 = vsel %vm1201_vm1, %v17643_v54, -inf }
 0xce9   : > { %18554 = vst [vmem:[#allocation43_spill] sm:$0xff] %v17645_v17  ;;  %18555 = vst [vmem:[#allocation44_spill] sm:$0xff] %v17647_v6  ;;  %v17649_v14 = vpop.f32.mrb[143].mxu1  ;;  %8856 = vmax.xlane.f32.xlu1 %v8855_v58  ;;  %v8852_v27 = vsel %vm1201_vm1, %v17647_v6, -inf  ;;  %v8879_v56 = vsel %vm1201_vm1, %v17645_v17, -inf }
 0xcea   : > { %18556 = vst [vmem:[#allocation45_spill] sm:$0xff] %v17649_v14  ;;  %8853 = vmax.xlane.f32.xlu0 %v8852_v27  ;;  %v8876_v42 = vsel %vm1201_vm1, %v17649_v14, -inf }
 0xceb   : > { %v17655_v1 = vpop.f32.mrb[132].mxu0 }
 0xcec   : > { %18557 = vst [vmem:[#allocation70_spill] sm:$0xff] %v17655_v1  ;;  %v17657_v29 = vpop.f32.mrb[144].mxu1  ;;  %v17659_v10 = vpop.f32.mrb[133].mxu0  ;;  %v8861_v34 = vsel %vm1201_vm1, %v17655_v1, -inf }
 0xced   : > { %18558 = vst [vmem:[#allocation71_spill] sm:$0xff] %v17657_v29  ;;  %18559 = vst [vmem:[#allocation72_spill] sm:$0xff] %v17659_v10  ;;  %v17661_v31 = vpop.f32.mrb[145].mxu1  ;;  %8880 = vmax.xlane.f32.xlu1 %v8879_v56  ;;  %v8858_v25 = vsel %vm1201_vm1, %v17659_v10, -inf  ;;  %v8885_v6 = vsel %vm1201_vm1, %v17657_v29, -inf }
 0xcee   : > { %8877 = vmax.xlane.f32.xlu0 %v8876_v42  ;;  %v8882_v1 = vsel %vm1201_vm1, %v17661_v31, -inf }
 0xcef   : > { %v17667_v58 = vpop.f32.mrb[134].mxu0 }
 0xcf0   : > { %18560 = vst [vmem:[#allocation73_spill] sm:$0xff] %v17667_v58  ;;  %v17669_v22 = vpop.f32.mrb[146].mxu1  ;;  %v17671_v27 = vpop.f32.mrb[135].mxu0 }
 0xcf1   : > { %18561 = vst [vmem:[#allocation74_spill] sm:$0xff] %v17669_v22  ;;  %18562 = vst [vmem:[#allocation75_spill] sm:$0xff] %v17671_v27  ;;  %v17673_v48 = vpop.f32.mrb[147].mxu1  ;;  %8862 = vmax.xlane.f32.xlu1 %v8861_v34  ;;  %v8867_v34 = vsel %vm1201_vm1, %v17667_v58, -inf  ;;  %v8891_v10 = vsel %vm1201_vm1, %v17669_v22, -inf }
 0xcf2   : > { %18563 = vst [vmem:[#allocation76_spill] sm:$0xff] %v17673_v48  ;;  %8859 = vmax.xlane.f32.xlu0 %v8858_v25  ;;  %v8864_v25 = vsel %vm1201_vm1, %v17671_v27, -inf  ;;  %v8888_v29 = vsel %vm1201_vm1, %v17673_v48, -inf }
 0xcf3   : > { %v17679_v56 = vpop.f32.mrb[136].mxu0 }
 0xcf4   : > { %18564 = vst [vmem:[#allocation77_spill] sm:$0xff] %v17679_v56  ;;  %v17681_v14 = vpop.f32.mrb[148].mxu1  ;;  %v17683_v42 = vpop.f32.mrb[137].mxu0 }
 0xcf5   : > { %18565 = vst [vmem:[#allocation78_spill] sm:$0xff] %v17681_v14  ;;  %18566 = vst [vmem:[#allocation79_spill] sm:$0xff] %v17683_v42  ;;  %v17685_v17 = vpop.f32.mrb[149].mxu1  ;;  %8886 = vmax.xlane.f32.xlu1 %v8885_v6  ;;  %v8873_v6 = vsel %vm1201_vm1, %v17679_v56, -inf }
 0xcf6   : > { %18567 = vst [vmem:[#allocation80_spill] sm:$0xff] %v17685_v17  ;;  %8883 = vmax.xlane.f32.xlu0 %v8882_v1  ;;  %v8870_v1 = vsel %vm1201_vm1, %v17683_v42, -inf }
 0xcf9   : > { %8868 = vmax.xlane.f32.xlu1 %v8867_v34  ;;  %v8897_v34 = vsel %vm1201_vm1, %v17681_v14, -inf }
 0xcfa   : > { %8865 = vmax.xlane.f32.xlu0 %v8864_v25  ;;  %v8894_v25 = vsel %vm1201_vm1, %v17685_v17, -inf }
 0xcfd   : > { %8892 = vmax.xlane.f32.xlu1 %v8891_v10 }
 0xcfe   : > { %8889 = vmax.xlane.f32.xlu0 %v8888_v29 }
 0xd01   : > { %8874 = vmax.xlane.f32.xlu1 %v8873_v6 }
 0xd02   : > { %8871 = vmax.xlane.f32.xlu0 %v8870_v1 }
 0xd05   : > { %8898 = vmax.xlane.f32.xlu1 %v8897_v34 }
 0xd06   : > { %8895 = vmax.xlane.f32.xlu0 %v8894_v25 }
 0xd12   : > { %v8713_v10 = vpop.xlane.xlu1 %8712 }
 0xd13   : > { %v8901_v48 = vsub.f32 %v17451_v28, %v8713_v10  ;;  %v8710_v29 = vpop.xlane.xlu0 %8709 }
 0xd14   : > { %v8900_v22 = vsub.f32 %v17455_v32, %v8710_v29 }
 0xd15   : > { %v8966_v56 = vmul.f32 1.442695, %v8901_v48 }
 0xd16   : > { %v8964_v6 = vmul.f32 1.442695, %v8900_v22  ;;  %v8737_v27 = vpop.xlane.xlu1 %8736 }
 0xd17   : > { %14386 = vpow2.f32 %v8966_v56  ;;  %v8909_v1 = vsub.f32 %v17453_v26, %v8737_v27  ;;  %v8734_v42 = vpop.xlane.xlu0 %8733 }
 0xd18   : > { %14388 = vpow2.f32 %v8964_v6  ;;  %v8908_v34 = vsub.f32 %v17457_v55, %v8734_v42 }
 0xd19   : > { %v8982_v14 = vmul.f32 1.442695, %v8909_v1 }
 0xd1a   : > { %v8980_v58 = vmul.f32 1.442695, %v8908_v34  ;;  %v8719_v17 = vpop.xlane.xlu1 %8718 }
 0xd1b   : > { %14390 = vpow2.f32 %v8982_v14  ;;  %v8903_v25 = vsub.f32 %v17463_v8, %v8719_v17  ;;  %v8716_v28 = vpop.xlane.xlu0 %8715 }
 0xd1c   : > { %14392 = vpow2.f32 %v8980_v58  ;;  %v8902_v32 = vsub.f32 %v17467_v46, %v8716_v28 }
 0xd1d   : > { %v8970_v48 = vmul.f32 1.442695, %v8903_v25 }
 0xd1e   : > { %v8968_v22 = vmul.f32 1.442695, %v8902_v32  ;;  %v8743_v10 = vpop.xlane.xlu1 %8742 }
 0xd1f   : > { %14394 = vpow2.f32 %v8970_v48  ;;  %v8911_v26 = vsub.f32 %v17465_v57, %v8743_v10  ;;  %v8740_v27 = vpop.xlane.xlu0 %8739 }
 0xd20   : > { %14396 = vpow2.f32 %v8968_v22  ;;  %v8910_v55 = vsub.f32 %v17469_v59, %v8740_v27 }
 0xd21   : > { %v17715_v56 = vpop.eup %14386  ;;  %v8986_v42 = vmul.f32 1.442695, %v8911_v26 }
 0xd22   : > { %v17717_v14 = vpop.eup %14388  ;;  %v8984_v17 = vmul.f32 1.442695, %v8910_v55  ;;  %v8725_v8 = vpop.xlane.xlu1 %8724  ;;  %v9095_v46 = vsel %vm1201_vm1, %v17715_v56, 0.0 }
 0xd23   : > { %14398 = vpow2.f32 %v8986_v42  ;;  %v8905_v58 = vsub.f32 %v17475_v37, %v8725_v8  ;;  %v8722_v29 = vpop.xlane.xlu0 %8721  ;;  %9096 = vadd.xlane.f32.xlu1 %v9095_v46  ;;  %v9092_v57 = vsel %vm1201_vm1, %v17717_v14, 0.0 }
 0xd24   : > { %14400 = vpow2.f32 %v8984_v17  ;;  %v8904_v59 = vsub.f32 %v17479_v16, %v8722_v29  ;;  %9093 = vadd.xlane.f32.xlu0 %v9092_v57 }
 0xd25   : > { %v17725_v6 = vpop.eup %14390  ;;  %v8974_v1 = vmul.f32 1.442695, %v8905_v58 }
 0xd26   : > { %v17727_v34 = vpop.eup %14392  ;;  %v8972_v25 = vmul.f32 1.442695, %v8904_v59  ;;  %v8749_v28 = vpop.xlane.xlu1 %8748  ;;  %v9119_v32 = vsel %vm1201_vm1, %v17725_v6, 0.0 }
 0xd27   : > { %14402 = vpow2.f32 %v8974_v1  ;;  %v8913_v37 = vsub.f32 %v17477_v47, %v8749_v28  ;;  %v8746_v48 = vpop.xlane.xlu0 %8745  ;;  %9120 = vadd.xlane.f32.xlu1 %v9119_v32  ;;  %v9116_v22 = vsel %vm1201_vm1, %v17727_v34, 0.0 }
 0xd28   : > { %14404 = vpow2.f32 %v8972_v25  ;;  %v8912_v16 = vsub.f32 %v17481_v50, %v8746_v48  ;;  %9117 = vadd.xlane.f32.xlu0 %v9116_v22 }
 0xd29   : > { %v17735_v10 = vpop.eup %14394  ;;  %v8990_v26 = vmul.f32 1.442695, %v8913_v37 }
 0xd2a   : > { %v17737_v27 = vpop.eup %14396  ;;  %v8988_v55 = vmul.f32 1.442695, %v8912_v16  ;;  %v8731_v42 = vpop.xlane.xlu1 %8730  ;;  %v9101_v17 = vsel %vm1201_vm1, %v17735_v10, 0.0 }
 0xd2b   : > { %14406 = vpow2.f32 %v8990_v26  ;;  %v8907_v47 = vsub.f32 %v17487_v61, %v8731_v42  ;;  %v8728_v8 = vpop.xlane.xlu0 %8727  ;;  %9102 = vadd.xlane.f32.xlu1 %v9101_v17  ;;  %v9098_v46 = vsel %vm1201_vm1, %v17737_v27, 0.0 }
 0xd2c   : > { %14408 = vpow2.f32 %v8988_v55  ;;  %v8906_v50 = vsub.f32 %v17491_v60, %v8728_v8  ;;  %9099 = vadd.xlane.f32.xlu0 %v9098_v46 }
 0xd2d   : > { %v17745_v58 = vpop.eup %14398  ;;  %v8978_v29 = vmul.f32 1.442695, %v8907_v47 }
 0xd2e   : > { %v17747_v57 = vpop.eup %14400  ;;  %v8976_v59 = vmul.f32 1.442695, %v8906_v50  ;;  %v8755_v1 = vpop.xlane.xlu1 %8754  ;;  %v9125_v25 = vsel %vm1201_vm1, %v17745_v58, 0.0 }
 0xd2f   : > { %14410 = vpow2.f32 %v8978_v29  ;;  %v8915_v61 = vsub.f32 %v17489_v19, %v8755_v1  ;;  %v8752_v28 = vpop.xlane.xlu0 %8751  ;;  %9126 = vadd.xlane.f32.xlu1 %v9125_v25  ;;  %v9122_v32 = vsel %vm1201_vm1, %v17747_v57, 0.0 }
 0xd30   : > { %14412 = vpow2.f32 %v8976_v59  ;;  %v8914_v60 = vsub.f32 %v17493_v5, %v8752_v28  ;;  %9123 = vadd.xlane.f32.xlu0 %v9122_v32 }
 0xd31   : > { %v17755_v37 = vpop.eup %14402  ;;  %v8994_v48 = vmul.f32 1.442695, %v8915_v61 }
 0xd32   : > { %v17757_v22 = vpop.eup %14404  ;;  %v8992_v16 = vmul.f32 1.442695, %v8914_v60  ;;  %v9107_v26 = vsel %vm1201_vm1, %v17755_v37, 0.0 }
 0xd33   : > { %14414 = vpow2.f32 %v8994_v48  ;;  %9108 = vadd.xlane.f32.xlu1 %v9107_v26  ;;  %v9104_v55 = vsel %vm1201_vm1, %v17757_v22, 0.0 }
 0xd34   : > { %v8761_v19 = vpop.xlane.xlu1 %8760  ;;  %14416 = vpow2.f32 %v8992_v16  ;;  %9105 = vadd.xlane.f32.xlu0 %v9104_v55 }
 0xd35   : > { %v8917_v42 = vsub.f32 %v17515_v40, %v8761_v19  ;;  %v8758_v5 = vpop.xlane.xlu0 %8757  ;;  %v17764_v17 = vpop.eup %14406 }
 0xd36   : > { %v8916_v47 = vsub.f32 %v17519_v21, %v8758_v5  ;;  %v17767_v8 = vpop.eup %14408  ;;  %v9131_v50 = vsel %vm1201_vm1, %v17764_v17, 0.0 }
 0xd37   : > { %v8998_v46 = vmul.f32 1.442695, %v8917_v42  ;;  %9132 = vadd.xlane.f32.xlu1 %v9131_v50  ;;  %v9128_v1 = vsel %vm1201_vm1, %v17767_v8, 0.0 }
 0xd38   : > { %v8996_v29 = vmul.f32 1.442695, %v8916_v47  ;;  %v8785_v59 = vpop.xlane.xlu1 %8784  ;;  %9129 = vadd.xlane.f32.xlu0 %v9128_v1 }
 0xd39   : > { %14418 = vpow2.f32 %v8998_v46  ;;  %v8925_v40 = vsub.f32 %v17517_v36, %v8785_v59  ;;  %v8782_v25 = vpop.xlane.xlu0 %8781  ;;  %v17774_v61 = vpop.eup %14410 }
 0xd3a   : > { %14420 = vpow2.f32 %v8996_v29  ;;  %v8924_v21 = vsub.f32 %v17521_v62, %v8782_v25  ;;  %v17777_v28 = vpop.eup %14412  ;;  %v9113_v60 = vsel %vm1201_vm1, %v17774_v61, 0.0 }
 0xd3b   : > { %v9014_v32 = vmul.f32 1.442695, %v8925_v40  ;;  %9114 = vadd.xlane.f32.xlu1 %v9113_v60  ;;  %v9110_v26 = vsel %vm1201_vm1, %v17777_v28, 0.0 }
 0xd3c   : > { %v9012_v48 = vmul.f32 1.442695, %v8924_v21  ;;  %v8767_v16 = vpop.xlane.xlu1 %8766  ;;  %9111 = vadd.xlane.f32.xlu0 %v9110_v26 }
 0xd3d   : > { %14422 = vpow2.f32 %v9014_v32  ;;  %v8919_v36 = vsub.f32 %v17527_v2, %v8767_v16  ;;  %v8764_v19 = vpop.xlane.xlu0 %8763  ;;  %v17784_v55 = vpop.eup %14414 }
 0xd3e   : > { %14424 = vpow2.f32 %v9012_v48  ;;  %v8918_v62 = vsub.f32 %v17531_v13, %v8764_v19  ;;  %v17787_v42 = vpop.eup %14416  ;;  %v9137_v47 = vsel %vm1201_vm1, %v17784_v55, 0.0 }
 0xd3f   : > { %v9002_v5 = vmul.f32 1.442695, %v8919_v36  ;;  %9138 = vadd.xlane.f32.xlu1 %v9137_v47  ;;  %v9134_v29 = vsel %vm1201_vm1, %v17787_v42, 0.0 }
 0xd40   : > { %v9000_v46 = vmul.f32 1.442695, %v8918_v62  ;;  %v8791_v50 = vpop.xlane.xlu1 %8790  ;;  %9135 = vadd.xlane.f32.xlu0 %v9134_v29 }
 0xd41   : > { %14426 = vpow2.f32 %v9002_v5  ;;  %v8927_v2 = vsub.f32 %v17529_v49, %v8791_v50  ;;  %v8788_v59 = vpop.xlane.xlu0 %8787 }
 0xd42   : > { %14428 = vpow2.f32 %v9000_v46  ;;  %v8926_v13 = vsub.f32 %v17533_v7, %v8788_v59 }
 0xd43   : > { %v17795_v1 = vpop.eup %14418  ;;  %v9018_v40 = vmul.f32 1.442695, %v8927_v2 }
 0xd44   : > { %v17797_v25 = vpop.eup %14420  ;;  %v9016_v21 = vmul.f32 1.442695, %v8926_v13  ;;  %v8773_v32 = vpop.xlane.xlu1 %8772  ;;  %v9143_v60 = vsel %vm1201_vm1, %v17795_v1, 0.0 }
 0xd45   : > { %14430 = vpow2.f32 %v9018_v40  ;;  %v8921_v48 = vsub.f32 %v17539_v18, %v8773_v32  ;;  %v8770_v16 = vpop.xlane.xlu0 %8769  ;;  %9144 = vadd.xlane.f32.xlu1 %v9143_v60  ;;  %v9140_v49 = vsel %vm1201_vm1, %v17797_v25, 0.0 }
 0xd46   : > { %14432 = vpow2.f32 %v9016_v21  ;;  %v8920_v7 = vsub.f32 %v17543_v30, %v8770_v16  ;;  %9141 = vadd.xlane.f32.xlu0 %v9140_v49 }
 0xd47   : > { %v17805_v26 = vpop.eup %14422  ;;  %v9006_v36 = vmul.f32 1.442695, %v8921_v48 }
 0xd48   : > { %v17807_v19 = vpop.eup %14424  ;;  %v9004_v62 = vmul.f32 1.442695, %v8920_v7  ;;  %v8797_v5 = vpop.xlane.xlu1 %8796  ;;  %v9167_v47 = vsel %vm1201_vm1, %v17805_v26, 0.0 }
 0xd49   : > { %14434 = vpow2.f32 %v9006_v36  ;;  %v8929_v18 = vsub.f32 %v17541_v24, %v8797_v5  ;;  %v8794_v46 = vpop.xlane.xlu0 %8793  ;;  %9168 = vadd.xlane.f32.xlu1 %v9167_v47  ;;  %v9164_v50 = vsel %vm1201_vm1, %v17807_v19, 0.0 }
 0xd4a   : > { %14436 = vpow2.f32 %v9004_v62  ;;  %v8928_v30 = vsub.f32 %v17545_v4, %v8794_v46  ;;  %9165 = vadd.xlane.f32.xlu0 %v9164_v50 }
 0xd4b   : > { %v17815_v29 = vpop.eup %14426  ;;  %v9022_v2 = vmul.f32 1.442695, %v8929_v18 }
 0xd4c   : > { %v17817_v59 = vpop.eup %14428  ;;  %v9020_v13 = vmul.f32 1.442695, %v8928_v30  ;;  %v8779_v40 = vpop.xlane.xlu1 %8778  ;;  %v9149_v21 = vsel %vm1201_vm1, %v17815_v29, 0.0 }
 0xd4d   : > { %14438 = vpow2.f32 %v9022_v2  ;;  %v8923_v24 = vsub.f32 %v17551_v52, %v8779_v40  ;;  %v8776_v32 = vpop.xlane.xlu0 %8775  ;;  %9150 = vadd.xlane.f32.xlu1 %v9149_v21  ;;  %v9146_v60 = vsel %vm1201_vm1, %v17817_v59, 0.0 }
 0xd4e   : > { %14440 = vpow2.f32 %v9020_v13  ;;  %v8922_v4 = vsub.f32 %v17555_v51, %v8776_v32  ;;  %9147 = vadd.xlane.f32.xlu0 %v9146_v60 }
 0xd4f   : > { %v17825_v48 = vpop.eup %14430  ;;  %v9010_v16 = vmul.f32 1.442695, %v8923_v24 }
 0xd50   : > { %v17827_v49 = vpop.eup %14432  ;;  %v9008_v7 = vmul.f32 1.442695, %v8922_v4  ;;  %v8803_v36 = vpop.xlane.xlu1 %8802  ;;  %v9173_v62 = vsel %vm1201_vm1, %v17825_v48, 0.0 }
 0xd51   : > { %14442 = vpow2.f32 %v9010_v16  ;;  %v8931_v52 = vsub.f32 %v17553_v39, %v8803_v36  ;;  %v8800_v5 = vpop.xlane.xlu0 %8799  ;;  %9174 = vadd.xlane.f32.xlu1 %v9173_v62  ;;  %v9170_v47 = vsel %vm1201_vm1, %v17827_v49, 0.0 }
 0xd52   : > { %14444 = vpow2.f32 %v9008_v7  ;;  %v8930_v51 = vsub.f32 %v17557_v3, %v8800_v5  ;;  %9171 = vadd.xlane.f32.xlu0 %v9170_v47 }
 0xd53   : > { %v17835_v18 = vpop.eup %14434  ;;  %v9026_v46 = vmul.f32 1.442695, %v8931_v52 }
 0xd54   : > { %v17837_v50 = vpop.eup %14436  ;;  %v9024_v30 = vmul.f32 1.442695, %v8930_v51  ;;  %v9155_v2 = vsel %vm1201_vm1, %v17835_v18, 0.0 }
 0xd55   : > { %14446 = vpow2.f32 %v9026_v46  ;;  %v8809_v39 = vpop.xlane.xlu1 %8808  ;;  %9156 = vadd.xlane.f32.xlu1 %v9155_v2  ;;  %v9152_v13 = vsel %vm1201_vm1, %v17837_v50, 0.0 }
 0xd56   : > { %14448 = vpow2.f32 %v9024_v30  ;;  %v8933_v40 = vsub.f32 %v17579_v43, %v8809_v39  ;;  %v8806_v3 = vpop.xlane.xlu0 %8805  ;;  %9153 = vadd.xlane.f32.xlu0 %v9152_v13 }
 0xd57   : > { %v17844_v21 = vpop.eup %14438  ;;  %v8932_v24 = vsub.f32 %v17583_v11, %v8806_v3 }
 0xd58   : > { %v17847_v32 = vpop.eup %14440  ;;  %v9030_v60 = vmul.f32 1.442695, %v8933_v40  ;;  %v9179_v4 = vsel %vm1201_vm1, %v17844_v21, 0.0 }
 0xd59   : > { %v9028_v16 = vmul.f32 1.442695, %v8932_v24  ;;  %v8833_v7 = vpop.xlane.xlu1 %8832  ;;  %9180 = vadd.xlane.f32.xlu1 %v9179_v4  ;;  %v9176_v36 = vsel %vm1201_vm1, %v17847_v32, 0.0 }
 0xd5a   : > { %14450 = vpow2.f32 %v9030_v60  ;;  %v8941_v43 = vsub.f32 %v17581_v15, %v8833_v7  ;;  %v8830_v62 = vpop.xlane.xlu0 %8829  ;;  %9177 = vadd.xlane.f32.xlu0 %v9176_v36 }
 0xd5b   : > { %v17854_v52 = vpop.eup %14442  ;;  %14452 = vpow2.f32 %v9028_v16  ;;  %v8940_v11 = vsub.f32 %v17585_v53, %v8830_v62 }
 0xd5c   : > { %v17857_v5 = vpop.eup %14444  ;;  %v9046_v47 = vmul.f32 1.442695, %v8941_v43  ;;  %v9161_v51 = vsel %vm1201_vm1, %v17854_v52, 0.0 }
 0xd5d   : > { %v9044_v46 = vmul.f32 1.442695, %v8940_v11  ;;  %v8815_v30 = vpop.xlane.xlu1 %8814  ;;  %9162 = vadd.xlane.f32.xlu1 %v9161_v51  ;;  %v9158_v2 = vsel %vm1201_vm1, %v17857_v5, 0.0 }
 0xd5e   : > { %14454 = vpow2.f32 %v9046_v47  ;;  %v8935_v15 = vsub.f32 %v17591_v41, %v8815_v30  ;;  %v8812_v39 = vpop.xlane.xlu0 %8811  ;;  %9159 = vadd.xlane.f32.xlu0 %v9158_v2 }
 0xd5f   : > { %v17864_v13 = vpop.eup %14446  ;;  %14456 = vpow2.f32 %v9044_v46  ;;  %v8934_v53 = vsub.f32 %v17595_v9, %v8812_v39 }
 0xd60   : > { %v17867_v40 = vpop.eup %14448  ;;  %v9034_v3 = vmul.f32 1.442695, %v8935_v15  ;;  %v9185_v24 = vsel %vm1201_vm1, %v17864_v13, 0.0 }
 0xd61   : > { %v9032_v60 = vmul.f32 1.442695, %v8934_v53  ;;  %v8839_v4 = vpop.xlane.xlu1 %8838  ;;  %9186 = vadd.xlane.f32.xlu1 %v9185_v24  ;;  %v9182_v16 = vsel %vm1201_vm1, %v17867_v40, 0.0 }
 0xd62   : > { %14458 = vpow2.f32 %v9034_v3  ;;  %v8943_v41 = vsub.f32 %v17593_v20, %v8839_v4  ;;  %v8836_v7 = vpop.xlane.xlu0 %8835  ;;  %9183 = vadd.xlane.f32.xlu0 %v9182_v16 }
 0xd63   : > { %14460 = vpow2.f32 %v9032_v60  ;;  %v8942_v9 = vsub.f32 %v17597_v63, %v8836_v7 }
 0xd64   : > { %v17875_v36 = vpop.eup %14450  ;;  %v9050_v43 = vmul.f32 1.442695, %v8943_v41 }
 0xd65   : > { %v17877_v62 = vpop.eup %14452  ;;  %v9048_v11 = vmul.f32 1.442695, %v8942_v9  ;;  %v8821_v47 = vpop.xlane.xlu1 %8820  ;;  %v9191_v51 = vsel %vm1201_vm1, %v17875_v36, 0.0 }
 0xd66   : > { %14462 = vpow2.f32 %v9050_v43  ;;  %v8937_v46 = vsub.f32 %v17603_v44, %v8821_v47  ;;  %v8818_v30 = vpop.xlane.xlu0 %8817  ;;  %9192 = vadd.xlane.f32.xlu1 %v9191_v51  ;;  %v9188_v20 = vsel %vm1201_vm1, %v17877_v62, 0.0 }
 0xd67   : > { %14464 = vpow2.f32 %v9048_v11  ;;  %v8936_v63 = vsub.f32 %v17607_v23, %v8818_v30  ;;  %9189 = vadd.xlane.f32.xlu0 %v9188_v20 }
 0xd68   : > { %v17885_v2 = vpop.eup %14454  ;;  %v9038_v15 = vmul.f32 1.442695, %v8937_v46 }
 0xd69   : > { %v17887_v39 = vpop.eup %14456  ;;  %v9036_v53 = vmul.f32 1.442695, %v8936_v63  ;;  %v8845_v3 = vpop.xlane.xlu1 %8844  ;;  %v9215_v24 = vsel %vm1201_vm1, %v17885_v2, 0.0 }
 0xd6a   : > { %14466 = vpow2.f32 %v9038_v15  ;;  %v8945_v44 = vsub.f32 %v17605_v12, %v8845_v3  ;;  %v8842_v60 = vpop.xlane.xlu0 %8841  ;;  %9216 = vadd.xlane.f32.xlu1 %v9215_v24  ;;  %v9212_v4 = vsel %vm1201_vm1, %v17887_v39, 0.0 }
 0xd6b   : > { %14468 = vpow2.f32 %v9036_v53  ;;  %v8944_v23 = vsub.f32 %v17609_v38, %v8842_v60  ;;  %9213 = vadd.xlane.f32.xlu0 %v9212_v4 }
 0xd6c   : > { %v17895_v16 = vpop.eup %14458  ;;  %v9054_v41 = vmul.f32 1.442695, %v8945_v44 }
 0xd6d   : > { %v17897_v7 = vpop.eup %14460  ;;  %v9052_v9 = vmul.f32 1.442695, %v8944_v23  ;;  %v8827_v43 = vpop.xlane.xlu1 %8826  ;;  %v9197_v11 = vsel %vm1201_vm1, %v17895_v16, 0.0 }
 0xd6e   : > { %14470 = vpow2.f32 %v9054_v41  ;;  %v8939_v12 = vsub.f32 %v17615_v45, %v8827_v43  ;;  %v8824_v47 = vpop.xlane.xlu0 %8823  ;;  %9198 = vadd.xlane.f32.xlu1 %v9197_v11  ;;  %v9194_v51 = vsel %vm1201_vm1, %v17897_v7, 0.0 }
 0xd6f   : > { %14472 = vpow2.f32 %v9052_v9  ;;  %v8938_v38 = vsub.f32 %v17619_v0, %v8824_v47  ;;  %9195 = vadd.xlane.f32.xlu0 %v9194_v51 }
 0xd70   : > { %v17905_v46 = vpop.eup %14462  ;;  %v9042_v30 = vmul.f32 1.442695, %v8939_v12  ;;  %v18568_v12 = vld [vmem:[#allocation44_spill] sm:$0xff] }
 0xd71   : > { %v17907_v20 = vpop.eup %14464  ;;  %v9040_v63 = vmul.f32 1.442695, %v8938_v38  ;;  %v8851_v15 = vpop.xlane.xlu1 %8850  ;;  %v9221_v53 = vsel %vm1201_vm1, %v17905_v46, 0.0 }
 0xd72   : > { %14474 = vpow2.f32 %v9042_v30  ;;  %v8947_v45 = vsub.f32 %v17617_v33, %v8851_v15  ;;  %v8848_v3 = vpop.xlane.xlu0 %8847  ;;  %9222 = vadd.xlane.f32.xlu1 %v9221_v53  ;;  %v9218_v24 = vsel %vm1201_vm1, %v17907_v20, 0.0 }
 0xd73   : > { %14476 = vpow2.f32 %v9040_v63  ;;  %v8946_v0 = vsub.f32 %v17621_v35, %v8848_v3  ;;  %9219 = vadd.xlane.f32.xlu0 %v9218_v24 }
 0xd74   : > { %v17915_v44 = vpop.eup %14466  ;;  %v9058_v60 = vmul.f32 1.442695, %v8947_v45 }
 0xd75   : > { %v17917_v4 = vpop.eup %14468  ;;  %v9056_v23 = vmul.f32 1.442695, %v8946_v0  ;;  %v9203_v41 = vsel %vm1201_vm1, %v17915_v44, 0.0  ;;  %v18570_v0 = vld [vmem:[#allocation45_spill] sm:$0xff] }
 0xd76   : > { %14478 = vpow2.f32 %v9058_v60  ;;  %v8857_v33 = vpop.xlane.xlu1 %8856  ;;  %9204 = vadd.xlane.f32.xlu1 %v9203_v41  ;;  %v9200_v9 = vsel %vm1201_vm1, %v17917_v4, 0.0 }
 0xd77   : > { %14480 = vpow2.f32 %v9056_v23  ;;  %v8949_v43 = vsub.f32 %v17643_v54, %v8857_v33  ;;  %v8854_v35 = vpop.xlane.xlu0 %8853  ;;  %9201 = vadd.xlane.f32.xlu0 %v9200_v9  ;;  %v18569_v54 = vld [vmem:[#allocation43_spill] sm:$0xff] }
 0xd78   : > { %v17924_v11 = vpop.eup %14470  ;;  %v8948_v47 = vsub.f32 %v18568_v12, %v8854_v35  ;;  %v18571_v12 = vld [vmem:[#allocation70_spill] sm:$0xff] }
 0xd79   : > { %v17927_v51 = vpop.eup %14472  ;;  %v9062_v38 = vmul.f32 1.442695, %v8949_v43  ;;  %v9227_v30 = vsel %vm1201_vm1, %v17924_v11, 0.0 }
 0xd7a   : > { %v9060_v63 = vmul.f32 1.442695, %v8948_v47  ;;  %v8881_v15 = vpop.xlane.xlu1 %8880  ;;  %9228 = vadd.xlane.f32.xlu1 %v9227_v30  ;;  %v9224_v53 = vsel %vm1201_vm1, %v17927_v51, 0.0 }
 0xd7b   : > { %14482 = vpow2.f32 %v9062_v38  ;;  %v8957_v45 = vsub.f32 %v18569_v54, %v8881_v15  ;;  %v8878_v3 = vpop.xlane.xlu0 %8877  ;;  %9225 = vadd.xlane.f32.xlu0 %v9224_v53 }
 0xd7c   : > { %v17934_v24 = vpop.eup %14474  ;;  %14484 = vpow2.f32 %v9060_v63  ;;  %v8956_v60 = vsub.f32 %v18570_v0, %v8878_v3  ;;  %v18573_v63 = vld [vmem:[#allocation72_spill] sm:$0xff] }
 0xd7d   : > { %v17937_v23 = vpop.eup %14476  ;;  %v9078_v41 = vmul.f32 1.442695, %v8957_v45  ;;  %v9209_v33 = vsel %vm1201_vm1, %v17934_v24, 0.0 }
 0xd7e   : > { %v9076_v9 = vmul.f32 1.442695, %v8956_v60  ;;  %v8863_v43 = vpop.xlane.xlu1 %8862  ;;  %9210 = vadd.xlane.f32.xlu1 %v9209_v33  ;;  %v9206_v35 = vsel %vm1201_vm1, %v17937_v23, 0.0 }
 0xd7f   : > { %14486 = vpow2.f32 %v9078_v41  ;;  %v8951_v47 = vsub.f32 %v18571_v12, %v8863_v43  ;;  %v8860_v38 = vpop.xlane.xlu0 %8859  ;;  %9207 = vadd.xlane.f32.xlu0 %v9206_v35  ;;  %v18574_v41 = vld [vmem:[#allocation71_spill] sm:$0xff] }
 0xd80   : > { %v17944_v30 = vpop.eup %14478  ;;  %14488 = vpow2.f32 %v9076_v9  ;;  %v8950_v15 = vsub.f32 %v18573_v63, %v8860_v38 }
 0xd81   : > { %18572 = vst [vmem:[#allocation44_spill] sm:$0xff] %v17944_v30  ;;  %v17947_v53 = vpop.eup %14480  ;;  %v9066_v54 = vmul.f32 1.442695, %v8951_v47  ;;  %v9233_v45 = vsel %vm1201_vm1, %v17944_v30, 0.0 }
 0xd82   : > { %v9064_v3 = vmul.f32 1.442695, %v8950_v15  ;;  %v8887_v0 = vpop.xlane.xlu1 %8886  ;;  %9234 = vadd.xlane.f32.xlu1 %v9233_v45  ;;  %v9230_v60 = vsel %vm1201_vm1, %v17947_v53, 0.0  ;;  %v18577_v45 = vld [vmem:[#allocation73_spill] sm:$0xff] }
 0xd83   : > { %14490 = vpow2.f32 %v9066_v54  ;;  %v8959_v33 = vsub.f32 %v18574_v41, %v8887_v0  ;;  %v8884_v43 = vpop.xlane.xlu0 %8883  ;;  %9231 = vadd.xlane.f32.xlu0 %v9230_v60 }
 0xd84   : > { %14492 = vpow2.f32 %v9064_v3  ;;  %v8958_v9 = vsub.f32 %v17661_v31, %v8884_v43  ;;  %v18578_v31 = vld [vmem:[#allocation75_spill] sm:$0xff] }
 0xd85   : > { %v17955_v35 = vpop.eup %14482  ;;  %v9082_v12 = vmul.f32 1.442695, %v8959_v33 }
 0xd86   : > { %18575 = vst [vmem:[#allocation43_spill] sm:$0xff] %v17955_v35  ;;  %v17957_v47 = vpop.eup %14484  ;;  %v9080_v38 = vmul.f32 1.442695, %v8958_v9  ;;  %v8869_v63 = vpop.xlane.xlu1 %8868  ;;  %v9239_v15 = vsel %vm1201_vm1, %v17955_v35, 0.0 }
 0xd87   : > { %18576 = vst [vmem:[#allocation45_spill] sm:$0xff] %v17957_v47  ;;  %14494 = vpow2.f32 %v9082_v12  ;;  %v8953_v54 = vsub.f32 %v18577_v45, %v8869_v63  ;;  %v8866_v30 = vpop.xlane.xlu0 %8865  ;;  %9240 = vadd.xlane.f32.xlu1 %v9239_v15  ;;  %v9236_v3 = vsel %vm1201_vm1, %v17957_v47, 0.0  ;;  %v18581_v63 = vld [vmem:[#allocation74_spill] sm:$0xff] }
 0xd88   : > { %14496 = vpow2.f32 %v9080_v38  ;;  %v8952_v0 = vsub.f32 %v18578_v31, %v8866_v30  ;;  %9237 = vadd.xlane.f32.xlu0 %v9236_v3  ;;  %v18582_v30 = vld [vmem:[#allocation76_spill] sm:$0xff] }
 0xd89   : > { %v17965_v60 = vpop.eup %14486  ;;  %v9070_v41 = vmul.f32 1.442695, %v8953_v54 }
 0xd8a   : > { %18579 = vst [vmem:[#allocation70_spill] sm:$0xff] %v17965_v60  ;;  %v17967_v33 = vpop.eup %14488  ;;  %v9068_v43 = vmul.f32 1.442695, %v8952_v0  ;;  %v8893_v9 = vpop.xlane.xlu1 %8892  ;;  %v9263_v12 = vsel %vm1201_vm1, %v17965_v60, 0.0 }
 0xd8b   : > { %18580 = vst [vmem:[#allocation72_spill] sm:$0xff] %v17967_v33  ;;  %14498 = vpow2.f32 %v9070_v41  ;;  %v8961_v15 = vsub.f32 %v18581_v63, %v8893_v9  ;;  %v8890_v45 = vpop.xlane.xlu0 %8889  ;;  %9264 = vadd.xlane.f32.xlu1 %v9263_v12  ;;  %v9260_v38 = vsel %vm1201_vm1, %v17967_v33, 0.0  ;;  %v18584_v9 = vld [vmem:[#allocation77_spill] sm:$0xff] }
 0xd8c   : > { %14500 = vpow2.f32 %v9068_v43  ;;  %v8960_v3 = vsub.f32 %v18582_v30, %v8890_v45  ;;  %9261 = vadd.xlane.f32.xlu0 %v9260_v38  ;;  %v18585_v45 = vld [vmem:[#allocation79_spill] sm:$0xff] }
 0xd8d   : > { %v17975_v54 = vpop.eup %14490  ;;  %v9086_v31 = vmul.f32 1.442695, %v8961_v15 }
 0xd8e   : > { %18583 = vst [vmem:[#allocation71_spill] sm:$0xff] %v17975_v54  ;;  %v17977_v0 = vpop.eup %14492  ;;  %v9084_v35 = vmul.f32 1.442695, %v8960_v3  ;;  %v8875_v47 = vpop.xlane.xlu1 %8874  ;;  %v9245_v41 = vsel %vm1201_vm1, %v17975_v54, 0.0 }
 0xd8f   : > { %14502 = vpow2.f32 %v9086_v31  ;;  %v8955_v12 = vsub.f32 %v18584_v9, %v8875_v47  ;;  %9246 = vadd.xlane.f32.xlu1 %v9245_v41  ;;  %v8872_v63 = vpop.xlane.xlu0 %8871  ;;  %v9242_v43 = vsel %vm1201_vm1, %v17977_v0, 0.0  ;;  %v18587_v47 = vld [vmem:[#allocation78_spill] sm:$0xff] }
 0xd90   : > { %14504 = vpow2.f32 %v9084_v35  ;;  %v8954_v38 = vsub.f32 %v18585_v45, %v8872_v63  ;;  %9243 = vadd.xlane.f32.xlu0 %v9242_v43  ;;  %v18588_v63 = vld [vmem:[#allocation80_spill] sm:$0xff] }
 0xd91   : > { %v17985_v15 = vpop.eup %14494  ;;  %v9074_v30 = vmul.f32 1.442695, %v8955_v12 }
 0xd92   : > { %18586 = vst [vmem:[#allocation73_spill] sm:$0xff] %v17985_v15  ;;  %v17987_v3 = vpop.eup %14496  ;;  %v9072_v60 = vmul.f32 1.442695, %v8954_v38  ;;  %v8899_v33 = vpop.xlane.xlu1 %8898  ;;  %v9269_v31 = vsel %vm1201_vm1, %v17985_v15, 0.0 }
 0xd93   : > { %14506 = vpow2.f32 %v9074_v30  ;;  %v8963_v41 = vsub.f32 %v18587_v47, %v8899_v33  ;;  %9270 = vadd.xlane.f32.xlu1 %v9269_v31  ;;  %v8896_v9 = vpop.xlane.xlu0 %8895  ;;  %v9266_v35 = vsel %vm1201_vm1, %v17987_v3, 0.0 }
 0xd94   : > { %14508 = vpow2.f32 %v9072_v60  ;;  %v8962_v43 = vsub.f32 %v18588_v63, %v8896_v9  ;;  %9267 = vadd.xlane.f32.xlu0 %v9266_v35 }
 0xd95   : > { %v17995_v12 = vpop.eup %14498  ;;  %v9090_v45 = vmul.f32 1.442695, %v8963_v41 }
 0xd96   : > { %18589 = vst [vmem:[#allocation75_spill] sm:$0xff] %v17995_v12  ;;  %v17997_v38 = vpop.eup %14500  ;;  %v9088_v54 = vmul.f32 1.442695, %v8962_v43  ;;  %v9251_v30 = vsel %vm1201_vm1, %v17995_v12, 0.0 }
 0xd97   : > { %18590 = vst [vmem:[#allocation74_spill] sm:$0xff] %v17997_v38  ;;  %14510 = vpow2.f32 %v9090_v45  ;;  %9252 = vadd.xlane.f32.xlu1 %v9251_v30  ;;  %v9248_v33 = vsel %vm1201_vm1, %v17997_v38, 0.0 }
 0xd98   : > { %14512 = vpow2.f32 %v9088_v54  ;;  %9249 = vadd.xlane.f32.xlu0 %v9248_v33 }
 0xd99   : > { %v18003_v60 = vpop.eup %14502 }
 0xd9a   : > { %18591 = vst [vmem:[#allocation76_spill] sm:$0xff] %v18003_v60  ;;  %v18005_v31 = vpop.eup %14504  ;;  %v9275_v47 = vsel %vm1201_vm1, %v18003_v60, 0.0 }
 0xd9b   : > { %18592 = vst [vmem:[#allocation77_spill] sm:$0xff] %v18005_v31  ;;  %9276 = vadd.xlane.f32.xlu1 %v9275_v47  ;;  %v9272_v41 = vsel %vm1201_vm1, %v18005_v31, 0.0 }
 0xd9c   : > { %9273 = vadd.xlane.f32.xlu0 %v9272_v41 }
 0xd9d   : > { %v18011_v9 = vpop.eup %14506 }
 0xd9e   : > { %18593 = vst [vmem:[#allocation79_spill] sm:$0xff] %v18011_v9  ;;  %v18013_v35 = vpop.eup %14508  ;;  %v9257_v54 = vsel %vm1201_vm1, %v18011_v9, 0.0 }
 0xd9f   : > { %18594 = vst [vmem:[#allocation78_spill] sm:$0xff] %v18013_v35  ;;  %9258 = vadd.xlane.f32.xlu1 %v9257_v54  ;;  %v9254_v63 = vsel %vm1201_vm1, %v18013_v35, 0.0 }
 0xda0   : > { %9255 = vadd.xlane.f32.xlu0 %v9254_v63 }
 0xda1   : > { %v18019_v43 = vpop.eup %14510 }
 0xda2   : > { %18595 = vst [vmem:[#allocation80_spill] sm:$0xff] %v18019_v43  ;;  %v18021_v45 = vpop.eup %14512  ;;  %v9281_v30 = vsel %vm1201_vm1, %v18019_v43, 0.0 }
 0xda3   : > { %18596 = vst [vmem:[#allocation81_spill] sm:$0xff] %v18021_v45  ;;  %9282 = vadd.xlane.f32.xlu1 %v9281_v30  ;;  %v9278_v33 = vsel %vm1201_vm1, %v18021_v45, 0.0 }
 0xda4   : > { %9279 = vadd.xlane.f32.xlu0 %v9278_v33 }
 0xdb0   : > { %v9097_v47 = vpop.xlane.xlu1 %9096 }
 0xdb1   : > { %14514 = vrcp.f32 %v9097_v47  ;;  %v9094_v41 = vpop.xlane.xlu0 %9093  ;;  %v18597_v47 = vld [vmem:[#allocation46_spill] sm:$0xff] }
 0xdb2   : > { %14516 = vrcp.f32 %v9094_v41 }
 0xdb4   : > { %v9121_v54 = vpop.xlane.xlu1 %9120 }
 0xdb5   : > { %v9118_v9 = vpop.xlane.xlu0 %9117 }
 0xdb8   : > { %v9103_v35 = vpop.xlane.xlu1 %9102 }
 0xdb9   : > { %14518 = vrcp.f32 %v9103_v35  ;;  %v9100_v63 = vpop.xlane.xlu0 %9099  ;;  %v18598_v35 = vld [vmem:[#allocation48_spill] sm:$0xff] }
 0xdba   : > { %14520 = vrcp.f32 %v9100_v63 }
 0xdbb   : > { %v14515_v60 = vpop.eup %14514 }
 0xdbc   : > { %v14517_v31 = vpop.eup %14516  ;;  %v9127_v12 = vpop.xlane.xlu1 %9126  ;;  %v9349_v43 = vmul.f32 %v14515_v60, %v17715_v56  ;;  %v18599_v60 = vld [vmem:[#allocation49_spill] sm:$0xff] }
 0xdbd   : > { %v9124_v38 = vpop.xlane.xlu0 %9123  ;;  %v9348_v30 = vmul.f32 %v14517_v31, %v17717_v14 }
 0xdbf   : > { %13029 = vmatprep.mubr.msk.f32.mxu0 %vm1201_vm1, %v9348_v30 }
 0xdc0   : > { %v9109_v33 = vpop.xlane.xlu1 %9108  ;;  %13030 = vmatmul.mubr.msk.f32.vlgmr.msra.gmra.mrb[138].mxu0 %vm1201_vm1, %v9349_v43 }
 0xdc1   : > { %14522 = vrcp.f32 %v9109_v33  ;;  %13942 = vmatpush3.bf16.msra.mxu0 %v18597_v47  ;;  %v9106_v41 = vpop.xlane.xlu0 %9105  ;;  %v18600_v33 = vld [vmem:[#allocation50_spill] sm:$0xff] }
 0xdc2   : > { %13944 = vmatprep.subr.bf16.mxu0 %v18598_v35  ;;  %14524 = vrcp.f32 %v9106_v41 }
 0xdc3   : > { %v14519_v63 = vpop.eup %14518  ;;  %14526 = vrcp.f32 %v9118_v9  ;;  %v18601_v9 = vld [vmem:[#allocation51_spill] sm:$0xff] }
 0xdc4   : > { %v14521_v45 = vpop.eup %14520  ;;  %v9133_v15 = vpop.xlane.xlu1 %9132  ;;  %v9351_v31 = vmul.f32 %v14519_v63, %v17735_v10 }
 0xdc5   : > { %13946 = vmatpush3.bf16.msra.mxu0 %v18598_v35  ;;  %v9130_v14 = vpop.xlane.xlu0 %9129  ;;  %v9350_v56 = vmul.f32 %v14521_v45, %v17737_v27 }
 0xdc6   : > { %13948 = vmatprep.subr.bf16.mxu0 %v18599_v60 }
 0xdc7   : > { %13032 = vmatprep.mubr.msk.f32.mxu0 %vm1201_vm1, %v9350_v56 }
 0xdc8   : > { %v9115_v43 = vpop.xlane.xlu1 %9114  ;;  %13033 = vmatmul.mubr.msk.f32.gmra.mrb[140].mxu0 %vm1201_vm1, %v9351_v31 }
 0xdc9   : > { %14528 = vrcp.f32 %v9115_v43  ;;  %13950 = vmatpush3.bf16.msra.mxu0 %v18599_v60  ;;  %v9112_v30 = vpop.xlane.xlu0 %9111 }
 0xdca   : > { %13952 = vmatprep.subr.bf16.mxu0 %v18600_v33  ;;  %14530 = vrcp.f32 %v9112_v30 }
 0xdcb   : > { %v14523_v47 = vpop.eup %14522  ;;  %14532 = vrcp.f32 %v9121_v54 }
 0xdcc   : > { %v14525_v41 = vpop.eup %14524  ;;  %v9139_v27 = vpop.xlane.xlu1 %9138  ;;  %14534 = vrcp.f32 %v9124_v38  ;;  %v9353_v35 = vmul.f32 %v14523_v47, %v17755_v37 }
 0xdcd   : > { %13954 = vmatpush3.bf16.msra.mxu0 %v18600_v33  ;;  %v9136_v10 = vpop.xlane.xlu0 %9135  ;;  %v9352_v45 = vmul.f32 %v14525_v41, %v17757_v22  ;;  %14536 = vrcp.f32 %v9127_v12  ;;  %v14527_v56 = vpop.eup %14526 }
 0xdce   : > { %13972 = vmatprep.subr.bf16.mxu0 %v18601_v9  ;;  %14538 = vrcp.f32 %v9130_v14  ;;  %v9356_v12 = vmul.f32 %v14527_v56, %v17727_v34 }
 0xdcf   : > { %13035 = vmatprep.mubr.msk.f32.mxu0 %vm1201_vm1, %v9352_v45  ;;  %v18602_v45 = vld [vmem:[#allocation52_spill] sm:$0xff] }
 0xdd0   : > { %13036 = vmatmul.mubr.msk.f32.gmra.mrb[142].mxu0 %vm1201_vm1, %v9353_v35 }
 0xdd2   : > { %v9145_v63 = vpop.xlane.xlu1 %9144 }
 0xdd3   : > { %14540 = vrcp.f32 %v9145_v63  ;;  %v9142_v54 = vpop.xlane.xlu0 %9141  ;;  %v14529_v60 = vpop.eup %14528 }
 0xdd4   : > { %14542 = vrcp.f32 %v9142_v54  ;;  %v14531_v31 = vpop.eup %14530  ;;  %v9355_v37 = vmul.f32 %v14529_v60, %v17774_v61 }
 0xdd5   : > { %14544 = vrcp.f32 %v9133_v15  ;;  %v9354_v38 = vmul.f32 %v14531_v31, %v17777_v28  ;;  %v14533_v30 = vpop.eup %14532 }
 0xdd6   : > { %v9169_v22 = vpop.xlane.xlu1 %9168  ;;  %14546 = vrcp.f32 %v9136_v10  ;;  %v14535_v14 = vpop.eup %14534  ;;  %v9357_v28 = vmul.f32 %v14533_v30, %v17725_v6 }
 0xdd7   : > { %v9166_v43 = vpop.xlane.xlu0 %9165  ;;  %13038 = vmatprep.mubr.msk.f32.mxu0 %vm1201_vm1, %v9354_v38  ;;  %14548 = vrcp.f32 %v9139_v27  ;;  %v14537_v15 = vpop.eup %14536  ;;  %v9358_v61 = vmul.f32 %v14535_v14, %v17747_v57  ;;  %v18604_v38 = vld [vmem:[#allocation53_spill] sm:$0xff] }
 0xdd8   : > { %13039 = vmatmul.mubr.msk.f32.gmra.mrb[144].mxu0 %vm1201_vm1, %v9355_v37  ;;  %14550 = vrcp.f32 %v9166_v43  ;;  %v14539_v41 = vpop.eup %14538  ;;  %v9359_v63 = vmul.f32 %v14537_v15, %v17745_v58  ;;  %v18603_v58 = vld [vmem:[#allocation47_spill] sm:$0xff]  ;;  %v18605_v43 = vld [vmem:[#allocation54_spill] sm:$0xff] }
 0xdd9   : > { %13057 = vmatprep.mubr.msk.f32.mxu0 %vm1201_vm1, %v9356_v12 }
 0xdda   : > { %v9151_v33 = vpop.xlane.xlu1 %9150 }
 0xddb   : > { %14552 = vrcp.f32 %v9151_v33  ;;  %v9148_v47 = vpop.xlane.xlu0 %9147 }
 0xddc   : > { %14554 = vrcp.f32 %v9148_v47  ;;  %13058 = vmatmul.mubr.msk.f32.vlgmr.msra.gmra.mrb[146].mxu0 %vm1201_vm1, %v9357_v28  ;;  %v18607_v28 = vld [vmem:[#allocation56_spill] sm:$0xff] }
 0xddd   : > { %v14541_v10 = vpop.eup %14540  ;;  %14556 = vrcp.f32 %v9169_v22  ;;  %13974 = vmatpush3.bf16.msra.mxu0 %v18601_v9  ;;  %13060 = vmatprep.mubr.msk.f32.mxu0 %vm1201_vm1, %v9358_v61  ;;  %v9360_v9 = vmul.f32 %v14539_v41, %v17767_v8 }
 0xdde   : > { %v14543_v34 = vpop.eup %14542  ;;  %v9175_v27 = vpop.xlane.xlu1 %9174  ;;  %13976 = vmatprep.subr.bf16.mxu0 %v18602_v45  ;;  %v9365_v57 = vmul.f32 %v14541_v10, %v17795_v1 }
 0xddf   : > { %v9172_v35 = vpop.xlane.xlu0 %9171  ;;  %v9364_v6 = vmul.f32 %v14543_v34, %v17797_v25  ;;  %v14545_v56 = vpop.eup %14544  ;;  %v18608_v34 = vld [vmem:[#allocation57_spill] sm:$0xff] }
 0xde0   : > { %14558 = vrcp.f32 %v9172_v35  ;;  %v14547_v54 = vpop.eup %14546  ;;  %13061 = vmatmul.mubr.msk.f32.gmra.mrb[148].mxu0 %vm1201_vm1, %v9359_v63  ;;  %v9361_v31 = vmul.f32 %v14545_v56, %v17764_v17  ;;  %v18606_v17 = vld [vmem:[#allocation55_spill] sm:$0xff] }
 0xde1   : > { %13085 = vmatprep.mubr.msk.f32.mxu1 %vm1201_vm1, %v9364_v6  ;;  %14560 = vrcp.f32 %v9175_v27  ;;  %13978 = vmatpush3.bf16.msra.mxu0 %v18602_v45  ;;  %v14549_v25 = vpop.eup %14548  ;;  %v9362_v8 = vmul.f32 %v14547_v54, %v17787_v42  ;;  %v18609_v27 = vld [vmem:[#allocation58_spill] sm:$0xff] }
 0xde2   : > { %v9157_v60 = vpop.xlane.xlu1 %9156  ;;  %13086 = vmatmul.mubr.msk.f32.vlgmr.msra.gmra.mrb[150].mxu1 %vm1201_vm1, %v9365_v57  ;;  %13063 = vmatprep.mubr.msk.f32.mxu0 %vm1201_vm1, %v9360_v9  ;;  %v14551_v22 = vpop.eup %14550  ;;  %v9363_v15 = vmul.f32 %v14549_v25, %v17784_v55 }
 0xde3   : > { %14562 = vrcp.f32 %v9157_v60  ;;  %13990 = vmatpush3.bf16.msra.mxu1 %v18603_v58  ;;  %v9154_v1 = vpop.xlane.xlu0 %9153  ;;  %13980 = vmatprep.subr.bf16.mxu0 %v18604_v38  ;;  %v9372_v41 = vmul.f32 %v14551_v22, %v17807_v19  ;;  %v18612_v58 = vld [vmem:[#allocation61_spill] sm:$0xff] }
 0xde4   : > { %13992 = vmatprep.subr.bf16.mxu1 %v18605_v43  ;;  %14564 = vrcp.f32 %v9154_v1  ;;  %13064 = vmatmul.mubr.msk.f32.gmra.mrb[150].mxu0 %vm1201_vm1, %v9361_v31 }
 0xde5   : > { %v14553_v37 = vpop.eup %14552  ;;  %13982 = vmatpush3.bf16.msra.mxu0 %v18604_v38  ;;  %13066 = vmatprep.mubr.msk.f32.mxu0 %vm1201_vm1, %v9362_v8 }
 0xde6   : > { %v14555_v30 = vpop.eup %14554  ;;  %v9181_v12 = vpop.xlane.xlu1 %9180  ;;  %13984 = vmatprep.subr.bf16.mxu0 %v18606_v17  ;;  %v9367_v47 = vmul.f32 %v14553_v37, %v17815_v29 }
 0xde7   : > { %14566 = vrcp.f32 %v9181_v12  ;;  %13994 = vmatpush3.bf16.msra.mxu1 %v18605_v43  ;;  %v9178_v14 = vpop.xlane.xlu0 %9177  ;;  %v9366_v33 = vmul.f32 %v14555_v30, %v17817_v59  ;;  %v14557_v42 = vpop.eup %14556  ;;  %v18613_v43 = vld [vmem:[#allocation62_spill] sm:$0xff] }
 0xde8   : > { %13996 = vmatprep.subr.bf16.mxu1 %v18607_v28  ;;  %14568 = vrcp.f32 %v9178_v14  ;;  %13067 = vmatmul.mubr.msk.f32.gmra.mrb[152].mxu0 %vm1201_vm1, %v9363_v15  ;;  %v9373_v55 = vmul.f32 %v14557_v42, %v17805_v26  ;;  %v18610_v26 = vld [vmem:[#allocation59_spill] sm:$0xff] }
 0xde9   : > { %13088 = vmatprep.mubr.msk.f32.mxu1 %vm1201_vm1, %v9366_v33  ;;  %13986 = vmatpush3.bf16.msra.mxu0 %v18606_v17 }
 0xdea   : > { %v14559_v61 = vpop.eup %14558  ;;  %v9163_v10 = vpop.xlane.xlu1 %9162  ;;  %13089 = vmatmul.mubr.msk.f32.gmra.mrb[152].mxu1 %vm1201_vm1, %v9367_v47  ;;  %13113 = vmatprep.mubr.msk.f32.mxu0 %vm1201_vm1, %v9372_v41 }
 0xdeb   : > { %14570 = vrcp.f32 %v9163_v10  ;;  %13998 = vmatpush3.bf16.msra.mxu1 %v18607_v28  ;;  %v9160_v29 = vpop.xlane.xlu0 %9159  ;;  %v14561_v59 = vpop.eup %14560  ;;  %14004 = vmatprep.subr.bf16.mxu0 %v18609_v27  ;;  %v9374_v19 = vmul.f32 %v14559_v61, %v17827_v49  ;;  %v18611_v49 = vld [vmem:[#allocation60_spill] sm:$0xff] }
 0xdec   : > { %14000 = vmatprep.subr.bf16.mxu1 %v18608_v34  ;;  %14572 = vrcp.f32 %v9160_v29  ;;  %13114 = vmatmul.mubr.msk.f32.vlgmr.msra.gmra.mrb[154].mxu0 %vm1201_vm1, %v9373_v55  ;;  %v9375_v57 = vmul.f32 %v14561_v59, %v17825_v48  ;;  %v18615_v29 = vld [vmem:[#allocation64_spill] sm:$0xff] }
 0xded   : > { %v14563_v45 = vpop.eup %14562  ;;  %14006 = vmatpush3.bf16.msra.mxu0 %v18609_v27  ;;  %13116 = vmatprep.mubr.msk.f32.mxu0 %vm1201_vm1, %v9374_v19  ;;  %v18616_v27 = vld [vmem:[#allocation65_spill] sm:$0xff] }
 0xdee   : > { %v14565_v35 = vpop.eup %14564  ;;  %v9187_v6 = vpop.xlane.xlu1 %9186  ;;  %14008 = vmatprep.subr.bf16.mxu0 %v18610_v26  ;;  %v9369_v54 = vmul.f32 %v14563_v45, %v17835_v18 }
 0xdef   : > { %14574 = vrcp.f32 %v9187_v6  ;;  %14002 = vmatpush3.bf16.msra.mxu1 %v18608_v34  ;;  %v9184_v63 = vpop.xlane.xlu0 %9183  ;;  %v9368_v56 = vmul.f32 %v14565_v35, %v17837_v50 }
 0xdf0   : > { %14020 = vmatprep.subr.bf16.mxu1 %v18611_v49  ;;  %14576 = vrcp.f32 %v9184_v63  ;;  %13117 = vmatmul.mubr.msk.f32.gmra.mrb[156].mxu0 %vm1201_vm1, %v9375_v57  ;;  %v18618_v63 = vld [vmem:[#allocation67_spill] sm:$0xff] }
 0xdf1   : > { %v14567_v9 = vpop.eup %14566  ;;  %13091 = vmatprep.mubr.msk.f32.mxu1 %vm1201_vm1, %v9368_v56  ;;  %14010 = vmatpush3.bf16.msra.mxu0 %v18610_v26  ;;  %v18619_v56 = vld [vmem:[#allocation68_spill] sm:$0xff] }
 0xdf2   : > { %v14569_v60 = vpop.eup %14568  ;;  %13092 = vmatmul.mubr.msk.f32.gmra.mrb[154].mxu1 %vm1201_vm1, %v9369_v54  ;;  %14012 = vmatprep.subr.bf16.mxu0 %v18612_v58  ;;  %v9377_v1 = vmul.f32 %v14567_v9, %v17844_v21 }
 0xdf3   : > { %v9193_v25 = vpop.xlane.xlu1 %9192  ;;  %v9376_v48 = vmul.f32 %v14569_v60, %v17847_v32  ;;  %v18620_v60 = vld [vmem:[#allocation69_spill] sm:$0xff] }
 0xdf4   : > { %14578 = vrcp.f32 %v9193_v25  ;;  %v9190_v50 = vpop.xlane.xlu0 %9189 }
 0xdf5   : > { %v14571_v18 = vpop.eup %14570  ;;  %14580 = vrcp.f32 %v9190_v50  ;;  %13119 = vmatprep.mubr.msk.f32.mxu0 %vm1201_vm1, %v9376_v48  ;;  %14014 = vmatpush3.bf16.msra.mxu0 %v18612_v58 }
 0xdf6   : > { %v14573_v31 = vpop.eup %14572  ;;  %13120 = vmatmul.mubr.msk.f32.gmra.mrb[158].mxu0 %vm1201_vm1, %v9377_v1  ;;  %14016 = vmatprep.subr.bf16.mxu0 %v18613_v43  ;;  %v9371_v8 = vmul.f32 %v14571_v18, %v17854_v52 }
 0xdf7   : > { %v9217_v22 = vpop.xlane.xlu1 %9216  ;;  %v9370_v38 = vmul.f32 %v14573_v31, %v17857_v5  ;;  %v18614_v5 = vld [vmem:[#allocation63_spill] sm:$0xff] }
 0xdf8   : > { %14582 = vrcp.f32 %v9217_v22  ;;  %v9214_v32 = vpop.xlane.xlu0 %9213 }
 0xdf9   : > { %v14575_v37 = vpop.eup %14574  ;;  %14584 = vrcp.f32 %v9214_v32  ;;  %13094 = vmatprep.mubr.msk.f32.mxu1 %vm1201_vm1, %v9370_v38  ;;  %14018 = vmatpush3.bf16.msra.mxu0 %v18613_v43 }
 0xdfa   : > { %v14577_v21 = vpop.eup %14576  ;;  %13095 = vmatmul.mubr.msk.f32.gmra.mrb[156].mxu1 %vm1201_vm1, %v9371_v8  ;;  %14036 = vmatprep.subr.bf16.mxu0 %v18614_v5  ;;  %v9379_v14 = vmul.f32 %v14575_v37, %v17864_v13 }
 0xdfb   : > { %v9199_v30 = vpop.xlane.xlu1 %9198  ;;  %v9378_v12 = vmul.f32 %v14577_v21, %v17867_v40  ;;  %v18621_v21 = vld [vmem:[#allocation44_spill] sm:$0xff] }
 0xdfc   : > { %14586 = vrcp.f32 %v9199_v30  ;;  %v9196_v17 = vpop.xlane.xlu0 %9195 }
 0xdfd   : > { %14588 = vrcp.f32 %v9196_v17  ;;  %13122 = vmatprep.mubr.msk.f32.mxu0 %vm1201_vm1, %v9378_v12  ;;  %v18622_v17 = vld [vmem:[#allocation45_spill] sm:$0xff] }
 0xdfe   : > { %v14579_v52 = vpop.eup %14578  ;;  %13123 = vmatmul.mubr.msk.f32.gmra.mrb[160].mxu0 %vm1201_vm1, %v9379_v14 }
 0xdff   : > { %v14581_v33 = vpop.eup %14580  ;;  %v9223_v15 = vpop.xlane.xlu1 %9222  ;;  %v9381_v40 = vmul.f32 %v14579_v52, %v17875_v36  ;;  %v18623_v52 = vld [vmem:[#allocation43_spill] sm:$0xff] }
 0xe00   : > { %14590 = vrcp.f32 %v9223_v15  ;;  %v9220_v42 = vpop.xlane.xlu0 %9219  ;;  %v9380_v28 = vmul.f32 %v14581_v33, %v17877_v62 }
 0xe01   : > { %14592 = vrcp.f32 %v9220_v42 }
 0xe02   : > { %v14583_v47 = vpop.eup %14582  ;;  %13141 = vmatprep.mubr.msk.f32.mxu1 %vm1201_vm1, %v9380_v28 }
 0xe03   : > { %v14585_v41 = vpop.eup %14584  ;;  %v9205_v13 = vpop.xlane.xlu1 %9204  ;;  %13142 = vmatmul.mubr.msk.f32.vlgmr.msra.gmra.mrb[158].mxu1 %vm1201_vm1, %v9381_v40  ;;  %v9389_v55 = vmul.f32 %v14583_v47, %v17885_v2  ;;  %v18617_v2 = vld [vmem:[#allocation66_spill] sm:$0xff]  ;;  %v18624_v40 = vld [vmem:[#allocation72_spill] sm:$0xff] }
 0xe04   : > { %14594 = vrcp.f32 %v9205_v13  ;;  %14022 = vmatpush3.bf16.msra.mxu1 %v18611_v49  ;;  %v9202_v61 = vpop.xlane.xlu0 %9201  ;;  %v9388_v10 = vmul.f32 %v14585_v41, %v17887_v39  ;;  %v18625_v41 = vld [vmem:[#allocation70_spill] sm:$0xff] }
 0xe05   : > { %14024 = vmatprep.subr.bf16.mxu1 %v18615_v29  ;;  %14596 = vrcp.f32 %v9202_v61 }
 0xe06   : > { %v14587_v36 = vpop.eup %14586  ;;  %13169 = vmatprep.mubr.msk.f32.mxu0 %vm1201_vm1, %v9388_v10 }
 0xe07   : > { %v14589_v62 = vpop.eup %14588  ;;  %v9229_v59 = vpop.xlane.xlu1 %9228  ;;  %13170 = vmatmul.mubr.msk.f32.vlgmr.msra.gmra.mrb[162].mxu0 %vm1201_vm1, %v9389_v55  ;;  %v9383_v19 = vmul.f32 %v14587_v36, %v17895_v16 }
 0xe08   : > { %14598 = vrcp.f32 %v9229_v59  ;;  %14026 = vmatpush3.bf16.msra.mxu1 %v18615_v29  ;;  %14038 = vmatpush3.bf16.msra.mxu0 %v18614_v5  ;;  %v9226_v34 = vpop.xlane.xlu0 %9225  ;;  %v9382_v39 = vmul.f32 %v14589_v62, %v17897_v7  ;;  %v18626_v62 = vld [vmem:[#allocation71_spill] sm:$0xff] }
 0xe09   : > { %14028 = vmatprep.subr.bf16.mxu1 %v18616_v27  ;;  %14040 = vmatprep.subr.bf16.mxu0 %v18617_v2  ;;  %14600 = vrcp.f32 %v9226_v34 }
 0xe0a   : > { %v14591_v45 = vpop.eup %14590  ;;  %13144 = vmatprep.mubr.msk.f32.mxu1 %vm1201_vm1, %v9382_v39 }
 0xe0b   : > { %v14593_v35 = vpop.eup %14592  ;;  %v9211_v6 = vpop.xlane.xlu1 %9210  ;;  %13145 = vmatmul.mubr.msk.f32.gmra.mrb[160].mxu1 %vm1201_vm1, %v9383_v19  ;;  %v9391_v16 = vmul.f32 %v14591_v45, %v17905_v46  ;;  %v18627_v45 = vld [vmem:[#allocation73_spill] sm:$0xff] }
 0xe0c   : > { %14602 = vrcp.f32 %v9211_v6  ;;  %14030 = vmatpush3.bf16.msra.mxu1 %v18616_v27  ;;  %14042 = vmatpush3.bf16.msra.mxu0 %v18617_v2  ;;  %v9208_v7 = vpop.xlane.xlu0 %9207  ;;  %v9390_v26 = vmul.f32 %v14593_v35, %v17907_v20 }
 0xe0d   : > { %14032 = vmatprep.subr.bf16.mxu1 %v18618_v63  ;;  %14044 = vmatprep.subr.bf16.mxu0 %v18619_v56  ;;  %14604 = vrcp.f32 %v9208_v7 }
 0xe0e   : > { %v14595_v57 = vpop.eup %14594  ;;  %13172 = vmatprep.mubr.msk.f32.mxu0 %vm1201_vm1, %v9390_v26 }
 0xe0f   : > { %v14597_v49 = vpop.eup %14596  ;;  %v9235_v54 = vpop.xlane.xlu1 %9234  ;;  %13173 = vmatmul.mubr.msk.f32.gmra.mrb[164].mxu0 %vm1201_vm1, %v9391_v16  ;;  %v9385_v46 = vmul.f32 %v14595_v57, %v17915_v44  ;;  %v18629_v16 = vld [vmem:[#allocation75_spill] sm:$0xff] }
 0xe10   : > { %14606 = vrcp.f32 %v9235_v54  ;;  %14034 = vmatpush3.bf16.msra.mxu1 %v18618_v63  ;;  %14046 = vmatpush3.bf16.msra.mxu0 %v18619_v56  ;;  %v9232_v20 = vpop.xlane.xlu0 %9231  ;;  %v9384_v9 = vmul.f32 %v14597_v49, %v17917_v4  ;;  %v18628_v63 = vld [vmem:[#allocation74_spill] sm:$0xff]  ;;  %v18630_v54 = vld [vmem:[#allocation77_spill] sm:$0xff] }
 0xe11   : > { %14048 = vmatprep.subr.bf16.mxu0 %v18620_v60  ;;  %14608 = vrcp.f32 %v9232_v20 }
 0xe12   : > { %v14599_v25 = vpop.eup %14598  ;;  %13147 = vmatprep.mubr.msk.f32.mxu1 %vm1201_vm1, %v9384_v9  ;;  %v18631_v9 = vld [vmem:[#allocation76_spill] sm:$0xff] }
 0xe13   : > { %v14601_v58 = vpop.eup %14600  ;;  %13148 = vmatmul.mubr.msk.f32.gmra.mrb[162].mxu1 %vm1201_vm1, %v9385_v46  ;;  %v9393_v4 = vmul.f32 %v14599_v25, %v17924_v11 }
 0xe14   : > { %v9241_v48 = vpop.xlane.xlu1 %9240  ;;  %14050 = vmatpush3.bf16.msra.mxu0 %v18620_v60  ;;  %v9392_v50 = vmul.f32 %v14601_v58, %v17927_v51  ;;  %v18633_v58 = vld [vmem:[#allocation78_spill] sm:$0xff] }
 0xe15   : > { %14610 = vrcp.f32 %v9241_v48  ;;  %v9238_v1 = vpop.xlane.xlu0 %9237 }
 0xe16   : > { %v14603_v18 = vpop.eup %14602  ;;  %14612 = vrcp.f32 %v9238_v1  ;;  %13175 = vmatprep.mubr.msk.f32.mxu0 %vm1201_vm1, %v9392_v50  ;;  %v18634_v50 = vld [vmem:[#allocation79_spill] sm:$0xff] }
 0xe17   : > { %v14605_v44 = vpop.eup %14604  ;;  %13176 = vmatmul.mubr.msk.f32.gmra.mrb[166].mxu0 %vm1201_vm1, %v9393_v4  ;;  %v9387_v43 = vmul.f32 %v14603_v18, %v17934_v24 }
 0xe18   : > { %v9265_v31 = vpop.xlane.xlu1 %9264  ;;  %v9386_v22 = vmul.f32 %v14605_v44, %v17937_v23  ;;  %v18635_v44 = vld [vmem:[#allocation81_spill] sm:$0xff] }
 0xe19   : > { %14614 = vrcp.f32 %v9265_v31  ;;  %v9262_v38 = vpop.xlane.xlu0 %9261 }
 0xe1a   : > { %v14607_v32 = vpop.eup %14606  ;;  %14616 = vrcp.f32 %v9262_v38  ;;  %13150 = vmatprep.mubr.msk.f32.mxu1 %vm1201_vm1, %v9386_v22  ;;  %v18636_v22 = vld [vmem:[#allocation80_spill] sm:$0xff] }
 0xe1b   : > { %v14609_v51 = vpop.eup %14608  ;;  %13151 = vmatmul.mubr.msk.f32.gmra.mrb[164].mxu1 %vm1201_vm1, %v9387_v43  ;;  %v9395_v30 = vmul.f32 %v14607_v32, %v18621_v21  ;;  %v6980_v43 = vld [vmem:[%s18632_s5] sm:$0xff]  ;;  %v6981_v32 = vld [vmem:[%s18632_s5 + $0x8] sm:$0xff] }
 0xe1c   : > { %v9247_v11 = vpop.xlane.xlu1 %9246  ;;  %v9394_v8 = vmul.f32 %v14609_v51, %v17947_v53  ;;  %v14051_v51 = vpack.c.bf16 %v6981_v32, %v6980_v43 }
 0xe1d   : > { %14618 = vrcp.f32 %v9247_v11  ;;  %v9244_v37 = vpop.xlane.xlu0 %9243  ;;  %v6982_v11 = vld [vmem:[%s18632_s5 + $0x10] sm:$0xff] }
 0xe1e   : > { %14620 = vrcp.f32 %v9244_v37  ;;  %13178 = vmatprep.mubr.msk.f32.mxu0 %vm1201_vm1, %v9394_v8  ;;  %14052 = vmatprep.subr.bf16.mxu1 %v14051_v51  ;;  %v6983_v8 = vld [vmem:[%s18632_s5 + $0x18] sm:$0xff]  ;;  %s10748_s5 = sshll.u32 %s15163_s3, 4  ;;  %s10749_s5 = int_to_ptr.vmem [resolvable:$true] %s10748_s5 }
 0xe1f   : > { %v14611_v23 = vpop.eup %14610  ;;  %13179 = vmatmul.mubr.msk.f32.gmra.mrb[168].mxu0 %vm1201_vm1, %v9395_v30  ;;  %v14055_v37 = vpack.c.bf16 %v6983_v8, %v6982_v11  ;;  %s14678_s9 = scalar_lea.vmem %s10749_s5, 128  ;;  %p14685_p0 = scmp.lt.s32.totalorder %s10749_s5, %s14683_s12 }
 0xe20   : > { %v14613_v24 = vpop.eup %14612  ;;  %v9271_v12 = vpop.xlane.xlu1 %9270  ;;  %v9397_v33 = vmul.f32 %v14611_v23, %v18623_v52  ;;  %p14679_p11 = scmp.ne.s32.totalorder %s10749_s5, %s14678_s9  ;;  %p14686_p1 = scmp.lt.s32.totalorder %s14684_s13, %s14678_s9 }
 0xe21   : > { %14622 = vrcp.f32 %v9271_v12  ;;  %v9268_v5 = vpop.xlane.xlu0 %9267  ;;  %v9396_v14 = vmul.f32 %v14613_v24, %v18622_v17 }
 0xe22   : > { %14624 = vrcp.f32 %v9268_v5  ;;  %p14680_p12 = pnand %p14679_p11, %p15045_p5  ;;  %p14687_p2 = por %p14686_p1, %p14685_p0 }
 0xe23   : > { %v14615_v53 = vpop.eup %14614  ;;  %13197 = vmatprep.mubr.msk.f32.mxu1 %vm1201_vm1, %v9396_v14 }
 0xe24   : > { %v14617_v15 = vpop.eup %14616  ;;  %v9253_v42 = vpop.xlane.xlu1 %9252  ;;  %13198 = vmatmul.mubr.msk.f32.vlgmr.msra.gmra.mrb[166].mxu1 %vm1201_vm1, %v9397_v33  ;;  %v9405_v13 = vmul.f32 %v14615_v53, %v18625_v41  ;;  %p14681_p13 = pneg %p14680_p12 }
 0xe25   : > { %14626 = vrcp.f32 %v9253_v42  ;;  %v9250_v28 = vpop.xlane.xlu0 %9249  ;;  %v9404_v47 = vmul.f32 %v14617_v15, %v18624_v40  ;;  %14054 = vmatpush3.bf16.msra.mxu1 %v14051_v51 }
 0xe26   : > { %14628 = vrcp.f32 %v9250_v28  ;;  %14056 = vmatprep.subr.bf16.mxu1 %v14055_v37  ;;  %p14688_p3 = pnand %p14687_p2, %p14681_p13 }
 0xe27   : > { %v14619_v61 = vpop.eup %14618  ;;  %13225 = vmatprep.mubr.msk.f32.mxu0 %vm1201_vm1, %v9404_v47 }
 0xe28   : > { %v14621_v10 = vpop.eup %14620  ;;  %v9277_v55 = vpop.xlane.xlu1 %9276  ;;  %13226 = vmatmul.mubr.msk.f32.vlgmr.msra.gmra.mrb[170].mxu0 %vm1201_vm1, %v9405_v13  ;;  %v9399_v59 = vmul.f32 %v14619_v61, %v18626_v62 }
 0xe29   : > { %14630 = vrcp.f32 %v9277_v55  ;;  %v9274_v29 = vpop.xlane.xlu0 %9273  ;;  %v9398_v36 = vmul.f32 %v14621_v10, %v17977_v0  ;;  %14058 = vmatpush3.bf16.msra.mxu1 %v14055_v37 }
 0xe2a   : > { %14632 = vrcp.f32 %v9274_v29 }
 0xe2b   : > { %v14623_v34 = vpop.eup %14622  ;;  %13200 = vmatprep.mubr.msk.f32.mxu1 %vm1201_vm1, %v9398_v36 }
 0xe2c   : > { %v14625_v39 = vpop.eup %14624  ;;  %v9259_v27 = vpop.xlane.xlu1 %9258  ;;  %13201 = vmatmul.mubr.msk.f32.gmra.mrb[168].mxu1 %vm1201_vm1, %v9399_v59  ;;  %v9407_v35 = vmul.f32 %v14623_v34, %v18627_v45 }
 0xe2d   : > { %14634 = vrcp.f32 %v9259_v27  ;;  %v9256_v2 = vpop.xlane.xlu0 %9255  ;;  %v9406_v19 = vmul.f32 %v14625_v39, %v17987_v3 }
 0xe2e   : > { %14636 = vrcp.f32 %v9256_v2 }
 0xe2f   : > { %v14627_v6 = vpop.eup %14626  ;;  %13228 = vmatprep.mubr.msk.f32.mxu0 %vm1201_vm1, %v9406_v19 }
 0xe30   : > { %v14629_v0 = vpop.eup %14628  ;;  %v9283_v7 = vpop.xlane.xlu1 %9282  ;;  %13229 = vmatmul.mubr.msk.f32.gmra.mrb[172].mxu0 %vm1201_vm1, %v9407_v35  ;;  %v9401_v57 = vmul.f32 %v14627_v6, %v18629_v16 }
 0xe31   : > { %14638 = vrcp.f32 %v9283_v7  ;;  %v9280_v26 = vpop.xlane.xlu0 %9279  ;;  %v9400_v56 = vmul.f32 %v14629_v0, %v18628_v63 }
 0xe32   : > { %14640 = vrcp.f32 %v9280_v26 }
 0xe33   : > { %v14631_v49 = vpop.eup %14630  ;;  %13203 = vmatprep.mubr.msk.f32.mxu1 %vm1201_vm1, %v9400_v56 }
 0xe34   : > { %v14633_v3 = vpop.eup %14632  ;;  %13204 = vmatmul.mubr.msk.f32.gmra.mrb[170].mxu1 %vm1201_vm1, %v9401_v57  ;;  %v9409_v60 = vmul.f32 %v14631_v49, %v18631_v9 }
 0xe35   : > { %v9408_v20 = vmul.f32 %v14633_v3, %v18630_v54 }
 0xe37   : > { %v14635_v46 = vpop.eup %14634  ;;  %13231 = vmatprep.mubr.msk.f32.mxu0 %vm1201_vm1, %v9408_v20 }
 0xe38   : > { %v14637_v25 = vpop.eup %14636  ;;  %13232 = vmatmul.mubr.msk.f32.gmra.mrb[174].mxu0 %vm1201_vm1, %v9409_v60  ;;  %v9403_v1 = vmul.f32 %v14635_v46, %v18634_v50 }
 0xe39   : > { %v9402_v48 = vmul.f32 %v14637_v25, %v18633_v58 }
 0xe3b   : > { %v14639_v4 = vpop.eup %14638  ;;  %13206 = vmatprep.mubr.msk.f32.mxu1 %vm1201_vm1, %v9402_v48 }
 0xe3c   : > { %v14641_v18 = vpop.eup %14640  ;;  %13207 = vmatmul.mubr.msk.f32.gmra.mrb[172].mxu1 %vm1201_vm1, %v9403_v1  ;;  %v9411_v38 = vmul.f32 %v14639_v4, %v18636_v22 }
 0xe3d   : > { %v9410_v31 = vmul.f32 %v14641_v18, %v18635_v44 }
 0xe3f   : > { %13234 = vmatprep.mubr.msk.f32.mxu0 %vm1201_vm1, %v9410_v31 }
 0xe40   : > { %13235 = vmatmul.mubr.msk.f32.gmra.mrb[176].mxu0 %vm1201_vm1, %v9411_v38 }
 0xe93   : > { %v13031_v21 = vpop.f32.mrb[138].mxu0 }
 0xe94   : > { %v9502_v30 = vpop.f32.mrb[139].mxu0  ;;  %v10459_v33 = vsel %vm1295_vm2, %v13031_v21, 0.0 }
 0xe95   : > { %v10444_v42 = vsel %vm1295_vm2, %v9502_v30, 0.0 }
 0xe9b   : > { %v13034_v23 = vpop.f32.mrb[140].mxu0 }
 0xe9c   : > { %v9512_v24 = vpop.f32.mrb[141].mxu0  ;;  %v10489_v13 = vsel %vm1295_vm2, %v13034_v23, 0.0 }
 0xe9d   : > { %v10474_v29 = vsel %vm1295_vm2, %v9512_v24, 0.0 }
 0xea3   : > { %v13037_v12 = vpop.f32.mrb[142].mxu0 }
 0xea4   : > { %v9522_v5 = vpop.f32.mrb[143].mxu0  ;;  %v10519_v35 = vsel %vm1295_vm2, %v13037_v12, 0.0 }
 0xea5   : > { %v10504_v7 = vsel %vm1295_vm2, %v9522_v5, 0.0 }
 0xeab   : > { %v13040_v17 = vpop.f32.mrb[144].mxu0 }
 0xeac   : > { %v9532_v14 = vpop.f32.mrb[145].mxu0  ;;  %v10549_v57 = vsel %vm1295_vm2, %v13040_v17, 0.0 }
 0xead   : > { %v10534_v20 = vsel %vm1295_vm2, %v9532_v14, 0.0 }
 0xeaf   : > { %v13059_v52 = vpop.f32.mrb[146].mxu0 }
 0xeb0   : > { %v10460_v53 = vsel %vm1295_vm2, %v13059_v52, 0.0  ;;  %v9631_v15 = vpop.f32.mrb[147].mxu0 }
 0xeb1   : > { %v10461_v28 = vadd.f32 %v10460_v53, %v10459_v33  ;;  %v10445_v40 = vsel %vm1295_vm2, %v9631_v15, 0.0 }
 0xeb2   : > { %v10446_v47 = vadd.f32 %v10445_v40, %v10444_v42 }
 0xeb3   : > { %v13062_v41 = vpop.f32.mrb[148].mxu0 }
 0xeb4   : > { %v10490_v61 = vsel %vm1295_vm2, %v13062_v41, 0.0  ;;  %v9641_v55 = vpop.f32.mrb[149].mxu0 }
 0xeb5   : > { %v13087_v10 = vpop.f32.mrb[150].mxu1  ;;  %v10491_v36 = vadd.f32 %v10490_v61, %v10489_v13  ;;  %v10475_v59 = vsel %vm1295_vm2, %v9641_v55, 0.0 }
 0xeb6   : > { %v10462_v62 = vsel %vm1295_vm2, %v13087_v10, 0.0  ;;  %v9760_v34 = vpop.f32.mrb[151].mxu1  ;;  %v10476_v27 = vadd.f32 %v10475_v59, %v10474_v29 }
 0xeb7   : > { %v10463_v39 = vadd.f32 %v10462_v62, %v10461_v28  ;;  %v10447_v2 = vsel %vm1295_vm2, %v9760_v34, 0.0  ;;  %v13065_v45 = vpop.f32.mrb[150].mxu0 }
 0xeb8   : > { %v10448_v19 = vadd.f32 %v10447_v2, %v10446_v47  ;;  %v10520_v6 = vsel %vm1295_vm2, %v13065_v45, 0.0  ;;  %v9651_v0 = vpop.f32.mrb[151].mxu0 }
 0xeb9   : > { %v10521_v26 = vadd.f32 %v10520_v6, %v10519_v35  ;;  %v10505_v63 = vsel %vm1295_vm2, %v9651_v0, 0.0 }
 0xeba   : > { %v10506_v56 = vadd.f32 %v10505_v63, %v10504_v7 }
 0xebb   : > { %v13068_v16 = vpop.f32.mrb[152].mxu0 }
 0xebc   : > { %v10550_v49 = vsel %vm1295_vm2, %v13068_v16, 0.0  ;;  %v9661_v54 = vpop.f32.mrb[153].mxu0 }
 0xebd   : > { %v13090_v3 = vpop.f32.mrb[152].mxu1  ;;  %v10551_v9 = vadd.f32 %v10550_v49, %v10549_v57  ;;  %v10535_v46 = vsel %vm1295_vm2, %v9661_v54, 0.0 }
 0xebe   : > { %v10492_v60 = vsel %vm1295_vm2, %v13090_v3, 0.0  ;;  %v9770_v25 = vpop.f32.mrb[153].mxu1  ;;  %v10536_v48 = vadd.f32 %v10535_v46, %v10534_v20 }
 0xebf   : > { %v10493_v58 = vadd.f32 %v10492_v60, %v10491_v36  ;;  %v10477_v50 = vsel %vm1295_vm2, %v9770_v25, 0.0  ;;  %v13115_v4 = vpop.f32.mrb[154].mxu0 }
 0xec0   : > { %v10478_v1 = vadd.f32 %v10477_v50, %v10476_v27  ;;  %v10464_v18 = vsel %vm1295_vm2, %v13115_v4, 0.0  ;;  %v9889_v44 = vpop.f32.mrb[155].mxu0 }
 0xec1   : > { %v10465_v31 = vadd.f32 %v10464_v18, %v10463_v39  ;;  %v10449_v22 = vsel %vm1295_vm2, %v9889_v44, 0.0 }
 0xec2   : > { %v10450_v38 = vadd.f32 %v10449_v22, %v10448_v19 }
 0xec3   : > { %v13118_v43 = vpop.f32.mrb[156].mxu0 }
 0xec4   : > { %v10494_v51 = vsel %vm1295_vm2, %v13118_v43, 0.0  ;;  %v9899_v11 = vpop.f32.mrb[157].mxu0 }
 0xec5   : > { %v13093_v32 = vpop.f32.mrb[154].mxu1  ;;  %v10495_v37 = vadd.f32 %v10494_v51, %v10493_v58  ;;  %v10479_v30 = vsel %vm1295_vm2, %v9899_v11, 0.0 }
 0xec6   : > { %v10522_v8 = vsel %vm1295_vm2, %v13093_v32, 0.0  ;;  %v9780_v21 = vpop.f32.mrb[155].mxu1  ;;  %v10480_v12 = vadd.f32 %v10479_v30, %v10478_v1 }
 0xec7   : > { %v10523_v23 = vadd.f32 %v10522_v8, %v10521_v26  ;;  %v10507_v24 = vsel %vm1295_vm2, %v9780_v21, 0.0 }
 0xec8   : > { %v10508_v5 = vadd.f32 %v10507_v24, %v10506_v56 }
 0xec9   : > { %v13121_v17 = vpop.f32.mrb[158].mxu0 }
 0xeca   : > { %v10524_v14 = vsel %vm1295_vm2, %v13121_v17, 0.0  ;;  %v9909_v52 = vpop.f32.mrb[159].mxu0 }
 0xecb   : > { %v10525_v33 = vadd.f32 %v10524_v14, %v10523_v23  ;;  %v10509_v53 = vsel %vm1295_vm2, %v9909_v52, 0.0 }
 0xecc   : > { %v10510_v15 = vadd.f32 %v10509_v53, %v10508_v5 }
 0xecd   : > { %v13096_v42 = vpop.f32.mrb[156].mxu1 }
 0xece   : > { %v10552_v28 = vsel %vm1295_vm2, %v13096_v42, 0.0  ;;  %v9790_v40 = vpop.f32.mrb[157].mxu1 }
 0xecf   : > { %v10553_v47 = vadd.f32 %v10552_v28, %v10551_v9  ;;  %v10537_v41 = vsel %vm1295_vm2, %v9790_v40, 0.0 }
 0xed0   : > { %v10538_v13 = vadd.f32 %v10537_v41, %v10536_v48 }
 0xed1   : > { %v13124_v61 = vpop.f32.mrb[160].mxu0 }
 0xed2   : > { %v10554_v10 = vsel %vm1295_vm2, %v13124_v61, 0.0  ;;  %v9919_v55 = vpop.f32.mrb[161].mxu0 }
 0xed3   : > { %v10555_v29 = vadd.f32 %v10554_v10, %v10553_v47  ;;  %v10539_v36 = vsel %vm1295_vm2, %v9919_v55, 0.0 }
 0xed4   : > { %v10540_v62 = vadd.f32 %v10539_v36, %v10538_v13 }
 0xed6   : > { %v13143_v59 = vpop.f32.mrb[158].mxu1 }
 0xed7   : > { %v10466_v34 = vsel %vm1295_vm2, %v13143_v59, 0.0  ;;  %v10018_v39 = vpop.f32.mrb[159].mxu1 }
 0xed8   : > { %v10467_v27 = vadd.f32 %v10466_v34, %v10465_v31  ;;  %v10451_v2 = vsel %vm1295_vm2, %v10018_v39, 0.0 }
 0xed9   : > { %v10452_v19 = vadd.f32 %v10451_v2, %v10450_v38 }
 0xeda   : > { %v13171_v45 = vpop.f32.mrb[162].mxu0 }
 0xedb   : > { %v10468_v35 = vsel %vm1295_vm2, %v13171_v45, 0.0  ;;  %v10147_v6 = vpop.f32.mrb[163].mxu0 }
 0xedc   : > { %v10469_v0 = vadd.f32 %v10468_v35, %v10467_v27  ;;  %v10453_v7 = vsel %vm1295_vm2, %v10147_v6, 0.0 }
 0xedd   : > { %v10454_v26 = vadd.f32 %v10453_v7, %v10452_v19 }
 0xede   : > { %v13146_v63 = vpop.f32.mrb[160].mxu1 }
 0xedf   : > { %v10496_v56 = vsel %vm1295_vm2, %v13146_v63, 0.0  ;;  %v10028_v16 = vpop.f32.mrb[161].mxu1 }
 0xee0   : > { %v10497_v57 = vadd.f32 %v10496_v56, %v10495_v37  ;;  %v10481_v49 = vsel %vm1295_vm2, %v10028_v16, 0.0 }
 0xee1   : > { %v10482_v3 = vadd.f32 %v10481_v49, %v10480_v12 }
 0xee2   : > { %v13174_v54 = vpop.f32.mrb[164].mxu0 }
 0xee3   : > { %v10498_v20 = vsel %vm1295_vm2, %v13174_v54, 0.0  ;;  %v10157_v9 = vpop.f32.mrb[165].mxu0 }
 0xee4   : > { %v10499_v60 = vadd.f32 %v10498_v20, %v10497_v57  ;;  %v10483_v46 = vsel %vm1295_vm2, %v10157_v9, 0.0 }
 0xee5   : > { %v10484_v25 = vadd.f32 %v10483_v46, %v10482_v3 }
 0xee6   : > { %v13149_v58 = vpop.f32.mrb[162].mxu1 }
 0xee7   : > { %v10526_v48 = vsel %vm1295_vm2, %v13149_v58, 0.0  ;;  %v10038_v50 = vpop.f32.mrb[163].mxu1 }
 0xee8   : > { %v10527_v1 = vadd.f32 %v10526_v48, %v10525_v33  ;;  %v10511_v4 = vsel %vm1295_vm2, %v10038_v50, 0.0 }
 0xee9   : > { %v10512_v18 = vadd.f32 %v10511_v4, %v10510_v15 }
 0xeea   : > { %v13177_v44 = vpop.f32.mrb[166].mxu0 }
 0xeeb   : > { %v10528_v31 = vsel %vm1295_vm2, %v13177_v44, 0.0  ;;  %v10167_v22 = vpop.f32.mrb[167].mxu0 }
 0xeec   : > { %v10529_v38 = vadd.f32 %v10528_v31, %v10527_v1  ;;  %v10513_v43 = vsel %vm1295_vm2, %v10167_v22, 0.0 }
 0xeed   : > { %v10514_v32 = vadd.f32 %v10513_v43, %v10512_v18 }
 0xeee   : > { %v13152_v51 = vpop.f32.mrb[164].mxu1 }
 0xeef   : > { %v10556_v11 = vsel %vm1295_vm2, %v13152_v51, 0.0  ;;  %v10048_v8 = vpop.f32.mrb[165].mxu1 }
 0xef0   : > { %v10557_v37 = vadd.f32 %v10556_v11, %v10555_v29  ;;  %v10541_v21 = vsel %vm1295_vm2, %v10048_v8, 0.0 }
 0xef1   : > { %v10542_v30 = vadd.f32 %v10541_v21, %v10540_v62 }
 0xef2   : > { %v13180_v23 = vpop.f32.mrb[168].mxu0 }
 0xef3   : > { %v10558_v24 = vsel %vm1295_vm2, %v13180_v23, 0.0  ;;  %v10177_v12 = vpop.f32.mrb[169].mxu0 }
 0xef4   : > { %v10559_v5 = vadd.f32 %v10558_v24, %v10557_v37  ;;  %v10543_v17 = vsel %vm1295_vm2, %v10177_v12, 0.0 }
 0xef5   : > { %v10544_v14 = vadd.f32 %v10543_v17, %v10542_v30 }
 0xef7   : > { %v13199_v52 = vpop.f32.mrb[166].mxu1 }
 0xef8   : > { %v10470_v33 = vsel %vm1295_vm2, %v13199_v52, 0.0  ;;  %v10276_v53 = vpop.f32.mrb[167].mxu1 }
 0xef9   : > { %v10471_v15 = vadd.f32 %v10470_v33, %v10469_v0  ;;  %v10455_v42 = vsel %vm1295_vm2, %v10276_v53, 0.0 }
 0xefa   : > { %v10456_v28 = vadd.f32 %v10455_v42, %v10454_v26 }
 0xefb   : > { %v13227_v40 = vpop.f32.mrb[170].mxu0 }
 0xefc   : > { %v10472_v47 = vsel %vm1295_vm2, %v13227_v40, 0.0  ;;  %v10405_v41 = vpop.f32.mrb[171].mxu0 }
 0xefd   : > { %v10473_v13 = vadd.f32 %v10472_v47, %v10471_v15  ;;  %v10457_v61 = vsel %vm1295_vm2, %v10405_v41, 0.0 }
 0xefe   : > { %v10458_v10 = vadd.f32 %v10457_v61, %v10456_v28 }
 0xeff   : > { %v13202_v55 = vpop.f32.mrb[168].mxu1 }
 0xf00   : > { %v10500_v29 = vsel %vm1295_vm2, %v13202_v55, 0.0  ;;  %v10286_v36 = vpop.f32.mrb[169].mxu1  ;;  %13245 = vmatprep.mubr.msk.f32.mxu1 %vm1295_vm2, %v10458_v10 }
 0xf01   : > { %v10501_v62 = vadd.f32 %v10500_v29, %v10499_v60  ;;  %v10485_v59 = vsel %vm1295_vm2, %v10286_v36, 0.0  ;;  %13246 = vmatmul.mubr.msk.f32.vlgmr.msra.gmra.mrb[174].mxu1 %vm1295_vm2, %v10473_v13 }
 0xf02   : > { %v10486_v34 = vadd.f32 %v10485_v59, %v10484_v25 }
 0xf03   : > { %v13230_v39 = vpop.f32.mrb[172].mxu0 }
 0xf04   : > { %v10502_v27 = vsel %vm1295_vm2, %v13230_v39, 0.0  ;;  %v10415_v2 = vpop.f32.mrb[173].mxu0 }
 0xf05   : > { %v10503_v19 = vadd.f32 %v10502_v27, %v10501_v62  ;;  %v10487_v45 = vsel %vm1295_vm2, %v10415_v2, 0.0 }
 0xf06   : > { %v10488_v35 = vadd.f32 %v10487_v45, %v10486_v34 }
 0xf07   : > { %v13205_v6 = vpop.f32.mrb[170].mxu1 }
 0xf08   : > { %v10530_v0 = vsel %vm1295_vm2, %v13205_v6, 0.0  ;;  %v10296_v7 = vpop.f32.mrb[171].mxu1  ;;  %13248 = vmatprep.mubr.msk.f32.mxu1 %vm1295_vm2, %v10488_v35 }
 0xf09   : > { %v10531_v26 = vadd.f32 %v10530_v0, %v10529_v38  ;;  %v10515_v63 = vsel %vm1295_vm2, %v10296_v7, 0.0  ;;  %13249 = vmatmul.mubr.msk.f32.gmra.mrb[176].mxu1 %vm1295_vm2, %v10503_v19 }
 0xf0a   : > { %v10516_v56 = vadd.f32 %v10515_v63, %v10514_v32 }
 0xf0b   : > { %v13233_v16 = vpop.f32.mrb[174].mxu0 }
 0xf0c   : > { %v10532_v57 = vsel %vm1295_vm2, %v13233_v16, 0.0  ;;  %v10425_v49 = vpop.f32.mrb[175].mxu0 }
 0xf0d   : > { %v10533_v3 = vadd.f32 %v10532_v57, %v10531_v26  ;;  %v10517_v54 = vsel %vm1295_vm2, %v10425_v49, 0.0 }
 0xf0e   : > { %v10518_v20 = vadd.f32 %v10517_v54, %v10516_v56 }
 0xf0f   : > { %v13208_v9 = vpop.f32.mrb[172].mxu1 }
 0xf10   : > { %v10560_v60 = vsel %vm1295_vm2, %v13208_v9, 0.0  ;;  %v10306_v46 = vpop.f32.mrb[173].mxu1  ;;  %13251 = vmatprep.mubr.msk.f32.mxu1 %vm1295_vm2, %v10518_v20 }
 0xf11   : > { %v10561_v25 = vadd.f32 %v10560_v60, %v10559_v5  ;;  %v10545_v58 = vsel %vm1295_vm2, %v10306_v46, 0.0  ;;  %13252 = vmatmul.mubr.msk.f32.gmra.mrb[178].mxu1 %vm1295_vm2, %v10533_v3 }
 0xf12   : > { %v10546_v48 = vadd.f32 %v10545_v58, %v10544_v14 }
 0xf13   : > { %v13236_v50 = vpop.f32.mrb[176].mxu0 }
 0xf14   : > { %v10562_v1 = vsel %vm1295_vm2, %v13236_v50, 0.0  ;;  %v10435_v4 = vpop.f32.mrb[177].mxu0 }
 0xf15   : > { %v10563_v18 = vadd.f32 %v10562_v1, %v10561_v25  ;;  %v10547_v44 = vsel %vm1295_vm2, %v10435_v4, 0.0 }
 0xf16   : > { %v10548_v31 = vadd.f32 %v10547_v44, %v10546_v48 }
 0xf18   : > { %13254 = vmatprep.mubr.msk.f32.mxu1 %vm1295_vm2, %v10548_v31 }
 0xf19   : > { %13255 = vmatmul.mubr.msk.f32.gmra.mrb[180].mxu1 %vm1295_vm2, %v10563_v18 }
 0xf1a   : > { %14691 = shalt.err (!%p14688_p3)
}
 0xf1b   : > { %s14692_s3 = scalar_lea.hbm %s18280_s6, 128  ;;  %s14696_s10 = scalar_lea.hbm %s15000_s17, 256 }
 0xf1c   : > { %p14693_p4 = scmp.ne.s32.totalorder %s18280_s6, %s14692_s3  ;;  %p14697_p9 = scmp.lt.u32.totalorder %s18280_s6, %s15000_s17 }
 0xf1d   : > { %p14698_p10 = scmp.lt.u32.totalorder %s14696_s10, %s14692_s3  ;;  %p14700_p12 = scmp.lt.u32.totalorder %s14692_s3, %s18280_s6 }
 0xf1e   : > { %p14694_p7 = pnand %p14693_p4, %p15045_p5 }
 0xf1f   : > { %p14699_p11 = por %p14698_p10, %p14697_p9 }
 0xf20   : > { %p14695_p8 = pneg %p14694_p7 }
 0xf21   : > { %p14701_p0 = por %p14700_p12, %p14699_p11 }
 0xf23   : > { %p14702_p13 = pnand %p14701_p0, %p14695_p8 }
 0xf25   : > { %14705 = shalt.err (!%p14702_p13)
}
 0xf26   : > { %14123 = dma.vmem_to_hbm [thread:$0]  (%p15045_p5), %s10749_s5, 128, %s18280_s6, %s10730_s8   ;;  %v11379_v22 = vld [vmem:[%s14990_s20] ss:$0 sm:$0xff]  ;;  %v18637_v21 = vld [vmem:[#allocation35_spill] sm:$0xff]  ;;  %v18638_v23 = vld [vmem:[#allocation36_spill] sm:$0xff] }
 0xf27   : > { %v11388_v38 = vld [vmem:[%s14995_s21] ss:$0 sm:$0xff]  ;;  %s10944_s9 = sshll.u32 %s15156_s15, 6  ;;  %v18640_v42 = vld [vmem:[#allocation38_spill] sm:$0xff]  ;;  %v18641_v55 = vld [vmem:[#allocation39_spill] sm:$0xff]  ;;  %s11400_s12 = sshll.u32 %s15028_s0, 10 }
 0xf28   : > { %s18301_s13 = scalar_lea.vmem [#allocation4], %s10944_s9  ;;  %v18639_v53 = vld [vmem:[#allocation37_spill] sm:$0xff]  ;;  %v18642_v36 = vld [vmem:[#allocation40_spill] sm:$0xff]  ;;  %s18325_s6 = scalar_lea.hbm %s15005_s27, %s11400_s12  ;;  %v18644_v6 = vld [vmem:[#allocation42_spill] sm:$0xff] }
 0xf29   : > { %s10761_s8 = sshll.u32 %s18301_s13, 4  ;;  %v18643_v45 = vld [vmem:[#allocation41_spill] sm:$0xff]  ;;  %s10735_s5 = scalar_lea.sflag [#allocation5], %s15156_s15  ;;  %s18322_s8 = int_to_ptr.vmem [resolvable:$true] %s10761_s8 }
 0xf2a   : > { %s14706_s4 = scalar_lea.vmem %s18322_s8, 1024  ;;  %s14814_s0 = smov [#allocation4]  }
 0xf2b   : > { %p14707_p1 = scmp.ne.s32.totalorder %s18322_s8, %s14706_s4  ;;  %s14710_s3 = sshll.u32 %s14814_s0, 4  ;;  %s14711_s3 = int_to_ptr.vmem [resolvable:$false] %s14710_s3 }
 0xf2c   : > { %s14712_s10 = scalar_lea.vmem %s14711_s3, 2048  ;;  %p14713_p4 = scmp.lt.s32.totalorder %s18322_s8, %s14711_s3 }
 0xf2d   : > { %p14708_p2 = pnand %p14707_p1, %p15045_p5  ;;  %p14714_p7 = scmp.lt.s32.totalorder %s14712_s10, %s14706_s4 }
 0xf2f   : > { %p14709_p3 = pneg %p14708_p2  ;;  %p14715_p8 = por %p14714_p7, %p14713_p4 }
 0xf31   : > { %p14716_p9 = pnand %p14715_p8, %p14709_p3 }
 0xfd4   : > { %v13247_v43 = vpop.f32.mrb[174].mxu1 }
 0xfd5   : > { %v10666_v32 = vadd.f32 %v13247_v43, %v11379_v22  ;;  %v10660_v51 = vpop.f32.mrb[175].mxu1 }
 0xfd6   : > { %v10661_v11 = vadd.f32 %v11379_v22, %v10660_v51 }
 0xfd7   : > { %v10706_v8 = vmul.f32 %v11388_v38, %v10666_v32 }
 0xfd8   : > { %v10705_v37 = vmul.f32 %v11388_v38, %v10661_v11 }
 0xfd9   : > { %v10714_v30 = vadd.f32 %v18637_v21, %v10706_v8 }
 0xfda   : > { %v10713_v24 = vadd.f32 %v10705_v37, %v18638_v23 }
 0xfdb   : > { %10722 = vst.msk [vmem:[%s18301_s13 + $0x8] sm:$0xff] %vm1295_vm2, %v10714_v30 }
 0xfdc   : > { %v13250_v12 = vpop.f32.mrb[176].mxu1  ;;  %10721 = vst.msk [vmem:[%s18301_s13] sm:$0xff] %vm1295_vm2, %v10713_v24 }
 0xfdd   : > { %v10676_v5 = vadd.f32 %v13250_v12, %v11379_v22  ;;  %v10670_v17 = vpop.f32.mrb[177].mxu1 }
 0xfde   : > { %v10671_v14 = vadd.f32 %v11379_v22, %v10670_v17 }
 0xfdf   : > { %v10708_v52 = vmul.f32 %v11388_v38, %v10676_v5 }
 0xfe0   : > { %v10707_v33 = vmul.f32 %v11388_v38, %v10671_v14 }
 0xfe1   : > { %v10716_v15 = vadd.f32 %v18639_v53, %v10708_v52 }
 0xfe2   : > { %v10715_v28 = vadd.f32 %v10707_v33, %v18640_v42 }
 0xfe3   : > { %10724 = vst.msk [vmem:[%s18301_s13 + $0x18] sm:$0xff] %vm1295_vm2, %v10716_v15 }
 0xfe4   : > { %v13253_v40 = vpop.f32.mrb[178].mxu1  ;;  %10723 = vst.msk [vmem:[%s18301_s13 + $0x10] sm:$0xff] %vm1295_vm2, %v10715_v28 }
 0xfe5   : > { %v10686_v47 = vadd.f32 %v13253_v40, %v11379_v22  ;;  %v10680_v41 = vpop.f32.mrb[179].mxu1 }
 0xfe6   : > { %v10681_v13 = vadd.f32 %v11379_v22, %v10680_v41 }
 0xfe7   : > { %v10710_v61 = vmul.f32 %v11388_v38, %v10686_v47 }
 0xfe8   : > { %v10709_v10 = vmul.f32 %v11388_v38, %v10681_v13 }
 0xfe9   : > { %v10718_v29 = vadd.f32 %v18641_v55, %v10710_v61 }
 0xfea   : > { %v10717_v62 = vadd.f32 %v10709_v10, %v18642_v36 }
 0xfeb   : > { %10726 = vst.msk [vmem:[%s18301_s13 + $0x28] sm:$0xff] %vm1295_vm2, %v10718_v29 }
 0xfec   : > { %v13256_v59 = vpop.f32.mrb[180].mxu1  ;;  %10725 = vst.msk [vmem:[%s18301_s13 + $0x20] sm:$0xff] %vm1295_vm2, %v10717_v62 }
 0xfed   : > { %v10696_v34 = vadd.f32 %v13256_v59, %v11379_v22  ;;  %v10690_v39 = vpop.f32.mrb[181].mxu1 }
 0xfee   : > { %v10691_v27 = vadd.f32 %v11379_v22, %v10690_v39 }
 0xfef   : > { %v10712_v2 = vmul.f32 %v11388_v38, %v10696_v34 }
 0xff0   : > { %v10711_v19 = vmul.f32 %v11388_v38, %v10691_v27 }
 0xff1   : > { %v10720_v35 = vadd.f32 %v18643_v45, %v10712_v2 }
 0xff2   : > { %v10719_v0 = vadd.f32 %v10711_v19, %v18644_v6 }
 0xff3   : > { %10728 = vst.msk [vmem:[%s18301_s13 + $0x38] sm:$0xff] %vm1295_vm2, %v10720_v35 }
 0xff4   : > { %10727 = vst.msk [vmem:[%s18301_s13 + $0x30] sm:$0xff] %vm1295_vm2, %v10719_v0 }
 0xff5   : > { %14719 = shalt.err (!%p14716_p9)
}
 0xff6   : > { %s14720_s9 = scalar_lea.hbm %s18325_s6, 1024  ;;  %s14724_s13 = scalar_lea.hbm %s15005_s27, 2048 }
 0xff7   : > { %p14721_p10 = scmp.ne.s32.totalorder %s18325_s6, %s14720_s9  ;;  %p14725_p0 = scmp.lt.u32.totalorder %s18325_s6, %s15005_s27 }
 0xff8   : > { %p14726_p13 = scmp.lt.u32.totalorder %s14724_s13, %s14720_s9  ;;  %p14728_p2 = scmp.lt.u32.totalorder %s14720_s9, %s18325_s6 }
 0xff9   : > { %p14722_p11 = pnand %p14721_p10, %p15045_p5 }
 0xffa   : > { %p14727_p1 = por %p14726_p13, %p14725_p0 }
 0xffb   : > { %p14723_p12 = pneg %p14722_p11 }
 0xffc   : > { %p14729_p4 = por %p14728_p2, %p14727_p1 }
 0xffe   : > { %p14730_p3 = pnand %p14729_p4, %p14723_p12 }
0x1000   : > { %14733 = shalt.err (!%p14730_p3)
}
0x1001   : > { %s14815_s12 = smov 128   ;;  %s14816_s4 = smov 8  }
0x1002   : > { %14124 = dma.vmem_to_hbm [thread:$0]  (%p15045_p5), %s18322_s8, 1024, %s18325_s6, %s10735_s5, %s14815_s12, %s14815_s12, %s14816_s4  }
0x1003 PF: > { %p14134_p7 = scmp.ge.s32.totalorder %s14772_s7, 2  ;;  %s10776_s0 = sand.u32 1, %s14760_s28  }
0x1004   : > { %s10777_s3 = scalar_lea.sflag [#allocation3], %s10776_s0 }
0x1005   : > { %p14128_p8 = pnand %p14134_p7, %p15049_p6 }
0x1007   : > { %14751 = dma.done.wait (!%p14128_p8), %s10777_s3, 128  }
0x1008   : > { %14753 = vsyncadd (!%p14128_p8), %s10777_s3, 4294967168  ;;  %s10786_s10 = scalar_lea.sflag [#allocation5], %s10776_s0 }
0x1009   : > { %14755 = dma.done.wait (!%p14128_p8), %s10786_s10, 1024  }
0x100a   : > { %14757 = vsyncadd (!%p14128_p8), %s10786_s10, 4294966272  ;;  %p87_p5 = scmp.ge.s32.totalorder %s15032_s11, 4   ;;  %s18645_s28 = smov %s14764_s1 }
0x100b   : > { %s18646_s1 = smov %s14768_s2  ;;  %s18647_s2 = smov %s15043_s18 }
0x100c   : > { %s18648_s7 = smov %s15032_s11  ;;  %89 = sbr.rel (!%p87_p5) target bundleno = 73 (0x49), region = 260 }
0x1013   :  { %10791 = vsyncpa [#allocation3], 1 }
0x1014   :  { %10793 = vsyncpa [#allocation3 + $0x1], 1 }
0x1015   :  { %10794 = vsyncpa [#allocation5], 1 }
0x1016   :  { %10796 = vsyncpa [#allocation5 + $0x1], 1 }

</bundles_post_ra>
